<compile_context>
chip_gen: v5e
topology: v5e:2x2
jax: 0.10.0
libtpu: 0.0.40
codegen_flags: <defaults>
</compile_context>

<pallas_src>
import math
import functools

import jax
import jax.numpy as jnp
from jax.experimental import pallas as pl
from jax.experimental.pallas import tpu as pltpu


# ----------------------------------------------------------------------------
# small helpers (pure jnp, used inside kernels)
# ----------------------------------------------------------------------------
def _full_spec(shape):
    """BlockSpec covering the full array (single block per grid step)."""
    return pl.BlockSpec(shape, lambda i, _n=len(shape): (0,) * _n)


def _layer_norm(x, g, b, eps=1e-6):
    mean = jnp.mean(x, axis=-1, keepdims=True)
    var = jnp.mean(jnp.square(x - mean), axis=-1, keepdims=True)
    return (x - mean) * jax.lax.rsqrt(var + eps) * g + b


def _gelu(x):
    # TODO(synk): tanh-approx GELU (torch nn.GELU default is exact erf); the
    # tanh form routes to the EUP and differs by <1e-3 in activation value.
    c = math.sqrt(2.0 / math.pi)
    return 0.5 * x * (1.0 + jnp.tanh(c * (x + 0.044715 * x * x * x)))


# ----------------------------------------------------------------------------
# Pallas kernels
# ----------------------------------------------------------------------------
def _patch_embed_kernel(x_ref, w_ref, b_ref, o_ref):
    # Conv2d(kernel=stride=patch) == patchify + matmul
    o_ref[...] = (
        jnp.dot(x_ref[...].astype(jnp.bfloat16), w_ref[...],
                preferred_element_type=jnp.float32)
        + b_ref[...]
    )


def _blocks_kernel(x_ref, ln1_g, ln1_b, qkv_w, qkv_b, proj_w, proj_b,
                   ln2_g, ln2_b, fc1_w, fc1_b, fc2_w, fc2_b, o_ref,
                   *, num_heads, head_dim, scale):
    """All pre-norm ViT blocks for one batch element.

    grid = (batch, depth); the token tile lives in the (resident) output VMEM
    block across the whole depth axis, weights are indexed by the depth grid
    axis (prefetched while the previous layer computes).
    """
    f32, bf16 = jnp.float32, jnp.bfloat16
    D = num_heads * head_dim
    d = pl.program_id(1)

    # first layer: seed the resident token tile from the HBM input
    @pl.when(d == 0)
    def _():
        o_ref[0] = x_ref[0]

    x = o_ref[0]                                                  # (S, D) f32

    # ---- LN1 + fused qkv projection (one big lane-dense matmul) ------------
    h = _layer_norm(x, ln1_g[0], ln1_b[0])
    qkv = jnp.dot(h.astype(bf16), qkv_w[0],
                  preferred_element_type=f32) + qkv_b[0]          # (S, 3D) f32

    # ---- multi-head self-attention (Dh = 128 => 128-aligned lane slices) ---
    heads = []
    for hd in range(num_heads):
        q = qkv[:, hd * head_dim:(hd + 1) * head_dim] * scale
        k = qkv[:, D + hd * head_dim:D + (hd + 1) * head_dim]
        v = qkv[:, 2 * D + hd * head_dim:2 * D + (hd + 1) * head_dim]
        # scores: contract the head dim directly (no explicit transpose of k)
        s = jax.lax.dot_general(q.astype(bf16), k.astype(bf16),
                                (((1,), (1,)), ((), ())),
                                preferred_element_type=f32)       # (S, S) f32
        s = s - jnp.max(s, axis=-1, keepdims=True)
        p = jnp.exp(s)
        p = p * pl.reciprocal(jnp.sum(p, axis=-1, keepdims=True), approx=True)
        heads.append(jnp.dot(p.astype(bf16), v.astype(bf16),
                             preferred_element_type=f32))         # (S, Dh)
    attn = heads[0] if num_heads == 1 else jnp.concatenate(heads, axis=-1)

    attn = jnp.dot(attn.astype(bf16), proj_w[0],
                   preferred_element_type=f32) + proj_b[0]
    x = x + attn                                                  # residual 1

    # ---- LN2 + MLP ----------------------------------------------------------
    h2 = _layer_norm(x, ln2_g[0], ln2_b[0])
    h2 = jnp.dot(h2.astype(bf16), fc1_w[0],
                 preferred_element_type=f32) + fc1_b[0]
    h2 = _gelu(h2)
    h2 = jnp.dot(h2.astype(bf16), fc2_w[0],
                 preferred_element_type=f32) + fc2_b[0]
    o_ref[0] = x + h2                                             # residual 2


def _pool_head_kernel(x_ref, g_ref, b_ref, w_ref, hb_ref, o_ref):
    """global-pool (drop cls) + fc_norm + head + L2 normalize, fused."""
    x = x_ref[...]                                        # (B, S, D) f32
    pooled = jnp.mean(x[:, 1:, :], axis=1)                # (B, D), cls excluded
    pooled = _layer_norm(pooled, g_ref[...], b_ref[...])
    y = jnp.dot(pooled.astype(jnp.bfloat16), w_ref[...],
                preferred_element_type=jnp.float32) + hb_ref[...]   # (B, Cpad)
    nrm = jnp.sqrt(jnp.sum(y * y, axis=-1, keepdims=True))
    o_ref[...] = y / jnp.maximum(nrm, 1e-12)              # F.normalize(dim=1)


# ----------------------------------------------------------------------------
# pallas_call wrappers
# ----------------------------------------------------------------------------
def patch_embed(xp, w, b):
    M, K = xp.shape
    N = w.shape[1]
    return pl.pallas_call(
        _patch_embed_kernel,
        grid=(1,),
        in_specs=[_full_spec((M, K)), _full_spec((K, N)), _full_spec((1, N))],
        out_specs=_full_spec((M, N)),
        out_shape=jax.ShapeDtypeStruct((M, N), jnp.float32),
    )(xp, w, b)


def transformer_blocks(tokens, blocks, *, num_heads):
    """All ViT blocks in one fused pallas_call, grid = (batch, depth)."""
    B, S, D = tokens.shape
    depth = blocks["qkv_w"].shape[0]
    hidden = blocks["fc1_w"].shape[2]
    Dh = D // num_heads

    tok_spec = pl.BlockSpec((1, S, D), lambda b, d: (b, 0, 0))

    def w_spec(trailing):
        # per-layer weight block: leading depth dim indexed by the grid's
        # depth axis -> prefetched one layer ahead by the pipeline.
        return pl.BlockSpec((1,) + trailing,
                            lambda b, d, _n=len(trailing): (d,) + (0,) * _n)

    kern = functools.partial(_blocks_kernel, num_heads=num_heads,
                             head_dim=Dh, scale=Dh ** -0.5)
    return pl.pallas_call(
        kern,
        grid=(B, depth),
        in_specs=[tok_spec,
                  w_spec((1, D)), w_spec((1, D)),            # ln1
                  w_spec((D, 3 * D)), w_spec((1, 3 * D)),    # qkv
                  w_spec((D, D)), w_spec((1, D)),            # proj
                  w_spec((1, D)), w_spec((1, D)),            # ln2
                  w_spec((D, hidden)), w_spec((1, hidden)),  # fc1
                  w_spec((hidden, D)), w_spec((1, D))],      # fc2
        out_specs=tok_spec,
        out_shape=jax.ShapeDtypeStruct((B, S, D), jnp.float32),
        compiler_params=pltpu.CompilerParams(
            dimension_semantics=("parallel", "arbitrary")),
    )(tokens,
      blocks["ln1_g"], blocks["ln1_b"], blocks["qkv_w"], blocks["qkv_b"],
      blocks["proj_w"], blocks["proj_b"], blocks["ln2_g"], blocks["ln2_b"],
      blocks["fc1_w"], blocks["fc1_b"], blocks["fc2_w"], blocks["fc2_b"])


def pool_head(tokens, g, b, head_w, head_b):
    B, S, D = tokens.shape
    Cpad = head_w.shape[1]
    return pl.pallas_call(
        _pool_head_kernel,
        grid=(1,),
        in_specs=[_full_spec((B, S, D)), _full_spec((1, D)), _full_spec((1, D)),
                  _full_spec((D, Cpad)), _full_spec((1, Cpad))],
        out_specs=_full_spec((B, Cpad)),
        out_shape=jax.ShapeDtypeStruct((B, Cpad), jnp.float32),
    )(tokens, g, b, head_w, head_b)


# ----------------------------------------------------------------------------
# parameters (deterministic synthetic init — no checkpoint load)
# ----------------------------------------------------------------------------
def init_params(key, *, in_chans, patch, embed_dim, depth, num_heads, mlp_ratio,
                num_classes, num_tokens, class_pad):
    del num_heads
    keys = jax.random.split(key, 4 + depth)

    def nrm(k, shape, dtype=jnp.float32):
        return (jax.random.normal(k, shape, jnp.float32) * 0.02).astype(dtype)

    hidden = int(embed_dim * mlp_ratio)
    # head: pad classes 16 -> 128 with zero weights/bias so the padded logits
    # are exactly 0 and the in-kernel L2 norm equals the norm over 16 classes.
    head_w = nrm(keys[3], (embed_dim, num_classes))
    head_w = jnp.pad(head_w, ((0, 0), (0, class_pad - num_classes)))

    qkv_w, proj_w, fc1_w, fc2_w = [], [], [], []
    for d in range(depth):
        bk = jax.random.split(keys[4 + d], 4)
        qkv_w.append(nrm(bk[0], (embed_dim, 3 * embed_dim), jnp.bfloat16))
        proj_w.append(nrm(bk[1], (embed_dim, embed_dim), jnp.bfloat16))
        fc1_w.append(nrm(bk[2], (embed_dim, hidden), jnp.bfloat16))
        fc2_w.append(nrm(bk[3], (hidden, embed_dim), jnp.bfloat16))

    return {
        "patch_w": nrm(keys[0], (in_chans * patch * patch, embed_dim), jnp.bfloat16),
        "patch_b": jnp.zeros((1, embed_dim), jnp.float32),
        "cls_token": nrm(keys[1], (1, 1, embed_dim)),
        "pos_embed": nrm(keys[2], (1, num_tokens, embed_dim)),
        "fc_norm_g": jnp.ones((1, embed_dim), jnp.float32),
        "fc_norm_b": jnp.zeros((1, embed_dim), jnp.float32),
        "head_w": head_w.astype(jnp.bfloat16),
        "head_b": jnp.zeros((1, class_pad), jnp.float32),
        # all per-layer weights stacked along a leading depth axis so the fused
        # block kernel can index them with the depth grid coordinate.
        "blocks": dict(
            ln1_g=jnp.ones((depth, 1, embed_dim), jnp.float32),
            ln1_b=jnp.zeros((depth, 1, embed_dim), jnp.float32),
            qkv_w=jnp.stack(qkv_w),
            qkv_b=jnp.zeros((depth, 1, 3 * embed_dim), jnp.float32),
            proj_w=jnp.stack(proj_w),
            proj_b=jnp.zeros((depth, 1, embed_dim), jnp.float32),
            ln2_g=jnp.ones((depth, 1, embed_dim), jnp.float32),
            ln2_b=jnp.zeros((depth, 1, embed_dim), jnp.float32),
            fc1_w=jnp.stack(fc1_w),
            fc1_b=jnp.zeros((depth, 1, hidden), jnp.float32),
            fc2_w=jnp.stack(fc2_w),
            fc2_b=jnp.zeros((depth, 1, embed_dim), jnp.float32),
        ),
    }


# ----------------------------------------------------------------------------
# forward pass (ViT w/ global pool -> head -> L2 normalize)
# ----------------------------------------------------------------------------
def pipeline_forward(params, x, *, patch, num_heads, num_classes):
    B, C, H, W = x.shape
    nh, nw = H // patch, W // patch
    N = nh * nw
    D = params["pos_embed"].shape[-1]

    # patch embed: patchify (flatten order C, ph, pw == Conv2d weight) + matmul
    xp = x.reshape(B, C, nh, patch, nw, patch)
    xp = xp.transpose(0, 2, 4, 1, 3, 5).reshape(B * N, C * patch * patch)
    tokens = patch_embed(xp, params["patch_w"], params["patch_b"]).reshape(B, N, D)

    # cls token + positional embedding (tiny glue in plain JAX)
    cls = jnp.broadcast_to(params["cls_token"], (B, 1, D))
    tokens = jnp.concatenate([cls, tokens], axis=1) + params["pos_embed"]

    # all transformer blocks fused in ONE pallas_call (dropout / drop_path are
    # identity in eval); tokens stay resident in VMEM across every layer.
    tokens = transformer_blocks(tokens, params["blocks"], num_heads=num_heads)

    # global pool (no cls) + fc_norm + head + F.normalize(dim=1), fused
    out = pool_head(tokens, params["fc_norm_g"], params["fc_norm_b"],
                    params["head_w"], params["head_b"])
    return out[:, :num_classes]


# ----------------------------------------------------------------------------
if __name__ == "__main__":
    # small, lane-dense ViT config consistent with the forward-pass structure
    B, C, H, W = 2, 3, 32, 32
    PATCH = 4
    EMBED_DIM = 256          # lane-dense (2 x 128)
    DEPTH = 2
    NUM_HEADS = 2            # head_dim = 128 -> all head slices 128-aligned
    MLP_RATIO = 4.0
    NUM_CLASSES = 16
    CLASS_PAD = 128          # pad head output to a full lane width
    NUM_TOKENS = (H // PATCH) * (W // PATCH) + 1     # 64 patches + cls = 65

    root = jax.random.PRNGKey(0)
    k_x, k_p = jax.random.split(root)
    x = jax.random.normal(k_x, (B, C, H, W), jnp.float32)   # NCHW like PyTorch
    params = init_params(
        k_p, in_chans=C, patch=PATCH, embed_dim=EMBED_DIM, depth=DEPTH,
        num_heads=NUM_HEADS, mlp_ratio=MLP_RATIO, num_classes=NUM_CLASSES,
        num_tokens=NUM_TOKENS, class_pad=CLASS_PAD,
    )

    fwd = jax.jit(functools.partial(pipeline_forward, patch=PATCH,
                                    num_heads=NUM_HEADS,
                                    num_classes=NUM_CLASSES))
    out = jax.block_until_ready(fwd(params, x))

    assert out.shape == (B, NUM_CLASSES), out.shape
    assert bool(jnp.all(jnp.isfinite(out)))
    # rows are L2-normalized
    assert bool(jnp.allclose(jnp.sum(out * out, axis=1), 1.0, atol=1e-4))
    print("KERNEL_OK")
</pallas_src>

<mosaic_0001>
module attributes {stable_mosaic.version = 11 : i64} {
  func.func @_blocks_kernel(%arg0: i32, %arg1: i32, %arg2: memref<1x65x256xf32, #tpu.memory_space<vmem>>, %arg3: memref<1x1x256xf32, #tpu.memory_space<vmem>>, %arg4: memref<1x1x256xf32, #tpu.memory_space<vmem>>, %arg5: memref<1x256x768xbf16, #tpu.memory_space<vmem>>, %arg6: memref<1x1x768xf32, #tpu.memory_space<vmem>>, %arg7: memref<1x256x256xbf16, #tpu.memory_space<vmem>>, %arg8: memref<1x1x256xf32, #tpu.memory_space<vmem>>, %arg9: memref<1x1x256xf32, #tpu.memory_space<vmem>>, %arg10: memref<1x1x256xf32, #tpu.memory_space<vmem>>, %arg11: memref<1x256x1024xbf16, #tpu.memory_space<vmem>>, %arg12: memref<1x1x1024xf32, #tpu.memory_space<vmem>>, %arg13: memref<1x1024x256xbf16, #tpu.memory_space<vmem>>, %arg14: memref<1x1x256xf32, #tpu.memory_space<vmem>>, %arg15: memref<1x65x256xf32, #tpu.memory_space<vmem>>) attributes {dimension_semantics = [#tpu.dimension_semantics<parallel>, #tpu.dimension_semantics<arbitrary>], iteration_bounds = array<i64: 2, 2>, scalar_prefetch = 0 : i64, scratch_operands = 0 : i64, tpu.core_type = #tpu.core_type<tc>, window_params = [{transform_indices = @transform_0, window_bounds = array<i64: 1, 65, 256>}, {transform_indices = @transform_1, window_bounds = array<i64: 1, 1, 256>}, {transform_indices = @transform_2, window_bounds = array<i64: 1, 1, 256>}, {transform_indices = @transform_3, window_bounds = array<i64: 1, 256, 768>}, {transform_indices = @transform_4, window_bounds = array<i64: 1, 1, 768>}, {transform_indices = @transform_5, window_bounds = array<i64: 1, 256, 256>}, {transform_indices = @transform_6, window_bounds = array<i64: 1, 1, 256>}, {transform_indices = @transform_7, window_bounds = array<i64: 1, 1, 256>}, {transform_indices = @transform_8, window_bounds = array<i64: 1, 1, 256>}, {transform_indices = @transform_9, window_bounds = array<i64: 1, 256, 1024>}, {transform_indices = @transform_10, window_bounds = array<i64: 1, 1, 1024>}, {transform_indices = @transform_11, window_bounds = array<i64: 1, 1024, 256>}, {transform_indices = @transform_12, window_bounds = array<i64: 1, 1, 256>}, {transform_indices = @transform_13, window_bounds = array<i64: 1, 65, 256>}]} {
    %c0_i32 = arith.constant 0 : i32
    %0 = arith.cmpi eq, %arg1, %c0_i32 : i32
    %1 = arith.extui %0 : i1 to i32
    %c0_i32_0 = arith.constant 0 : i32
    %2 = arith.cmpi ne, %1, %c0_i32_0 : i32
    scf.if %2 {
      %c0_69 = arith.constant 0 : index
      %c0_70 = arith.constant 0 : index
      %c0_71 = arith.constant 0 : index
      %150 = vector.load %arg2[%c0_69, %c0_70, %c0_71] : memref<1x65x256xf32, #tpu.memory_space<vmem>>, vector<1x65x256xf32>
      %151 = vector.shape_cast %150 : vector<1x65x256xf32> to vector<65x256xf32>
      %c0_72 = arith.constant 0 : index
      %c0_73 = arith.constant 0 : index
      %c0_74 = arith.constant 0 : index
      %152 = vector.load %arg15[%c0_72, %c0_73, %c0_74] : memref<1x65x256xf32, #tpu.memory_space<vmem>>, vector<1x65x256xf32>
      %153 = vector.shape_cast %152 : vector<1x65x256xf32> to vector<65x256xf32>
      %154 = vector.shape_cast %151 : vector<65x256xf32> to vector<1x65x256xf32>
      tpu.vector_store %arg15[%c0_72, %c0_73, %c0_74], %154 {strides = array<i32>} : memref<1x65x256xf32, #tpu.memory_space<vmem>>, vector<1x65x256xf32>,
    } else {
    }
    %c0 = arith.constant 0 : index
    %c0_1 = arith.constant 0 : index
    %c0_2 = arith.constant 0 : index
    %3 = vector.load %arg15[%c0, %c0_1, %c0_2] : memref<1x65x256xf32, #tpu.memory_space<vmem>>, vector<1x65x256xf32>
    %4 = vector.shape_cast %3 : vector<1x65x256xf32> to vector<65x256xf32>
    %c0_3 = arith.constant 0 : index
    %c0_4 = arith.constant 0 : index
    %c0_5 = arith.constant 0 : index
    %5 = vector.load %arg3[%c0_3, %c0_4, %c0_5] : memref<1x1x256xf32, #tpu.memory_space<vmem>>, vector<1x1x256xf32>
    %6 = vector.shape_cast %5 : vector<1x1x256xf32> to vector<1x256xf32>
    %c0_6 = arith.constant 0 : index
    %c0_7 = arith.constant 0 : index
    %c0_8 = arith.constant 0 : index
    %7 = vector.load %arg4[%c0_6, %c0_7, %c0_8] : memref<1x1x256xf32, #tpu.memory_space<vmem>>, vector<1x1x256xf32>
    %8 = vector.shape_cast %7 : vector<1x1x256xf32> to vector<1x256xf32>
    %cst = arith.constant dense<0.000000e+00> : vector<65xf32>
    %9 = vector.multi_reduction <add>, %4, %cst [1] : vector<65x256xf32> to vector<65xf32>
    %10 = vector.shape_cast %9 : vector<65xf32> to vector<65x1xf32>
    %cst_9 = arith.constant 2.560000e+02 : f32
    %11 = vector.broadcast %cst_9 : f32 to vector<65x1xf32>
    %12 = arith.divf %10, %11 : vector<65x1xf32>
    %13 = vector.broadcast %12 : vector<65x1xf32> to vector<65x256xf32>
    %14 = arith.subf %4, %13 : vector<65x256xf32>
    %15 = arith.mulf %14, %14 : vector<65x256xf32>
    %cst_10 = arith.constant dense<0.000000e+00> : vector<65xf32>
    %16 = vector.multi_reduction <add>, %15, %cst_10 [1] : vector<65x256xf32> to vector<65xf32>
    %17 = vector.shape_cast %16 : vector<65xf32> to vector<65x1xf32>
    %cst_11 = arith.constant 2.560000e+02 : f32
    %18 = vector.broadcast %cst_11 : f32 to vector<65x1xf32>
    %19 = arith.divf %17, %18 : vector<65x1xf32>
    %20 = vector.broadcast %12 : vector<65x1xf32> to vector<65x256xf32>
    %21 = arith.subf %4, %20 : vector<65x256xf32>
    %cst_12 = arith.constant 9.99999997E-7 : f32
    %22 = vector.broadcast %cst_12 : f32 to vector<65x1xf32>
    %23 = arith.addf %19, %22 : vector<65x1xf32>
    %24 = math.rsqrt %23 : vector<65x1xf32>
    %25 = vector.broadcast %24 : vector<65x1xf32> to vector<65x256xf32>
    %26 = arith.mulf %21, %25 : vector<65x256xf32>
    %27 = vector.broadcast %6 : vector<1x256xf32> to vector<65x256xf32>
    %28 = arith.mulf %26, %27 : vector<65x256xf32>
    %29 = vector.broadcast %8 : vector<1x256xf32> to vector<65x256xf32>
    %30 = arith.addf %28, %29 : vector<65x256xf32>
    %31 = arith.truncf %30 : vector<65x256xf32> to vector<65x256xbf16>
    %c0_13 = arith.constant 0 : index
    %c0_14 = arith.constant 0 : index
    %c0_15 = arith.constant 0 : index
    %32 = vector.load %arg5[%c0_13, %c0_14, %c0_15] : memref<1x256x768xbf16, #tpu.memory_space<vmem>>, vector<1x256x768xbf16>
    %33 = vector.shape_cast %32 : vector<1x256x768xbf16> to vector<256x768xbf16>
    %cst_16 = arith.constant dense<0.000000e+00> : vector<65x768xf32>
    %34 = tpu.matmul %31, %33, %cst_16 {dimension_numbers = #tpu.dot_dimension_numbers<[1], [0], [0], [1], [0, 0, 1, 1], [], []>} : vector<65x256xbf16>, vector<256x768xbf16>, vector<65x768xf32> -> vector<65x768xf32>
    %c0_17 = arith.constant 0 : index
    %c0_18 = arith.constant 0 : index
    %c0_19 = arith.constant 0 : index
    %35 = vector.load %arg6[%c0_17, %c0_18, %c0_19] : memref<1x1x768xf32, #tpu.memory_space<vmem>>, vector<1x1x768xf32>
    %36 = vector.shape_cast %35 : vector<1x1x768xf32> to vector<1x768xf32>
    %37 = vector.broadcast %36 : vector<1x768xf32> to vector<65x768xf32>
    %38 = arith.addf %34, %37 : vector<65x768xf32>
    %39 = vector.extract_strided_slice %38 {offsets = [0, 0], sizes = [65, 128], strides = [1, 1]} : vector<65x768xf32> to vector<65x128xf32>
    %cst_20 = arith.constant 0.0883883461 : f32
    %40 = vector.broadcast %cst_20 : f32 to vector<65x128xf32>
    %41 = arith.mulf %39, %40 : vector<65x128xf32>
    %42 = vector.extract_strided_slice %38 {offsets = [0, 256], sizes = [65, 128], strides = [1, 1]} : vector<65x768xf32> to vector<65x128xf32>
    %43 = vector.extract_strided_slice %38 {offsets = [0, 512], sizes = [65, 128], strides = [1, 1]} : vector<65x768xf32> to vector<65x128xf32>
    %44 = arith.truncf %41 : vector<65x128xf32> to vector<65x128xbf16>
    %45 = arith.truncf %42 : vector<65x128xf32> to vector<65x128xbf16>
    %cst_21 = arith.constant dense<0.000000e+00> : vector<65x65xf32>
    %46 = tpu.matmul %44, %45, %cst_21 {dimension_numbers = #tpu.dot_dimension_numbers<[1], [1], [0], [0], [0, 0, 1, 0], [], []>} : vector<65x128xbf16>, vector<65x128xbf16>, vector<65x65xf32> -> vector<65x65xf32>
    %cst_22 = arith.constant dense<0xFF800000> : vector<65xf32>
    %47 = vector.multi_reduction <maximumf>, %46, %cst_22 [1] : vector<65x65xf32> to vector<65xf32>
    %48 = vector.shape_cast %47 : vector<65xf32> to vector<65x1xf32>
    %49 = vector.broadcast %48 : vector<65x1xf32> to vector<65x65xf32>
    %50 = arith.subf %46, %49 : vector<65x65xf32>
    %51 = math.exp %50 : vector<65x65xf32>
    %cst_23 = arith.constant dense<0.000000e+00> : vector<65xf32>
    %52 = vector.multi_reduction <add>, %51, %cst_23 [1] : vector<65x65xf32> to vector<65xf32>
    %53 = vector.shape_cast %52 : vector<65xf32> to vector<65x1xf32>
    %54 = tpu.reciprocal %53 {approx = true} : vector<65x1xf32> -> vector<65x1xf32>
    %55 = vector.broadcast %54 : vector<65x1xf32> to vector<65x65xf32>
    %56 = arith.mulf %51, %55 : vector<65x65xf32>
    %57 = arith.truncf %56 : vector<65x65xf32> to vector<65x65xbf16>
    %58 = arith.truncf %43 : vector<65x128xf32> to vector<65x128xbf16>
    %cst_24 = arith.constant dense<0.000000e+00> : vector<65x128xf32>
    %59 = tpu.matmul %57, %58, %cst_24 {dimension_numbers = #tpu.dot_dimension_numbers<[1], [0], [0], [1], [0, 0, 1, 1], [], []>} : vector<65x65xbf16>, vector<65x128xbf16>, vector<65x128xf32> -> vector<65x128xf32>
    %60 = vector.extract_strided_slice %38 {offsets = [0, 128], sizes = [65, 128], strides = [1, 1]} : vector<65x768xf32> to vector<65x128xf32>
    %cst_25 = arith.constant 0.0883883461 : f32
    %61 = vector.broadcast %cst_25 : f32 to vector<65x128xf32>
    %62 = arith.mulf %60, %61 : vector<65x128xf32>
    %63 = vector.extract_strided_slice %38 {offsets = [0, 384], sizes = [65, 128], strides = [1, 1]} : vector<65x768xf32> to vector<65x128xf32>
    %64 = vector.extract_strided_slice %38 {offsets = [0, 640], sizes = [65, 128], strides = [1, 1]} : vector<65x768xf32> to vector<65x128xf32>
    %65 = arith.truncf %62 : vector<65x128xf32> to vector<65x128xbf16>
    %66 = arith.truncf %63 : vector<65x128xf32> to vector<65x128xbf16>
    %cst_26 = arith.constant dense<0.000000e+00> : vector<65x65xf32>
    %67 = tpu.matmul %65, %66, %cst_26 {dimension_numbers = #tpu.dot_dimension_numbers<[1], [1], [0], [0], [0, 0, 1, 0], [], []>} : vector<65x128xbf16>, vector<65x128xbf16>, vector<65x65xf32> -> vector<65x65xf32>
    %cst_27 = arith.constant dense<0xFF800000> : vector<65xf32>
    %68 = vector.multi_reduction <maximumf>, %67, %cst_27 [1] : vector<65x65xf32> to vector<65xf32>
    %69 = vector.shape_cast %68 : vector<65xf32> to vector<65x1xf32>
    %70 = vector.broadcast %69 : vector<65x1xf32> to vector<65x65xf32>
    %71 = arith.subf %67, %70 : vector<65x65xf32>
    %72 = math.exp %71 : vector<65x65xf32>
    %cst_28 = arith.constant dense<0.000000e+00> : vector<65xf32>
    %73 = vector.multi_reduction <add>, %72, %cst_28 [1] : vector<65x65xf32> to vector<65xf32>
    %74 = vector.shape_cast %73 : vector<65xf32> to vector<65x1xf32>
    %75 = tpu.reciprocal %74 {approx = true} : vector<65x1xf32> -> vector<65x1xf32>
    %76 = vector.broadcast %75 : vector<65x1xf32> to vector<65x65xf32>
    %77 = arith.mulf %72, %76 : vector<65x65xf32>
    %78 = arith.truncf %77 : vector<65x65xf32> to vector<65x65xbf16>
    %79 = arith.truncf %64 : vector<65x128xf32> to vector<65x128xbf16>
    %cst_29 = arith.constant dense<0.000000e+00> : vector<65x128xf32>
    %80 = tpu.matmul %78, %79, %cst_29 {dimension_numbers = #tpu.dot_dimension_numbers<[1], [0], [0], [1], [0, 0, 1, 1], [], []>} : vector<65x65xbf16>, vector<65x128xbf16>, vector<65x128xf32> -> vector<65x128xf32>
    %81 = tpu.concatenate %59, %80 in 1 : vector<65x128xf32>, vector<65x128xf32> -> vector<65x256xf32>
    %82 = arith.truncf %81 : vector<65x256xf32> to vector<65x256xbf16>
    %c0_30 = arith.constant 0 : index
    %c0_31 = arith.constant 0 : index
    %c0_32 = arith.constant 0 : index
    %83 = vector.load %arg7[%c0_30, %c0_31, %c0_32] : memref<1x256x256xbf16, #tpu.memory_space<vmem>>, vector<1x256x256xbf16>
    %84 = vector.shape_cast %83 : vector<1x256x256xbf16> to vector<256x256xbf16>
    %cst_33 = arith.constant dense<0.000000e+00> : vector<65x256xf32>
    %85 = tpu.matmul %82, %84, %cst_33 {dimension_numbers = #tpu.dot_dimension_numbers<[1], [0], [0], [1], [0, 0, 1, 1], [], []>} : vector<65x256xbf16>, vector<256x256xbf16>, vector<65x256xf32> -> vector<65x256xf32>
    %c0_34 = arith.constant 0 : index
    %c0_35 = arith.constant 0 : index
    %c0_36 = arith.constant 0 : index
    %86 = vector.load %arg8[%c0_34, %c0_35, %c0_36] : memref<1x1x256xf32, #tpu.memory_space<vmem>>, vector<1x1x256xf32>
    %87 = vector.shape_cast %86 : vector<1x1x256xf32> to vector<1x256xf32>
    %88 = vector.broadcast %87 : vector<1x256xf32> to vector<65x256xf32>
    %89 = arith.addf %85, %88 : vector<65x256xf32>
    %90 = arith.addf %4, %89 : vector<65x256xf32>
    %c0_37 = arith.constant 0 : index
    %c0_38 = arith.constant 0 : index
    %c0_39 = arith.constant 0 : index
    %91 = vector.load %arg9[%c0_37, %c0_38, %c0_39] : memref<1x1x256xf32, #tpu.memory_space<vmem>>, vector<1x1x256xf32>
    %92 = vector.shape_cast %91 : vector<1x1x256xf32> to vector<1x256xf32>
    %c0_40 = arith.constant 0 : index
    %c0_41 = arith.constant 0 : index
    %c0_42 = arith.constant 0 : index
    %93 = vector.load %arg10[%c0_40, %c0_41, %c0_42] : memref<1x1x256xf32, #tpu.memory_space<vmem>>, vector<1x1x256xf32>
    %94 = vector.shape_cast %93 : vector<1x1x256xf32> to vector<1x256xf32>
    %cst_43 = arith.constant dense<0.000000e+00> : vector<65xf32>
    %95 = vector.multi_reduction <add>, %90, %cst_43 [1] : vector<65x256xf32> to vector<65xf32>
    %96 = vector.shape_cast %95 : vector<65xf32> to vector<65x1xf32>
    %cst_44 = arith.constant 2.560000e+02 : f32
    %97 = vector.broadcast %cst_44 : f32 to vector<65x1xf32>
    %98 = arith.divf %96, %97 : vector<65x1xf32>
    %99 = vector.broadcast %98 : vector<65x1xf32> to vector<65x256xf32>
    %100 = arith.subf %90, %99 : vector<65x256xf32>
    %101 = arith.mulf %100, %100 : vector<65x256xf32>
    %cst_45 = arith.constant dense<0.000000e+00> : vector<65xf32>
    %102 = vector.multi_reduction <add>, %101, %cst_45 [1] : vector<65x256xf32> to vector<65xf32>
    %103 = vector.shape_cast %102 : vector<65xf32> to vector<65x1xf32>
    %cst_46 = arith.constant 2.560000e+02 : f32
    %104 = vector.broadcast %cst_46 : f32 to vector<65x1xf32>
    %105 = arith.divf %103, %104 : vector<65x1xf32>
    %106 = vector.broadcast %98 : vector<65x1xf32> to vector<65x256xf32>
    %107 = arith.subf %90, %106 : vector<65x256xf32>
    %cst_47 = arith.constant 9.99999997E-7 : f32
    %108 = vector.broadcast %cst_47 : f32 to vector<65x1xf32>
    %109 = arith.addf %105, %108 : vector<65x1xf32>
    %110 = math.rsqrt %109 : vector<65x1xf32>
    %111 = vector.broadcast %110 : vector<65x1xf32> to vector<65x256xf32>
    %112 = arith.mulf %107, %111 : vector<65x256xf32>
    %113 = vector.broadcast %92 : vector<1x256xf32> to vector<65x256xf32>
    %114 = arith.mulf %112, %113 : vector<65x256xf32>
    %115 = vector.broadcast %94 : vector<1x256xf32> to vector<65x256xf32>
    %116 = arith.addf %114, %115 : vector<65x256xf32>
    %117 = arith.truncf %116 : vector<65x256xf32> to vector<65x256xbf16>
    %c0_48 = arith.constant 0 : index
    %c0_49 = arith.constant 0 : index
    %c0_50 = arith.constant 0 : index
    %118 = vector.load %arg11[%c0_48, %c0_49, %c0_50] : memref<1x256x1024xbf16, #tpu.memory_space<vmem>>, vector<1x256x1024xbf16>
    %119 = vector.shape_cast %118 : vector<1x256x1024xbf16> to vector<256x1024xbf16>
    %cst_51 = arith.constant dense<0.000000e+00> : vector<65x1024xf32>
    %120 = tpu.matmul %117, %119, %cst_51 {dimension_numbers = #tpu.dot_dimension_numbers<[1], [0], [0], [1], [0, 0, 1, 1], [], []>} : vector<65x256xbf16>, vector<256x1024xbf16>, vector<65x1024xf32> -> vector<65x1024xf32>
    %c0_52 = arith.constant 0 : index
    %c0_53 = arith.constant 0 : index
    %c0_54 = arith.constant 0 : index
    %121 = vector.load %arg12[%c0_52, %c0_53, %c0_54] : memref<1x1x1024xf32, #tpu.memory_space<vmem>>, vector<1x1x1024xf32>
    %122 = vector.shape_cast %121 : vector<1x1x1024xf32> to vector<1x1024xf32>
    %123 = vector.broadcast %122 : vector<1x1024xf32> to vector<65x1024xf32>
    %124 = arith.addf %120, %123 : vector<65x1024xf32>
    %cst_55 = arith.constant 5.000000e-01 : f32
    %125 = vector.broadcast %cst_55 : f32 to vector<65x1024xf32>
    %126 = arith.mulf %125, %124 : vector<65x1024xf32>
    %cst_56 = arith.constant 4.471500e-02 : f32
    %127 = vector.broadcast %cst_56 : f32 to vector<65x1024xf32>
    %128 = arith.mulf %127, %124 : vector<65x1024xf32>
    %129 = arith.mulf %128, %124 : vector<65x1024xf32>
    %130 = arith.mulf %129, %124 : vector<65x1024xf32>
    %131 = arith.addf %124, %130 : vector<65x1024xf32>
    %cst_57 = arith.constant 0.797884583 : f32
    %132 = vector.broadcast %cst_57 : f32 to vector<65x1024xf32>
    %133 = arith.mulf %132, %131 : vector<65x1024xf32>
    %134 = math.tanh %133 : vector<65x1024xf32>
    %cst_58 = arith.constant 1.000000e+00 : f32
    %135 = vector.broadcast %cst_58 : f32 to vector<65x1024xf32>
    %136 = arith.addf %135, %134 : vector<65x1024xf32>
    %137 = arith.mulf %126, %136 : vector<65x1024xf32>
    %138 = arith.truncf %137 : vector<65x1024xf32> to vector<65x1024xbf16>
    %c0_59 = arith.constant 0 : index
    %c0_60 = arith.constant 0 : index
    %c0_61 = arith.constant 0 : index
    %139 = vector.load %arg13[%c0_59, %c0_60, %c0_61] : memref<1x1024x256xbf16, #tpu.memory_space<vmem>>, vector<1x1024x256xbf16>
    %140 = vector.shape_cast %139 : vector<1x1024x256xbf16> to vector<1024x256xbf16>
    %cst_62 = arith.constant dense<0.000000e+00> : vector<65x256xf32>
    %141 = tpu.matmul %138, %140, %cst_62 {dimension_numbers = #tpu.dot_dimension_numbers<[1], [0], [0], [1], [0, 0, 1, 1], [], []>} : vector<65x1024xbf16>, vector<1024x256xbf16>, vector<65x256xf32> -> vector<65x256xf32>
    %c0_63 = arith.constant 0 : index
    %c0_64 = arith.constant 0 : index
    %c0_65 = arith.constant 0 : index
    %142 = vector.load %arg14[%c0_63, %c0_64, %c0_65] : memref<1x1x256xf32, #tpu.memory_space<vmem>>, vector<1x1x256xf32>
    %143 = vector.shape_cast %142 : vector<1x1x256xf32> to vector<1x256xf32>
    %144 = vector.broadcast %143 : vector<1x256xf32> to vector<65x256xf32>
    %145 = arith.addf %141, %144 : vector<65x256xf32>
    %146 = arith.addf %90, %145 : vector<65x256xf32>
    %c0_66 = arith.constant 0 : index
    %c0_67 = arith.constant 0 : index
    %c0_68 = arith.constant 0 : index
    %147 = vector.load %arg15[%c0_66, %c0_67, %c0_68] : memref<1x65x256xf32, #tpu.memory_space<vmem>>, vector<1x65x256xf32>
    %148 = vector.shape_cast %147 : vector<1x65x256xf32> to vector<65x256xf32>
    %149 = vector.shape_cast %146 : vector<65x256xf32> to vector<1x65x256xf32>
    tpu.vector_store %arg15[%c0_66, %c0_67, %c0_68], %149 {strides = array<i32>} : memref<1x65x256xf32, #tpu.memory_space<vmem>>, vector<1x65x256xf32>,
    return
  }
  func.func @transform_0(%arg0: i32, %arg1: i32) -> (i32, i32, i32) {
    %c0_i32 = arith.constant 0 : i32
    %c0_i32_0 = arith.constant 0 : i32
    %c0_i32_1 = arith.constant 0 : i32
    return %arg0, %c0_i32, %c0_i32_0 : i32, i32, i32
  }
  func.func @transform_1(%arg0: i32, %arg1: i32) -> (i32, i32, i32) {
    %c0_i32 = arith.constant 0 : i32
    %c0_i32_0 = arith.constant 0 : i32
    %c0_i32_1 = arith.constant 0 : i32
    return %arg1, %c0_i32, %c0_i32_0 : i32, i32, i32
  }
  func.func @transform_2(%arg0: i32, %arg1: i32) -> (i32, i32, i32) {
    %c0_i32 = arith.constant 0 : i32
    %c0_i32_0 = arith.constant 0 : i32
    %c0_i32_1 = arith.constant 0 : i32
    return %arg1, %c0_i32, %c0_i32_0 : i32, i32, i32
  }
  func.func @transform_3(%arg0: i32, %arg1: i32) -> (i32, i32, i32) {
    %c0_i32 = arith.constant 0 : i32
    %c0_i32_0 = arith.constant 0 : i32
    %c0_i32_1 = arith.constant 0 : i32
    return %arg1, %c0_i32, %c0_i32_0 : i32, i32, i32
  }
  func.func @transform_4(%arg0: i32, %arg1: i32) -> (i32, i32, i32) {
    %c0_i32 = arith.constant 0 : i32
    %c0_i32_0 = arith.constant 0 : i32
    %c0_i32_1 = arith.constant 0 : i32
    return %arg1, %c0_i32, %c0_i32_0 : i32, i32, i32
  }
  func.func @transform_5(%arg0: i32, %arg1: i32) -> (i32, i32, i32) {
    %c0_i32 = arith.constant 0 : i32
    %c0_i32_0 = arith.constant 0 : i32
    %c0_i32_1 = arith.constant 0 : i32
    return %arg1, %c0_i32, %c0_i32_0 : i32, i32, i32
  }
  func.func @transform_6(%arg0: i32, %arg1: i32) -> (i32, i32, i32) {
    %c0_i32 = arith.constant 0 : i32
    %c0_i32_0 = arith.constant 0 : i32
    %c0_i32_1 = arith.constant 0 : i32
    return %arg1, %c0_i32, %c0_i32_0 : i32, i32, i32
  }
  func.func @transform_7(%arg0: i32, %arg1: i32) -> (i32, i32, i32) {
    %c0_i32 = arith.constant 0 : i32
    %c0_i32_0 = arith.constant 0 : i32
    %c0_i32_1 = arith.constant 0 : i32
    return %arg1, %c0_i32, %c0_i32_0 : i32, i32, i32
  }
  func.func @transform_8(%arg0: i32, %arg1: i32) -> (i32, i32, i32) {
    %c0_i32 = arith.constant 0 : i32
    %c0_i32_0 = arith.constant 0 : i32
    %c0_i32_1 = arith.constant 0 : i32
    return %arg1, %c0_i32, %c0_i32_0 : i32, i32, i32
  }
  func.func @transform_9(%arg0: i32, %arg1: i32) -> (i32, i32, i32) {
    %c0_i32 = arith.constant 0 : i32
    %c0_i32_0 = arith.constant 0 : i32
    %c0_i32_1 = arith.constant 0 : i32
    return %arg1, %c0_i32, %c0_i32_0 : i32, i32, i32
  }
  func.func @transform_10(%arg0: i32, %arg1: i32) -> (i32, i32, i32) {
    %c0_i32 = arith.constant 0 : i32
    %c0_i32_0 = arith.constant 0 : i32
    %c0_i32_1 = arith.constant 0 : i32
    return %arg1, %c0_i32, %c0_i32_0 : i32, i32, i32
  }
  func.func @transform_11(%arg0: i32, %arg1: i32) -> (i32, i32, i32) {
    %c0_i32 = arith.constant 0 : i32
    %c0_i32_0 = arith.constant 0 : i32
    %c0_i32_1 = arith.constant 0 : i32
    return %arg1, %c0_i32, %c0_i32_0 : i32, i32, i32
  }
  func.func @transform_12(%arg0: i32, %arg1: i32) -> (i32, i32, i32) {
    %c0_i32 = arith.constant 0 : i32
    %c0_i32_0 = arith.constant 0 : i32
    %c0_i32_1 = arith.constant 0 : i32
    return %arg1, %c0_i32, %c0_i32_0 : i32, i32, i32
  }
  func.func @transform_13(%arg0: i32, %arg1: i32) -> (i32, i32, i32) {
    %c0_i32 = arith.constant 0 : i32
    %c0_i32_0 = arith.constant 0 : i32
    %c0_i32_1 = arith.constant 0 : i32
    return %arg0, %c0_i32, %c0_i32_0 : i32, i32, i32
  }
}

module attributes {stable_mosaic.version = 11 : i64} {
  func.func @_pool_head_kernel(%arg0: i32, %arg1: memref<2x65x256xf32, #tpu.memory_space<vmem>>, %arg2: memref<1x256xf32, #tpu.memory_space<vmem>>, %arg3: memref<1x256xf32, #tpu.memory_space<vmem>>, %arg4: memref<256x128xbf16, #tpu.memory_space<vmem>>, %arg5: memref<1x128xf32, #tpu.memory_space<vmem>>, %arg6: memref<2x128xf32, #tpu.memory_space<vmem>>) attributes {dimension_semantics = [#tpu.dimension_semantics<arbitrary>], iteration_bounds = array<i64: 1>, scalar_prefetch = 0 : i64, scratch_operands = 0 : i64, tpu.core_type = #tpu.core_type<tc>, window_params = [{pipeline_mode = #tpu.pipeline_mode<synchronous>, transform_indices = @transform_0, window_bounds = array<i64: 2, 65, 256>}, {pipeline_mode = #tpu.pipeline_mode<synchronous>, transform_indices = @transform_1, window_bounds = array<i64: 1, 256>}, {pipeline_mode = #tpu.pipeline_mode<synchronous>, transform_indices = @transform_2, window_bounds = array<i64: 1, 256>}, {pipeline_mode = #tpu.pipeline_mode<synchronous>, transform_indices = @transform_3, window_bounds = array<i64: 256, 128>}, {pipeline_mode = #tpu.pipeline_mode<synchronous>, transform_indices = @transform_4, window_bounds = array<i64: 1, 128>}, {pipeline_mode = #tpu.pipeline_mode<synchronous>, transform_indices = @transform_5, window_bounds = array<i64: 2, 128>}]} {
    %c0 = arith.constant 0 : index
    %c0_0 = arith.constant 0 : index
    %c0_1 = arith.constant 0 : index
    %0 = vector.load %arg1[%c0, %c0_0, %c0_1] : memref<2x65x256xf32, #tpu.memory_space<vmem>>, vector<2x65x256xf32>
    %1 = vector.extract_strided_slice %0 {offsets = [0, 1, 0], sizes = [2, 64, 256], strides = [1, 1, 1]} : vector<2x65x256xf32> to vector<2x64x256xf32>
    %cst = arith.constant dense<0.000000e+00> : vector<2x256xf32>
    %2 = vector.multi_reduction <add>, %1, %cst [1] : vector<2x64x256xf32> to vector<2x256xf32>
    %cst_2 = arith.constant 6.400000e+01 : f32
    %3 = vector.broadcast %cst_2 : f32 to vector<2x256xf32>
    %4 = arith.divf %2, %3 : vector<2x256xf32>
    %c0_3 = arith.constant 0 : index
    %c0_4 = arith.constant 0 : index
    %5 = vector.load %arg2[%c0_3, %c0_4] : memref<1x256xf32, #tpu.memory_space<vmem>>, vector<1x256xf32>
    %c0_5 = arith.constant 0 : index
    %c0_6 = arith.constant 0 : index
    %6 = vector.load %arg3[%c0_5, %c0_6] : memref<1x256xf32, #tpu.memory_space<vmem>>, vector<1x256xf32>
    %cst_7 = arith.constant dense<0.000000e+00> : vector<2xf32>
    %7 = vector.multi_reduction <add>, %4, %cst_7 [1] : vector<2x256xf32> to vector<2xf32>
    %8 = vector.shape_cast %7 : vector<2xf32> to vector<2x1xf32>
    %cst_8 = arith.constant 2.560000e+02 : f32
    %9 = vector.broadcast %cst_8 : f32 to vector<2x1xf32>
    %10 = arith.divf %8, %9 : vector<2x1xf32>
    %11 = vector.broadcast %10 : vector<2x1xf32> to vector<2x256xf32>
    %12 = arith.subf %4, %11 : vector<2x256xf32>
    %13 = arith.mulf %12, %12 : vector<2x256xf32>
    %cst_9 = arith.constant dense<0.000000e+00> : vector<2xf32>
    %14 = vector.multi_reduction <add>, %13, %cst_9 [1] : vector<2x256xf32> to vector<2xf32>
    %15 = vector.shape_cast %14 : vector<2xf32> to vector<2x1xf32>
    %cst_10 = arith.constant 2.560000e+02 : f32
    %16 = vector.broadcast %cst_10 : f32 to vector<2x1xf32>
    %17 = arith.divf %15, %16 : vector<2x1xf32>
    %18 = vector.broadcast %10 : vector<2x1xf32> to vector<2x256xf32>
    %19 = arith.subf %4, %18 : vector<2x256xf32>
    %cst_11 = arith.constant 9.99999997E-7 : f32
    %20 = vector.broadcast %cst_11 : f32 to vector<2x1xf32>
    %21 = arith.addf %17, %20 : vector<2x1xf32>
    %22 = math.rsqrt %21 : vector<2x1xf32>
    %23 = vector.broadcast %22 : vector<2x1xf32> to vector<2x256xf32>
    %24 = arith.mulf %19, %23 : vector<2x256xf32>
    %25 = vector.broadcast %5 : vector<1x256xf32> to vector<2x256xf32>
    %26 = arith.mulf %24, %25 : vector<2x256xf32>
    %27 = vector.broadcast %6 : vector<1x256xf32> to vector<2x256xf32>
    %28 = arith.addf %26, %27 : vector<2x256xf32>
    %29 = arith.truncf %28 : vector<2x256xf32> to vector<2x256xbf16>
    %c0_12 = arith.constant 0 : index
    %c0_13 = arith.constant 0 : index
    %30 = vector.load %arg4[%c0_12, %c0_13] : memref<256x128xbf16, #tpu.memory_space<vmem>>, vector<256x128xbf16>
    %cst_14 = arith.constant dense<0.000000e+00> : vector<2x128xf32>
    %31 = tpu.matmul %29, %30, %cst_14 {dimension_numbers = #tpu.dot_dimension_numbers<[1], [0], [0], [1], [0, 0, 1, 1], [], []>} : vector<2x256xbf16>, vector<256x128xbf16>, vector<2x128xf32> -> vector<2x128xf32>
    %c0_15 = arith.constant 0 : index
    %c0_16 = arith.constant 0 : index
    %32 = vector.load %arg5[%c0_15, %c0_16] : memref<1x128xf32, #tpu.memory_space<vmem>>, vector<1x128xf32>
    %33 = vector.broadcast %32 : vector<1x128xf32> to vector<2x128xf32>
    %34 = arith.addf %31, %33 : vector<2x128xf32>
    %35 = arith.mulf %34, %34 : vector<2x128xf32>
    %cst_17 = arith.constant dense<0.000000e+00> : vector<2xf32>
    %36 = vector.multi_reduction <add>, %35, %cst_17 [1] : vector<2x128xf32> to vector<2xf32>
    %37 = vector.shape_cast %36 : vector<2xf32> to vector<2x1xf32>
    %38 = math.sqrt %37 : vector<2x1xf32>
    %cst_18 = arith.constant 9.99999996E-13 : f32
    %39 = vector.broadcast %cst_18 : f32 to vector<2x1xf32>
    %40 = arith.maximumf %38, %39 : vector<2x1xf32>
    %41 = vector.broadcast %40 : vector<2x1xf32> to vector<2x128xf32>
    %42 = arith.divf %34, %41 : vector<2x128xf32>
    %c0_19 = arith.constant 0 : index
    %c0_20 = arith.constant 0 : index
    %43 = vector.load %arg6[%c0_19, %c0_20] : memref<2x128xf32, #tpu.memory_space<vmem>>, vector<2x128xf32>
    tpu.vector_store %arg6[%c0_19, %c0_20], %42 {strides = array<i32>} : memref<2x128xf32, #tpu.memory_space<vmem>>, vector<2x128xf32>,
    return
  }
  func.func @transform_0(%arg0: i32) -> (i32, i32, i32) {
    %c0_i32 = arith.constant 0 : i32
    %c0_i32_0 = arith.constant 0 : i32
    %c0_i32_1 = arith.constant 0 : i32
    %c0_i32_2 = arith.constant 0 : i32
    return %c0_i32, %c0_i32_0, %c0_i32_1 : i32, i32, i32
  }
  func.func @transform_1(%arg0: i32) -> (i32, i32) {
    %c0_i32 = arith.constant 0 : i32
    %c0_i32_0 = arith.constant 0 : i32
    %c0_i32_1 = arith.constant 0 : i32
    return %c0_i32, %c0_i32_0 : i32, i32
  }
  func.func @transform_2(%arg0: i32) -> (i32, i32) {
    %c0_i32 = arith.constant 0 : i32
    %c0_i32_0 = arith.constant 0 : i32
    %c0_i32_1 = arith.constant 0 : i32
    return %c0_i32, %c0_i32_0 : i32, i32
  }
  func.func @transform_3(%arg0: i32) -> (i32, i32) {
    %c0_i32 = arith.constant 0 : i32
    %c0_i32_0 = arith.constant 0 : i32
    %c0_i32_1 = arith.constant 0 : i32
    return %c0_i32, %c0_i32_0 : i32, i32
  }
  func.func @transform_4(%arg0: i32) -> (i32, i32) {
    %c0_i32 = arith.constant 0 : i32
    %c0_i32_0 = arith.constant 0 : i32
    %c0_i32_1 = arith.constant 0 : i32
    return %c0_i32, %c0_i32_0 : i32, i32
  }
  func.func @transform_5(%arg0: i32) -> (i32, i32) {
    %c0_i32 = arith.constant 0 : i32
    %c0_i32_0 = arith.constant 0 : i32
    %c0_i32_1 = arith.constant 0 : i32
    return %c0_i32, %c0_i32_0 : i32, i32
  }
}

module attributes {stable_mosaic.version = 11 : i64} {
  func.func @_patch_embed_kernel(%arg0: i32, %arg1: memref<128x48xf32, #tpu.memory_space<vmem>>, %arg2: memref<48x256xbf16, #tpu.memory_space<vmem>>, %arg3: memref<1x256xf32, #tpu.memory_space<vmem>>, %arg4: memref<128x256xf32, #tpu.memory_space<vmem>>) attributes {dimension_semantics = [#tpu.dimension_semantics<arbitrary>], iteration_bounds = array<i64: 1>, scalar_prefetch = 0 : i64, scratch_operands = 0 : i64, tpu.core_type = #tpu.core_type<tc>, window_params = [{pipeline_mode = #tpu.pipeline_mode<synchronous>, transform_indices = @transform_0, window_bounds = array<i64: 128, 48>}, {pipeline_mode = #tpu.pipeline_mode<synchronous>, transform_indices = @transform_1, window_bounds = array<i64: 48, 256>}, {pipeline_mode = #tpu.pipeline_mode<synchronous>, transform_indices = @transform_2, window_bounds = array<i64: 1, 256>}, {pipeline_mode = #tpu.pipeline_mode<synchronous>, transform_indices = @transform_3, window_bounds = array<i64: 128, 256>}]} {
    %c0 = arith.constant 0 : index
    %c0_0 = arith.constant 0 : index
    %0 = vector.load %arg1[%c0, %c0_0] : memref<128x48xf32, #tpu.memory_space<vmem>>, vector<128x48xf32>
    %1 = arith.truncf %0 : vector<128x48xf32> to vector<128x48xbf16>
    %c0_1 = arith.constant 0 : index
    %c0_2 = arith.constant 0 : index
    %2 = vector.load %arg2[%c0_1, %c0_2] : memref<48x256xbf16, #tpu.memory_space<vmem>>, vector<48x256xbf16>
    %cst = arith.constant dense<0.000000e+00> : vector<128x256xf32>
    %3 = tpu.matmul %1, %2, %cst {dimension_numbers = #tpu.dot_dimension_numbers<[1], [0], [0], [1], [0, 0, 1, 1], [], []>} : vector<128x48xbf16>, vector<48x256xbf16>, vector<128x256xf32> -> vector<128x256xf32>
    %c0_3 = arith.constant 0 : index
    %c0_4 = arith.constant 0 : index
    %4 = vector.load %arg3[%c0_3, %c0_4] : memref<1x256xf32, #tpu.memory_space<vmem>>, vector<1x256xf32>
    %5 = vector.broadcast %4 : vector<1x256xf32> to vector<128x256xf32>
    %6 = arith.addf %3, %5 : vector<128x256xf32>
    %c0_5 = arith.constant 0 : index
    %c0_6 = arith.constant 0 : index
    %7 = vector.load %arg4[%c0_5, %c0_6] : memref<128x256xf32, #tpu.memory_space<vmem>>, vector<128x256xf32>
    tpu.vector_store %arg4[%c0_5, %c0_6], %6 {strides = array<i32>} : memref<128x256xf32, #tpu.memory_space<vmem>>, vector<128x256xf32>,
    return
  }
  func.func @transform_0(%arg0: i32) -> (i32, i32) {
    %c0_i32 = arith.constant 0 : i32
    %c0_i32_0 = arith.constant 0 : i32
    %c0_i32_1 = arith.constant 0 : i32
    return %c0_i32, %c0_i32_0 : i32, i32
  }
  func.func @transform_1(%arg0: i32) -> (i32, i32) {
    %c0_i32 = arith.constant 0 : i32
    %c0_i32_0 = arith.constant 0 : i32
    %c0_i32_1 = arith.constant 0 : i32
    return %c0_i32, %c0_i32_0 : i32, i32
  }
  func.func @transform_2(%arg0: i32) -> (i32, i32) {
    %c0_i32 = arith.constant 0 : i32
    %c0_i32_0 = arith.constant 0 : i32
    %c0_i32_1 = arith.constant 0 : i32
    return %c0_i32, %c0_i32_0 : i32, i32
  }
  func.func @transform_3(%arg0: i32) -> (i32, i32) {
    %c0_i32 = arith.constant 0 : i32
    %c0_i32_0 = arith.constant 0 : i32
    %c0_i32_1 = arith.constant 0 : i32
    return %c0_i32, %c0_i32_0 : i32, i32
  }
}

</mosaic_0001>

<bundles_post_ra>
// kernel: pipeline_forward.3
= control target key start
LH: loop header
LB: loop body
LE: loop exit
PB: predicated region body
PF: predicated region fallthrough
CT: control target
= control target key end

     0   :  { %vm81_vm0 = vcmask 392192   ;;  %s547_s1 = inlined_call_operand.vmem [shape: bf16[48,256], index: 1, kind: input, shape index: {}]   ;;  %s548_s0 = inlined_call_operand.vmem [shape: f32[128,48], index: 0, kind: input, shape index: {}]   ;;  %s549_s2 = inlined_call_operand.vmem [shape: f32[1,256], index: 2, kind: input, shape index: {}]   ;;  %s550_s3 = inlined_call_operand.vmem [shape: f32[128,256], index: 3, kind: output, shape index: {}]  }
   0x1   :  { %v258_v0 = vld [vmem:[%s547_s1 + $0x20] sm:$0xf]  ;;  %v285_v1 = vld [vmem:[%s547_s1 + $0x24] sm:$0xf0]  ;;  %v284_v2 = vld [vmem:[%s547_s1 + $0x24] sm:$0xf] }
   0x2   :  { %v259_v3 = vor.u32 %v285_v1, %v258_v0  ;;  %v260_v4 = vld [vmem:[%s547_s1 + $0x28] sm:$0xf0]  ;;  %v250_v5 = vld [vmem:[%s547_s1 + $0x10] sm:$0xf]  ;;  %v283_v6 = vld [vmem:[%s547_s1 + $0x14] sm:$0xf0] }
   0x3   :  { %v263_v7 = vor.u32 %v284_v2, %v260_v4  ;;  %v282_v8 = vld [vmem:[%s547_s1 + $0x14] sm:$0xf]  ;;  %v252_v9 = vld [vmem:[%s547_s1 + $0x18] sm:$0xf0]  ;;  %v251_v10 = vor.u32 %v283_v6, %v250_v5  ;;  %v242_v12 = vld [vmem:[%s547_s1] sm:$0xf] }
   0x4   :  { %111 = vmatpush.bf16.msra.mxu0 %v259_v3  ;;  %286 = vmatpush.bf16.msra.mxu2 %v259_v3  ;;  %v255_v11 = vor.u32 %v282_v8, %v252_v9  ;;  %v281_v13 = vld [vmem:[%s547_s1 + $0x4] sm:$0xf0]  ;;  %v280_v14 = vld [vmem:[%s547_s1 + $0x4] sm:$0xf]  ;;  %v244_v15 = vld [vmem:[%s547_s1 + $0x8] sm:$0xf0] }
   0x5   :  { %160 = vmatpush.bf16.msra.mxu1 %v263_v7  ;;  %289 = vmatpush.bf16.msra.mxu3 %v263_v7  ;;  %v15_v16 = vld [vmem:[%s548_s0] sm:$0xff]  ;;  %v243_v17 = vor.u32 %v281_v13, %v242_v12  ;;  %v16_v18 = vld [vmem:[%s548_s0 + $0x8] sm:$0xff]  ;;  %v247_v21 = vor.u32 %v280_v14, %v244_v15  ;;  %v17_v24 = vld [vmem:[%s548_s0 + $0x10] sm:$0xff] }
   0x6   :  { %v23_v19 = vld [vmem:[%s548_s0 + $0x40] sm:$0xff]  ;;  %v24_v20 = vld [vmem:[%s548_s0 + $0x48] sm:$0xff]  ;;  %v31_v22 = vpack.c.bf16 %v16_v18, %v15_v16  ;;  %v18_v25 = vld [vmem:[%s548_s0 + $0x18] sm:$0xff] }
   0x7   :  { %v35_v23 = vpack.c.bf16 %v24_v20, %v23_v19  ;;  %v25_v26 = vld [vmem:[%s548_s0 + $0x50] sm:$0xff]  ;;  %v26_v27 = vld [vmem:[%s548_s0 + $0x58] sm:$0xff]  ;;  %v32_v28 = vpack.c.bf16 %v18_v25, %v17_v24  ;;  %v19_v30 = vld [vmem:[%s548_s0 + $0x20] sm:$0xff] }
   0x8   :  { %112 = vmatpush.bf16.msra.mxu0 %v251_v10  ;;  %287 = vmatpush.bf16.msra.mxu2 %v251_v10  ;;  %v36_v29 = vpack.c.bf16 %v26_v27, %v25_v26  ;;  %v20_v31 = vld [vmem:[%s548_s0 + $0x28] sm:$0xff]  ;;  %v27_v32 = vld [vmem:[%s548_s0 + $0x60] sm:$0xff]  ;;  %v21_v36 = vld [vmem:[%s548_s0 + $0x30] sm:$0xff] }
   0x9   :  { %161 = vmatpush.bf16.msra.mxu1 %v255_v11  ;;  %290 = vmatpush.bf16.msra.mxu3 %v255_v11  ;;  %v28_v33 = vld [vmem:[%s548_s0 + $0x68] sm:$0xff]  ;;  %v33_v34 = vpack.c.bf16 %v20_v31, %v19_v30  ;;  %v22_v37 = vld [vmem:[%s548_s0 + $0x38] sm:$0xff]  ;;  %v29_v38 = vld [vmem:[%s548_s0 + $0x70] sm:$0xff] }
   0xa   :  { %v37_v35 = vpack.c.bf16 %v28_v33, %v27_v32  ;;  %v30_v39 = vld [vmem:[%s548_s0 + $0x78] sm:$0xff]  ;;  %v34_v40 = vpack.c.bf16 %v22_v37, %v21_v36  ;;  %v45_v42 = vld [vmem:[%s549_s2] sm:$0x3] }
   0xb   :  { %v38_v41 = vpack.c.bf16 %v30_v39, %v29_v38  ;;  %v415_v43 = vperm.slane %v45_v42, 0  ;;  %v417_v44 = vperm.slane %v45_v42, 1 }
   0xc   :  { %113 = vmatpush.bf16.msra.mxu0 %v243_v17  ;;  %288 = vmatpush.bf16.msra.mxu2 %v243_v17 }
   0xd   :  { %162 = vmatpush.bf16.msra.mxu1 %v247_v21  ;;  %291 = vmatpush.bf16.msra.mxu3 %v247_v21 }
   0xf   :  { %264 = vmatmul.msk.bf16.vlgmr.msra.gmra.mxu0 %vm81_vm0, %v31_v22  ;;  %268 = vmatmul.msk.bf16.vlgmr.msra.gmra.mxu2 %vm81_vm0, %v35_v23 }
  0x10   :  { %272 = vmatmul.msk.bf16.vlgmr.msra.gmra.mxu1 %vm81_vm0, %v31_v22  ;;  %276 = vmatmul.msk.bf16.vlgmr.msra.gmra.mxu3 %vm81_vm0, %v35_v23 }
  0x1f   :  { %265 = vmatmul.msk.bf16.gmra.mxu0 %vm81_vm0, %v32_v28  ;;  %269 = vmatmul.msk.bf16.gmra.mxu2 %vm81_vm0, %v36_v29 }
  0x20   :  { %273 = vmatmul.msk.bf16.gmra.mxu1 %vm81_vm0, %v32_v28  ;;  %277 = vmatmul.msk.bf16.gmra.mxu3 %vm81_vm0, %v36_v29 }
  0x2f   :  { %266 = vmatmul.msk.bf16.gmra.mxu0 %vm81_vm0, %v33_v34  ;;  %270 = vmatmul.msk.bf16.gmra.mxu2 %vm81_vm0, %v37_v35 }
  0x30   :  { %274 = vmatmul.msk.bf16.gmra.mxu1 %vm81_vm0, %v33_v34  ;;  %278 = vmatmul.msk.bf16.gmra.mxu3 %vm81_vm0, %v37_v35 }
  0x3f   :  { %267 = vmatmul.msk.bf16.gmra.mxu0 %vm81_vm0, %v34_v40  ;;  %271 = vmatmul.msk.bf16.gmra.mxu2 %vm81_vm0, %v38_v41 }
  0x40   :  { %275 = vmatmul.msk.bf16.gmra.mxu1 %vm81_vm0, %v34_v40  ;;  %279 = vmatmul.msk.bf16.gmra.mxu3 %vm81_vm0, %v38_v41 }
  0x8c   :  { %v115_v45 = vpop.f32.mrf.mxu0 }
  0x8d   :  { %v116_v46 = vadd.f32 %v115_v45, %v415_v43  ;;  %v164_v47 = vpop.f32.mrf.mxu1 }
  0x8e   :  { %v165_v48 = vadd.f32 %v164_v47, %v417_v44 }
  0x8f   :  { %204 = vst [vmem:[%s550_s3] sm:$0xff] %v116_v46 }
  0x90   :  { %205 = vst [vmem:[%s550_s3 + $0x8] sm:$0xff] %v165_v48 }
  0x92   :  { %v135_v49 = vpop.f32.mrf.mxu2 }
  0x93   :  { %v136_v50 = vadd.f32 %v135_v49, %v415_v43  ;;  %v184_v51 = vpop.f32.mrf.mxu3 }
  0x94   :  { %v185_v52 = vadd.f32 %v184_v51, %v417_v44  ;;  %v117_v53 = vpop.f32.mrf.mxu0 }
  0x95   :  { %220 = vst [vmem:[%s550_s3 + $0x80] sm:$0xff] %v136_v50  ;;  %v118_v54 = vadd.f32 %v117_v53, %v415_v43  ;;  %v166_v55 = vpop.f32.mrf.mxu1 }
  0x96   :  { %221 = vst [vmem:[%s550_s3 + $0x88] sm:$0xff] %v185_v52  ;;  %v167_v56 = vadd.f32 %v166_v55, %v417_v44 }
  0x97   :  { %206 = vst [vmem:[%s550_s3 + $0x10] sm:$0xff] %v118_v54 }
  0x98   :  { %207 = vst [vmem:[%s550_s3 + $0x18] sm:$0xff] %v167_v56 }
  0x9a   :  { %v137_v57 = vpop.f32.mrf.mxu2 }
  0x9b   :  { %v138_v58 = vadd.f32 %v137_v57, %v415_v43  ;;  %v186_v59 = vpop.f32.mrf.mxu3 }
  0x9c   :  { %v187_v60 = vadd.f32 %v186_v59, %v417_v44  ;;  %v120_v61 = vpop.f32.mrf.mxu0 }
  0x9d   :  { %222 = vst [vmem:[%s550_s3 + $0x90] sm:$0xff] %v138_v58  ;;  %v121_v62 = vadd.f32 %v120_v61, %v415_v43  ;;  %v169_v63 = vpop.f32.mrf.mxu1 }
  0x9e   :  { %223 = vst [vmem:[%s550_s3 + $0x98] sm:$0xff] %v187_v60  ;;  %v170_v0 = vadd.f32 %v169_v63, %v417_v44 }
  0x9f   :  { %208 = vst [vmem:[%s550_s3 + $0x20] sm:$0xff] %v121_v62 }
  0xa0   :  { %209 = vst [vmem:[%s550_s3 + $0x28] sm:$0xff] %v170_v0 }
  0xa2   :  { %v140_v1 = vpop.f32.mrf.mxu2 }
  0xa3   :  { %v141_v2 = vadd.f32 %v140_v1, %v415_v43  ;;  %v189_v3 = vpop.f32.mrf.mxu3 }
  0xa4   :  { %v190_v4 = vadd.f32 %v189_v3, %v417_v44  ;;  %v122_v5 = vpop.f32.mrf.mxu0 }
  0xa5   :  { %224 = vst [vmem:[%s550_s3 + $0xa0] sm:$0xff] %v141_v2  ;;  %v123_v6 = vadd.f32 %v122_v5, %v415_v43  ;;  %v171_v7 = vpop.f32.mrf.mxu1 }
  0xa6   :  { %225 = vst [vmem:[%s550_s3 + $0xa8] sm:$0xff] %v190_v4  ;;  %v172_v8 = vadd.f32 %v171_v7, %v417_v44 }
  0xa7   :  { %210 = vst [vmem:[%s550_s3 + $0x30] sm:$0xff] %v123_v6 }
  0xa8   :  { %211 = vst [vmem:[%s550_s3 + $0x38] sm:$0xff] %v172_v8 }
  0xaa   :  { %v142_v9 = vpop.f32.mrf.mxu2 }
  0xab   :  { %v143_v10 = vadd.f32 %v142_v9, %v415_v43  ;;  %v191_v11 = vpop.f32.mrf.mxu3 }
  0xac   :  { %v192_v12 = vadd.f32 %v191_v11, %v417_v44  ;;  %v125_v13 = vpop.f32.mrf.mxu0 }
  0xad   :  { %226 = vst [vmem:[%s550_s3 + $0xb0] sm:$0xff] %v143_v10  ;;  %v126_v14 = vadd.f32 %v125_v13, %v415_v43  ;;  %v174_v15 = vpop.f32.mrf.mxu1 }
  0xae   :  { %227 = vst [vmem:[%s550_s3 + $0xb8] sm:$0xff] %v192_v12  ;;  %v175_v16 = vadd.f32 %v174_v15, %v417_v44 }
  0xaf   :  { %212 = vst [vmem:[%s550_s3 + $0x40] sm:$0xff] %v126_v14 }
  0xb0   :  { %213 = vst [vmem:[%s550_s3 + $0x48] sm:$0xff] %v175_v16 }
  0xb2   :  { %v145_v17 = vpop.f32.mrf.mxu2 }
  0xb3   :  { %v146_v18 = vadd.f32 %v145_v17, %v415_v43  ;;  %v194_v19 = vpop.f32.mrf.mxu3 }
  0xb4   :  { %v195_v20 = vadd.f32 %v194_v19, %v417_v44  ;;  %v127_v21 = vpop.f32.mrf.mxu0 }
  0xb5   :  { %228 = vst [vmem:[%s550_s3 + $0xc0] sm:$0xff] %v146_v18  ;;  %v128_v22 = vadd.f32 %v127_v21, %v415_v43  ;;  %v176_v23 = vpop.f32.mrf.mxu1 }
  0xb6   :  { %229 = vst [vmem:[%s550_s3 + $0xc8] sm:$0xff] %v195_v20  ;;  %v177_v24 = vadd.f32 %v176_v23, %v417_v44 }
  0xb7   :  { %214 = vst [vmem:[%s550_s3 + $0x50] sm:$0xff] %v128_v22 }
  0xb8   :  { %215 = vst [vmem:[%s550_s3 + $0x58] sm:$0xff] %v177_v24 }
  0xba   :  { %v147_v25 = vpop.f32.mrf.mxu2 }
  0xbb   :  { %v148_v26 = vadd.f32 %v147_v25, %v415_v43  ;;  %v196_v27 = vpop.f32.mrf.mxu3 }
  0xbc   :  { %v197_v28 = vadd.f32 %v196_v27, %v417_v44  ;;  %v130_v29 = vpop.f32.mrf.mxu0 }
  0xbd   :  { %230 = vst [vmem:[%s550_s3 + $0xd0] sm:$0xff] %v148_v26  ;;  %v131_v30 = vadd.f32 %v130_v29, %v415_v43  ;;  %v179_v31 = vpop.f32.mrf.mxu1 }
  0xbe   :  { %231 = vst [vmem:[%s550_s3 + $0xd8] sm:$0xff] %v197_v28  ;;  %v180_v32 = vadd.f32 %v179_v31, %v417_v44 }
  0xbf   :  { %216 = vst [vmem:[%s550_s3 + $0x60] sm:$0xff] %v131_v30 }
  0xc0   :  { %217 = vst [vmem:[%s550_s3 + $0x68] sm:$0xff] %v180_v32 }
  0xc2   :  { %v150_v33 = vpop.f32.mrf.mxu2 }
  0xc3   :  { %v151_v34 = vadd.f32 %v150_v33, %v415_v43  ;;  %v199_v35 = vpop.f32.mrf.mxu3 }
  0xc4   :  { %v200_v36 = vadd.f32 %v199_v35, %v417_v44  ;;  %v132_v37 = vpop.f32.mrf.mxu0 }
  0xc5   :  { %232 = vst [vmem:[%s550_s3 + $0xe0] sm:$0xff] %v151_v34  ;;  %v133_v38 = vadd.f32 %v132_v37, %v415_v43  ;;  %v181_v39 = vpop.f32.mrf.mxu1 }
  0xc6   :  { %233 = vst [vmem:[%s550_s3 + $0xe8] sm:$0xff] %v200_v36  ;;  %v182_v40 = vadd.f32 %v181_v39, %v417_v44 }
  0xc7   :  { %218 = vst [vmem:[%s550_s3 + $0x70] sm:$0xff] %v133_v38 }
  0xc8   :  { %219 = vst [vmem:[%s550_s3 + $0x78] sm:$0xff] %v182_v40 }
  0xca   :  { %v152_v41 = vpop.f32.mrf.mxu2 }
  0xcb   :  { %v153_v42 = vadd.f32 %v152_v41, %v415_v43  ;;  %v201_v45 = vpop.f32.mrf.mxu3 }
  0xcc   :  { %v202_v46 = vadd.f32 %v201_v45, %v417_v44 }
  0xcd   :  { %234 = vst [vmem:[%s550_s3 + $0xf0] sm:$0xff] %v153_v42 }
  0xce   :  { %235 = vst [vmem:[%s550_s3 + $0xf8] sm:$0xff] %v202_v46 }

// kernel: pipeline_forward.5
= control target key start
LH: loop header
LB: loop body
LE: loop exit
PB: predicated region body
PF: predicated region fallthrough
CT: control target
= control target key end

     0   :  { %vm93_vm0 = vcmask 1046528   ;;  %v694_v25 = vmov 64.0   ;;  %s978_s0 = inlined_call_operand.vmem [shape: f32[2,65,256], index: 0, kind: input, shape index: {}]   ;;  %s979_s1 = inlined_call_operand.vmem [shape: f32[1,256], index: 1, kind: input, shape index: {}]   ;;  %s980_s2 = inlined_call_operand.vmem [shape: f32[1,256], index: 2, kind: input, shape index: {}]   ;;  %s981_s3 = inlined_call_operand.vmem [shape: bf16[256,128], index: 3, kind: input, shape index: {}]   ;;  %s982_s4 = inlined_call_operand.vmem [shape: f32[1,128], index: 4, kind: input, shape index: {}]   ;;  %s983_s5 = inlined_call_operand.hbm [shape: f32[2,128], index: 5, kind: output, shape index: {}]  }
   0x1   :  { %v21_v0 = vld [vmem:[%s978_s0] sm:$0xff]  ;;  %v22_v1 = vld [vmem:[%s978_s0 + $0x8] sm:$0xff]  ;;  %v23_v2 = vld [vmem:[%s978_s0 + $0x10] sm:$0xff]  ;;  %658 = vrcp.f32 %v694_v25 }
   0x2   :  { %v24_v3 = vld [vmem:[%s978_s0 + $0x18] sm:$0xff]  ;;  %v25_v4 = vld [vmem:[%s978_s0 + $0x20] sm:$0xff]  ;;  %v26_v5 = vld [vmem:[%s978_s0 + $0x28] sm:$0xff]  ;;  %v94_v10 = vrot.slane %v21_v0, 1  ;;  %v95_v11 = vrot.slane %v23_v2, 1  ;;  %v97_v12 = vrot.slane %v22_v1, 1 }
   0x3   :  { %v27_v6 = vld [vmem:[%s978_s0 + $0x30] sm:$0xff]  ;;  %v28_v7 = vld [vmem:[%s978_s0 + $0x38] sm:$0xff]  ;;  %v29_v8 = vld [vmem:[%s978_s0 + $0x40] sm:$0xff]  ;;  %v98_v13 = vrot.slane %v24_v3, 1  ;;  %v100_v16 = vrot.slane %v25_v4, 1  ;;  %v102_v17 = vrot.slane %v26_v5, 1 }
   0x4   :  { %v30_v9 = vld [vmem:[%s978_s0 + $0x48] sm:$0xff]  ;;  %v31_v14 = vld [vmem:[%s978_s0 + $0x50] sm:$0xff]  ;;  %v32_v15 = vld [vmem:[%s978_s0 + $0x58] sm:$0xff]  ;;  %v104_v18 = vrot.slane %v27_v6, 1  ;;  %v106_v20 = vrot.slane %v28_v7, 1  ;;  %v108_v21 = vrot.slane %v29_v8, 1  ;;  %v96_v29 = vsel %vm93_vm0, %v94_v10, %v95_v11 }
   0x5   :  { %v33_v19 = vld [vmem:[%s978_s0 + $0x60] sm:$0xff]  ;;  %v34_v22 = vld [vmem:[%s978_s0 + $0x68] sm:$0xff]  ;;  %v772_v23 = vld [vmem:[%s978_s0 + $0x70] sm:$0xff]  ;;  %v110_v24 = vrot.slane %v30_v9, 1  ;;  %v99_v30 = vsel %vm93_vm0, %v97_v12, %v98_v13  ;;  %v112_v31 = vrot.slane %v31_v14, 1  ;;  %v114_v32 = vrot.slane %v32_v15, 1 }
   0x6   :  { %v777_v26 = vld [vmem:[%s978_s0 + $0x78] sm:$0xff]  ;;  %v37_v27 = vld [vmem:[%s978_s0 + $0x80] sm:$0x1]  ;;  %v39_v28 = vld [vmem:[%s978_s0 + $0x90] sm:$0xff]  ;;  %v101_v35 = vsel %vm93_vm0, %v95_v11, %v100_v16  ;;  %v103_v36 = vsel %vm93_vm0, %v98_v13, %v102_v17  ;;  %v105_v37 = vsel %vm93_vm0, %v100_v16, %v104_v18  ;;  %v116_v38 = vrot.slane %v33_v19, 1 }
   0x7   :  { %v41_v33 = vld [vmem:[%s978_s0 + $0xa0] sm:$0xff]  ;;  %v43_v34 = vld [vmem:[%s978_s0 + $0xb0] sm:$0xff]  ;;  %v799_v39 = vld [vmem:[%s978_s0 + $0x88] sm:$0x1]  ;;  %v107_v43 = vsel %vm93_vm0, %v102_v17, %v106_v20  ;;  %v109_v44 = vsel %vm93_vm0, %v104_v18, %v108_v21  ;;  %v118_v45 = vrot.slane %v34_v22, 1  ;;  %v120_v46 = vrot.slane %v772_v23, 1 }
   0x8   :  { %v40_v40 = vld [vmem:[%s978_s0 + $0x98] sm:$0xff]  ;;  %v42_v41 = vld [vmem:[%s978_s0 + $0xa8] sm:$0xff]  ;;  %v45_v47 = vld [vmem:[%s978_s0 + $0xc0] sm:$0xff]  ;;  %v111_v50 = vsel %vm93_vm0, %v106_v20, %v110_v24  ;;  %v122_v51 = vrot.slane %v777_v26, 1  ;;  %v124_v52 = vrot.slane %v37_v27, 1  ;;  %v128_v53 = vrot.slane %v39_v28, 1 }
   0x9   :  { %v44_v42 = vld [vmem:[%s978_s0 + $0xb8] sm:$0xff]  ;;  %v46_v48 = vld [vmem:[%s978_s0 + $0xc8] sm:$0xff]  ;;  %v47_v49 = vld [vmem:[%s978_s0 + $0xd0] sm:$0xff]  ;;  %v113_v54 = vsel %vm93_vm0, %v108_v21, %v112_v31  ;;  %v115_v55 = vsel %vm93_vm0, %v110_v24, %v114_v32  ;;  %v129_v56 = vrot.slane %v41_v33, 1  ;;  %v134_v57 = vrot.slane %v43_v34, 1 }
   0xa   :  { %10 = vsyncpa [#allocation3], 0  ;;  %v826_v58 = vpop.eup %658  ;;  %v48_v59 = vld [vmem:[%s978_s0 + $0xd8] sm:$0xff]  ;;  %v117_v60 = vsel %vm93_vm0, %v112_v31, %v116_v38  ;;  %v131_v61 = vrot.slane %v40_v40, 1  ;;  %v132_v62 = vrot.slane %v42_v41, 1  ;;  %v136_v63 = vrot.slane %v44_v42, 1 }
   0xb   :  { %v49_v0 = vld [vmem:[%s978_s0 + $0xe0] sm:$0xff]  ;;  %v50_v1 = vld [vmem:[%s978_s0 + $0xe8] sm:$0xff]  ;;  %v119_v2 = vsel %vm93_vm0, %v114_v32, %v118_v45  ;;  %v138_v3 = vrot.slane %v45_v47, 1  ;;  %v194_v4 = vadd.f32 %v101_v35, %v96_v29  ;;  %v207_v5 = vadd.f32 %v103_v36, %v99_v30  ;;  %v51_v10 = vld [vmem:[%s978_s0 + $0xf0] sm:$0xff]  ;;  %s565_s26 = sshll.u32 %s983_s5, 4  ;;  %s566_s26 = int_to_ptr.hbm [resolvable:$true] %s565_s26 }
   0xc   :  { %v121_v6 = vsel %vm93_vm0, %v116_v38, %v120_v46  ;;  %v126_v7 = vrot.slane %v799_v39, 1  ;;  %v140_v8 = vrot.slane %v46_v48, 1  ;;  %v142_v9 = vrot.slane %v47_v49, 1  ;;  %v52_v19 = vld [vmem:[%s978_s0 + $0xf8] sm:$0xff]  ;;  %v53_v24 = vld [vmem:[%s978_s0 + $0x100] sm:$0xff]  ;;  %v54_v30 = vld [vmem:[%s978_s0 + $0x108] sm:$0xff] }
   0xd   :  { %v123_v11 = vsel %vm93_vm0, %v118_v45, %v122_v51  ;;  %v130_v12 = vsel %vm93_vm0, %v128_v53, %v129_v56  ;;  %v135_v13 = vsel %vm93_vm0, %v129_v56, %v134_v57  ;;  %v144_v14 = vrot.slane %v48_v59, 1  ;;  %v55_v31 = vld [vmem:[%s978_s0 + $0x110] sm:$0x1]  ;;  %v56_v40 = vld [vmem:[%s978_s0 + $0x118] sm:$0x1] }
   0xe   :  { %v133_v15 = vsel %vm93_vm0, %v131_v61, %v132_v62  ;;  %v137_v16 = vsel %vm93_vm0, %v132_v62, %v136_v63  ;;  %v146_v17 = vrot.slane %v49_v0, 1  ;;  %v148_v18 = vrot.slane %v50_v1, 1 }
   0xf   :  { %v125_v20 = vsel %vm93_vm0, %v120_v46, %v124_v52  ;;  %v139_v21 = vsel %vm93_vm0, %v134_v57, %v138_v3  ;;  %v195_v22 = vadd.f32 %v194_v4, %v105_v37  ;;  %v208_v23 = vadd.f32 %v207_v5, %v107_v43 }
  0x10   :  { %v141_v25 = vsel %vm93_vm0, %v136_v63, %v140_v8  ;;  %v143_v27 = vsel %vm93_vm0, %v138_v3, %v142_v9  ;;  %v150_v28 = vrot.slane %v51_v10, 1  ;;  %v220_v29 = vadd.f32 %v135_v13, %v130_v12 }
  0x11   :  { %v145_v32 = vsel %vm93_vm0, %v140_v8, %v144_v14  ;;  %v196_v33 = vadd.f32 %v195_v22, %v109_v44  ;;  %v209_v34 = vadd.f32 %v208_v23, %v111_v50  ;;  %v233_v35 = vadd.f32 %v137_v16, %v133_v15 }
  0x12   :  { %v147_v36 = vsel %vm93_vm0, %v142_v9, %v146_v17  ;;  %v149_v37 = vsel %vm93_vm0, %v144_v14, %v148_v18  ;;  %v152_v38 = vrot.slane %v52_v19, 1  ;;  %v221_v39 = vadd.f32 %v220_v29, %v139_v21 }
  0x13   :  { %v154_v41 = vrot.slane %v53_v24, 1  ;;  %v197_v42 = vadd.f32 %v196_v33, %v113_v54  ;;  %v210_v43 = vadd.f32 %v209_v34, %v115_v55  ;;  %v234_v45 = vadd.f32 %v233_v35, %v141_v25 }
  0x14   :  { %v151_v46 = vsel %vm93_vm0, %v146_v17, %v150_v28  ;;  %v156_v47 = vrot.slane %v54_v30, 1  ;;  %v158_v44 = vrot.slane %v55_v31, 1  ;;  %v222_v48 = vadd.f32 %v221_v39, %v143_v27 }
  0x15   :  { %v198_v49 = vadd.f32 %v197_v42, %v117_v60  ;;  %v211_v50 = vadd.f32 %v210_v43, %v119_v2  ;;  %v235_v52 = vadd.f32 %v234_v45, %v145_v32  ;;  %v247_v53 = vmul.f32 64.0, %v826_v58 }
  0x16   :  { %v127_v56 = vsel %vm93_vm0, %v122_v51, %v126_v7  ;;  %v153_v57 = vsel %vm93_vm0, %v148_v18, %v152_v38  ;;  %v160_v59 = vrot.slane %v56_v40, 1  ;;  %v223_v54 = vadd.f32 %v222_v48, %v147_v36 }
  0x17   :  { %v155_v55 = vsel %vm93_vm0, %v150_v28, %v154_v41  ;;  %v199_v61 = vadd.f32 %v198_v49, %v121_v6  ;;  %v212_v62 = vadd.f32 %v211_v50, %v123_v11  ;;  %v236_v63 = vadd.f32 %v235_v52, %v149_v37 }
  0x18   :  { %v157_v0 = vsel %vm93_vm0, %v152_v38, %v156_v47  ;;  %v159_v60 = vsel %vm93_vm0, %v154_v41, %v158_v44  ;;  %v224_v1 = vadd.f32 %v223_v54, %v151_v46  ;;  %v248_v26 = vsub.f32 1.0, %v247_v53 }
  0x19   :  { %v200_v2 = vadd.f32 %v199_v61, %v125_v20  ;;  %v213_v3 = vadd.f32 %v212_v62, %v127_v56  ;;  %v237_v4 = vadd.f32 %v236_v63, %v153_v57  ;;  %v161_v51 = vsel %vm93_vm0, %v156_v47, %v160_v59 }
  0x1a   :  { %v225_v5 = vadd.f32 %v224_v1, %v155_v55  ;;  %v249_v13 = vmul.f32 %v826_v58, %v248_v26  ;;  %vm251_vm1 = vweird.f32 %v826_v58  ;;  %vm263_vm2 = vcmask 1041409  }
  0x1b   :  { %v201_v7 = vrot.slane %v200_v2, 4  ;;  %v214_v8 = vrot.slane %v213_v3, 4  ;;  %v238_v9 = vadd.f32 %v237_v4, %v157_v0  ;;  %vm268_vm3 = vcmask 1041408  }
  0x1c   :  { %v226_v10 = vadd.f32 %v225_v5, %v159_v60  ;;  %v250_v22 = vadd.f32 %v826_v58, %v249_v13  ;;  %v650_v13 = vld [vmem:[%s981_s3 + $0x60] sm:$0xff] }
  0x1d   :  { %v202_v12 = vadd.f32 %v201_v7, %v200_v2  ;;  %v215_v6 = vadd.f32 %v214_v8, %v213_v3  ;;  %v239_v11 = vadd.f32 %v238_v9, %v161_v51  ;;  %v645_v7 = vld [vmem:[%s981_s3 + $0x38] sm:$0xff]  ;;  %v644_v9 = vld [vmem:[%s981_s3 + $0x30] sm:$0xff] }
  0x1e   :  { %v227_v14 = vrot.slane %v226_v10, 4  ;;  %v252_v32 = vsel %vm251_vm1, %v826_v58, %v250_v22  ;;  %v695_v58 = vmov 256.0   ;;  %v653_v8 = vld [vmem:[%s981_s3 + $0x78] sm:$0xff]  ;;  %499 = vmatpush.bf16.msra.mxu0 %v645_v7  ;;  %v638_v22 = vld [vmem:[%s981_s3] sm:$0xff] }
  0x1f   :  { %v203_v15 = vrot.slane %v202_v12, 2  ;;  %v216_v16 = vrot.slane %v215_v6, 2  ;;  %v240_v17 = vrot.slane %v239_v11, 4  ;;  %660 = vrcp.f32 %v695_v58  ;;  %512 = vmatpush.bf16.msra.mxu1 %v653_v8 }
  0x20   :  { %v228_v18 = vadd.f32 %v227_v14, %v226_v10  ;;  %v652_v10 = vld [vmem:[%s981_s3 + $0x70] sm:$0xff]  ;;  %v641_v14 = vld [vmem:[%s981_s3 + $0x18] sm:$0xff] }
  0x21   :  { %v204_v19 = vadd.f32 %v203_v15, %v202_v12  ;;  %v217_v20 = vadd.f32 %v216_v16, %v215_v6  ;;  %v241_v21 = vadd.f32 %v240_v17, %v239_v11  ;;  %v643_v12 = vld [vmem:[%s981_s3 + $0x28] sm:$0xff]  ;;  %v642_v11 = vld [vmem:[%s981_s3 + $0x20] sm:$0xff]  ;;  %v649_v15 = vld [vmem:[%s981_s3 + $0x58] sm:$0xff] }
  0x22   :  { %v229_v23 = vrot.slane %v228_v18, 2  ;;  %500 = vmatpush.bf16.msra.mxu0 %v644_v9  ;;  %v651_v6 = vld [vmem:[%s981_s3 + $0x68] sm:$0xff]  ;;  %v640_v16 = vld [vmem:[%s981_s3 + $0x10] sm:$0xff] }
  0x23   :  { %v205_v24 = vrot.slane %v204_v19, 1  ;;  %v218_v25 = vrot.slane %v217_v20, 1  ;;  %v242_v27 = vrot.slane %v241_v21, 2  ;;  %513 = vmatpush.bf16.msra.mxu1 %v652_v10  ;;  %v648_v17 = vld [vmem:[%s981_s3 + $0x50] sm:$0xff] }
  0x24   :  { %v230_v28 = vadd.f32 %v229_v23, %v228_v18  ;;  %v639_v18 = vld [vmem:[%s981_s3 + $0x8] sm:$0xff]  ;;  %v646_v23 = vld [vmem:[%s981_s3 + $0x40] sm:$0xff] }
  0x25   :  { %v206_v29 = vadd.f32 %v205_v24, %v204_v19  ;;  %v219_v30 = vadd.f32 %v218_v25, %v217_v20  ;;  %v243_v31 = vadd.f32 %v242_v27, %v241_v21  ;;  %v661_v47 = vpop.eup %660  ;;  %v647_v19 = vld [vmem:[%s981_s3 + $0x48] sm:$0xff]  ;;  %s696_s3 = smov [#allocation2]  }
  0x26   :  { %v231_v33 = vrot.slane %v230_v28, 1  ;;  %v275_v44 = vmul.f32 256.0, %v661_v47  ;;  %vm279_vm4 = vweird.f32 %v661_v47  ;;  %501 = vmatpush.bf16.msra.mxu0 %v643_v12 }
  0x27   :  { %v244_v34 = vrot.slane %v243_v31, 1  ;;  %v253_v36 = vmul.f32 %v252_v32, %v206_v29  ;;  %v254_v38 = vmul.f32 %v252_v32, %v219_v30  ;;  %514 = vmatpush.bf16.msra.mxu1 %v651_v6 }
  0x28   :  { %v232_v35 = vadd.f32 %v231_v33, %v230_v28  ;;  %v276_v48 = vsub.f32 1.0, %v275_v44 }
  0x29   :  { %v245_v37 = vadd.f32 %v244_v34, %v243_v31  ;;  %v257_v31 = vld [vmem:[%s979_s1] sm:$0x3] }
  0x2a   :  { %v255_v39 = vmul.f32 %v252_v32, %v232_v35  ;;  %v277_v49 = vmul.f32 %v661_v47, %v276_v48  ;;  %502 = vmatpush.bf16.msra.mxu0 %v642_v11  ;;  %v330_v34 = vperm.slane %v257_v31, 0  ;;  %v331_v35 = vperm.slane %v257_v31, 1 }
  0x2b   :  { %v256_v40 = vmul.f32 %v252_v32, %v245_v37  ;;  %515 = vmatpush.bf16.msra.mxu1 %v650_v13  ;;  %v258_v32 = vld [vmem:[%s980_s2] sm:$0x3] }
  0x2c   :  { %v264_v41 = vsel %vm263_vm2, %v255_v39, %v253_v36  ;;  %v278_v50 = vadd.f32 %v661_v47, %v277_v49  ;;  %v339_v37 = vperm.slane %v258_v32, 0 }
  0x2d   :  { %v265_v42 = vsel %vm263_vm2, %v256_v40, %v254_v38  ;;  %v269_v43 = vsel %vm268_vm3, %v264_v41, 0.0  ;;  %v340_v41 = vperm.slane %v258_v32, 1 }
  0x2e   :  { %v270_v45 = vsel %vm268_vm3, %v265_v42, 0.0  ;;  %v280_v52 = vsel %vm279_vm4, %v661_v47, %v278_v50  ;;  %503 = vmatpush.bf16.msra.mxu0 %v641_v14 }
  0x2f   :  { %v271_v46 = vadd.f32 %v270_v45, %v269_v43  ;;  %516 = vmatpush.bf16.msra.mxu1 %v649_v15 }
  0x31   :  { %272 = vadd.xlane.f32.xlu0 %v271_v46 }
  0x32   :  { %504 = vmatpush.bf16.msra.mxu0 %v640_v16 }
  0x33   :  { %517 = vmatpush.bf16.msra.mxu1 %v648_v17 }
  0x36   :  { %505 = vmatpush.bf16.msra.mxu0 %v639_v18 }
  0x37   :  { %518 = vmatpush.bf16.msra.mxu1 %v647_v19 }
  0x3a   :  { %506 = vmatpush.bf16.msra.mxu0 %v638_v22 }
  0x3b   :  { %519 = vmatpush.bf16.msra.mxu1 %v646_v23 }
  0xa4   :  { %v273_v53 = vpop.xlane.xlu0 %272 }
  0xa5   :  { %v281_v56 = vmul.f32 %v280_v52, %v273_v53 }
  0xa7   :  { %v283_v57 = vrot.slane %v281_v56, 1  ;;  %v891_v59 = vsub.f32 %v253_v36, %v281_v56  ;;  %v893_v54 = vsub.f32 %v254_v38, %v281_v56 }
  0xa9   :  { %v895_v55 = vsub.f32 %v255_v39, %v283_v57  ;;  %v897_v61 = vsub.f32 %v256_v40, %v283_v57  ;;  %v290_v0 = vmul.f32 %v891_v59, %v891_v59  ;;  %v291_v60 = vmul.f32 %v893_v54, %v893_v54 }
  0xab   :  { %v292_v62 = vmul.f32 %v895_v55, %v895_v55  ;;  %v293_v63 = vmul.f32 %v897_v61, %v897_v61 }
  0xad   :  { %v298_v1 = vrot.slane %v292_v62, 7  ;;  %v300_v2 = vrot.slane %v293_v63, 7 }
  0xaf   :  { %v299_v3 = vsel %vm263_vm2, %v298_v1, %v290_v0  ;;  %v301_v4 = vsel %vm263_vm2, %v300_v2, %v291_v60 }
  0xb0   :  { %v304_v26 = vsel %vm268_vm3, %v299_v3, 0.0  ;;  %v305_v51 = vsel %vm268_vm3, %v301_v4, 0.0  ;;  %v657_v3 = vld [vmem:[%s982_s4] ss:$0 sm:$0xff]  ;;  %s563_s4 = sshll.u32 %s696_s3, 4  ;;  %s564_s4 = int_to_ptr.vmem [resolvable:$true] %s563_s4 }
  0xb1   :  { %v306_v5 = vadd.f32 %v305_v51, %v304_v26 }
  0xb3   :  { %307 = vadd.xlane.f32.xlu0 %v306_v5 }
 0x126   :  { %v308_v20 = vpop.xlane.xlu0 %307 }
 0x127   :  { %v309_v21 = vmul.f32 %v308_v20, %v280_v52 }
 0x129   :  { %v310_v24 = vadd.f32 1e-06, %v309_v21 }
 0x12b   :  { %662 = vrsqrt.f32 %v310_v24  ;;  %vm317_vm6 = vweird.f32 %v310_v24 }
 0x131   :  { %v663_v25 = vpop.eup %662 }
 0x132   :  { %v312_v27 = vmul.f32 %v663_v25, %v310_v24  ;;  %vm318_vm5 = vweird.f32 %v663_v25 }
 0x133   :  { %vm319_vm7 = vmor %vm317_vm6, %vm318_vm5 }
 0x134   :  { %v313_v28 = vmul.f32 %v663_v25, %v312_v27 }
 0x136   :  { %v314_v29 = vmul.f32 0.5, %v313_v28 }
 0x138   :  { %v315_v30 = vsub.f32 1.5, %v314_v29 }
 0x13a   :  { %v316_v33 = vmul.f32 %v663_v25, %v315_v30 }
 0x13c   :  { %v320_v36 = vsel %vm319_vm7, %v663_v25, %v316_v33 }
 0x13d   :  { %v322_v38 = vrot.slane %v320_v36, 1  ;;  %v325_v39 = vmul.f32 %v320_v36, %v891_v59  ;;  %v326_v40 = vmul.f32 %v320_v36, %v893_v54 }
 0x13f   :  { %v327_v42 = vmul.f32 %v322_v38, %v895_v55  ;;  %v334_v43 = vmul.f32 %v330_v34, %v325_v39  ;;  %v328_v45 = vmul.f32 %v322_v38, %v897_v61  ;;  %v335_v46 = vmul.f32 %v331_v35, %v326_v40 }
 0x141   :  { %v336_v58 = vmul.f32 %v330_v34, %v327_v42  ;;  %v343_v47 = vadd.f32 %v339_v37, %v334_v43  ;;  %v337_v44 = vmul.f32 %v331_v35, %v328_v45  ;;  %v344_v48 = vadd.f32 %v340_v41, %v335_v46 }
 0x143   :  { %v345_v49 = vadd.f32 %v339_v37, %v336_v58  ;;  %v346_v50 = vadd.f32 %v340_v41, %v337_v44  ;;  %v347_v52 = vpack.c.bf16 %v343_v47, %v343_v47  ;;  %v348_v56 = vpack.c.bf16 %v344_v48, %v344_v48 }
 0x145   :  { %v349_v53 = vpack.c.bf16 %v345_v49, %v345_v49  ;;  %v350_v57 = vpack.c.bf16 %v346_v50, %v346_v50  ;;  %v391_v54 = vunpack.c.l.b16 %v347_v52  ;;  %v392_v0 = vunpack.c.l.b16 %v348_v56 }
 0x147   :  { %v393_v59 = vunpack.c.l.b16 %v349_v53  ;;  %v394_v62 = vunpack.c.l.b16 %v350_v57 }
 0x149   :  { %v395_v63 = vrot.slane %v393_v59, 7  ;;  %v397_v55 = vrot.slane %v394_v62, 7 }
 0x14b   :  { %v396_v60 = vsel %vm263_vm2, %v395_v63, %v391_v54  ;;  %v398_v61 = vsel %vm263_vm2, %v397_v55, %v392_v0 }
 0x14c   :  { %v399_v1 = vpack.c.b16 %v396_v60, %v396_v60  ;;  %v400_v2 = vpack.c.b16 %v398_v61, %v398_v61 }
 0x14e   :  { %507 = vmatmul.bf16.vlgmr.msra.gmra.mxu0 %v399_v1  ;;  %520 = vmatmul.bf16.vlgmr.msra.gmra.mxu1 %v400_v2 }
 0x1cb   :  { %v508_v4 = vpop.f32.mrf.mxu0  ;;  %v521_v26 = vpop.f32.mrf.mxu1 }
 0x1cc   :  { %v509_v51 = vadd.f32 %v657_v3, %v508_v4 }
 0x1ce   :  { %v522_v5 = vadd.f32 %v521_v26, %v509_v51 }
 0x1d0   :  { %v525_v7 = vmul.f32 %v522_v5, %v522_v5 }
 0x1d2   :  { %v526_v8 = vsel %vm268_vm3, %v525_v7, 0.0 }
 0x1d3   :  { %v510_v9 = vpop.f32.mrf.mxu0  ;;  %v523_v10 = vpop.f32.mrf.mxu1  ;;  %527 = vadd.xlane.f32.xlu1 %v526_v8 }
 0x246   :  { %v528_v12 = vpop.xlane.xlu1 %527 }
 0x247   :  { %664 = vrsqrt.f32 %v528_v12  ;;  %vm536_vm8 = vcmp.eq.f32.partialorder %v528_v12, inf  ;;  %v539_v18 = vand.u32 2147483648, %v528_v12  ;;  %vm538_vm9 = vcmp.eq.f32.partialorder %v528_v12, 0.0 }
 0x24d   :  { %v665_v6 = vpop.eup %664 }
 0x24e   :  { %v530_v11 = vmul.f32 %v665_v6, %v528_v12 }
 0x250   :  { %v531_v13 = vmul.f32 %v665_v6, %v530_v11 }
 0x252   :  { %v532_v14 = vmul.f32 0.5, %v531_v13 }
 0x254   :  { %v533_v15 = vsub.f32 1.5, %v532_v14 }
 0x256   :  { %v534_v16 = vmul.f32 %v665_v6, %v533_v15 }
 0x258   :  { %v535_v17 = vmul.f32 %v534_v16, %v528_v12 }
 0x25a   :  { %v537_v19 = vsel %vm536_vm8, %v528_v12, %v535_v17 }
 0x25b   :  { %v540_v20 = vsel %vm538_vm9, %v539_v18, %v537_v19 }
 0x25c   :  { %v541_v21 = vmax.f32 %v540_v20, 1e-12 }
 0x25e   :  { %666 = vrcp.f32 %v541_v21  ;;  %v553_v25 = vand.u32 2147483648, %v541_v21  ;;  %v551_v28 = vand.u32 2147483647, %v541_v21  ;;  %vm547_vm11 = vweird.f32 %v541_v21 }
 0x260   :  { %v554_v30 = vor.u32 1.1754944e-38, %v553_v25  ;;  %vm552_vm13 = vcmp.eq.f32.partialorder %v551_v28, 8.507059e+37 }
 0x264   :  { %v667_v22 = vpop.eup %666 }
 0x265   :  { %v543_v23 = vmul.f32 %v667_v22, %v541_v21  ;;  %vm548_vm10 = vweird.f32 %v667_v22 }
 0x266   :  { %vm549_vm12 = vmor %vm547_vm11, %vm548_vm10 }
 0x267   :  { %v544_v24 = vsub.f32 1.0, %v543_v23 }
 0x269   :  { %v545_v27 = vmul.f32 %v667_v22, %v544_v24 }
 0x26b   :  { %v546_v29 = vadd.f32 %v667_v22, %v545_v27 }
 0x26d   :  { %v550_v31 = vsel %vm549_vm12, %v667_v22, %v546_v29 }
 0x26e   :  { %v555_v32 = vsel %vm552_vm13, %v554_v30, %v550_v31 }
 0x26f   :  { %v556_v33 = vmul.f32 %v555_v32, %v522_v5 }
 0x271   :  { %557 = vst [vmem:[#allocation2] sm:$0x3] %v556_v33 }
 0x272   :  { %568 = dma.vmem_to_hbm [thread:$0]  %s564_s4, 32, %s566_s26, [#allocation3]  }
 0x273   :  { %692 = dma.done.wait [#allocation3], 32  }
 0x274   :  { %693 = vsyncadd [#allocation3], 4294967264 }
 0x275   :  { %573 = vsyncpa [#allocation3], 1 }

// kernel: pipeline_forward.4
= control target key start
LH: loop header
LB: loop body
LE: loop exit
PB: predicated region body
PF: predicated region fallthrough
CT: control target
= control target key end

     0   :  { %s12491_s0 = inlined_call_operand.vmem [shape: f32[2,65,256], index: 0, kind: input, shape index: {}]   ;;  %s12492_s1 = inlined_call_operand.vmem [shape: f32[2,1,256], index: 1, kind: input, shape index: {}]   ;;  %s12493_s2 = inlined_call_operand.vmem [shape: f32[2,1,256], index: 2, kind: input, shape index: {}]   ;;  %s12494_s3 = inlined_call_operand.hbm [shape: bf16[2,256,768], index: 3, kind: input, shape index: {}]   ;;  %s12495_s4 = inlined_call_operand.vmem [shape: f32[2,1,768], index: 4, kind: input, shape index: {}]   ;;  %s12496_s5 = inlined_call_operand.vmem [shape: bf16[2,256,256], index: 5, kind: input, shape index: {}]   ;;  %s12497_s6 = inlined_call_operand.vmem [shape: f32[2,1,256], index: 6, kind: input, shape index: {}]   ;;  %s12498_s7 = inlined_call_operand.vmem [shape: f32[2,1,256], index: 7, kind: input, shape index: {}]   ;;  %s12499_s8 = inlined_call_operand.vmem [shape: f32[2,1,256], index: 8, kind: input, shape index: {}]   ;;  %s12500_s9 = inlined_call_operand.vmem [shape: bf16[2,256,1024], index: 9, kind: input, shape index: {}]   ;;  %s12501_s10 = inlined_call_operand.vmem [shape: f32[2,1,1024], index: 10, kind: input, shape index: {}]   ;;  %s12502_s11 = inlined_call_operand.vmem [shape: bf16[2,1024,256], index: 11, kind: input, shape index: {}]   ;;  %s12503_s12 = inlined_call_operand.vmem [shape: f32[2,1,256], index: 12, kind: input, shape index: {}]   ;;  %s12504_s13 = inlined_call_operand.vmem [shape: f32[2,65,256], index: 13, kind: output, shape index: {}]  }
   0x1   :  { %12549 = sst [smem:[#allocation51_spill]] %s12491_s0 }
   0x2   :  { %12550 = sst [smem:[#allocation52_spill]] %s12494_s3 }
   0x3   :  { %12551 = sst [smem:[#allocation53_spill]] %s12495_s4 }
   0x4   :  { %12552 = sst [smem:[#allocation54_spill]] %s12496_s5 }
   0x5   :  { %12553 = sst [smem:[#allocation55_spill]] %s12499_s8 }
   0x6   :  { %12554 = sst [smem:[#allocation56_spill]] %s12502_s11 }
   0x7   :  { %12555 = sst [smem:[#allocation57_spill]] %s12503_s12 }
   0x8   :  { %12556 = sst [smem:[#allocation58_spill]] %s12504_s13 }
   0x9   :  { %18 = vsyncpa [#allocation3], 0 }
   0xa   :  { %20 = vsyncpa [#allocation3 + $0x1], 0  ;;  %s9149_s25 = smov 0   ;;  %s9151_s26 = smov 0  }
   0xb   :  { %s9153_s27 = smov 0   ;;  %s9155_s28 = smov 0  }
   0xc   :  { %s9157_s29 = smov 0   ;;  %s9159_s30 = smov 0  }
   0xd   :  { %s9161_s14 = smov 0   ;;  %s9163_s15 = smov 0  }
   0xe LB: > { %12557 = sst [smem:[#allocation5_spill]] %s9049_s26  ;;  %s6666_s16 = sadd.s32 4294967295, %s9073_s15   ;;  %s9073_s15 = sphi %s9163_s15, %s26_s15   ;;  %s9069_s14 = sphi %s9161_s14, %s12695_s14   ;;  %s9065_s30 = sphi %s9159_s30, %s12694_s30   ;;  %s9061_s29 = sphi %s9157_s29, %s12693_s29   ;;  %s9057_s28 = sphi %s9155_s28, %s12692_s28   ;;  %s9053_s27 = sphi %s9153_s27, %s12691_s27   ;;  %s9049_s26 = sphi %s9151_s26, %s12690_s26   ;;  %s9045_s25 = sphi %s9149_s25, %s12689_s25  }
   0xf   : > { %12558 = sst [smem:[#allocation6_spill]] %s9053_s27  ;;  %s35_s17 = sadd.s32 1, %s9065_s30 }
  0x10   : > { %12559 = sst [smem:[#allocation7_spill]] %s9065_s30  ;;  %p36_p0 = scmp.ge.s32.totalorder %s35_s17, 2 }
  0x11   : > { %12560 = sst [smem:[#allocation8_spill]] %s9069_s14  ;;  %s38_s18 = sadd.s32 1, %s9069_s14 }
  0x12   : > { %12561 = sst [smem:[#allocation9_spill]] %s9073_s15  ;;  %s123_s19 = sadd.s32 1, %s9053_s27 }
  0x13   : > { %p130_p1 = scmp.ne.s32.totalorder %s9053_s27, %s9049_s26  ;;  %s12697_s17 = smov (%p36_p0, %s35_s17), 0 }
  0x14   : > { %12562 = sst [smem:[#allocation10_spill]] %s12697_s17  ;;  %s12699_s18 = smov (!%p36_p0, %s38_s18), %s9069_s14 }
  0x15   : > { %s120_s20 = ssub.s32 %s9065_s30, %s12697_s17  ;;  %p131_p2 = scmp.eq.s32.totalorder %s9073_s15, 0 }
  0x16   : > { %p40_p3 = scmp.ge.s32.totalorder %s12699_s18, 2  ;;  %p121_p4 = scmp.eq.s32.totalorder %s120_s20, 0 }
  0x17   : > { %p132_p5 = por %p131_p2, %p130_p1  ;;  %p136_p6 = scmp.ne.s32.totalorder %s9049_s26, %s9045_s25 }
  0x18   : > { %s12701_s18 = smov (%p40_p3, %s12699_s18), 0  ;;  %p137_p7 = scmp.eq.s32.totalorder %s6666_s16, 0 }
  0x19   : > { %12563 = sst [smem:[#allocation11_spill]] %s12701_s18  ;;  %p8634_p8 = scmp.lt.s32.totalorder %s9073_s15, 4 }
  0x1a   : > { %s9203_s21 = scalar_select %p121_p4, %s9053_s27, %s123_s19  }
  0x1b   : > { %s442_s22 = sand.u32 1, %s9053_s27   ;;  %p9207_p9 = por %p137_p7, %p136_p6 }
  0x1c   : > { %12564 = sst [smem:[#allocation12_spill]] %s9203_s21  ;;  %s8623_s24 = smul.u32 768, %s442_s22 }
  0x1d   : > { %p8631_p10 = pnand %p8634_p8, %p132_p5  ;;  %s8624_s17 = smul.u32 768, %s9065_s30 }
  0x1e   : > { %s12566_s3 = sld [smem:[#allocation52_spill]]  ;;  %s446_s13 = scalar_lea.vmem [#allocation2], %s8623_s24 }
  0x1f   : > { %s454_s18 = sshll.u32 %s446_s13, 4  ;;  %s443_s16 = scalar_lea.sflag [#allocation3], %s442_s22  ;;  %s455_s18 = int_to_ptr.vmem [resolvable:$true] %s454_s18 }
  0x20   : > { %s9075_s21 = smov 384   ;;  %s9076_s27 = smov 24  }
  0x21   : > { %p6671_p11 = scmp.ge.s32.totalorder %s9073_s15, 1  ;;  %p528_p12 = scmp.lt.s32.totalorder %s9073_s15, 5 }
  0x23   : > { %p529_p13 = pnand %p6671_p11, %p528_p12 }
  0x24   : > { %s451_s25 = scalar_lea.hbm %s12566_s3, %s8624_s17 }
  0x25   : > { %s452_s19 = sshll.u32 %s451_s25, 4  ;;  %532 = sbr.rel (%p529_p13) target bundleno = 2491 (0x9bb), region = 72  ;;  %s453_s19 = int_to_ptr.hbm [resolvable:$true] %s452_s19 }
  0x26   : > { %8633 = dma.hbm_to_vmem [thread:$0]  (!%p8631_p10), %s453_s19, 12288, %s455_s18, %s443_s16, %s9075_s21, %s9075_s21, %s9076_s27  }
  0x2a   : > { %s534_s30 = sand.u32 1, %s9049_s26  }
  0x2b   : > { %s8625_s12 = smul.u32 768, %s534_s30  ;;  %s535_s11 = scalar_lea.sflag [#allocation3], %s534_s30 }
  0x2d   : > { %s9218_s14 = scalar_lea.vmem [#allocation2], %s8625_s12 }
  0x2e   : > { %12567 = sst [smem:[#allocation13_spill]] %s9218_s14 }
  0x2f   : > { %9040 = dma.done.wait (%p9207_p9), %s535_s11, 12288  }
  0x30   : > { %9042 = vsyncadd (%p9207_p9), %s535_s11, 4294955008  ;;  %p634_p0 = scmp.lt.s32.totalorder %s9061_s29, 1  ;;  %p639_p1 = scmp.lt.s32.totalorder %s9057_s28, 1 }
  0x31   : > { %s12568_s0 = sld [smem:[#allocation51_spill]]  ;;  %p6687_p2 = scmp.ne.s32.totalorder %s9057_s28, 0 }
  0x32   : > { %s12703_s29 = smov (!%p634_p0, %s9061_s29), 1  ;;  %s12569_s4 = sld [smem:[#allocation53_spill]] }
  0x33   : > { %s640_s13 = scalar_select %p639_p1, %s9057_s28, 1 }
  0x34   : > { %s8626_s27 = smul.u32 144, %s12703_s29  ;;  %s12570_s5 = sld [smem:[#allocation54_spill]] }
  0x35   : > { %s9228_s17 = sshll.u32 %s640_s13, 1  ;;  %s8627_s12 = smul.u32 6, %s640_s13 }
  0x36   : > { %s8236_s3 = sshll.u32 %s640_s13, 8  ;;  %s6682_s26 = sshll.u32 %s640_s13, 3 }
  0x37   : > { %s9233_s18 = scalar_lea.vmem %s12568_s0, %s8626_s27  ;;  %s9273_s0 = scalar_lea.vmem %s12501_s10, %s6682_s26 }
  0x38   : > { %s9246_s16 = scalar_lea.vmem %s12569_s4, %s8627_s12  ;;  %s8237_s12 = sshll.u32 %s640_s13, 10 }
  0x39   : > { %s9268_s4 = scalar_lea.vmem %s12500_s9, %s8237_s12  ;;  %s12572_s21 = sld [smem:[#allocation56_spill]] }
  0x3a   : > { %s9255_s14 = scalar_lea.vmem %s12570_s5, %s8236_s3  ;;  %s12573_s29 = sld [smem:[#allocation57_spill]] }
  0x3b   : > { %s12574_s23 = sld [smem:[#allocation58_spill]] }
  0x3d   : > { %695 = sbr.rel (%p6687_p2) target bundleno = 85 (0x55), region = 80 }
  0x3f   : > { %s9278_s22 = scalar_lea.vmem %s12572_s21, %s8237_s12 }
  0x40   : > { %s685_s25 = scalar_lea.vmem %s12573_s29, %s9228_s17 }
  0x41   : > { %s9287_s19 = scalar_lea.vmem %s12574_s23, %s8626_s27 }
  0x42   : > { %v696_v0 = vld [vmem:[%s9233_s18] sm:$0xff]  ;;  %v697_v1 = vld [vmem:[%s9233_s18 + $0x8] sm:$0xff]  ;;  %v698_v2 = vld [vmem:[%s9233_s18 + $0x10] sm:$0xff] }
  0x43   : > { %714 = vst [vmem:[%s9287_s19] sm:$0xff] %v696_v0  ;;  %v699_v3 = vld [vmem:[%s9233_s18 + $0x18] sm:$0xff]  ;;  %v700_v4 = vld [vmem:[%s9233_s18 + $0x20] sm:$0xff]  ;;  %v701_v5 = vld [vmem:[%s9233_s18 + $0x28] sm:$0xff] }
  0x44   : > { %715 = vst [vmem:[%s9287_s19 + $0x8] sm:$0xff] %v697_v1  ;;  %v702_v6 = vld [vmem:[%s9233_s18 + $0x30] sm:$0xff]  ;;  %v703_v7 = vld [vmem:[%s9233_s18 + $0x38] sm:$0xff]  ;;  %v704_v8 = vld [vmem:[%s9233_s18 + $0x40] sm:$0xff] }
  0x45   : > { %716 = vst [vmem:[%s9287_s19 + $0x10] sm:$0xff] %v698_v2  ;;  %v705_v9 = vld [vmem:[%s9233_s18 + $0x48] sm:$0xff]  ;;  %v706_v10 = vld [vmem:[%s9233_s18 + $0x50] sm:$0xff]  ;;  %v707_v11 = vld [vmem:[%s9233_s18 + $0x58] sm:$0xff] }
  0x46   : > { %717 = vst [vmem:[%s9287_s19 + $0x18] sm:$0xff] %v699_v3  ;;  %v708_v12 = vld [vmem:[%s9233_s18 + $0x60] sm:$0xff]  ;;  %v709_v13 = vld [vmem:[%s9233_s18 + $0x68] sm:$0xff]  ;;  %v710_v14 = vld [vmem:[%s9233_s18 + $0x70] sm:$0xff] }
  0x47   : > { %718 = vst [vmem:[%s9287_s19 + $0x20] sm:$0xff] %v700_v4  ;;  %v711_v15 = vld [vmem:[%s9233_s18 + $0x78] sm:$0xff]  ;;  %v712_v16 = vld [vmem:[%s9233_s18 + $0x80] sm:$0x1]  ;;  %v713_v17 = vld [vmem:[%s9233_s18 + $0x88] sm:$0x1] }
  0x48   : > { %719 = vst [vmem:[%s9287_s19 + $0x28] sm:$0xff] %v701_v5 }
  0x49   : > { %720 = vst [vmem:[%s9287_s19 + $0x30] sm:$0xff] %v702_v6 }
  0x4a   : > { %721 = vst [vmem:[%s9287_s19 + $0x38] sm:$0xff] %v703_v7 }
  0x4b   : > { %722 = vst [vmem:[%s9287_s19 + $0x40] sm:$0xff] %v704_v8 }
  0x4c   : > { %723 = vst [vmem:[%s9287_s19 + $0x48] sm:$0xff] %v705_v9 }
  0x4d   : > { %724 = vst [vmem:[%s9287_s19 + $0x50] sm:$0xff] %v706_v10 }
  0x4e   : > { %725 = vst [vmem:[%s9287_s19 + $0x58] sm:$0xff] %v707_v11 }
  0x4f   : > { %726 = vst [vmem:[%s9287_s19 + $0x60] sm:$0xff] %v708_v12 }
  0x50   : > { %727 = vst [vmem:[%s9287_s19 + $0x68] sm:$0xff] %v709_v13 }
  0x51   : > { %728 = vst [vmem:[%s9287_s19 + $0x70] sm:$0xff] %v710_v14 }
  0x52   : > { %729 = vst [vmem:[%s9287_s19 + $0x78] sm:$0xff] %v711_v15 }
  0x53   : > { %730 = vst [vmem:[%s9287_s19 + $0x80] sm:$0x1] %v712_v16 }
  0x54   : > { %731 = vst [vmem:[%s9287_s19 + $0x88] sm:$0x1] %v713_v17 }
  0x55 PF: > { %v740_v18 = vld [vmem:[%s9287_s19 + $0x40] sm:$0xff]  ;;  %v741_v19 = vld [vmem:[%s9287_s19 + $0x48] sm:$0xff]  ;;  %v9333_v27 = vld [vmem:[%s9287_s19 + $0x30] sm:$0xff]  ;;  %vm776_vm0 = vcmask 1040384   ;;  %v9077_v47 = vmov 256.0   ;;  %s12576_s5 = sld [smem:[#allocation13_spill]]  ;;  %s12577_s13 = scalar_lea.vmem %s12492_s1, %s9228_s17 }
  0x56   : > { %v736_v20 = vld [vmem:[%s9287_s19 + $0x20] sm:$0xff]  ;;  %v764_v21 = vadd.f32 %v741_v19, %v740_v18  ;;  %v737_v22 = vld [vmem:[%s9287_s19 + $0x28] sm:$0xff]  ;;  %v9336_v28 = vld [vmem:[%s9287_s19 + $0x50] sm:$0xff]  ;;  %8703 = vrcp.f32 %v9077_v47  ;;  %s12578_s30 = scalar_lea.vmem %s12493_s2, %s9228_s17  ;;  %s12597_s24 = scalar_lea.vmem %s12497_s6, %s9228_s17 }
  0x57   : > { %v732_v23 = vld [vmem:[%s9287_s19] sm:$0xff]  ;;  %v733_v24 = vld [vmem:[%s9287_s19 + $0x8] sm:$0xff]  ;;  %v758_v25 = vadd.f32 %v737_v22, %v736_v20  ;;  %v9339_v29 = vld [vmem:[%s9287_s19 + $0x58] sm:$0xff]  ;;  %s12617_s15 = scalar_lea.vmem %s12498_s7, %s9228_s17  ;;  %s12618_s21 = sld [smem:[#allocation55_spill]] }
  0x58   : > { %v752_v26 = vadd.f32 %v733_v24, %v732_v23  ;;  %765 = vadd.xlane.f32.xlu2 %v764_v21  ;;  %v9342_v30 = vld [vmem:[%s9287_s19 + $0x38] sm:$0xff]  ;;  %v734_v31 = vld [vmem:[%s9287_s19 + $0x10] sm:$0xff]  ;;  %v767_v33 = vadd.f32 %v9339_v29, %v9336_v28  ;;  %v9357_v38 = vld [vmem:[%s9287_s19 + $0x60] sm:$0xff] }
  0x59   : > { %759 = vadd.xlane.f32.xlu1 %v758_v25  ;;  %v735_v32 = vld [vmem:[%s9287_s19 + $0x18] sm:$0xff]  ;;  %v761_v34 = vadd.f32 %v9342_v30, %v9333_v27  ;;  %v9351_v36 = vld [vmem:[%s9287_s19 + $0x70] sm:$0xff]  ;;  %v9360_v39 = vld [vmem:[%s9287_s19 + $0x68] sm:$0xff] }
  0x5a   : > { %753 = vadd.xlane.f32.xlu0 %v752_v26  ;;  %v755_v35 = vadd.f32 %v735_v32, %v734_v31  ;;  %v9354_v37 = vld [vmem:[%s9287_s19 + $0x78] sm:$0xff]  ;;  %v770_v41 = vadd.f32 %v9360_v39, %v9357_v38  ;;  %v9367_v42 = vld [vmem:[%s9287_s19 + $0x80] sm:$0x1] }
  0x5b   : > { %v773_v40 = vadd.f32 %v9354_v37, %v9351_v36  ;;  %v9370_v43 = vld [vmem:[%s9287_s19 + $0x88] sm:$0x1]  ;;  %v777_v44 = vsel %vm776_vm0, %v9367_v42, 0.0 }
  0x5c   : > { %v778_v45 = vsel %vm776_vm0, %v9370_v43, 0.0  ;;  %v8704_v48 = vpop.eup %8703 }
  0x5d   : > { %v779_v46 = vadd.f32 %v778_v45, %v777_v44  ;;  %v783_v49 = vmul.f32 256.0, %v8704_v48  ;;  %vm787_vm1 = vweird.f32 %v8704_v48  ;;  %s12619_s20 = scalar_lea.vmem %s12618_s21, %s9228_s17 }
  0x5f   : > { %v784_v50 = vsub.f32 1.0, %v783_v49 }
  0x60   : > { %768 = vadd.xlane.f32.xlu2 %v767_v33 }
  0x61   : > { %762 = vadd.xlane.f32.xlu1 %v761_v34  ;;  %v785_v51 = vmul.f32 %v8704_v48, %v784_v50 }
  0x62   : > { %756 = vadd.xlane.f32.xlu0 %v755_v35 }
  0x63   : > { %v786_v52 = vadd.f32 %v8704_v48, %v785_v51 }
  0x65   : > { %v9376_v53 = vsel %vm787_vm1, %v8704_v48, %v786_v52 }
  0x66   : > { %12575 = vst [vmem:[#allocation14_spill] sm:$0xff] %v9376_v53 }
  0x69   : > { %774 = vadd.xlane.f32.xlu1 %v773_v40 }
  0x6a   : > { %771 = vadd.xlane.f32.xlu0 %v770_v41 }
  0x71   : > { %780 = vadd.xlane.f32.xlu1 %v779_v46 }
  0xcb   : > { %v766_v54 = vpop.xlane.xlu2 %765 }
  0xcc   : > { %v793_v55 = vmul.f32 %v9376_v53, %v766_v54  ;;  %v760_v56 = vpop.xlane.xlu1 %759 }
  0xcd   : > { %v754_v57 = vpop.xlane.xlu0 %753  ;;  %v791_v58 = vmul.f32 %v9376_v53, %v760_v56 }
  0xce   : > { %v789_v59 = vmul.f32 %v9376_v53, %v754_v57  ;;  %v9381_v60 = vsub.f32 %v740_v18, %v793_v55  ;;  %v9383_v61 = vsub.f32 %v741_v19, %v793_v55 }
  0xcf   : > { %v9389_v0 = vsub.f32 %v736_v20, %v791_v58  ;;  %v9391_v1 = vsub.f32 %v737_v22, %v791_v58  ;;  %v7050_v58 = vld [vmem:[%s12576_s5 + $0x2d0] sm:$0xf] }
  0xd0   : > { %v9385_v62 = vsub.f32 %v732_v23, %v789_v59  ;;  %v9387_v63 = vsub.f32 %v733_v24, %v789_v59  ;;  %v824_v2 = vmul.f32 %v9381_v60, %v9381_v60  ;;  %v825_v3 = vmul.f32 %v9383_v61, %v9383_v61 }
  0xd1   : > { %v820_v11 = vmul.f32 %v9389_v0, %v9389_v0  ;;  %v821_v12 = vmul.f32 %v9391_v1, %v9391_v1 }
  0xd2   : > { %v816_v4 = vmul.f32 %v9385_v62, %v9385_v62  ;;  %v817_v5 = vmul.f32 %v9387_v63, %v9387_v63  ;;  %v846_v6 = vadd.f32 %v825_v3, %v824_v2  ;;  %v8332_v2 = vld [vmem:[%s12576_s5 + $0x2e4] sm:$0xf0]  ;;  %v8281_v3 = vld [vmem:[%s12576_s5 + $0x154] sm:$0xf] }
  0xd3   : > { %v769_v8 = vpop.xlane.xlu2 %768  ;;  %v840_v18 = vadd.f32 %v821_v12, %v820_v11  ;;  %v8278_v11 = vld [vmem:[%s12576_s5 + $0x134] sm:$0xf0]  ;;  %v7026_v12 = vld [vmem:[%s12576_s5 + $0x2a0] sm:$0xf] }
  0xd4   : > { %v834_v7 = vadd.f32 %v817_v5, %v816_v4  ;;  %v763_v9 = vpop.xlane.xlu1 %762  ;;  %847 = vadd.xlane.f32.xlu1 %v846_v6  ;;  %v794_v14 = vmul.f32 %v9376_v53, %v769_v8  ;;  %v6860_v4 = vld [vmem:[%s12576_s5 + $0x168] sm:$0xf0]  ;;  %v7051_v5 = vor.u32 %v8332_v2, %v7050_v58  ;;  %v8260_v2 = vld [vmem:[%s12576_s5 + $0xa4] sm:$0xf0] }
  0xd5   : > { %v757_v10 = vpop.xlane.xlu0 %756  ;;  %v792_v15 = vmul.f32 %v9376_v53, %v763_v9  ;;  %v6863_v6 = vor.u32 %v8281_v3, %v6860_v4  ;;  %v7052_v8 = vld [vmem:[%s12576_s5 + $0x2e8] sm:$0xf0]  ;;  %v6954_v3 = vld [vmem:[%s12576_s5 + $0x210] sm:$0xf] }
  0xd6   : > { %v790_v13 = vmul.f32 %v9376_v53, %v757_v10  ;;  %835 = vadd.xlane.f32.xlu2 %v834_v7  ;;  %v9413_v19 = vsub.f32 %v9336_v28, %v794_v14  ;;  %v9416_v20 = vsub.f32 %v9339_v29, %v794_v14  ;;  %v8329_v7 = vld [vmem:[%s12576_s5 + $0x2d4] sm:$0xf]  ;;  %1668 = vmatpush.bf16.msra.mxu1 %v7051_v5  ;;  %v6834_v10 = vld [vmem:[%s12576_s5 + $0x120] sm:$0xf]  ;;  %v8326_v14 = vld [vmem:[%s12576_s5 + $0x2b4] sm:$0xf0] }
  0xd7   : > { %v9423_v23 = vsub.f32 %v9333_v27, %v792_v15  ;;  %v9426_v24 = vsub.f32 %v9342_v30, %v792_v15  ;;  %v7055_v9 = vor.u32 %v8329_v7, %v7052_v8  ;;  %1701 = vmatpush.bf16.msra.mxu2 %v6863_v6  ;;  %v8275_v15 = vld [vmem:[%s12576_s5 + $0x124] sm:$0xf]  ;;  %v8308_v5 = vld [vmem:[%s12576_s5 + $0x224] sm:$0xf0]  ;;  %v8257_v6 = vld [vmem:[%s12576_s5 + $0x94] sm:$0xf] }
  0xd8   : > { %v9408_v16 = vsub.f32 %v734_v31, %v790_v13  ;;  %v9410_v17 = vsub.f32 %v735_v32, %v790_v13  ;;  %v826_v29 = vmul.f32 %v9413_v19, %v9413_v19  ;;  %v827_v32 = vmul.f32 %v9416_v20, %v9416_v20  ;;  %v6764_v7 = vld [vmem:[%s12576_s5 + $0xa8] sm:$0xf0] }
  0xd9   : > { %v822_v27 = vmul.f32 %v9423_v23, %v9423_v23  ;;  %v823_v30 = vmul.f32 %v9426_v24, %v9426_v24  ;;  %1734 = vmatpush.bf16.msra.mxu3 %v7055_v9  ;;  %v6835_v13 = vor.u32 %v8278_v11, %v6834_v10  ;;  %v6955_v8 = vor.u32 %v8308_v5, %v6954_v3  ;;  %v8305_v10 = vld [vmem:[%s12576_s5 + $0x214] sm:$0xf]  ;;  %v6956_v11 = vld [vmem:[%s12576_s5 + $0x228] sm:$0xf0]  ;;  %v6882_v5 = vld [vmem:[%s12576_s5 + $0x180] sm:$0xf] }
  0xda   : > { %v818_v21 = vmul.f32 %v9408_v16, %v9408_v16  ;;  %v819_v22 = vmul.f32 %v9410_v17, %v9410_v17  ;;  %v849_v44 = vadd.f32 %v827_v32, %v826_v29  ;;  %v8272_v29 = vld [vmem:[%s12576_s5 + $0x104] sm:$0xf0]  ;;  %v7002_v32 = vld [vmem:[%s12576_s5 + $0x270] sm:$0xf]  ;;  %v6767_v9 = vor.u32 %v8257_v6, %v6764_v7  ;;  %v8290_v7 = vld [vmem:[%s12576_s5 + $0x194] sm:$0xf0] }
  0xdb   : > { %v843_v47 = vadd.f32 %v823_v30, %v822_v27  ;;  %v8320_v27 = vld [vmem:[%s12576_s5 + $0x284] sm:$0xf0]  ;;  %v8269_v30 = vld [vmem:[%s12576_s5 + $0xf4] sm:$0xf] }
  0xdc   : > { %v837_v25 = vadd.f32 %v819_v22, %v818_v21  ;;  %v775_v26 = vpop.xlane.xlu1 %774  ;;  %v7027_v21 = vor.u32 %v8326_v14, %v7026_v12  ;;  %v6959_v12 = vor.u32 %v8305_v10, %v6956_v11  ;;  %v6883_v11 = vor.u32 %v8290_v7, %v6882_v5 }
  0xdd   : > { %v772_v31 = vpop.xlane.xlu0 %771  ;;  %v796_v28 = vmul.f32 %v9376_v53, %v775_v26  ;;  %v7028_v26 = vld [vmem:[%s12576_s5 + $0x2b8] sm:$0xf0] }
  0xde   : > { %841 = vadd.xlane.f32.xlu2 %v840_v18  ;;  %838 = vadd.xlane.f32.xlu0 %v837_v25  ;;  %v795_v33 = vmul.f32 %v9376_v53, %v772_v31  ;;  %v6836_v18 = vld [vmem:[%s12576_s5 + $0x138] sm:$0xf0]  ;;  %v8323_v25 = vld [vmem:[%s12576_s5 + $0x2a4] sm:$0xf] }
  0xdf   : > { %v9439_v34 = vsub.f32 %v9351_v36, %v796_v28  ;;  %v9442_v35 = vsub.f32 %v9354_v37, %v796_v28  ;;  %v6839_v22 = vor.u32 %v8275_v15, %v6836_v18  ;;  %v7031_v31 = vor.u32 %v8323_v25, %v7028_v26  ;;  %1669 = vmatpush.bf16.msra.mxu1 %v7027_v21  ;;  %v6810_v28 = vld [vmem:[%s12576_s5 + $0xf0] sm:$0xf]  ;;  %v6738_v18 = vld [vmem:[%s12576_s5 + $0x60] sm:$0xf]  ;;  %v8254_v21 = vld [vmem:[%s12576_s5 + $0x74] sm:$0xf0] }
  0xe0   : > { %v9449_v45 = vsub.f32 %v9357_v38, %v795_v33  ;;  %v9452_v46 = vsub.f32 %v9360_v39, %v795_v33  ;;  %v6811_v33 = vor.u32 %v8272_v29, %v6810_v28  ;;  %v6930_v25 = vld [vmem:[%s12576_s5 + $0x1e0] sm:$0xf]  ;;  %v8302_v26 = vld [vmem:[%s12576_s5 + $0x1f4] sm:$0xf0]  ;;  %v6740_v29 = vld [vmem:[%s12576_s5 + $0x78] sm:$0xf0] }
  0xe1   : > { %v830_v40 = vmul.f32 %v9439_v34, %v9439_v34  ;;  %v831_v41 = vmul.f32 %v9442_v35, %v9442_v35  ;;  %1702 = vmatpush.bf16.msra.mxu2 %v6839_v22  ;;  %1735 = vmatpush.bf16.msra.mxu3 %v7031_v31  ;;  %v6739_v22 = vor.u32 %v8254_v21, %v6738_v18  ;;  %v8251_v31 = vld [vmem:[%s12576_s5 + $0x64] sm:$0xf] }
  0xe2   : > { %v828_v37 = vmul.f32 %v9449_v45, %v9449_v45  ;;  %v829_v38 = vmul.f32 %v9452_v46, %v9452_v46  ;;  %v6931_v28 = vor.u32 %v8302_v26, %v6930_v25 }
  0xe3   : > { %v855_v48 = vadd.f32 %v831_v41, %v830_v40  ;;  %v6812_v40 = vld [vmem:[%s12576_s5 + $0x108] sm:$0xf0]  ;;  %v7003_v41 = vor.u32 %v8320_v27, %v7002_v32  ;;  %v8299_v32 = vld [vmem:[%s12576_s5 + $0x1e4] sm:$0xf]  ;;  %v6743_v27 = vor.u32 %v8251_v31, %v6740_v29 }
  0xe4   : > { %v781_v36 = vpop.xlane.xlu1 %780  ;;  %v852_v54 = vadd.f32 %v829_v38, %v828_v37  ;;  %v8266_v37 = vld [vmem:[%s12576_s5 + $0xd4] sm:$0xf0]  ;;  %v6978_v38 = vld [vmem:[%s12576_s5 + $0x240] sm:$0xf] }
  0xe5   : > { %v797_v49 = vmul.f32 %v9376_v53, %v781_v36  ;;  %856 = vadd.xlane.f32.xlu1 %v855_v48  ;;  %v7004_v48 = vld [vmem:[%s12576_s5 + $0x288] sm:$0xf0]  ;;  %1670 = vmatpush.bf16.msra.mxu1 %v7003_v41  ;;  %v8248_v41 = vld [vmem:[%s12576_s5 + $0x44] sm:$0xf0] }
  0xe6   : > { %850 = vadd.xlane.f32.xlu2 %v849_v44  ;;  %844 = vadd.xlane.f32.xlu0 %v843_v47  ;;  %v6815_v44 = vor.u32 %v8269_v30, %v6812_v40  ;;  %v8317_v47 = vld [vmem:[%s12576_s5 + $0x274] sm:$0xf]  ;;  %v6714_v40 = vld [vmem:[%s12576_s5 + $0x30] sm:$0xf] }
  0xe7   : > { %v9460_v39 = vsub.f32 %v9367_v42, %v797_v49  ;;  %v9463_v50 = vsub.f32 %v9370_v43, %v797_v49  ;;  %v6858_v42 = vld [vmem:[%s12576_s5 + $0x150] sm:$0xf]  ;;  %v8284_v43 = vld [vmem:[%s12576_s5 + $0x164] sm:$0xf0]  ;;  %v7007_v36 = vor.u32 %v8317_v47, %v7004_v48  ;;  %v6786_v49 = vld [vmem:[%s12576_s5 + $0xc0] sm:$0xf] }
  0xe8   : > { %v6859_v59 = vor.u32 %v8284_v43, %v6858_v42  ;;  %1703 = vmatpush.bf16.msra.mxu2 %v6815_v44  ;;  %v8311_v42 = vld [vmem:[%s12576_s5 + $0x244] sm:$0xf]  ;;  %v6980_v43 = vld [vmem:[%s12576_s5 + $0x258] sm:$0xf0]  ;;  %v6906_v44 = vld [vmem:[%s12576_s5 + $0x1b0] sm:$0xf] }
  0xe9   : > { %v832_v51 = vmul.f32 %v9460_v39, %v9460_v39  ;;  %v833_v52 = vmul.f32 %v9463_v50, %v9463_v50  ;;  %1736 = vmatpush.bf16.msra.mxu3 %v7007_v36  ;;  %v6983_v58 = vor.u32 %v8311_v42, %v6980_v43  ;;  %v6715_v36 = vor.u32 %v8248_v41, %v6714_v40 }
  0xea   : > { %1635 = vmatpush.bf16.msra.mxu0 %v6859_v59  ;;  %v6762_v59 = vld [vmem:[%s12576_s5 + $0x90] sm:$0xf] }
  0xeb   : > { %v858_v55 = vsel %vm776_vm0, %v832_v51, 0.0  ;;  %v859_v56 = vsel %vm776_vm0, %v833_v52, 0.0  ;;  %v6787_v51 = vor.u32 %v8266_v37, %v6786_v49  ;;  %v8314_v52 = vld [vmem:[%s12576_s5 + $0x254] sm:$0xf0]  ;;  %v6763_v4 = vor.u32 %v8260_v2, %v6762_v59  ;;  %v8296_v49 = vld [vmem:[%s12576_s5 + $0x1c4] sm:$0xf0] }
  0xec   : > { %v860_v57 = vadd.f32 %v859_v56, %v858_v55  ;;  %v6788_v55 = vld [vmem:[%s12576_s5 + $0xd8] sm:$0xf0]  ;;  %v6979_v56 = vor.u32 %v8314_v52, %v6978_v38  ;;  %v8245_v37 = vld [vmem:[%s12576_s5 + $0x34] sm:$0xf]  ;;  %v6716_v38 = vld [vmem:[%s12576_s5 + $0x48] sm:$0xf0] }
  0xed   : > { %1737 = vmatpush.bf16.msra.mxu3 %v6983_v58  ;;  %v6690_v2 = vld [vmem:[%s12576_s5] sm:$0xf] }
  0xee   : > { %853 = vadd.xlane.f32.xlu0 %v852_v54  ;;  %861 = vadd.xlane.f32.xlu2 %v860_v57  ;;  %v8263_v54 = vld [vmem:[%s12576_s5 + $0xc4] sm:$0xf] }
  0xef   : > { %1636 = vmatpush.bf16.msra.mxu0 %v6835_v13  ;;  %v6791_v57 = vor.u32 %v8263_v54, %v6788_v55  ;;  %1671 = vmatpush.bf16.msra.mxu1 %v6979_v56  ;;  %v6907_v54 = vor.u32 %v8296_v49, %v6906_v44  ;;  %v6719_v55 = vor.u32 %v8245_v37, %v6716_v38  ;;  %v8293_v56 = vld [vmem:[%s12576_s5 + $0x1b4] sm:$0xf]  ;;  %v750_v37 = vld [vmem:[%s12577_s13] sm:$0x3] }
  0xf1   : > { %1704 = vmatpush.bf16.msra.mxu2 %v6791_v57  ;;  %1738 = vmatpush.bf16.msra.mxu3 %v6959_v12  ;;  %v6908_v57 = vld [vmem:[%s12576_s5 + $0x1c8] sm:$0xf0]  ;;  %v6692_v12 = vld [vmem:[%s12576_s5 + $0x18] sm:$0xf0] }
  0xf2   : > { %v6911_v42 = vor.u32 %v8293_v56, %v6908_v57  ;;  %v9578_v56 = vperm.slane %v750_v37, 0  ;;  %v9580_v57 = vperm.slane %v750_v37, 1 }
  0xf3   : > { %1637 = vmatpush.bf16.msra.mxu0 %v6811_v33  ;;  %1672 = vmatpush.bf16.msra.mxu1 %v6955_v8  ;;  %v6932_v33 = vld [vmem:[%s12576_s5 + $0x1f8] sm:$0xf0]  ;;  %v8239_v8 = vld [vmem:[%s12576_s5 + $0x4] sm:$0xf] }
  0xf4   : > { %v6935_v30 = vor.u32 %v8299_v32, %v6932_v33  ;;  %v6695_v18 = vor.u32 %v8239_v8, %v6692_v12 }
  0xf5   : > { %1705 = vmatpush.bf16.msra.mxu2 %v6767_v9 }
  0xf6   : > { %1739 = vmatpush.bf16.msra.mxu3 %v6935_v30 }
  0xf7   : > { %1638 = vmatpush.bf16.msra.mxu0 %v6787_v51  ;;  %1673 = vmatpush.bf16.msra.mxu1 %v6931_v28 }
  0xf9   : > { %1706 = vmatpush.bf16.msra.mxu2 %v6743_v27 }
  0xfa   : > { %1740 = vmatpush.bf16.msra.mxu3 %v6911_v42 }
  0xfb   : > { %1639 = vmatpush.bf16.msra.mxu0 %v6763_v4  ;;  %1674 = vmatpush.bf16.msra.mxu1 %v6907_v54  ;;  %v8242_v4 = vld [vmem:[%s12576_s5 + $0x14] sm:$0xf0] }
  0xfc   : > { %v6691_v10 = vor.u32 %v8242_v4, %v6690_v2 }
  0xfd   : > { %1707 = vmatpush.bf16.msra.mxu2 %v6719_v55 }
  0xff   : > { %1640 = vmatpush.bf16.msra.mxu0 %v6739_v22  ;;  %1675 = vmatpush.bf16.msra.mxu1 %v6883_v11 }
 0x101   : > { %1708 = vmatpush.bf16.msra.mxu2 %v6695_v18 }
 0x103   : > { %1641 = vmatpush.bf16.msra.mxu0 %v6715_v36 }
 0x107   : > { %1642 = vmatpush.bf16.msra.mxu0 %v6691_v10 }
 0x147   : > { %v848_v6 = vpop.xlane.xlu1 %847 }
 0x148   : > { %v867_v22 = vmul.f32 %v848_v6, %v9376_v53 }
 0x149   : > { %v836_v13 = vpop.xlane.xlu2 %835 }
 0x14a   : > { %v863_v14 = vmul.f32 %v836_v13, %v9376_v53  ;;  %v8287_v13 = vld [vmem:[%s12576_s5 + $0x184] sm:$0xf]  ;;  %v9553_v30 = vadd.f32 1e-06, %v867_v22 }
 0x14c   : > { %v9512_v15 = vadd.f32 1e-06, %v863_v14  ;;  %v6884_v14 = vld [vmem:[%s12576_s5 + $0x198] sm:$0xf0]  ;;  %vm927_vm1 = vweird.f32 %v9553_v30 }
 0x14d   : > { %v6887_v21 = vor.u32 %v8287_v13, %v6884_v14 }
 0x14e   : > { %8705 = vrsqrt.f32 %v9512_v15  ;;  %vm887_vm3 = vweird.f32 %v9512_v15 }
 0x14f   : > { %1741 = vmatpush.bf16.msra.mxu3 %v6887_v21 }
 0x151   : > { %v842_v47 = vpop.xlane.xlu2 %841  ;;  %v839_v48 = vpop.xlane.xlu0 %838 }
 0x152   : > { %v865_v51 = vmul.f32 %v842_v47, %v9376_v53  ;;  %v864_v52 = vmul.f32 %v839_v48, %v9376_v53 }
 0x154   : > { %v8706_v43 = vpop.eup %8705  ;;  %v9533_v58 = vadd.f32 1e-06, %v865_v51  ;;  %v9535_v59 = vadd.f32 1e-06, %v864_v52 }
 0x155   : > { %v882_v3 = vmul.f32 %v8706_v43, %v9512_v15  ;;  %vm888_vm2 = vweird.f32 %v8706_v43  ;;  %v751_v15 = vld [vmem:[%s12578_s30] sm:$0x3] }
 0x156   : > { %8707 = vrsqrt.f32 %v9533_v58  ;;  %vm889_vm4 = vmor %vm887_vm3, %vm888_vm2  ;;  %vm897_vm6 = vweird.f32 %v9535_v59  ;;  %v9587_v6 = vperm.slane %v751_v15, 0  ;;  %vm907_vm8 = vweird.f32 %v9533_v58 }
 0x157   : > { %v883_v9 = vmul.f32 %v8706_v43, %v882_v3  ;;  %8709 = vrsqrt.f32 %v9535_v59 }
 0x158   : > { %v857_v49 = vpop.xlane.xlu1 %856 }
 0x159   : > { %v884_v25 = vmul.f32 0.5, %v883_v9  ;;  %v851_v26 = vpop.xlane.xlu2 %850  ;;  %v845_v28 = vpop.xlane.xlu0 %844  ;;  %v870_v55 = vmul.f32 %v857_v49, %v9376_v53  ;;  %v9591_v9 = vperm.slane %v751_v15, 1 }
 0x15a   : > { %v868_v31 = vmul.f32 %v851_v26, %v9376_v53  ;;  %v866_v32 = vmul.f32 %v845_v28, %v9376_v53 }
 0x15b   : > { %v885_v29 = vsub.f32 1.5, %v884_v25  ;;  %v9593_v11 = vadd.f32 1e-06, %v870_v55 }
 0x15c   : > { %v9551_v33 = vpop.eup %8707  ;;  %v9555_v40 = vadd.f32 1e-06, %v868_v31  ;;  %v9560_v48 = vadd.f32 1e-06, %v866_v32 }
 0x15d   : > { %v8710_v27 = vpop.eup %8709  ;;  %v886_v41 = vmul.f32 %v8706_v43, %v885_v29  ;;  %v902_v44 = vmul.f32 %v9551_v33, %v9533_v58  ;;  %vm908_vm9 = vweird.f32 %v9551_v33  ;;  %v8282_v58 = vld [vmem:[%s12576_s5 + $0x15c] sm:$0xf] }
 0x15e   : > { %v892_v47 = vmul.f32 %v8710_v27, %v9535_v59  ;;  %8711 = vrsqrt.f32 %v9555_v40  ;;  %vm898_vm5 = vweird.f32 %v8710_v27  ;;  %vm917_vm10 = vweird.f32 %v9560_v48  ;;  %vm909_vm12 = vmor %vm907_vm8, %vm908_vm9 }
 0x15f   : > { %8713 = vrsqrt.f32 %v9553_v30  ;;  %v890_v38 = vsel %vm889_vm4, %v8706_v43, %v886_v41  ;;  %v903_v51 = vmul.f32 %v9551_v33, %v902_v44  ;;  %vm899_vm7 = vmor %vm897_vm6, %vm898_vm5  ;;  %vm937_vm14 = vweird.f32 %v9555_v40 }
 0x160   : > { %v893_v36 = vmul.f32 %v8710_v27, %v892_v47  ;;  %8715 = vrsqrt.f32 %v9560_v48  ;;  %v971_v42 = vmul.f32 %v890_v38, %v9385_v62  ;;  %v972_v43 = vmul.f32 %v890_v38, %v9387_v63 }
 0x161   : > { %v854_v2 = vpop.xlane.xlu0 %853  ;;  %v904_v3 = vmul.f32 0.5, %v903_v51  ;;  %v862_v7 = vpop.xlane.xlu2 %861  ;;  %8717 = vrsqrt.f32 %v9593_v11 }
 0x162   : > { %v894_v52 = vmul.f32 0.5, %v893_v36  ;;  %v869_v62 = vmul.f32 %v854_v2, %v9376_v53  ;;  %v994_v12 = vmul.f32 %v9578_v56, %v971_v42  ;;  %v995_v59 = vmul.f32 %v9580_v57, %v972_v43  ;;  %v6868_v42 = vld [vmem:[%s12576_s5 + $0x170] sm:$0xf0]  ;;  %v8330_v43 = vld [vmem:[%s12576_s5 + $0x2dc] sm:$0xf] }
 0x163   : > { %v905_v18 = vsub.f32 1.5, %v904_v3  ;;  %v871_v25 = vmul.f32 %v862_v7, %v9376_v53 }
 0x164   : > { %v895_v54 = vsub.f32 1.5, %v894_v52  ;;  %v9585_v5 = vpop.eup %8711  ;;  %v1017_v29 = vadd.f32 %v9587_v6, %v994_v12  ;;  %v1018_v32 = vadd.f32 %v9591_v9, %v995_v59 }
 0x165   : > { %v9589_v8 = vpop.eup %8713  ;;  %v932_v21 = vmul.f32 %v9585_v5, %v9555_v40  ;;  %v906_v44 = vmul.f32 %v9551_v33, %v905_v18  ;;  %v9619_v49 = vadd.f32 1e-06, %v871_v25  ;;  %vm938_vm15 = vweird.f32 %v9585_v5 }
 0x166   : > { %v896_v4 = vmul.f32 %v8710_v27, %v895_v54  ;;  %v8716_v63 = vpop.eup %8715  ;;  %v922_v26 = vmul.f32 %v9589_v8, %v9553_v30  ;;  %vm928_vm2 = vweird.f32 %v9589_v8  ;;  %vm939_vm3 = vmor %vm937_vm14, %vm938_vm15  ;;  %vm2083_vm14 = vcmask 531456  }
 0x167   : > { %v912_v22 = vmul.f32 %v8716_v63, %v9560_v48  ;;  %v933_v47 = vmul.f32 %v9585_v5, %v932_v21  ;;  %vm918_vm11 = vweird.f32 %v8716_v63  ;;  %v9635_v48 = vpop.eup %8717  ;;  %v910_v15 = vsel %vm909_vm12, %v9551_v33, %v906_v44  ;;  %vm929_vm6 = vmor %vm927_vm1, %vm928_vm2 }
 0x168   : > { %v900_v10 = vsel %vm899_vm7, %v8710_v27, %v896_v4  ;;  %v923_v51 = vmul.f32 %v9589_v8, %v922_v26  ;;  %vm919_vm13 = vmor %vm917_vm10, %vm918_vm11  ;;  %v7060_v4 = vld [vmem:[%s12576_s5 + $0x2f0] sm:$0xf0]  ;;  %v975_v7 = vmul.f32 %v910_v15, %v9389_v0  ;;  %vm967_vm4 = vweird.f32 %v9619_v49 }
 0x169   : > { %v973_v13 = vmul.f32 %v900_v10, %v9408_v16  ;;  %v974_v14 = vmul.f32 %v900_v10, %v9410_v17  ;;  %v913_v16 = vmul.f32 %v8716_v63, %v912_v22  ;;  %v9611_v17 = vadd.f32 1e-06, %v869_v62 }
 0x16a   : > { %v934_v54 = vmul.f32 0.5, %v933_v47  ;;  %v924_v2 = vmul.f32 0.5, %v923_v51  ;;  %v976_v10 = vmul.f32 %v910_v15, %v9391_v1  ;;  %vm957_vm10 = vweird.f32 %v9593_v11 }
 0x16b   : > { %v996_v31 = vmul.f32 %v9578_v56, %v973_v13  ;;  %v997_v28 = vmul.f32 %v9580_v57, %v974_v14  ;;  %v914_v36 = vmul.f32 0.5, %v913_v16  ;;  %8719 = vrsqrt.f32 %v9611_v17 }
 0x16c   : > { %8721 = vrsqrt.f32 %v9619_v49  ;;  %v935_v59 = vsub.f32 1.5, %v934_v54  ;;  %v6871_v13 = vor.u32 %v8282_v58, %v6868_v42  ;;  %v7063_v14 = vor.u32 %v8330_v43, %v7060_v4  ;;  %v6866_v42 = vld [vmem:[%s12576_s5 + $0x158] sm:$0xf]  ;;  %v8285_v43 = vld [vmem:[%s12576_s5 + $0x16c] sm:$0xf0] }
 0x16d   : > { %v1019_v27 = vadd.f32 %v9587_v6, %v996_v31  ;;  %v1020_v41 = vadd.f32 %v9591_v9, %v997_v28  ;;  %v915_v52 = vsub.f32 1.5, %v914_v36  ;;  %v925_v1 = vsub.f32 1.5, %v924_v2  ;;  %v7058_v2 = vld [vmem:[%s12576_s5 + $0x2d8] sm:$0xf]  ;;  %v8333_v4 = vld [vmem:[%s12576_s5 + $0x2ec] sm:$0xf0] }
 0x16e   : > { %1833 = vmatpush.bf16.msrb.mxu2 %v6871_v13  ;;  %1866 = vmatpush.bf16.msrb.mxu3 %v7063_v14  ;;  %v936_v25 = vmul.f32 %v9585_v5, %v935_v59  ;;  %v6842_v59 = vld [vmem:[%s12576_s5 + $0x128] sm:$0xf]  ;;  %v8279_v13 = vld [vmem:[%s12576_s5 + $0x13c] sm:$0xf0]  ;;  %vm947_vm8 = vweird.f32 %v9611_v17  ;;  %vm958_vm11 = vweird.f32 %v9635_v48  ;;  %vm2108_vm15 = vcmask 524288  }
 0x16f   : > { %v9621_v37 = vpack.c.bf16 %v1019_v27, %v1017_v29  ;;  %v9623_v38 = vpack.c.bf16 %v1020_v41, %v1018_v32  ;;  %v916_v55 = vmul.f32 %v8716_v63, %v915_v52  ;;  %v926_v29 = vmul.f32 %v9589_v8, %v925_v1  ;;  %v7036_v1 = vld [vmem:[%s12576_s5 + $0x2c0] sm:$0xf0] }
 0x170   : > { %v940_v41 = vsel %vm939_vm3, %v9585_v5, %v936_v25 }
 0x171   : > { %1643 = vmatmul.bf16.vlgmr.msra.gmra.mxu0 %v9621_v37  ;;  %1676 = vmatmul.bf16.vlgmr.msra.gmra.mxu1 %v9623_v38  ;;  %v920_v3 = vsel %vm919_vm13, %v8716_v63, %v916_v55  ;;  %v9648_v12 = vpop.eup %8719  ;;  %v952_v63 = vmul.f32 %v9635_v48, %v9593_v11  ;;  %v930_v52 = vsel %vm929_vm6, %v9589_v8, %v926_v29  ;;  %v8270_v29 = vld [vmem:[%s12576_s5 + $0xfc] sm:$0xf]  ;;  %vm959_vm13 = vmor %vm957_vm10, %vm958_vm11 }
 0x172   : > { %1709 = vmatmul.bf16.vlgmr.msra.gmra.mxu2 %v9621_v37  ;;  %1742 = vmatmul.bf16.vlgmr.msra.gmra.mxu3 %v9623_v38  ;;  %v977_v62 = vmul.f32 %v920_v3, %v9423_v23  ;;  %v978_v33 = vmul.f32 %v920_v3, %v9426_v24  ;;  %v8722_v18 = vpop.eup %8721  ;;  %v998_v23 = vmul.f32 %v9578_v56, %v975_v7  ;;  %v8276_v7 = vld [vmem:[%s12576_s5 + $0x12c] sm:$0xf]  ;;  %vm948_vm9 = vweird.f32 %v9648_v12 }
 0x173   : > { %v962_v0 = vmul.f32 %v8722_v18, %v9619_v49  ;;  %v999_v24 = vmul.f32 %v9580_v57, %v976_v10  ;;  %v942_v26 = vmul.f32 %v9648_v12, %v9611_v17  ;;  %vm968_vm5 = vweird.f32 %v8722_v18  ;;  %v6844_v10 = vld [vmem:[%s12576_s5 + $0x140] sm:$0xf0]  ;;  %vm9741_vm12 = vmor %vm947_vm8, %vm948_vm9 }
 0x174   : > { %v1000_v21 = vmul.f32 %v9578_v56, %v977_v62  ;;  %v1001_v22 = vmul.f32 %v9580_v57, %v978_v33  ;;  %v1021_v32 = vadd.f32 %v9587_v6, %v998_v23  ;;  %v953_v30 = vmul.f32 %v9635_v48, %v952_v63  ;;  %vm969_vm7 = vmor %vm967_vm4, %vm968_vm5 }
 0x175   : > { %v963_v40 = vmul.f32 %v8722_v18, %v962_v0  ;;  %v1022_v27 = vadd.f32 %v9591_v9, %v999_v24  ;;  %v943_v44 = vmul.f32 %v9648_v12, %v942_v26  ;;  %v981_v15 = vmul.f32 %v940_v41, %v9413_v19  ;;  %v8324_v0 = vld [vmem:[%s12576_s5 + $0x2ac] sm:$0xf]  ;;  %v6818_v26 = vld [vmem:[%s12576_s5 + $0xf8] sm:$0xf] }
 0x176   : > { %v1023_v31 = vadd.f32 %v9587_v6, %v1000_v21  ;;  %v1024_v28 = vadd.f32 %v9591_v9, %v1001_v22  ;;  %v9681_v5 = vmul.f32 0.5, %v953_v30  ;;  %v982_v54 = vmul.f32 %v940_v41, %v9416_v20  ;;  %v8321_v30 = vld [vmem:[%s12576_s5 + $0x28c] sm:$0xf0] }
 0x177   : > { %v964_v16 = vmul.f32 0.5, %v963_v40  ;;  %v9684_v55 = vmul.f32 0.5, %v943_v44  ;;  %v979_v3 = vmul.f32 %v930_v52, %v9381_v60  ;;  %v6867_v20 = vor.u32 %v8285_v43, %v6866_v42  ;;  %v7034_v60 = vld [vmem:[%s12576_s5 + $0x2a8] sm:$0xf]  ;;  %v8273_v40 = vld [vmem:[%s12576_s5 + $0x10c] sm:$0xf0] }
 0x178   : > { %v9673_v36 = vpack.c.bf16 %v1023_v31, %v1021_v32  ;;  %v9675_v51 = vpack.c.bf16 %v1024_v28, %v1022_v27  ;;  %v1004_v62 = vmul.f32 %v9578_v56, %v981_v15  ;;  %v1005_v14 = vmul.f32 %v9580_v57, %v982_v54  ;;  %v6820_v32 = vld [vmem:[%s12576_s5 + $0x110] sm:$0xf0]  ;;  %v8318_v44 = vld [vmem:[%s12576_s5 + $0x27c] sm:$0xf]  ;;  %v6794_v54 = vld [vmem:[%s12576_s5 + $0xc8] sm:$0xf] }
 0x179   : > { %v965_v47 = vsub.f32 1.5, %v964_v16  ;;  %1767 = vmatpush.bf16.msrb.mxu0 %v6867_v20  ;;  %v6847_v21 = vor.u32 %v8276_v7, %v6844_v10  ;;  %v6843_v22 = vor.u32 %v8279_v13, %v6842_v59  ;;  %v945_v23 = vsub.f32 1.5, %v9684_v55  ;;  %v7010_v16 = vld [vmem:[%s12576_s5 + $0x278] sm:$0xf]  ;;  %v6796_v42 = vld [vmem:[%s12576_s5 + $0xe0] sm:$0xf0] }
 0x17a   : > { %v7039_v25 = vor.u32 %v8324_v0, %v7036_v1  ;;  %v1002_v31 = vmul.f32 %v9578_v56, %v979_v3  ;;  %v6823_v41 = vor.u32 %v8270_v29, %v6820_v32  ;;  %v1027_v55 = vadd.f32 %v9587_v6, %v1004_v62  ;;  %v6986_v3 = vld [vmem:[%s12576_s5 + $0x248] sm:$0xf]  ;;  %v8315_v10 = vld [vmem:[%s12576_s5 + $0x25c] sm:$0xf0]  ;;  %v6988_v62 = vld [vmem:[%s12576_s5 + $0x260] sm:$0xf0] }
 0x17b   : > { %v966_v49 = vmul.f32 %v8722_v18, %v965_v47  ;;  %1834 = vmatpush.bf16.msrb.mxu2 %v6847_v21  ;;  %v7012_v47 = vld [vmem:[%s12576_s5 + $0x290] sm:$0xf0]  ;;  %v6770_v21 = vld [vmem:[%s12576_s5 + $0x98] sm:$0xf]  ;;  %v8309_v0 = vld [vmem:[%s12576_s5 + $0x22c] sm:$0xf0] }
 0x17c   : > { %1867 = vmatpush.bf16.msrb.mxu3 %v7039_v25  ;;  %v7015_v15 = vor.u32 %v8318_v44, %v7012_v47  ;;  %v8258_v1 = vld [vmem:[%s12576_s5 + $0x9c] sm:$0xf]  ;;  %v8255_v29 = vld [vmem:[%s12576_s5 + $0x7c] sm:$0xf0]  ;;  %v6938_v32 = vld [vmem:[%s12576_s5 + $0x1e8] sm:$0xf] }
 0x17d   : > { %v970_v58 = vsel %vm969_vm7, %v8722_v18, %v966_v49  ;;  %v7059_v18 = vor.u32 %v8333_v4, %v7058_v2  ;;  %v955_v49 = vsub.f32 1.5, %v9681_v5  ;;  %1768 = vmatpush.bf16.msrb.mxu0 %v6843_v22  ;;  %v946_v5 = vmul.f32 %v9648_v12, %v945_v23  ;;  %v8261_v22 = vld [vmem:[%s12576_s5 + $0xac] sm:$0xf0]  ;;  %v6772_v23 = vld [vmem:[%s12576_s5 + $0xb0] sm:$0xf0] }
 0x17e   : > { %v987_v8 = vmul.f32 %v970_v58, %v9460_v39  ;;  %v988_v19 = vmul.f32 %v970_v58, %v9463_v50  ;;  %v980_v39 = vmul.f32 %v930_v52, %v9383_v61  ;;  %v8327_v61 = vld [vmem:[%s12576_s5 + $0x2bc] sm:$0xf0]  ;;  %v6819_v52 = vor.u32 %v8273_v40, %v6818_v26  ;;  %v8306_v40 = vld [vmem:[%s12576_s5 + $0x21c] sm:$0xf]  ;;  %v6748_v44 = vld [vmem:[%s12576_s5 + $0x80] sm:$0xf0] }
 0x17f   : > { %1800 = vmatpush.bf16.msrb.mxu1 %v7059_v18  ;;  %v7035_v28 = vor.u32 %v8327_v61, %v7034_v60  ;;  %v1028_v58 = vadd.f32 %v9591_v9, %v1005_v14  ;;  %v7011_v2 = vor.u32 %v8321_v30, %v7010_v16  ;;  %1835 = vmatpush.bf16.msrb.mxu2 %v6823_v41  ;;  %v6962_v61 = vld [vmem:[%s12576_s5 + $0x218] sm:$0xf]  ;;  %v8252_v41 = vld [vmem:[%s12576_s5 + $0x6c] sm:$0xf]  ;;  %v8246_v43 = vld [vmem:[%s12576_s5 + $0x3c] sm:$0xf] }
 0x180   : > { %v1010_v50 = vmul.f32 %v9578_v56, %v987_v8  ;;  %v1011_v33 = vmul.f32 %v9580_v57, %v988_v19  ;;  %v1003_v27 = vmul.f32 %v9580_v57, %v980_v39  ;;  %v8267_v8 = vld [vmem:[%s12576_s5 + $0xdc] sm:$0xf0]  ;;  %v8264_v19 = vld [vmem:[%s12576_s5 + $0xcc] sm:$0xf]  ;;  %v1025_v4 = vadd.f32 %v9587_v6, %v1002_v31  ;;  %1868 = vmatpush.bf16.msrb.mxu3 %v7015_v15  ;;  %v6964_v31 = vld [vmem:[%s12576_s5 + $0x230] sm:$0xf0] }
 0x181   : > { %1648 = vmatmul.bf16.gmra.mxu0 %v9673_v36  ;;  %1681 = vmatmul.bf16.gmra.mxu1 %v9675_v51  ;;  %v6799_v20 = vor.u32 %v8264_v19, %v6796_v42  ;;  %v8312_v39 = vld [vmem:[%s12576_s5 + $0x24c] sm:$0xf]  ;;  %v6795_v17 = vor.u32 %v8267_v8, %v6794_v54  ;;  %v950_v13 = vsel %vm9741_vm12, %v9648_v12, %v946_v5  ;;  %v6940_v15 = vld [vmem:[%s12576_s5 + $0x200] sm:$0xf0]  ;;  %v6722_v54 = vld [vmem:[%s12576_s5 + $0x38] sm:$0xf] }
 0x182   : > { %1714 = vmatmul.bf16.gmra.mxu2 %v9673_v36  ;;  %1747 = vmatmul.bf16.gmra.mxu3 %v9675_v51  ;;  %v9710_v24 = vadd.f32 %v9587_v6, %v1010_v50  ;;  %v9713_v63 = vadd.f32 %v9591_v9, %v1011_v33  ;;  %v1026_v7 = vadd.f32 %v9591_v9, %v1003_v27  ;;  %v8303_v27 = vld [vmem:[%s12576_s5 + $0x1fc] sm:$0xf0]  ;;  %v8300_v47 = vld [vmem:[%s12576_s5 + $0x1ec] sm:$0xf]  ;;  %v6914_v42 = vld [vmem:[%s12576_s5 + $0x1b8] sm:$0xf] }
 0x183   : > { %1801 = vmatpush.bf16.msrb.mxu1 %v7035_v28  ;;  %v956_v50 = vmul.f32 %v9635_v48, %v955_v49  ;;  %1769 = vmatpush.bf16.msrb.mxu0 %v6819_v52  ;;  %v9756_v33 = vpack.c.bf16 %v1027_v55, %v1025_v4  ;;  %v6987_v60 = vor.u32 %v8315_v10, %v6986_v3  ;;  %v6746_v28 = vld [vmem:[%s12576_s5 + $0x68] sm:$0xf]  ;;  %v8249_v55 = vld [vmem:[%s12576_s5 + $0x4c] sm:$0xf0]  ;;  %v6724_v3 = vld [vmem:[%s12576_s5 + $0x50] sm:$0xf0] }
 0x184   : > { %v9758_v59 = vpack.c.bf16 %v1028_v58, %v1026_v7  ;;  %1836 = vmatpush.bf16.msrb.mxu2 %v6799_v20  ;;  %v6991_v14 = vor.u32 %v8312_v39, %v6988_v62  ;;  %v983_v18 = vmul.f32 %v950_v13, %v9449_v45  ;;  %v984_v12 = vmul.f32 %v950_v13, %v9452_v46  ;;  %v8297_v5 = vld [vmem:[%s12576_s5 + $0x1cc] sm:$0xf0]  ;;  %v8294_v20 = vld [vmem:[%s12576_s5 + $0x1bc] sm:$0xf]  ;;  %v6916_v4 = vld [vmem:[%s12576_s5 + $0x1d0] sm:$0xf0] }
 0x185   : > { %v960_v11 = vsel %vm959_vm13, %v9635_v48, %v956_v50  ;;  %v6771_v48 = vor.u32 %v8261_v22, %v6770_v21  ;;  %v6963_v25 = vor.u32 %v8309_v0, %v6962_v61  ;;  %v6775_v26 = vor.u32 %v8258_v1, %v6772_v23  ;;  %v6698_v10 = vld [vmem:[%s12576_s5 + $0x8] sm:$0xf]  ;;  %v8243_v39 = vld [vmem:[%s12576_s5 + $0x1c] sm:$0xf0]  ;;  %v8240_v13 = vld [vmem:[%s12576_s5 + $0xc] sm:$0xf] }
 0x186   : > { %1869 = vmatpush.bf16.msrb.mxu3 %v6991_v14  ;;  %v985_v45 = vmul.f32 %v960_v11, %v9439_v34  ;;  %v986_v46 = vmul.f32 %v960_v11, %v9442_v35  ;;  %v6967_v16 = vor.u32 %v8306_v40, %v6964_v31  ;;  %v1006_v34 = vmul.f32 %v9578_v56, %v983_v18  ;;  %v8291_v18 = vld [vmem:[%s12576_s5 + $0x19c] sm:$0xf0]  ;;  %v6892_v21 = vld [vmem:[%s12576_s5 + $0x1a0] sm:$0xf0]  ;;  %v6876_v40 = vld [vmem:[%s12576_s5 + $0x178] sm:$0xf0] }
 0x187   : > { %1802 = vmatpush.bf16.msrb.mxu1 %v7011_v2  ;;  %1770 = vmatpush.bf16.msrb.mxu0 %v6795_v17  ;;  %v1007_v30 = vmul.f32 %v9580_v57, %v984_v12  ;;  %v6747_v35 = vor.u32 %v8255_v29, %v6746_v28  ;;  %v6939_v49 = vor.u32 %v8303_v27, %v6938_v32  ;;  %v6890_v17 = vld [vmem:[%s12576_s5 + $0x188] sm:$0xf]  ;;  %v8288_v12 = vld [vmem:[%s12576_s5 + $0x18c] sm:$0xf]  ;;  %v7068_v29 = vld [vmem:[%s12576_s5 + $0x2f8] sm:$0xf0] }
 0x188   : > { %1837 = vmatpush.bf16.msrb.mxu2 %v6775_v26  ;;  %v6751_v52 = vor.u32 %v8252_v41, %v6748_v44  ;;  %v1008_v58 = vmul.f32 %v9578_v56, %v985_v45  ;;  %v1009_v8 = vmul.f32 %v9580_v57, %v986_v46  ;;  %v6943_v19 = vor.u32 %v8300_v47, %v6940_v15  ;;  %v7066_v45 = vld [vmem:[%s12576_s5 + $0x2e0] sm:$0xf]  ;;  %v8283_v26 = vld [vmem:[%s12576_s5 + $0x164] sm:$0xf]  ;;  %v6850_v27 = vld [vmem:[%s12576_s5 + $0x130] sm:$0xf] }
 0x189   : > { %v6723_v2 = vor.u32 %v8249_v55, %v6722_v54  ;;  %v1029_v7 = vadd.f32 %v9587_v6, %v1006_v34  ;;  %v1030_v56 = vadd.f32 %v9591_v9, %v1007_v30  ;;  %v6727_v57 = vor.u32 %v8246_v43, %v6724_v3  ;;  %v8280_v34 = vld [vmem:[%s12576_s5 + $0x144] sm:$0xf0]  ;;  %v7042_v30 = vld [vmem:[%s12576_s5 + $0x2b0] sm:$0xf]  ;;  %v8277_v44 = vld [vmem:[%s12576_s5 + $0x134] sm:$0xf] }
 0x18a   : > { %1870 = vmatpush.bf16.msrb.mxu3 %v6967_v16  ;;  %v6915_v62 = vor.u32 %v8297_v5, %v6914_v42  ;;  %v6919_v50 = vor.u32 %v8294_v20, %v6916_v4  ;;  %v1031_v14 = vadd.f32 %v9587_v6, %v1008_v58  ;;  %v1032_v11 = vadd.f32 %v9591_v9, %v1009_v8  ;;  %v8331_v16 = vld [vmem:[%s12576_s5 + $0x2e4] sm:$0xf]  ;;  %v8328_v41 = vld [vmem:[%s12576_s5 + $0x2c4] sm:$0xf0]  ;;  %v6852_v47 = vld [vmem:[%s12576_s5 + $0x148] sm:$0xf0] }
 0x18b   : > { %1803 = vmatpush.bf16.msrb.mxu1 %v6987_v60  ;;  %1771 = vmatpush.bf16.msrb.mxu0 %v6771_v48  ;;  %v6700_v60 = vld [vmem:[%s12576_s5 + $0x20] sm:$0xf0]  ;;  %v6699_v22 = vor.u32 %v8243_v39, %v6698_v10  ;;  %v6891_v1 = vor.u32 %v8291_v18, %v6890_v17  ;;  %v6895_v23 = vor.u32 %v8288_v12, %v6892_v21  ;;  %v8325_v15 = vld [vmem:[%s12576_s5 + $0x2b4] sm:$0xf]  ;;  %v7044_v54 = vld [vmem:[%s12576_s5 + $0x2c8] sm:$0xf0] }
 0x18c   : > { %1838 = vmatpush.bf16.msrb.mxu2 %v6751_v52  ;;  %v9812_v61 = vpack.c.bf16 %v1031_v14, %v1029_v7  ;;  %v9814_v48 = vpack.c.bf16 %v1032_v11, %v1030_v56  ;;  %v6703_v0 = vor.u32 %v8240_v13, %v6700_v60  ;;  %v9822_v6 = vpack.c.bf16 %v9710_v24, %v9710_v24  ;;  %v6874_v24 = vld [vmem:[%s12576_s5 + $0x160] sm:$0xf]  ;;  %v8274_v8 = vld [vmem:[%s12576_s5 + $0x114] sm:$0xf0]  ;;  %v6828_v3 = vld [vmem:[%s12576_s5 + $0x118] sm:$0xf0] }
 0x18d   : > { %v9826_v9 = vpack.c.bf16 %v9713_v63, %v9713_v63  ;;  %v8286_v63 = vld [vmem:[%s12576_s5 + $0x174] sm:$0xf0]  ;;  %v6879_v28 = vor.u32 %v8283_v26, %v6876_v40  ;;  %v7071_v32 = vor.u32 %v8331_v16, %v7068_v29  ;;  %v6855_v52 = vor.u32 %v8277_v44, %v6852_v47  ;;  %v6826_v55 = vld [vmem:[%s12576_s5 + $0x100] sm:$0xf]  ;;  %v8319_v20 = vld [vmem:[%s12576_s5 + $0x284] sm:$0xf] }
 0x18e   : > { %1871 = vmatpush.bf16.msrb.mxu3 %v6943_v19  ;;  %v6875_v46 = vor.u32 %v8286_v63, %v6874_v24  ;;  %v7047_v58 = vor.u32 %v8325_v15, %v7044_v54  ;;  %v7018_v19 = vld [vmem:[%s12576_s5 + $0x280] sm:$0xf]  ;;  %v8322_v42 = vld [vmem:[%s12576_s5 + $0x294] sm:$0xf0]  ;;  %v6827_v5 = vor.u32 %v8274_v8, %v6826_v55  ;;  %v7020_v7 = vld [vmem:[%s12576_s5 + $0x298] sm:$0xf0] }
 0x18f   : > { %1804 = vmatpush.bf16.msrb.mxu1 %v6963_v25  ;;  %1772 = vmatpush.bf16.msrb.mxu0 %v6747_v35  ;;  %v8334_v25 = vld [vmem:[%s12576_s5 + $0x2f4] sm:$0xf0]  ;;  %v6851_v35 = vor.u32 %v8280_v34, %v6850_v27  ;;  %v7019_v43 = vor.u32 %v8322_v42, %v7018_v19  ;;  %v7023_v56 = vor.u32 %v8319_v20, %v7020_v7  ;;  %v8268_v10 = vld [vmem:[%s12576_s5 + $0xe4] sm:$0xf0]  ;;  %v6994_v39 = vld [vmem:[%s12576_s5 + $0x250] sm:$0xf] }
 0x190   : > { %1839 = vmatpush.bf16.msrb.mxu2 %v6727_v57  ;;  %v7067_v31 = vor.u32 %v8334_v25, %v7066_v45  ;;  %v6802_v57 = vld [vmem:[%s12576_s5 + $0xd0] sm:$0xf]  ;;  %v8316_v17 = vld [vmem:[%s12576_s5 + $0x264] sm:$0xf0]  ;;  %v8265_v13 = vld [vmem:[%s12576_s5 + $0xd4] sm:$0xf] }
 0x191   : > { %1653 = vmatmul.bf16.gmra.mxu0 %v9756_v33  ;;  %1686 = vmatmul.bf16.gmra.mxu1 %v9758_v59  ;;  %v6804_v60 = vld [vmem:[%s12576_s5 + $0xe8] sm:$0xf0]  ;;  %v6995_v14 = vor.u32 %v8316_v17, %v6994_v39  ;;  %v8313_v18 = vld [vmem:[%s12576_s5 + $0x254] sm:$0xf]  ;;  %v6778_v21 = vld [vmem:[%s12576_s5 + $0xa0] sm:$0xf] }
 0x192   : > { %1719 = vmatmul.bf16.gmra.mxu2 %v9756_v33  ;;  %1752 = vmatmul.bf16.gmra.mxu3 %v9758_v59  ;;  %v6807_v11 = vor.u32 %v8265_v13, %v6804_v60  ;;  %v6996_v12 = vld [vmem:[%s12576_s5 + $0x268] sm:$0xf0]  ;;  %v8259_v45 = vld [vmem:[%s12576_s5 + $0xa4] sm:$0xf]  ;;  %v6972_v40 = vld [vmem:[%s12576_s5 + $0x238] sm:$0xf0] }
 0x193   : > { %1805 = vmatpush.bf16.msrb.mxu1 %v6939_v49  ;;  %1773 = vmatpush.bf16.msrb.mxu0 %v6723_v2  ;;  %v7043_v49 = vor.u32 %v8328_v41, %v7042_v30  ;;  %v8271_v2 = vld [vmem:[%s12576_s5 + $0x104] sm:$0xf]  ;;  %v6754_v16 = vld [vmem:[%s12576_s5 + $0x70] sm:$0xf]  ;;  %v8256_v29 = vld [vmem:[%s12576_s5 + $0x84] sm:$0xf0] }
 0x194   : > { %1872 = vmatpush.bf16.msrb.mxu3 %v6919_v50  ;;  %1840 = vmatpush.bf16.msrb.mxu2 %v6703_v0  ;;  %v6831_v4 = vor.u32 %v8271_v2, %v6828_v3  ;;  %v6803_v50 = vor.u32 %v8268_v10, %v6802_v57  ;;  %v8262_v0 = vld [vmem:[%s12576_s5 + $0xb4] sm:$0xf0]  ;;  %v8307_v25 = vld [vmem:[%s12576_s5 + $0x224] sm:$0xf]  ;;  %v6755_v27 = vor.u32 %v8256_v29, %v6754_v16  ;;  %v8304_v34 = vld [vmem:[%s12576_s5 + $0x204] sm:$0xf0] }
 0x195   : > { %v6779_v24 = vor.u32 %v8262_v0, %v6778_v21  ;;  %v8253_v30 = vld [vmem:[%s12576_s5 + $0x74] sm:$0xf]  ;;  %v6922_v8 = vld [vmem:[%s12576_s5 + $0x1c0] sm:$0xf]  ;;  %v8298_v19 = vld [vmem:[%s12576_s5 + $0x1d4] sm:$0xf0] }
 0x196   : > { %v8301_v47 = vld [vmem:[%s12576_s5 + $0x1f4] sm:$0xf]  ;;  %v6732_v2 = vld [vmem:[%s12576_s5 + $0x58] sm:$0xf0]  ;;  %v8295_v3 = vld [vmem:[%s12576_s5 + $0x1c4] sm:$0xf]  ;;  %v6923_v20 = vor.u32 %v8298_v19, %v6922_v8 }
 0x197   : > { %1806 = vmatpush.bf16.msrb.mxu1 %v6915_v62  ;;  %1774 = vmatpush.bf16.msrb.mxu0 %v6699_v22  ;;  %v9872_v62 = vld [vmem:[%s9246_s16] sm:$0x3f]  ;;  %v6999_v22 = vor.u32 %v8313_v18, %v6996_v12  ;;  %v6924_v7 = vld [vmem:[%s12576_s5 + $0x1d8] sm:$0xf0]  ;;  %v6706_v39 = vld [vmem:[%s12576_s5 + $0x10] sm:$0xf] }
 0x198   : > { %1873 = vmatpush.bf16.msrb.mxu3 %v6895_v23  ;;  %1965 = vmatpush.bf16.msra.mxu2 %v6879_v28  ;;  %v8310_v23 = vld [vmem:[%s12576_s5 + $0x234] sm:$0xf0]  ;;  %v6975_v28 = vor.u32 %v8307_v25, %v6972_v40  ;;  %v9911_v57 = vperm.slane %v9872_v62, 1  ;;  %v6927_v10 = vor.u32 %v8295_v3, %v6924_v7  ;;  %v6898_v13 = vld [vmem:[%s12576_s5 + $0x190] sm:$0xf] }
 0x199   : > { %v8292_v60 = vld [vmem:[%s12576_s5 + $0x1a4] sm:$0xf0]  ;;  %v6708_v12 = vld [vmem:[%s12576_s5 + $0x28] sm:$0xf0]  ;;  %v8289_v21 = vld [vmem:[%s12576_s5 + $0x194] sm:$0xf] }
 0x19a   : > { %v6899_v18 = vor.u32 %v8292_v60, %v6898_v13 }
 0x19b   : > { %1807 = vmatpush.bf16.msrb.mxu1 %v6891_v1  ;;  %1899 = vmatpush.bf16.msra.mxu0 %v6875_v46  ;;  %v6970_v1 = vld [vmem:[%s12576_s5 + $0x220] sm:$0xf]  ;;  %v6780_v46 = vld [vmem:[%s12576_s5 + $0xb8] sm:$0xf0] }
 0x19c   : > { %1998 = vmatpush.bf16.msra.mxu3 %v7071_v32  ;;  %1966 = vmatpush.bf16.msra.mxu2 %v6855_v52  ;;  %v6971_v63 = vor.u32 %v8310_v23, %v6970_v1  ;;  %v6783_v26 = vor.u32 %v8259_v45, %v6780_v46  ;;  %v6946_v32 = vld [vmem:[%s12576_s5 + $0x1f0] sm:$0xf]  ;;  %v6730_v52 = vld [vmem:[%s12576_s5 + $0x40] sm:$0xf] }
 0x19d   : > { %v6947_v41 = vor.u32 %v8304_v34, %v6946_v32 }
 0x19f   : > { %1932 = vmatpush.bf16.msra.mxu1 %v7067_v31  ;;  %1900 = vmatpush.bf16.msra.mxu0 %v6851_v35  ;;  %v9888_v31 = vperm.slane %v9872_v62, 0  ;;  %v6756_v35 = vld [vmem:[%s12576_s5 + $0x88] sm:$0xf0] }
 0x1a0   : > { %1999 = vmatpush.bf16.msra.mxu3 %v7047_v58  ;;  %1967 = vmatpush.bf16.msra.mxu2 %v6831_v4  ;;  %v6759_v44 = vor.u32 %v8253_v30, %v6756_v35  ;;  %v8250_v58 = vld [vmem:[%s12576_s5 + $0x54] sm:$0xf0] }
 0x1a1   : > { %1658 = vmatmul.bf16.gmra.mxu0 %v9812_v61  ;;  %1691 = vmatmul.bf16.gmra.mxu1 %v9814_v48 }
 0x1a2   : > { %1724 = vmatmul.bf16.gmra.mxu2 %v9812_v61  ;;  %1757 = vmatmul.bf16.gmra.mxu3 %v9814_v48 }
 0x1a3   : > { %1933 = vmatpush.bf16.msra.mxu1 %v7043_v49  ;;  %1901 = vmatpush.bf16.msra.mxu0 %v6827_v5  ;;  %v6948_v49 = vld [vmem:[%s12576_s5 + $0x208] sm:$0xf0]  ;;  %v6731_v5 = vor.u32 %v8250_v58, %v6730_v52 }
 0x1a4   : > { %2000 = vmatpush.bf16.msra.mxu3 %v7023_v56  ;;  %1968 = vmatpush.bf16.msra.mxu2 %v6807_v11  ;;  %v6951_v55 = vor.u32 %v8301_v47, %v6948_v49 }
 0x1a7   : > { %1934 = vmatpush.bf16.msra.mxu1 %v7019_v43  ;;  %1902 = vmatpush.bf16.msra.mxu0 %v6803_v50  ;;  %v8247_v43 = vld [vmem:[%s12576_s5 + $0x44] sm:$0xf]  ;;  %v8244_v50 = vld [vmem:[%s12576_s5 + $0x24] sm:$0xf0] }
 0x1a8   : > { %2001 = vmatpush.bf16.msra.mxu3 %v6999_v22  ;;  %1969 = vmatpush.bf16.msra.mxu2 %v6783_v26  ;;  %v6735_v4 = vor.u32 %v8247_v43, %v6732_v2  ;;  %v6707_v17 = vor.u32 %v8244_v50, %v6706_v39  ;;  %v6900_v22 = vld [vmem:[%s12576_s5 + $0x1a8] sm:$0xf0] }
 0x1ab   : > { %1935 = vmatpush.bf16.msra.mxu1 %v6995_v14  ;;  %1903 = vmatpush.bf16.msra.mxu0 %v6779_v24  ;;  %v8241_v14 = vld [vmem:[%s12576_s5 + $0x14] sm:$0xf] }
 0x1ac   : > { %2002 = vmatpush.bf16.msra.mxu3 %v6975_v28  ;;  %1970 = vmatpush.bf16.msra.mxu2 %v6759_v44  ;;  %v6711_v24 = vor.u32 %v8241_v14, %v6708_v12 }
 0x1af   : > { %1936 = vmatpush.bf16.msra.mxu1 %v6971_v63  ;;  %1904 = vmatpush.bf16.msra.mxu0 %v6755_v27  ;;  %v6903_v63 = vor.u32 %v8289_v21, %v6900_v22 }
 0x1b0   : > { %2003 = vmatpush.bf16.msra.mxu3 %v6951_v55  ;;  %1971 = vmatpush.bf16.msra.mxu2 %v6735_v4 }
 0x1b1   : > { %1663 = vmatmul.bf16.gmra.mxu0 %v9822_v6  ;;  %1696 = vmatmul.bf16.gmra.mxu1 %v9826_v9 }
 0x1b2   : > { %1729 = vmatmul.bf16.gmra.mxu2 %v9822_v6  ;;  %1762 = vmatmul.bf16.gmra.mxu3 %v9826_v9 }
 0x1b3   : > { %1937 = vmatpush.bf16.msra.mxu1 %v6947_v41  ;;  %1905 = vmatpush.bf16.msra.mxu0 %v6731_v5 }
 0x1b4   : > { %2004 = vmatpush.bf16.msra.mxu3 %v6927_v10  ;;  %1972 = vmatpush.bf16.msra.mxu2 %v6711_v24 }
 0x1b7   : > { %1938 = vmatpush.bf16.msra.mxu1 %v6923_v20  ;;  %1906 = vmatpush.bf16.msra.mxu0 %v6707_v17 }
 0x1b8   : > { %2005 = vmatpush.bf16.msra.mxu3 %v6903_v63 }
 0x1bb   : > { %1939 = vmatpush.bf16.msra.mxu1 %v6899_v18 }
 0x1c1   : > { %1775 = vmatmul.bf16.vlgmr.msrb.gmra.mxu0 %v9621_v37  ;;  %1808 = vmatmul.bf16.vlgmr.msrb.gmra.mxu1 %v9623_v38 }
 0x1c2   : > { %1841 = vmatmul.bf16.vlgmr.msrb.gmra.mxu2 %v9621_v37  ;;  %1874 = vmatmul.bf16.vlgmr.msrb.gmra.mxu3 %v9623_v38 }
 0x1d1   : > { %1780 = vmatmul.bf16.gmra.mxu0 %v9673_v36  ;;  %1813 = vmatmul.bf16.gmra.mxu1 %v9675_v51 }
 0x1d2   : > { %1846 = vmatmul.bf16.gmra.mxu2 %v9673_v36  ;;  %1879 = vmatmul.bf16.gmra.mxu3 %v9675_v51 }
 0x1e1   : > { %1785 = vmatmul.bf16.gmra.mxu0 %v9756_v33  ;;  %1818 = vmatmul.bf16.gmra.mxu1 %v9758_v59 }
 0x1e2   : > { %1851 = vmatmul.bf16.gmra.mxu2 %v9756_v33  ;;  %1884 = vmatmul.bf16.gmra.mxu3 %v9758_v59 }
 0x1ee   : > { %v1644_v15 = vpop.f32.mrf.mxu0  ;;  %v1677_v54 = vpop.f32.mrf.mxu1 }
 0x1ef   : > { %v1645_v42 = vadd.f32 %v1644_v15, %v9888_v31 }
 0x1f1   : > { %v1678_v56 = vadd.f32 %v1677_v54, %v1645_v42  ;;  %1790 = vmatmul.bf16.gmra.mxu0 %v9812_v61  ;;  %1823 = vmatmul.bf16.gmra.mxu1 %v9814_v48 }
 0x1f2   : > { %1856 = vmatmul.bf16.gmra.mxu2 %v9812_v61  ;;  %1889 = vmatmul.bf16.gmra.mxu3 %v9814_v48 }
 0x1f3   : > { %v9924_v40 = vmul.f32 0.088388346, %v1678_v56 }
 0x1f5   : > { %v1710_v11 = vpop.f32.mrf.mxu2  ;;  %v1743_v1 = vpop.f32.mrf.mxu3 }
 0x1f6   : > { %v1711_v0 = vadd.f32 %v1710_v11, %v9911_v57  ;;  %v1646_v23 = vpop.f32.mrf.mxu0  ;;  %v1679_v46 = vpop.f32.mrf.mxu1 }
 0x1f7   : > { %v1647_v45 = vadd.f32 %v1646_v23, %v9888_v31 }
 0x1f8   : > { %v1744_v25 = vadd.f32 %v1743_v1, %v1711_v0 }
 0x1f9   : > { %v1680_v26 = vadd.f32 %v1679_v46, %v1647_v45 }
 0x1fa   : > { %v9934_v47 = vmul.f32 0.088388346, %v1744_v25 }
 0x1fb   : > { %v9926_v28 = vmul.f32 0.088388346, %v1680_v26 }
 0x1fd   : > { %v1712_v29 = vpop.f32.mrf.mxu2  ;;  %v1745_v27 = vpop.f32.mrf.mxu3 }
 0x1fe   : > { %v1713_v32 = vadd.f32 %v1712_v29, %v9911_v57  ;;  %v1649_v34 = vpop.f32.mrf.mxu0  ;;  %v1682_v35 = vpop.f32.mrf.mxu1 }
 0x1ff   : > { %v1650_v30 = vadd.f32 %v1649_v34, %v9888_v31 }
 0x200   : > { %v1746_v41 = vadd.f32 %v1745_v27, %v1713_v32 }
 0x201   : > { %v1683_v44 = vadd.f32 %v1682_v35, %v1650_v30  ;;  %1795 = vmatmul.bf16.gmra.mxu0 %v9822_v6  ;;  %1828 = vmatmul.bf16.gmra.mxu1 %v9826_v9 }
 0x202   : > { %v9936_v49 = vmul.f32 0.088388346, %v1746_v41  ;;  %1861 = vmatmul.bf16.gmra.mxu2 %v9822_v6  ;;  %1894 = vmatmul.bf16.gmra.mxu3 %v9826_v9 }
 0x203   : > { %v9944_v43 = vmul.f32 0.088388346, %v1683_v44 }
 0x205   : > { %v1715_v15 = vpop.f32.mrf.mxu2  ;;  %v1748_v55 = vpop.f32.mrf.mxu3 }
 0x206   : > { %v1716_v54 = vadd.f32 %v1715_v15, %v9911_v57  ;;  %v1651_v58 = vpop.f32.mrf.mxu0  ;;  %v1684_v19 = vpop.f32.mrf.mxu1 }
 0x207   : > { %v1652_v8 = vadd.f32 %v1651_v58, %v9888_v31 }
 0x208   : > { %v1749_v42 = vadd.f32 %v1748_v55, %v1716_v54 }
 0x209   : > { %v1685_v5 = vadd.f32 %v1684_v19, %v1652_v8 }
 0x20a   : > { %v9954_v13 = vmul.f32 0.088388346, %v1749_v42 }
 0x20b   : > { %v9946_v2 = vmul.f32 0.088388346, %v1685_v5 }
 0x20d   : > { %v1717_v3 = vpop.f32.mrf.mxu2  ;;  %v1750_v7 = vpop.f32.mrf.mxu3 }
 0x20e   : > { %v1718_v4 = vadd.f32 %v1717_v3, %v9911_v57  ;;  %v1654_v56 = vpop.f32.mrf.mxu0  ;;  %v1687_v39 = vpop.f32.mrf.mxu1 }
 0x20f   : > { %v1655_v10 = vadd.f32 %v1654_v56, %v9888_v31 }
 0x210   : > { %v1751_v50 = vadd.f32 %v1750_v7, %v1718_v4 }
 0x211   : > { %v1688_v17 = vadd.f32 %v1687_v39, %v1655_v10  ;;  %1907 = vmatmul.bf16.vlgmr.msra.gmra.mxu0 %v9621_v37  ;;  %1940 = vmatmul.bf16.vlgmr.msra.gmra.mxu1 %v9623_v38 }
 0x212   : > { %v9956_v60 = vmul.f32 0.088388346, %v1751_v50  ;;  %1973 = vmatmul.bf16.vlgmr.msra.gmra.mxu2 %v9621_v37  ;;  %2006 = vmatmul.bf16.vlgmr.msra.gmra.mxu3 %v9623_v38  ;;  %v10006_v50 = vperm.slane %v9872_v62, 2 }
 0x213   : > { %v9964_v24 = vmul.f32 0.088388346, %v1688_v17 }
 0x215   : > { %v1720_v11 = vpop.f32.mrf.mxu2  ;;  %v1753_v12 = vpop.f32.mrf.mxu3 }
 0x216   : > { %v1721_v18 = vadd.f32 %v1720_v11, %v9911_v57  ;;  %v1656_v21 = vpop.f32.mrf.mxu0  ;;  %v1689_v0 = vpop.f32.mrf.mxu1 }
 0x217   : > { %v1657_v22 = vadd.f32 %v1656_v21, %v9888_v31 }
 0x218   : > { %v1754_v1 = vadd.f32 %v1753_v12, %v1721_v18 }
 0x219   : > { %v1690_v23 = vadd.f32 %v1689_v0, %v1657_v22 }
 0x21a   : > { %v9976_v34 = vmul.f32 0.088388346, %v1754_v1 }
 0x21b   : > { %v9966_v63 = vmul.f32 0.088388346, %v1690_v23 }
 0x21d   : > { %v1722_v37 = vpop.f32.mrf.mxu2  ;;  %v1755_v46 = vpop.f32.mrf.mxu3 }
 0x21e   : > { %v1723_v45 = vadd.f32 %v1722_v37, %v9911_v57  ;;  %v1659_v25 = vpop.f32.mrf.mxu0  ;;  %v1692_v29 = vpop.f32.mrf.mxu1 }
 0x21f   : > { %v1660_v26 = vadd.f32 %v1659_v25, %v9888_v31 }
 0x220   : > { %v1756_v32 = vadd.f32 %v1755_v46, %v1723_v45 }
 0x221   : > { %v9972_v27 = vadd.f32 %v1692_v29, %v1660_v26  ;;  %1912 = vmatmul.bf16.gmra.mxu0 %v9673_v36  ;;  %1945 = vmatmul.bf16.gmra.mxu1 %v9675_v51 }
 0x222   : > { %v9978_v30 = vmul.f32 0.088388346, %v1756_v32  ;;  %1978 = vmatmul.bf16.gmra.mxu2 %v9673_v36  ;;  %2011 = vmatmul.bf16.gmra.mxu3 %v9675_v51 }
 0x223   : > { %12581 = vst [vmem:[#allocation15_spill] sm:$0xff] %v9972_v27 }
 0x225   : > { %v1725_v41 = vpop.f32.mrf.mxu2  ;;  %v1758_v15 = vpop.f32.mrf.mxu3 }
 0x226   : > { %v1726_v44 = vadd.f32 %v1725_v41, %v9911_v57  ;;  %v9985_v54 = vpop.f32.mrf.mxu0  ;;  %v9987_v55 = vpop.f32.mrf.mxu1 }
 0x228   : > { %v9989_v58 = vadd.f32 %v1758_v15, %v1726_v44 }
 0x22a   : > { %12582 = vst [vmem:[#allocation16_spill] sm:$0xff] %v9989_v58 }
 0x22d   : > { %v9991_v8 = vpop.f32.mrf.mxu2  ;;  %v9993_v19 = vpop.f32.mrf.mxu3 }
 0x22e   : > { %12583 = vst [vmem:[#allocation17_spill] sm:$0xff] %v9993_v19  ;;  %v1664_v36 = vpop.f32.mrf.mxu0  ;;  %v1697_v42 = vpop.f32.mrf.mxu1 }
 0x22f   : > { %v1665_v51 = vadd.f32 %v1664_v36, %v9888_v31 }
 0x231   : > { %v9996_v5 = vadd.f32 %v1697_v42, %v1665_v51  ;;  %1917 = vmatmul.bf16.gmra.mxu0 %v9756_v33  ;;  %1950 = vmatmul.bf16.gmra.mxu1 %v9758_v59 }
 0x232   : > { %1983 = vmatmul.bf16.gmra.mxu2 %v9756_v33  ;;  %2016 = vmatmul.bf16.gmra.mxu3 %v9758_v59  ;;  %v10015_v59 = vperm.slane %v9872_v62, 3 }
 0x233   : > { %12584 = vst [vmem:[#allocation18_spill] sm:$0xff] %v9996_v5 }
 0x235   : > { %v1730_v3 = vpop.f32.mrf.mxu2  ;;  %v1763_v7 = vpop.f32.mrf.mxu3 }
 0x236   : > { %v1731_v4 = vadd.f32 %v1730_v3, %v9911_v57  ;;  %v1666_v56 = vpop.f32.mrf.mxu0  ;;  %v1699_v10 = vpop.f32.mrf.mxu1 }
 0x238   : > { %v10003_v39 = vadd.f32 %v1763_v7, %v1731_v4 }
 0x23a   : > { %12585 = vst [vmem:[#allocation19_spill] sm:$0xff] %v10003_v39 }
 0x23d   : > { %v1732_v17 = vpop.f32.mrf.mxu2  ;;  %v1765_v11 = vpop.f32.mrf.mxu3 }
 0x23e   : > { %v1776_v18 = vpop.f32.mrf.mxu0  ;;  %v1809_v21 = vpop.f32.mrf.mxu1 }
 0x23f   : > { %v1777_v12 = vadd.f32 %v1776_v18, %v10006_v50 }
 0x241   : > { %v10009_v33 = vadd.f32 %v1809_v21, %v1777_v12  ;;  %1922 = vmatmul.bf16.gmra.mxu0 %v9812_v61  ;;  %1955 = vmatmul.bf16.gmra.mxu1 %v9814_v48 }
 0x242   : > { %1988 = vmatmul.bf16.gmra.mxu2 %v9812_v61  ;;  %2021 = vmatmul.bf16.gmra.mxu3 %v9814_v48 }
 0x245   : > { %v1842_v22 = vpop.f32.mrf.mxu2  ;;  %v1875_v1 = vpop.f32.mrf.mxu3 }
 0x246   : > { %v1843_v0 = vadd.f32 %v1842_v22, %v10015_v59  ;;  %v10019_v23 = vpop.f32.mrf.mxu0  ;;  %v10021_v37 = vpop.f32.mrf.mxu1 }
 0x248   : > { %v10023_v45 = vadd.f32 %v1875_v1, %v1843_v0 }
 0x24d   : > { %v10025_v46 = vpop.f32.mrf.mxu2  ;;  %v10027_v25 = vpop.f32.mrf.mxu3 }
 0x24e   : > { %v1781_v61 = vpop.f32.mrf.mxu0  ;;  %v1814_v29 = vpop.f32.mrf.mxu1 }
 0x24f   : > { %v1782_v26 = vadd.f32 %v1781_v61, %v10006_v50 }
 0x251   : > { %v10030_v32 = vadd.f32 %v1814_v29, %v1782_v26  ;;  %1927 = vmatmul.bf16.gmra.mxu0 %v9822_v6  ;;  %1960 = vmatmul.bf16.gmra.mxu1 %v9826_v9 }
 0x252   : > { %1993 = vmatmul.bf16.gmra.mxu2 %v9822_v6  ;;  %2026 = vmatmul.bf16.gmra.mxu3 %v9826_v9 }
 0x255   : > { %v1847_v48 = vpop.f32.mrf.mxu2  ;;  %v1880_v44 = vpop.f32.mrf.mxu3 }
 0x256   : > { %v1848_v41 = vadd.f32 %v1847_v48, %v10015_v59  ;;  %v1783_v15 = vpop.f32.mrf.mxu0  ;;  %v10037_v36 = vpop.f32.mrf.mxu1 }
 0x258   : > { %v10039_v51 = vadd.f32 %v1880_v44, %v1848_v41 }
 0x25d   : > { %v10041_v42 = vpop.f32.mrf.mxu2  ;;  %v10043_v3 = vpop.f32.mrf.mxu3 }
 0x25e   : > { %v1786_v4 = vpop.f32.mrf.mxu0  ;;  %v1819_v7 = vpop.f32.mrf.mxu1 }
 0x265   : > { %v1852_v56 = vpop.f32.mrf.mxu2  ;;  %v10045_v10 = vpop.f32.mrf.mxu3 }
 0x266   : > { %v1788_v6 = vpop.f32.mrf.mxu0  ;;  %v1821_v9 = vpop.f32.mrf.mxu1 }
 0x26d   : > { %v1854_v17 = vpop.f32.mrf.mxu2  ;;  %v1887_v11 = vpop.f32.mrf.mxu3 }
 0x26e   : > { %v1791_v18 = vpop.f32.mrf.mxu0  ;;  %v1824_v12 = vpop.f32.mrf.mxu1 }
 0x26f   : > { %v1792_v14 = vadd.f32 %v1791_v18, %v10006_v50 }
 0x271   : > { %v1825_v19 = vadd.f32 %v1824_v12, %v1792_v14 }
 0x275   : > { %v1857_v21 = vpop.f32.mrf.mxu2  ;;  %v1890_v22 = vpop.f32.mrf.mxu3 }
 0x276   : > { %v1793_v0 = vpop.f32.mrf.mxu0  ;;  %v1826_v1 = vpop.f32.mrf.mxu1  ;;  %v1858_v18 = vadd.f32 %v1857_v21, %v10015_v59  ;;  %v10063_v21 = vperm.slane %v9872_v62, 5 }
 0x277   : > { %v1794_v35 = vadd.f32 %v1793_v0, %v10006_v50  ;;  %v10054_v0 = vperm.slane %v9872_v62, 4 }
 0x279   : > { %v1827_v39 = vadd.f32 %v1826_v1, %v1794_v35 }
 0x27d   : > { %v1859_v61 = vpop.f32.mrf.mxu2  ;;  %v1892_v26 = vpop.f32.mrf.mxu3 }
 0x27e   : > { %v1796_v29 = vpop.f32.mrf.mxu0  ;;  %v1829_v41 = vpop.f32.mrf.mxu1  ;;  %v1860_v27 = vadd.f32 %v1859_v61, %v10015_v59 }
 0x27f   : > { %v1797_v48 = vadd.f32 %v1796_v29, %v10006_v50 }
 0x281   : > { %v1830_v44 = vadd.f32 %v1829_v41, %v1797_v48  ;;  %v1789_v48 = vadd.f32 %v1788_v6, %v10006_v50  ;;  %v2048_v41 = vpack.c.bf16 %v1827_v39, %v1825_v19  ;;  %v1855_v39 = vadd.f32 %v1854_v17, %v10015_v59 }
 0x283   : > { %v2049_v38 = vpack.c.bf16 %v1830_v44, %v1830_v44  ;;  %v1888_v61 = vadd.f32 %v1887_v11, %v1855_v39  ;;  %v1779_v11 = vadd.f32 %v10019_v23, %v10006_v50 }
 0x285   : > { %v1862_v20 = vpop.f32.mrf.mxu2  ;;  %2053 = vmatpush.bf16.xpose.msrb.mxu0 %v2049_v38  ;;  %v1895_v16 = vpop.f32.mrf.mxu3 }
 0x286   : > { %v1863_v52 = vadd.f32 %v1862_v20, %v10015_v59  ;;  %v1798_v53 = vpop.f32.mrf.mxu0  ;;  %v1831_v5 = vpop.f32.mrf.mxu1  ;;  %v1787_v20 = vadd.f32 %v1786_v4, %v10006_v50  ;;  %v1784_v4 = vadd.f32 %v1783_v15, %v10006_v50  ;;  %v1850_v15 = vadd.f32 %v10041_v42, %v10015_v59 }
 0x287   : > { %v1893_v53 = vadd.f32 %v1892_v26, %v1860_v27  ;;  %v1891_v5 = vadd.f32 %v1890_v22, %v1858_v18  ;;  %v1853_v27 = vadd.f32 %v1852_v56, %v10015_v59  ;;  %v1845_v42 = vadd.f32 %v10025_v46, %v10015_v59 }
 0x288   : > { %v1896_v58 = vadd.f32 %v1895_v16, %v1863_v52  ;;  %v1822_v52 = vadd.f32 %v1821_v9, %v1789_v48  ;;  %v1820_v6 = vadd.f32 %v1819_v7, %v1787_v20  ;;  %v1817_v17 = vadd.f32 %v10037_v36, %v1784_v4 }
 0x289   : > { %v2264_v12 = vpack.c.bf16 %v1893_v53, %v1891_v5  ;;  %v1886_v62 = vadd.f32 %v10045_v10, %v1853_v27  ;;  %v1883_v36 = vadd.f32 %v10043_v3, %v1850_v15  ;;  %v1812_v20 = vadd.f32 %v10021_v37, %v1779_v11 }
 0x28a   : > { %v2265_v29 = vpack.c.bf16 %v1896_v58, %v1896_v58  ;;  %v2047_v1 = vpack.c.bf16 %v1822_v52, %v1820_v6  ;;  %v2046_v48 = vpack.c.bf16 %v1817_v17, %v10030_v32  ;;  %v1878_v3 = vadd.f32 %v10027_v25, %v1845_v42 }
 0x28b   : > { %v2263_v56 = vpack.c.bf16 %v1888_v61, %v1886_v62  ;;  %v2262_v50 = vpack.c.bf16 %v1883_v36, %v10039_v51  ;;  %v2045_v23 = vpack.c.bf16 %v1812_v20, %v10009_v33  ;;  %v12586_v59 = vpack.c.bf16 %v9926_v28, %v9924_v40 }
 0x28c   : > { %2269 = vmatpush.bf16.xpose.msrb.mxu2 %v2265_v29  ;;  %v2261_v37 = vpack.c.bf16 %v1878_v3, %v10023_v45  ;;  %v12587_v25 = vpack.c.bf16 %v9936_v49, %v9934_v47  ;;  %v12588_v40 = vpack.c.bf16 %v9946_v2, %v9944_v43  ;;  %v12589_v4 = vpack.c.bf16 %v9956_v60, %v9954_v13 }
 0x28d   : > { %v1864_v38 = vpop.f32.mrf.mxu2  ;;  %2054 = vmatpush.bf16.xpose.msrb.mxu0 %v2048_v41  ;;  %v1897_v35 = vpop.f32.mrf.mxu3  ;;  %v1662_v43 = vadd.f32 %v9985_v54, %v9888_v31  ;;  %v9078_v15 = vmov 0   ;;  %v12591_v11 = vpack.c.bf16 %v9978_v30, %v9976_v34  ;;  %v1728_v31 = vadd.f32 %v9991_v8, %v9911_v57  ;;  %v12592_v34 = vld [vmem:[#allocation15_spill] sm:$0xff]  ;;  %v12593_v8 = vld [vmem:[#allocation17_spill] sm:$0xff] }
 0x28e   : > { %v1908_v16 = vpop.f32.mrf.mxu0  ;;  %v1941_v58 = vpop.f32.mrf.mxu1  ;;  %v2037_v30 = vmul.f32 0.088388346, %v12592_v34 }
 0x28f   : > { %v1909_v14 = vadd.f32 %v1908_v16, %v10054_v0  ;;  %v1695_v62 = vadd.f32 %v9987_v55, %v1662_v43 }
 0x291   : > { %v10059_v19 = vadd.f32 %v1941_v58, %v1909_v14  ;;  %v2038_v42 = vmul.f32 0.088388346, %v1695_v62 }
 0x294   : > { %2270 = vmatpush.bf16.xpose.msrb.mxu2 %v2264_v12 }
 0x295   : > { %v1974_v9 = vpop.f32.mrf.mxu2  ;;  %2055 = vmatpush.bf16.xpose.msrb.mxu0 %v2047_v1  ;;  %v2007_v7 = vpop.f32.mrf.mxu3 }
 0x296   : > { %v1975_v22 = vadd.f32 %v1974_v9, %v10063_v21  ;;  %v10068_v26 = vpop.f32.mrf.mxu0  ;;  %v10071_v44 = vpop.f32.mrf.mxu1  ;;  %v12590_v9 = vpack.c.bf16 %v9966_v63, %v9964_v24 }
 0x298   : > { %v10074_v29 = vadd.f32 %v2007_v7, %v1975_v22 }
 0x29c   : > { %2271 = vmatpush.bf16.xpose.msrb.mxu2 %v2263_v56  ;;  %v2210_v56 = vsel %vm776_vm0, 65535, %v9078_v15 }
 0x29d   : > { %v10081_v41 = vpop.f32.mrf.mxu2  ;;  %2056 = vmatpush.bf16.xpose.msrb.mxu0 %v2046_v48  ;;  %v10084_v18 = vpop.f32.mrf.mxu3 }
 0x29e   : > { %v10086_v10 = vpop.f32.mrf.mxu0  ;;  %v10089_v38 = vpop.f32.mrf.mxu1 }
 0x2a4   : > { %2272 = vmatpush.bf16.xpose.msrb.mxu2 %v2262_v50 }
 0x2a5   : > { %v10095_v32 = vpop.f32.mrf.mxu2  ;;  %2057 = vmatpush.bf16.xpose.msrb.mxu0 %v2045_v23  ;;  %v10098_v53 = vpop.f32.mrf.mxu3 }
 0x2a6   : > { %v1915_v35 = vpop.f32.mrf.mxu0  ;;  %v10100_v16 = vpop.f32.mrf.mxu1 }
 0x2ac   : > { %2273 = vmatpush.bf16.xpose.msrb.mxu2 %v2261_v37  ;;  %2058 = vmatmul.bf16.vlgmr.msrb.gmra.mxu0 %v12586_v59 }
 0x2ad   : > { %v10106_v46 = vpop.f32.mrf.mxu2  ;;  %v10108_v33 = vpop.f32.mrf.mxu3 }
 0x2ae   : > { %v1918_v51 = vpop.f32.mrf.mxu0  ;;  %v1951_v52 = vpop.f32.mrf.mxu1 }
 0x2af   : > { %v1919_v3 = vadd.f32 %v1918_v51, %v10054_v0  ;;  %v1914_v51 = vadd.f32 %v10086_v10, %v10054_v0 }
 0x2b3   : > { %2274 = vmatmul.bf16.vlgmr.msrb.gmra.mxu2 %v12587_v25 }
 0x2b5   : > { %v10113_v14 = vpop.f32.mrf.mxu2  ;;  %v10115_v58 = vpop.f32.mrf.mxu3 }
 0x2b6   : > { %v1920_v45 = vpop.f32.mrf.mxu0  ;;  %v1953_v5 = vpop.f32.mrf.mxu1 }
 0x2b7   : > { %v1921_v54 = vadd.f32 %v1920_v45, %v10054_v0  ;;  %v1761_v45 = vadd.f32 %v12593_v8, %v1728_v31 }
 0x2bc   : > { %2063 = vmatmul.bf16.gmra.mxu0 %v12588_v40  ;;  %v1916_v40 = vadd.f32 %v1915_v35, %v10054_v0  ;;  %v1911_v35 = vadd.f32 %v10068_v26, %v10054_v0 }
 0x2bd   : > { %v1986_v28 = vpop.f32.mrf.mxu2  ;;  %v10120_v6 = vpop.f32.mrf.mxu3 }
 0x2be   : > { %v1923_v39 = vpop.f32.mrf.mxu0  ;;  %v1956_v12 = vpop.f32.mrf.mxu1  ;;  %v1987_v43 = vadd.f32 %v1986_v28, %v10063_v21  ;;  %v1947_v28 = vadd.f32 %v10089_v38, %v1914_v51  ;;  %v1977_v38 = vadd.f32 %v10081_v41, %v10063_v21 }
 0x2bf   : > { %v1924_v24 = vadd.f32 %v1923_v39, %v10054_v0  ;;  %v1954_v39 = vadd.f32 %v1953_v5, %v1921_v54  ;;  %v1949_v5 = vadd.f32 %v10100_v16, %v1916_v40  ;;  %v1944_v16 = vadd.f32 %v10071_v44, %v1911_v35 }
 0x2c1   : > { %v1957_v37 = vadd.f32 %v1956_v12, %v1924_v24  ;;  %v1952_v12 = vadd.f32 %v1951_v52, %v1919_v3  ;;  %v12594_v52 = vld [vmem:[#allocation16_spill] sm:$0xff]  ;;  %v2190_v15 = vpack.c.bf16 %v1949_v5, %v1947_v28 }
 0x2c2   : > { %v2253_v62 = vmul.f32 0.088388346, %v12594_v52 }
 0x2c3   : > { %2279 = vmatmul.bf16.gmra.mxu2 %v12589_v4 }
 0x2c5   : > { %v1989_v47 = vpop.f32.mrf.mxu2  ;;  %v2022_v49 = vpop.f32.mrf.mxu3 }
 0x2c6   : > { %v1925_v1 = vpop.f32.mrf.mxu0  ;;  %v1958_v27 = vpop.f32.mrf.mxu1 }
 0x2c7   : > { %v1926_v13 = vadd.f32 %v1925_v1, %v10054_v0  ;;  %v1990_v1 = vadd.f32 %v1989_v47, %v10063_v21 }
 0x2c9   : > { %v1959_v48 = vadd.f32 %v1958_v27, %v1926_v13  ;;  %v1985_v13 = vadd.f32 %v10113_v14, %v10063_v21  ;;  %v1980_v14 = vadd.f32 %v10095_v32, %v10063_v21  ;;  %v2010_v32 = vadd.f32 %v10084_v18, %v1977_v38 }
 0x2cb   : > { %v2192_v4 = vpack.c.bf16 %v1959_v48, %v1957_v37  ;;  %v2403_v54 = vpack.c.bf16 %v2010_v32, %v10074_v29 }
 0x2cc   : > { %2068 = vmatmul.bf16.gmra.mxu0 %v12590_v9  ;;  %v2043_v9 = vpack.c.bf16 %v2038_v42, %v2037_v30 }
 0x2cd   : > { %v1991_v61 = vpop.f32.mrf.mxu2  ;;  %v2024_v2 = vpop.f32.mrf.mxu3 }
 0x2ce   : > { %v1928_v22 = vpop.f32.mrf.mxu0  ;;  %v1961_v17 = vpop.f32.mrf.mxu1  ;;  %v1992_v25 = vadd.f32 %v1991_v61, %v10063_v21 }
 0x2cf   : > { %v1929_v7 = vadd.f32 %v1928_v22, %v10054_v0  ;;  %v2020_v0 = vadd.f32 %v10120_v6, %v1987_v43  ;;  %v2189_v6 = vpack.c.bf16 %v1944_v16, %v10059_v19 }
 0x2d0   : > { %v2025_v22 = vadd.f32 %v2024_v2, %v1992_v25  ;;  %v1982_v2 = vadd.f32 %v10106_v46, %v10063_v21 }
 0x2d1   : > { %v1962_v60 = vadd.f32 %v1961_v17, %v1929_v7  ;;  %v2254_v7 = vmul.f32 0.088388346, %v1761_v45  ;;  %v2191_v17 = vpack.c.bf16 %v1954_v39, %v1952_v12 }
 0x2d2   : > { %v2015_v46 = vadd.f32 %v10108_v33, %v1982_v2 }
 0x2d3   : > { %v2193_v63 = vpack.c.bf16 %v1962_v60, %v1962_v60  ;;  %2284 = vmatmul.bf16.gmra.mxu2 %v12591_v11  ;;  %v2023_v60 = vadd.f32 %v2022_v49, %v1990_v1  ;;  %v2018_v49 = vadd.f32 %v10115_v58, %v1985_v13  ;;  %v2013_v11 = vadd.f32 %v10098_v53, %v1980_v14 }
 0x2d5   : > { %v2212_v36 = vand.u32 %v2210_v56, %v2193_v63  ;;  %v1994_v20 = vpop.f32.mrf.mxu2  ;;  %v2027_v50 = vpop.f32.mrf.mxu3  ;;  %v2406_v26 = vpack.c.bf16 %v2025_v22, %v2023_v60  ;;  %v2405_v24 = vpack.c.bf16 %v2020_v0, %v2018_v49  ;;  %v12595_v63 = vld [vmem:[#allocation18_spill] sm:$0xff]  ;;  %v2404_v58 = vpack.c.bf16 %v2015_v46, %v2013_v11 }
 0x2d6   : > { %v1995_v55 = vadd.f32 %v1994_v20, %v10063_v21  ;;  %v1930_v23 = vpop.f32.mrf.mxu0  ;;  %v1963_v59 = vpop.f32.mrf.mxu1  ;;  %v2039_v44 = vmul.f32 0.088388346, %v12595_v63  ;;  %v12596_v21 = vld [vmem:[#allocation19_spill] sm:$0xff] }
 0x2d7   : > { %2217 = vmatpush.bf16.msrb.mxu1 %v2212_v36  ;;  %v2255_v41 = vmul.f32 0.088388346, %v12596_v21 }
 0x2d8   : > { %v2028_v57 = vadd.f32 %v2027_v50, %v1995_v55  ;;  %v2044_v31 = vpack.c.bf16 %v2039_v44, %v2039_v44 }
 0x2d9   : > { %v2260_v33 = vpack.c.bf16 %v2255_v41, %v2255_v41 }
 0x2da   : > { %v2407_v27 = vpack.c.bf16 %v2028_v57, %v2028_v57 }
 0x2db   : > { %2218 = vmatpush.bf16.msrb.mxu1 %v2192_v4 }
 0x2dc   : > { %v2424_v61 = vand.u32 %v2407_v27, %v2210_v56  ;;  %2073 = vmatmul.bf16.gmra.mxu0 %v2043_v9  ;;  %v2259_v56 = vpack.c.bf16 %v2254_v7, %v2253_v62 }
 0x2dd   : > { %v1996_v47 = vpop.f32.mrf.mxu2  ;;  %v2029_v10 = vpop.f32.mrf.mxu3 }
 0x2de   : > { %2429 = vmatpush.bf16.msrb.mxu3 %v2424_v61 }
 0x2df   : > { %2219 = vmatpush.bf16.msrb.mxu1 %v2191_v17 }
 0x2e2   : > { %2430 = vmatpush.bf16.msrb.mxu3 %v2406_v26 }
 0x2e3   : > { %2289 = vmatmul.bf16.gmra.mxu2 %v2259_v56  ;;  %2220 = vmatpush.bf16.msrb.mxu1 %v2190_v15 }
 0x2e6   : > { %2431 = vmatpush.bf16.msrb.mxu3 %v2405_v24 }
 0x2e7   : > { %2221 = vmatpush.bf16.msrb.mxu1 %v2189_v6 }
 0x2ea   : > { %2432 = vmatpush.bf16.msrb.mxu3 %v2404_v58 }
 0x2ec   : > { %2078 = vmatmul.bf16.gmra.mxu0 %v2044_v31 }
 0x2ee   : > { %2433 = vmatpush.bf16.msrb.mxu3 %v2403_v54 }
 0x2f3   : > { %2294 = vmatmul.bf16.gmra.mxu2 %v2260_v33 }
 0x329   : > { %v2059_v19 = vpop.f32.mrf.mxu0 }
 0x32a   : > { %v2084_v48 = vsel %vm2083_vm14, %v2059_v19, -inf }
 0x32b   : > { %2085 = vmax.xlane.f32.xlu2 %v2084_v48 }
 0x331   : > { %v10175_v53 = vpop.f32.mrf.mxu0 }
 0x332   : > { %v2087_v55 = vsel %vm2083_vm14, %v10175_v53, -inf }
 0x336   : > { %v2275_v36 = vpop.f32.mrf.mxu2 }
 0x337   : > { %v2299_v18 = vsel %vm2083_vm14, %v2275_v36, -inf }
 0x338   : > { %2300 = vmax.xlane.f32.xlu0 %v2299_v18 }
 0x339   : > { %v10178_v20 = vpop.f32.mrf.mxu0 }
 0x33a   : > { %v2090_v37 = vsel %vm2083_vm14, %v10178_v20, -inf }
 0x33e   : > { %v2277_v29 = vpop.f32.mrf.mxu2 }
 0x33f   : > { %v2302_v42 = vsel %vm2083_vm14, %v2277_v29, -inf }
 0x340   : > { %2303 = vmax.xlane.f32.xlu1 %v2302_v42  ;;  %2088 = vmax.xlane.f32.xlu0 %v2087_v55 }
 0x341   : > { %v10183_v50 = vpop.f32.mrf.mxu0 }
 0x342   : > { %v2093_v25 = vsel %vm2083_vm14, %v10183_v50, -inf }
 0x346   : > { %v10185_v23 = vpop.f32.mrf.mxu2 }
 0x347   : > { %v2305_v3 = vsel %vm2083_vm14, %v10185_v23, -inf }
 0x348   : > { %2306 = vmax.xlane.f32.xlu1 %v2305_v3  ;;  %2091 = vmax.xlane.f32.xlu0 %v2090_v37 }
 0x349   : > { %v10191_v59 = vpop.f32.mrf.mxu0 }
 0x34a   : > { %v2096_v40 = vsel %vm2083_vm14, %v10191_v59, -inf }
 0x34e   : > { %v10193_v34 = vpop.f32.mrf.mxu2 }
 0x34f   : > { %v2308_v30 = vsel %vm2083_vm14, %v10193_v34, -inf }
 0x350   : > { %2309 = vmax.xlane.f32.xlu2 %v2308_v30  ;;  %2094 = vmax.xlane.f32.xlu1 %v2093_v25 }
 0x351   : > { %v10199_v57 = vpop.f32.mrf.mxu0 }
 0x352   : > { %v2099_v27 = vsel %vm2083_vm14, %v10199_v57, -inf }
 0x356   : > { %v10201_v8 = vpop.f32.mrf.mxu2 }
 0x357   : > { %v2311_v45 = vsel %vm2083_vm14, %v10201_v8, -inf }
 0x358   : > { %2312 = vmax.xlane.f32.xlu2 %v2311_v45  ;;  %2097 = vmax.xlane.f32.xlu1 %v2096_v40 }
 0x359   : > { %v10207_v39 = vpop.f32.mrf.mxu0 }
 0x35a   : > { %v2102_v12 = vsel %vm2083_vm14, %v10207_v39, -inf }
 0x35e   : > { %v10209_v4 = vpop.f32.mrf.mxu2 }
 0x35f   : > { %v2314_v1 = vsel %vm2083_vm14, %v10209_v4, -inf }
 0x360   : > { %2315 = vmax.xlane.f32.xlu0 %v2314_v1  ;;  %2100 = vmax.xlane.f32.xlu2 %v2099_v27 }
 0x361   : > { %v10215_v9 = vpop.f32.mrf.mxu0 }
 0x362   : > { %v2105_v43 = vsel %vm2083_vm14, %v10215_v9, -inf }
 0x366   : > { %v10217_v51 = vpop.f32.mrf.mxu2 }
 0x367   : > { %v2317_v35 = vsel %vm2083_vm14, %v10217_v51, -inf }
 0x368   : > { %2103 = vmax.xlane.f32.xlu2 %v2102_v12  ;;  %2106 = vmax.xlane.f32.xlu0 %v2105_v43 }
 0x369   : > { %v10223_v22 = vpop.f32.mrf.mxu0 }
 0x36e   : > { %v10225_v61 = vpop.f32.mrf.mxu2 }
 0x36f   : > { %v2320_v7 = vsel %vm2083_vm14, %v10225_v61, -inf }
 0x370   : > { %2321 = vmax.xlane.f32.xlu1 %v2320_v7  ;;  %2318 = vmax.xlane.f32.xlu0 %v2317_v35 }
 0x371   : > { %v2081_v5 = vpop.f32.mrf.mxu0 }
 0x376   : > { %v10231_v17 = vpop.f32.mrf.mxu2 }
 0x37e   : > { %v2297_v47 = vpop.f32.mrf.mxu2 }
 0x39e   : > { %v2086_v13 = vpop.xlane.xlu2 %2085 }
 0x39f   : > { %v2112_v60 = vsub.f32 %v2059_v19, %v2086_v13  ;;  %v2323_v13 = vsel %vm2108_vm15, %v10231_v17, -inf }
 0x3a1   : > { %v2121_v10 = vmul.f32 1.442695, %v2112_v60 }
 0x3a3   : > { %8723 = vpow2.f32 %v2121_v10 }
 0x3a9   : > { %v10233_v52 = vpop.eup %8723 }
 0x3aa   : > { %v2139_v62 = vsel %vm2083_vm14, %v10233_v52, 0.0 }
 0x3ab   : > { %v2301_v28 = vpop.xlane.xlu0 %2300  ;;  %2140 = vadd.xlane.f32.xlu0 %v2139_v62 }
 0x3ac   : > { %v2326_v2 = vsub.f32 %v2275_v36, %v2301_v28 }
 0x3ae   : > { %v2335_v0 = vmul.f32 1.442695, %v2326_v2 }
 0x3b0   : > { %8725 = vpow2.f32 %v2335_v0 }
 0x3b3   : > { %v2304_v26 = vpop.xlane.xlu1 %2303  ;;  %v2089_v16 = vpop.xlane.xlu0 %2088 }
 0x3b4   : > { %v2327_v15 = vsub.f32 %v2277_v29, %v2304_v26  ;;  %v2113_v56 = vsub.f32 %v10175_v53, %v2089_v16 }
 0x3b6   : > { %v10238_v14 = vpop.eup %8725  ;;  %v2337_v49 = vmul.f32 1.442695, %v2327_v15  ;;  %v2123_v38 = vmul.f32 1.442695, %v2113_v56 }
 0x3b7   : > { %v2353_v46 = vsel %vm2083_vm14, %v10238_v14, 0.0 }
 0x3b8   : > { %8727 = vpow2.f32 %v2337_v49  ;;  %2354 = vadd.xlane.f32.xlu1 %v2353_v46 }
 0x3b9   : > { %8729 = vpow2.f32 %v2123_v38 }
 0x3bb   : > { %v2307_v24 = vpop.xlane.xlu1 %2306  ;;  %v2092_v6 = vpop.xlane.xlu0 %2091 }
 0x3bc   : > { %v2328_v63 = vsub.f32 %v10185_v23, %v2307_v24  ;;  %v2114_v44 = vsub.f32 %v10178_v20, %v2092_v6 }
 0x3be   : > { %v10244_v11 = vpop.eup %8727  ;;  %v2339_v32 = vmul.f32 1.442695, %v2328_v63  ;;  %v2125_v58 = vmul.f32 1.442695, %v2114_v44 }
 0x3bf   : > { %v10246_v31 = vpop.eup %8729  ;;  %v2356_v54 = vsel %vm2083_vm14, %v10244_v11, 0.0 }
 0x3c0   : > { %8731 = vpow2.f32 %v2339_v32  ;;  %v2142_v21 = vsel %vm2083_vm14, %v10246_v31, 0.0  ;;  %2357 = vadd.xlane.f32.xlu2 %v2356_v54 }
 0x3c1   : > { %8733 = vpow2.f32 %v2125_v58  ;;  %2143 = vadd.xlane.f32.xlu1 %v2142_v21 }
 0x3c3   : > { %v2310_v41 = vpop.xlane.xlu2 %2309  ;;  %v2095_v33 = vpop.xlane.xlu1 %2094 }
 0x3c4   : > { %v2329_v19 = vsub.f32 %v10193_v34, %v2310_v41  ;;  %v2115_v48 = vsub.f32 %v10183_v50, %v2095_v33 }
 0x3c6   : > { %v10254_v53 = vpop.eup %8731  ;;  %v2341_v36 = vmul.f32 1.442695, %v2329_v19  ;;  %v2127_v18 = vmul.f32 1.442695, %v2115_v48 }
 0x3c7   : > { %v10256_v20 = vpop.eup %8733  ;;  %v2359_v29 = vsel %vm2083_vm14, %v10254_v53, 0.0 }
 0x3c8   : > { %8735 = vpow2.f32 %v2341_v36  ;;  %v2145_v42 = vsel %vm2083_vm14, %v10256_v20, 0.0  ;;  %2360 = vadd.xlane.f32.xlu2 %v2359_v29 }
 0x3c9   : > { %8737 = vpow2.f32 %v2127_v18  ;;  %2146 = vadd.xlane.f32.xlu1 %v2145_v42 }
 0x3cb   : > { %v2313_v55 = vpop.xlane.xlu2 %2312  ;;  %v2098_v23 = vpop.xlane.xlu1 %2097 }
 0x3cc   : > { %v2330_v50 = vsub.f32 %v10201_v8, %v2313_v55  ;;  %v2116_v3 = vsub.f32 %v10191_v59, %v2098_v23  ;;  %v2109_v8 = vsel %vm2108_vm15, %v10223_v22, -inf }
 0x3ce   : > { %v10264_v37 = vpop.eup %8735  ;;  %v2343_v34 = vmul.f32 1.442695, %v2330_v50  ;;  %v2129_v30 = vmul.f32 1.442695, %v2116_v3 }
 0x3cf   : > { %v10266_v25 = vpop.eup %8737  ;;  %v2362_v45 = vsel %vm2083_vm14, %v10264_v37, 0.0 }
 0x3d0   : > { %8739 = vpow2.f32 %v2343_v34  ;;  %v2148_v40 = vsel %vm2083_vm14, %v10266_v25, 0.0  ;;  %2363 = vadd.xlane.f32.xlu0 %v2362_v45 }
 0x3d1   : > { %8741 = vpow2.f32 %v2129_v30  ;;  %2149 = vadd.xlane.f32.xlu2 %v2148_v40  ;;  %2110 = vmax.xlane.f32.xlu1 %v2109_v8 }
 0x3d3   : > { %v2316_v59 = vpop.xlane.xlu0 %2315  ;;  %v2101_v1 = vpop.xlane.xlu2 %2100 }
 0x3d4   : > { %v2331_v27 = vsub.f32 %v10209_v4, %v2316_v59  ;;  %v2117_v12 = vsub.f32 %v10199_v57, %v2101_v1 }
 0x3d6   : > { %v10276_v43 = vpop.eup %8739  ;;  %v2345_v7 = vmul.f32 1.442695, %v2331_v27  ;;  %v2131_v35 = vmul.f32 1.442695, %v2117_v12 }
 0x3d7   : > { %v10278_v5 = vpop.eup %8741  ;;  %v2365_v47 = vsel %vm2083_vm14, %v10276_v43, 0.0 }
 0x3d8   : > { %8743 = vpow2.f32 %v2345_v7  ;;  %2324 = vmax.xlane.f32.xlu0 %v2323_v13  ;;  %v2151_v60 = vsel %vm2083_vm14, %v10278_v5, 0.0 }
 0x3d9   : > { %8745 = vpow2.f32 %v2131_v35  ;;  %2366 = vadd.xlane.f32.xlu2 %v2365_v47  ;;  %2152 = vadd.xlane.f32.xlu1 %v2151_v60 }
 0x3db   : > { %v2104_v57 = vpop.xlane.xlu2 %2103  ;;  %v2107_v4 = vpop.xlane.xlu0 %2106 }
 0x3dc   : > { %v2118_v10 = vsub.f32 %v10207_v39, %v2104_v57  ;;  %v2119_v24 = vsub.f32 %v10215_v9, %v2107_v4 }
 0x3de   : > { %v10287_v62 = vpop.eup %8743  ;;  %v2133_v28 = vmul.f32 1.442695, %v2118_v10  ;;  %v2135_v63 = vmul.f32 1.442695, %v2119_v24  ;;  %v8348_v24 = vld [vmem:[%s9255_s14 + $0x64] sm:$0xf0] }
 0x3df   : > { %v10289_v2 = vpop.eup %8745  ;;  %v2368_v0 = vsel %vm2083_vm14, %v10287_v62, 0.0 }
 0x3e0   : > { %8747 = vpow2.f32 %v2133_v28  ;;  %v2154_v26 = vsel %vm2083_vm14, %v10289_v2, 0.0  ;;  %2369 = vadd.xlane.f32.xlu0 %v2368_v0 }
 0x3e1   : > { %2155 = vadd.xlane.f32.xlu2 %v2154_v26  ;;  %v7140_v26 = vld [vmem:[%s9255_s14 + $0x70] sm:$0xf] }
 0x3e3   : > { %v2322_v16 = vpop.xlane.xlu1 %2321  ;;  %v2319_v15 = vpop.xlane.xlu0 %2318 }
 0x3e4   : > { %v2333_v56 = vsub.f32 %v10225_v61, %v2322_v16  ;;  %v2332_v39 = vsub.f32 %v10217_v51, %v2319_v15  ;;  %v8350_v16 = vld [vmem:[%s9255_s14 + $0x74] sm:$0xf0]  ;;  %v8349_v15 = vld [vmem:[%s9255_s14 + $0x74] sm:$0xf] }
 0x3e6   : > { %v10297_v49 = vpop.eup %8747  ;;  %v2349_v38 = vmul.f32 1.442695, %v2333_v56  ;;  %v2347_v46 = vmul.f32 1.442695, %v2332_v39  ;;  %v7141_v39 = vor.u32 %v8350_v16, %v7140_v26  ;;  %v7204_v16 = vld [vmem:[%s9255_s14 + $0xf0] sm:$0xf] }
 0x3e7   : > { %v2157_v6 = vsel %vm2083_vm14, %v10297_v49, 0.0 }
 0x3e8   : > { %8749 = vpow2.f32 %v2349_v38  ;;  %v7142_v38 = vld [vmem:[%s9255_s14 + $0x78] sm:$0xf0]  ;;  %2667 = vmatpush.bf16.msra.mxu0 %v7141_v39 }
 0x3e9   : > { %8751 = vpow2.f32 %v2347_v46  ;;  %2158 = vadd.xlane.f32.xlu2 %v2157_v6  ;;  %v7132_v46 = vld [vmem:[%s9255_s14 + $0x60] sm:$0xf]  ;;  %v7094_v39 = vld [vmem:[%s9255_s14 + $0x18] sm:$0xf0] }
 0x3ea   : > { %8753 = vpow2.f32 %v2135_v63  ;;  %v7145_v63 = vor.u32 %v8349_v15, %v7142_v38 }
 0x3ec   : > { %2733 = vmatpush.bf16.msra.mxu2 %v7145_v63 }
 0x3ee   : > { %v10302_v44 = vpop.eup %8749 }
 0x3ef   : > { %v10304_v32 = vpop.eup %8751  ;;  %v2374_v51 = vsel %vm2083_vm14, %v10302_v44, 0.0 }
 0x3f0   : > { %v2371_v61 = vsel %vm2083_vm14, %v10304_v32, 0.0  ;;  %2375 = vadd.xlane.f32.xlu1 %v2374_v51  ;;  %v10310_v9 = vpop.eup %8753  ;;  %v8347_v51 = vld [vmem:[%s9255_s14 + $0x64] sm:$0xf] }
 0x3f1   : > { %2372 = vadd.xlane.f32.xlu0 %v2371_v61  ;;  %v2160_v58 = vsel %vm2083_vm14, %v10310_v9, 0.0  ;;  %v7134_v61 = vld [vmem:[%s9255_s14 + $0x68] sm:$0xf0] }
 0x3f9   : > { %2161 = vadd.xlane.f32.xlu0 %v2160_v58 }
 0x41e   : > { %v2141_v21 = vpop.xlane.xlu0 %2140 }
 0x42b   : > { %v2355_v54 = vpop.xlane.xlu1 %2354 }
 0x42c   : > { %8755 = vrcp.f32 %v2355_v54 }
 0x42d   : > { %8757 = vrcp.f32 %v2141_v21 }
 0x432   : > { %v8756_v19 = vpop.eup %8755 }
 0x433   : > { %v2358_v41 = vpop.xlane.xlu2 %2357  ;;  %v8758_v48 = vpop.eup %8757  ;;  %v2389_v29 = vmul.f32 %v8756_v19, %v10238_v14 }
 0x434   : > { %v2144_v33 = vpop.xlane.xlu1 %2143  ;;  %8759 = vrcp.f32 %v2358_v41  ;;  %v2175_v23 = vmul.f32 %v8758_v48, %v10233_v52  ;;  %v7133_v41 = vor.u32 %v8348_v24, %v7132_v46  ;;  %v7137_v48 = vor.u32 %v8347_v51, %v7134_v61  ;;  %v7084_v46 = vld [vmem:[%s9255_s14] sm:$0xf]  ;;  %v8336_v24 = vld [vmem:[%s9255_s14 + $0x4] sm:$0xf0]  ;;  %v8335_v61 = vld [vmem:[%s9255_s14 + $0x4] sm:$0xf] }
 0x435   : > { %8761 = vrcp.f32 %v2144_v33  ;;  %v7085_v63 = vor.u32 %v8336_v24, %v7084_v46  ;;  %v8364_v51 = vld [vmem:[%s9255_s14 + $0xe4] sm:$0xf0] }
 0x436   : > { %2668 = vmatpush.bf16.msra.mxu0 %v7133_v41  ;;  %2734 = vmatpush.bf16.msra.mxu2 %v7137_v48  ;;  %v7188_v41 = vld [vmem:[%s9255_s14 + $0xd0] sm:$0xf] }
 0x43a   : > { %v8760_v36 = vpop.eup %8759 }
 0x43b   : > { %v8762_v18 = vpop.eup %8761  ;;  %v2390_v42 = vmul.f32 %v8760_v36, %v10244_v11  ;;  %v2361_v55 = vpop.xlane.xlu2 %2360  ;;  %v7124_v36 = vld [vmem:[%s9255_s14 + $0x50] sm:$0xf] }
 0x43c   : > { %v2176_v50 = vmul.f32 %v8762_v18, %v10246_v31  ;;  %v2147_v3 = vpop.xlane.xlu1 %2146  ;;  %8763 = vrcp.f32 %v2361_v55  ;;  %v8346_v18 = vld [vmem:[%s9255_s14 + $0x54] sm:$0xf0]  ;;  %v7126_v55 = vld [vmem:[%s9255_s14 + $0x58] sm:$0xf0] }
 0x43d   : > { %v2398_v34 = vpack.c.bf16 %v2390_v42, %v2389_v29  ;;  %8765 = vrcp.f32 %v2147_v3  ;;  %v8345_v42 = vld [vmem:[%s9255_s14 + $0x54] sm:$0xf]  ;;  %v7118_v3 = vld [vmem:[%s9255_s14 + $0x48] sm:$0xf0] }
 0x43e   : > { %v2184_v30 = vpack.c.bf16 %v2176_v50, %v2175_v23  ;;  %v8344_v23 = vld [vmem:[%s9255_s14 + $0x44] sm:$0xf0]  ;;  %v8343_v50 = vld [vmem:[%s9255_s14 + $0x44] sm:$0xf] }
 0x43f   : > { %7077 = vmatmul.msk.bf16.vlgmr.msrb.gmra.mxu3 %vm2083_vm14, %v2398_v34 }
 0x440   : > { %7072 = vmatmul.msk.bf16.vlgmr.msrb.gmra.mxu1 %vm2083_vm14, %v2184_v30 }
 0x442   : > { %v8764_v52 = vpop.eup %8763 }
 0x443   : > { %v2364_v45 = vpop.xlane.xlu0 %2363  ;;  %v8766_v59 = vpop.eup %8765  ;;  %v2391_v27 = vmul.f32 %v8764_v52, %v10254_v53  ;;  %v7110_v52 = vld [vmem:[%s9255_s14 + $0x38] sm:$0xf0] }
 0x444   : > { %v2150_v40 = vpop.xlane.xlu2 %2149  ;;  %8767 = vrcp.f32 %v2364_v45  ;;  %v2111_v14 = vpop.xlane.xlu1 %2110  ;;  %v2177_v35 = vmul.f32 %v8766_v59, %v10256_v20 }
 0x445   : > { %8769 = vrcp.f32 %v2150_v40  ;;  %v2120_v11 = vsub.f32 %v10223_v22, %v2111_v14  ;;  %v7121_v40 = vor.u32 %v8343_v50, %v7118_v3  ;;  %v7108_v14 = vld [vmem:[%s9255_s14 + $0x30] sm:$0xf]  ;;  %v8361_v50 = vld [vmem:[%s9255_s14 + $0xd4] sm:$0xf]  ;;  %v7190_v3 = vld [vmem:[%s9255_s14 + $0xd8] sm:$0xf0] }
 0x447   : > { %v2137_v8 = vmul.f32 1.442695, %v2120_v11  ;;  %v8342_v11 = vld [vmem:[%s9255_s14 + $0x34] sm:$0xf0] }
 0x448   : > { %v7109_v59 = vor.u32 %v8342_v11, %v7108_v14  ;;  %v8359_v14 = vld [vmem:[%s9255_s14 + $0xc4] sm:$0xf]  ;;  %v7182_v11 = vld [vmem:[%s9255_s14 + $0xc8] sm:$0xf0] }
 0x449   : > { %8771 = vpow2.f32 %v2137_v8  ;;  %v8341_v8 = vld [vmem:[%s9255_s14 + $0x34] sm:$0xf] }
 0x44a   : > { %v8768_v31 = vpop.eup %8767 }
 0x44b   : > { %v8770_v1 = vpop.eup %8769  ;;  %v2392_v12 = vmul.f32 %v8768_v31, %v10264_v37  ;;  %v2325_v7 = vpop.xlane.xlu0 %2324 }
 0x44c   : > { %v2178_v47 = vmul.f32 %v8770_v1, %v10266_v25  ;;  %v2367_v13 = vpop.xlane.xlu2 %2366  ;;  %v2334_v60 = vsub.f32 %v10231_v17, %v2325_v7  ;;  %v2153_v53 = vpop.xlane.xlu1 %2152  ;;  %v7113_v1 = vor.u32 %v8341_v8, %v7110_v52  ;;  %v7185_v52 = vor.u32 %v8359_v14, %v7182_v11 }
 0x44d   : > { %v2399_v57 = vpack.c.bf16 %v2392_v12, %v2391_v27 }
 0x44e   : > { %v2351_v22 = vmul.f32 1.442695, %v2334_v60  ;;  %v2185_v4 = vpack.c.bf16 %v2178_v47, %v2177_v35 }
 0x44f   : > { %v10326_v10 = vpop.eup %8771  ;;  %7078 = vmatmul.msk.bf16.gmra.mxu3 %vm2083_vm14, %v2399_v57 }
 0x450   : > { %8773 = vpow2.f32 %v2351_v22  ;;  %7073 = vmatmul.msk.bf16.gmra.mxu1 %vm2083_vm14, %v2185_v4  ;;  %v2163_v20 = vsel %vm2108_vm15, %v10326_v10, 0.0 }
 0x451   : > { %2164 = vadd.xlane.f32.xlu2 %v2163_v20  ;;  %8775 = vrcp.f32 %v2367_v13  ;;  %v8339_v20 = vld [vmem:[%s9255_s14 + $0x24] sm:$0xf] }
 0x452   : > { %8777 = vrcp.f32 %v2153_v53  ;;  %v8340_v53 = vld [vmem:[%s9255_s14 + $0x24] sm:$0xf0] }
 0x453   : > { %v2370_v17 = vpop.xlane.xlu0 %2369 }
 0x454   : > { %v2156_v37 = vpop.xlane.xlu2 %2155  ;;  %8779 = vrcp.f32 %v2370_v17 }
 0x455   : > { %8781 = vrcp.f32 %v2156_v37  ;;  %v7102_v37 = vld [vmem:[%s9255_s14 + $0x28] sm:$0xf0] }
 0x456   : > { %v10332_v25 = vpop.eup %8773  ;;  %v7105_v26 = vor.u32 %v8339_v20, %v7102_v37 }
 0x457   : > { %v2377_v28 = vsel %vm2108_vm15, %v10332_v25, 0.0  ;;  %v8776_v0 = vpop.eup %8775 }
 0x458   : > { %2378 = vadd.xlane.f32.xlu1 %v2377_v28  ;;  %v8778_v56 = vpop.eup %8777  ;;  %v2393_v54 = vmul.f32 %v8776_v0, %v10276_v43  ;;  %v7092_v28 = vld [vmem:[%s9255_s14 + $0x10] sm:$0xf]  ;;  %v8338_v0 = vld [vmem:[%s9255_s14 + $0x14] sm:$0xf0] }
 0x459   : > { %v2179_v33 = vmul.f32 %v8778_v56, %v10278_v5  ;;  %v7129_v5 = vor.u32 %v8345_v42, %v7126_v55  ;;  %v7093_v15 = vor.u32 %v8338_v0, %v7092_v28  ;;  %v8360_v42 = vld [vmem:[%s9255_s14 + $0xc4] sm:$0xf0]  ;;  %v8363_v55 = vld [vmem:[%s9255_s14 + $0xe4] sm:$0xf] }
 0x45a   : > { %v8780_v6 = vpop.eup %8779  ;;  %v8351_v0 = vld [vmem:[%s9255_s14 + $0x84] sm:$0xf] }
 0x45b   : > { %v8782_v58 = vpop.eup %8781  ;;  %v2394_v21 = vmul.f32 %v8780_v6, %v10287_v62  ;;  %v7125_v62 = vor.u32 %v8346_v18, %v7124_v36  ;;  %2735 = vmatpush.bf16.msra.mxu2 %v7129_v5  ;;  %v7196_v6 = vld [vmem:[%s9255_s14 + $0xe0] sm:$0xf]  ;;  %v7206_v36 = vld [vmem:[%s9255_s14 + $0xf8] sm:$0xf0] }
 0x45c   : > { %v2180_v19 = vmul.f32 %v8782_v58, %v10289_v2  ;;  %v7116_v2 = vld [vmem:[%s9255_s14 + $0x40] sm:$0xf]  ;;  %v2159_v31 = vpop.xlane.xlu2 %2158  ;;  %v7086_v58 = vld [vmem:[%s9255_s14 + $0x8] sm:$0xf0] }
 0x45d   : > { %v2400_v29 = vpack.c.bf16 %v2394_v21, %v2393_v54  ;;  %2669 = vmatpush.bf16.msra.mxu0 %v7125_v62  ;;  %v7117_v30 = vor.u32 %v8344_v23, %v7116_v2  ;;  %v7197_v54 = vor.u32 %v8364_v51, %v7196_v6  ;;  %v7089_v21 = vor.u32 %v8335_v61, %v7086_v58  ;;  %v7198_v62 = vld [vmem:[%s9255_s14 + $0xe8] sm:$0xf0]  ;;  %v7172_v2 = vld [vmem:[%s9255_s14 + $0xb0] sm:$0xf]  ;;  %v8358_v23 = vld [vmem:[%s9255_s14 + $0xb4] sm:$0xf0] }
 0x45e   : > { %v2186_v43 = vpack.c.bf16 %v2180_v19, %v2179_v33  ;;  %v8362_v33 = vld [vmem:[%s9255_s14 + $0xd4] sm:$0xf0]  ;;  %v8365_v19 = vld [vmem:[%s9255_s14 + $0xf4] sm:$0xf]  ;;  %v7201_v5 = vor.u32 %v8363_v55, %v7198_v62 }
 0x45f   : > { %7079 = vmatmul.msk.bf16.gmra.mxu3 %vm2083_vm14, %v2400_v29  ;;  %2736 = vmatpush.bf16.msra.mxu2 %v7121_v40  ;;  %v7189_v48 = vor.u32 %v8362_v33, %v7188_v41  ;;  %v7209_v18 = vor.u32 %v8365_v19, %v7206_v36  ;;  %v7180_v29 = vld [vmem:[%s9255_s14 + $0xc0] sm:$0xf]  ;;  %v8356_v40 = vld [vmem:[%s9255_s14 + $0xa4] sm:$0xf0] }
 0x460   : > { %7074 = vmatmul.msk.bf16.gmra.mxu1 %vm2083_vm14, %v2186_v43  ;;  %v7181_v43 = vor.u32 %v8360_v42, %v7180_v29 }
 0x461   : > { %2670 = vmatpush.bf16.msra.mxu0 %v7117_v30  ;;  %2766 = vmatpush.bf16.msra.mxu3 %v7209_v18  ;;  %v7193_v30 = vor.u32 %v8361_v50, %v7190_v3 }
 0x463   : > { %v2376_v34 = vpop.xlane.xlu1 %2375  ;;  %2737 = vmatpush.bf16.msra.mxu2 %v7113_v1  ;;  %v8357_v1 = vld [vmem:[%s9255_s14 + $0xb4] sm:$0xf] }
 0x464   : > { %v2373_v45 = vpop.xlane.xlu0 %2372  ;;  %8783 = vrcp.f32 %v2376_v34  ;;  %v7173_v34 = vor.u32 %v8358_v23, %v7172_v2 }
 0x465   : > { %8785 = vrcp.f32 %v2373_v45  ;;  %2671 = vmatpush.bf16.msra.mxu0 %v7109_v59  ;;  %2767 = vmatpush.bf16.msra.mxu3 %v7201_v5  ;;  %v7164_v45 = vld [vmem:[%s9255_s14 + $0xa0] sm:$0xf]  ;;  %v7156_v59 = vld [vmem:[%s9255_s14 + $0x90] sm:$0xf] }
 0x466   : > { %8787 = vrcp.f32 %v2159_v31  ;;  %v7165_v8 = vor.u32 %v8356_v40, %v7164_v45  ;;  %v8354_v31 = vld [vmem:[%s9255_s14 + $0x94] sm:$0xf0]  ;;  %v2501_v45 = vld [vmem:[%s12597_s24] sm:$0x3] }
 0x467   : > { %2738 = vmatpush.bf16.msra.mxu2 %v7105_v26  ;;  %v7150_v26 = vld [vmem:[%s9255_s14 + $0x88] sm:$0xf0]  ;;  %v10421_v11 = vperm.slane %v2501_v45, 0 }
 0x469   : > { %2768 = vmatpush.bf16.msra.mxu3 %v7193_v30 }
 0x46a   : > { %v8784_v27 = vpop.eup %8783 }
 0x46b   : > { %v8786_v12 = vpop.eup %8785  ;;  %v2396_v7 = vmul.f32 %v8784_v27, %v10302_v44  ;;  %v7174_v27 = vld [vmem:[%s9255_s14 + $0xb8] sm:$0xf0] }
 0x46c   : > { %v2395_v35 = vmul.f32 %v8786_v12, %v10304_v32  ;;  %v2162_v47 = vpop.xlane.xlu0 %2161  ;;  %v8788_v60 = vpop.eup %8787  ;;  %v7100_v32 = vld [vmem:[%s9255_s14 + $0x20] sm:$0xf] }
 0x46d   : > { %8789 = vrcp.f32 %v2162_v47  ;;  %v2181_v44 = vmul.f32 %v8788_v60, %v10297_v49  ;;  %v7101_v17 = vor.u32 %v8340_v53, %v7100_v32  ;;  %v8366_v49 = vld [vmem:[%s9255_s14 + $0xf4] sm:$0xf0]  ;;  %2769 = vmatpush.bf16.msra.mxu3 %v7185_v52  ;;  %v7148_v47 = vld [vmem:[%s9255_s14 + $0x80] sm:$0xf]  ;;  %v8355_v60 = vld [vmem:[%s9255_s14 + $0xa4] sm:$0xf] }
 0x46e   : > { %v2401_v13 = vpack.c.bf16 %v2396_v7, %v2395_v35  ;;  %v7205_v56 = vor.u32 %v8366_v49, %v7204_v16  ;;  %v7157_v7 = vor.u32 %v8354_v31, %v7156_v59  ;;  %v7177_v35 = vor.u32 %v8357_v1, %v7174_v27  ;;  %v7158_v32 = vld [vmem:[%s9255_s14 + $0x98] sm:$0xf0] }
 0x46f   : > { %2672 = vmatpush.bf16.msra.mxu0 %v7101_v17  ;;  %v7153_v16 = vor.u32 %v8351_v0, %v7150_v26  ;;  %v10423_v52 = vperm.slane %v2501_v45, 1  ;;  %v8959_v0 = vld [vmem:[%s9287_s19 + $0x10] sm:$0xff]  ;;  %v8965_v45 = vld [vmem:[%s9287_s19 + $0x40] sm:$0xff] }
 0x470   : > { %7080 = vmatmul.msk.bf16.gmra.mxu3 %vm2083_vm14, %v2401_v13  ;;  %2700 = vmatpush.bf16.msra.mxu1 %v7205_v56  ;;  %v8352_v13 = vld [vmem:[%s9255_s14 + $0x84] sm:$0xf0] }
 0x471   : > { %2770 = vmatpush.bf16.msra.mxu3 %v7177_v35 }
 0x473   : > { %v8790_v57 = vpop.eup %8789  ;;  %2673 = vmatpush.bf16.msra.mxu0 %v7093_v15 }
 0x474   : > { %v2182_v22 = vmul.f32 %v8790_v57, %v10310_v9  ;;  %v8337_v9 = vld [vmem:[%s9255_s14 + $0x14] sm:$0xf]  ;;  %2701 = vmatpush.bf16.msra.mxu1 %v7197_v54  ;;  %v7166_v57 = vld [vmem:[%s9255_s14 + $0xa8] sm:$0xf0] }
 0x475   : > { %v7097_v38 = vor.u32 %v8337_v9, %v7094_v39 }
 0x476   : > { %v2187_v4 = vpack.c.bf16 %v2182_v22, %v2181_v44  ;;  %v7149_v44 = vor.u32 %v8352_v13, %v7148_v47  ;;  %v7169_v22 = vor.u32 %v8355_v60, %v7166_v57  ;;  %v8957_v47 = vld [vmem:[%s9287_s19] sm:$0xff]  ;;  %v8958_v60 = vld [vmem:[%s9287_s19 + $0x8] sm:$0xff] }
 0x477   : > { %2739 = vmatpush.bf16.msra.mxu2 %v7097_v38  ;;  %2674 = vmatpush.bf16.msra.mxu0 %v7085_v63 }
 0x478   : > { %7075 = vmatmul.msk.bf16.gmra.mxu1 %vm2083_vm14, %v2187_v4  ;;  %v8353_v4 = vld [vmem:[%s9255_s14 + $0x94] sm:$0xf]  ;;  %2771 = vmatpush.bf16.msra.mxu3 %v7169_v22 }
 0x479   : > { %2702 = vmatpush.bf16.msra.mxu1 %v7189_v48  ;;  %v7161_v37 = vor.u32 %v8353_v4, %v7158_v32 }
 0x47b   : > { %2740 = vmatpush.bf16.msra.mxu2 %v7089_v21 }
 0x47c   : > { %2772 = vmatpush.bf16.msra.mxu3 %v7161_v37 }
 0x47d   : > { %2703 = vmatpush.bf16.msra.mxu1 %v7181_v43 }
 0x480   : > { %2773 = vmatpush.bf16.msra.mxu3 %v7153_v16  ;;  %v8960_v16 = vld [vmem:[%s9287_s19 + $0x18] sm:$0xff] }
 0x481   : > { %2704 = vmatpush.bf16.msra.mxu1 %v7173_v34 }
 0x485   : > { %2705 = vmatpush.bf16.msra.mxu1 %v7165_v8 }
 0x489   : > { %2706 = vmatpush.bf16.msra.mxu1 %v7157_v7 }
 0x48d   : > { %2707 = vmatpush.bf16.msra.mxu1 %v7149_v44 }
 0x4bd   : > { %v2223_v12 = vpop.f32.mrf.mxu1 }
 0x4c2   : > { %v2435_v20 = vpop.f32.mrf.mxu3 }
 0x4c4   : > { %v2165_v53 = vpop.xlane.xlu2 %2164 }
 0x4c5   : > { %8791 = vrcp.f32 %v2165_v53  ;;  %v2225_v17 = vpop.f32.mrf.mxu1 }
 0x4c6   : > { %v2459_v28 = vpack.c.bf16 %v2225_v17, %v2223_v12 }
 0x4c8   : > { %2675 = vmatmul.bf16.vlgmr.msra.gmra.mxu0 %v2459_v28  ;;  %2741 = vmatmul.bf16.vlgmr.msra.gmra.mxu2 %v2459_v28 }
 0x4ca   : > { %v2437_v38 = vpop.f32.mrf.mxu3 }
 0x4cb   : > { %v8792_v49 = vpop.eup %8791  ;;  %v2379_v9 = vpop.xlane.xlu1 %2378 }
 0x4cc   : > { %v2183_v15 = vmul.f32 %v8792_v49, %v10326_v10  ;;  %8793 = vrcp.f32 %v2379_v9  ;;  %v2460_v10 = vpack.c.bf16 %v2437_v38, %v2435_v20 }
 0x4cd   : > { %v2228_v56 = vpop.f32.mrf.mxu1 }
 0x4ce   : > { %v2188_v39 = vpack.c.bf16 %v2183_v15, %v2183_v15 }
 0x4d0   : > { %7076 = vmatmul.msk.bf16.gmra.mxu1 %vm2083_vm14, %v2188_v39 }
 0x4d2   : > { %v8794_v46 = vpop.eup %8793  ;;  %v2440_v61 = vpop.f32.mrf.mxu3 }
 0x4d3   : > { %v2397_v24 = vmul.f32 %v8794_v46, %v10332_v25 }
 0x4d5   : > { %v2230_v6 = vpop.f32.mrf.mxu1  ;;  %v2402_v63 = vpack.c.bf16 %v2397_v24, %v2397_v24 }
 0x4d6   : > { %v2461_v51 = vpack.c.bf16 %v2230_v6, %v2228_v56 }
 0x4d7   : > { %7081 = vmatmul.msk.bf16.gmra.mxu3 %vm2083_vm14, %v2402_v63  ;;  %v8961_v63 = vld [vmem:[%s9287_s19 + $0x20] sm:$0xff] }
 0x4d8   : > { %2680 = vmatmul.bf16.gmra.mxu0 %v2461_v51  ;;  %2746 = vmatmul.bf16.gmra.mxu2 %v2461_v51 }
 0x4da   : > { %v2442_v54 = vpop.f32.mrf.mxu3 }
 0x4db   : > { %v2462_v19 = vpack.c.bf16 %v2442_v54, %v2440_v61  ;;  %v8962_v61 = vld [vmem:[%s9287_s19 + $0x28] sm:$0xff] }
 0x4dd   : > { %v2233_v58 = vpop.f32.mrf.mxu1 }
 0x4e0   : > { %2708 = vmatmul.bf16.vlgmr.msra.gmra.mxu1 %v2460_v10 }
 0x4e2   : > { %v2445_v33 = vpop.f32.mrf.mxu3 }
 0x4e5   : > { %v2235_v21 = vpop.f32.mrf.mxu1 }
 0x4e6   : > { %v2463_v41 = vpack.c.bf16 %v2235_v21, %v2233_v58 }
 0x4e7   : > { %2774 = vmatmul.bf16.vlgmr.msra.gmra.mxu3 %v2460_v10 }
 0x4e8   : > { %2685 = vmatmul.bf16.gmra.mxu0 %v2463_v41  ;;  %2751 = vmatmul.bf16.gmra.mxu2 %v2463_v41 }
 0x4ea   : > { %v2447_v48 = vpop.f32.mrf.mxu3 }
 0x4eb   : > { %v2464_v18 = vpack.c.bf16 %v2447_v48, %v2445_v33 }
 0x4f0   : > { %2713 = vmatmul.bf16.gmra.mxu1 %v2462_v19 }
 0x4f3   : > { %v2450_v42 = vpop.f32.mrf.mxu3 }
 0x4f5   : > { %v2238_v25 = vpop.f32.mrf.mxu1 }
 0x4f7   : > { %2779 = vmatmul.bf16.gmra.mxu3 %v2462_v19 }
 0x4fb   : > { %v2452_v55 = vpop.f32.mrf.mxu3 }
 0x4fc   : > { %v2466_v43 = vpack.c.bf16 %v2452_v55, %v2450_v42  ;;  %v8964_v42 = vld [vmem:[%s9287_s19 + $0x38] sm:$0xff] }
 0x4fd   : > { %v2240_v36 = vpop.f32.mrf.mxu1 }
 0x4fe   : > { %v2465_v29 = vpack.c.bf16 %v2240_v36, %v2238_v25 }
 0x500   : > { %2690 = vmatmul.bf16.gmra.mxu0 %v2465_v29  ;;  %2718 = vmatmul.bf16.gmra.mxu1 %v2464_v18 }
 0x501   : > { %2756 = vmatmul.bf16.gmra.mxu2 %v2465_v29 }
 0x507   : > { %2784 = vmatmul.bf16.gmra.mxu3 %v2464_v18  ;;  %v8963_v18 = vld [vmem:[%s9287_s19 + $0x30] sm:$0xff] }
 0x510   : > { %2723 = vmatmul.bf16.gmra.mxu1 %v2466_v43 }
 0x517   : > { %2789 = vmatmul.bf16.gmra.mxu3 %v2466_v43 }
 0x545   : > { %v2676_v23 = vpop.f32.mrf.mxu0 }
 0x546   : > { %v2677_v31 = vadd.f32 %v2676_v23, %v10421_v11 }
 0x54b   : > { %v2742_v50 = vpop.f32.mrf.mxu2 }
 0x54c   : > { %v2743_v1 = vadd.f32 %v2742_v50, %v10423_v52 }
 0x54d   : > { %v2243_v62 = vpop.f32.mrf.mxu1  ;;  %v2678_v40 = vpop.f32.mrf.mxu0 }
 0x54e   : > { %v2467_v5 = vpack.c.bf16 %v2243_v62, %v2243_v62  ;;  %v2679_v4 = vadd.f32 %v2678_v40, %v10421_v11 }
 0x550   : > { %2695 = vmatmul.bf16.gmra.mxu0 %v2467_v5  ;;  %2761 = vmatmul.bf16.gmra.mxu2 %v2467_v5 }
 0x553   : > { %v2744_v8 = vpop.f32.mrf.mxu2 }
 0x554   : > { %v2745_v53 = vadd.f32 %v2744_v8, %v10423_v52 }
 0x555   : > { %v2245_v2 = vpop.f32.mrf.mxu1  ;;  %v2681_v7 = vpop.f32.mrf.mxu0 }
 0x556   : > { %v2682_v15 = vadd.f32 %v2681_v7, %v10421_v11 }
 0x55a   : > { %v2455_v3 = vpop.f32.mrf.mxu3 }
 0x55b   : > { %v2468_v34 = vpack.c.bf16 %v2455_v3, %v2455_v3  ;;  %v2747_v22 = vpop.f32.mrf.mxu2 }
 0x55c   : > { %v2748_v38 = vadd.f32 %v2747_v22, %v10423_v52 }
 0x55d   : > { %v2709_v30 = vpop.f32.mrf.mxu1  ;;  %2728 = vmatmul.bf16.gmra.mxu1 %v2468_v34  ;;  %2794 = vmatmul.bf16.gmra.mxu3 %v2468_v34  ;;  %v2683_v28 = vpop.f32.mrf.mxu0 }
 0x55e   : > { %v2710_v27 = vadd.f32 %v2709_v30, %v2677_v31  ;;  %v2684_v10 = vadd.f32 %v2683_v28, %v10421_v11 }
 0x560   : > { %v10428_v13 = vadd.f32 %v8957_v47, %v2710_v27 }
 0x562   : > { %v2457_v14 = vpop.f32.mrf.mxu3  ;;  %12598 = vst [vmem:[#allocation15_spill] sm:$0xff] %v10428_v13 }
 0x563   : > { %v2749_v39 = vpop.f32.mrf.mxu2  ;;  %v8966_v14 = vld [vmem:[%s9287_s19 + $0x48] sm:$0xff] }
 0x564   : > { %v2750_v33 = vadd.f32 %v2749_v39, %v10423_v52 }
 0x565   : > { %v2711_v59 = vpop.f32.mrf.mxu1  ;;  %v2686_v54 = vpop.f32.mrf.mxu0 }
 0x566   : > { %v2712_v20 = vadd.f32 %v2711_v59, %v2679_v4  ;;  %v2687_v43 = vadd.f32 %v2686_v54, %v10421_v11  ;;  %v8968_v4 = vld [vmem:[%s9287_s19 + $0x58] sm:$0xff] }
 0x568   : > { %v10438_v26 = vadd.f32 %v8959_v0, %v2712_v20 }
 0x56a   : > { %v2775_v12 = vpop.f32.mrf.mxu3  ;;  %12600 = vst [vmem:[#allocation16_spill] sm:$0xff] %v10438_v26 }
 0x56b   : > { %v2776_v35 = vadd.f32 %v2775_v12, %v2743_v1  ;;  %v2752_v25 = vpop.f32.mrf.mxu2 }
 0x56c   : > { %v2753_v5 = vadd.f32 %v2752_v25, %v10423_v52 }
 0x56d   : > { %v10431_v57 = vadd.f32 %v8958_v60, %v2776_v35  ;;  %v2714_v44 = vpop.f32.mrf.mxu1  ;;  %v2688_v2 = vpop.f32.mrf.mxu0 }
 0x56e   : > { %v2715_v46 = vadd.f32 %v2714_v44, %v2682_v15  ;;  %v2689_v59 = vadd.f32 %v2688_v2, %v10421_v11  ;;  %v8967_v44 = vld [vmem:[%s9287_s19 + $0x50] sm:$0xff] }
 0x56f   : > { %12599 = vst [vmem:[#allocation17_spill] sm:$0xff] %v10431_v57  ;;  %v2819_v32 = vadd.f32 %v10431_v57, %v10428_v13 }
 0x570   : > { %v10448_v51 = vadd.f32 %v8961_v63, %v2715_v46 }
 0x571   : > { %2820 = vadd.xlane.f32.xlu0 %v2819_v32 }
 0x572   : > { %v2777_v17 = vpop.f32.mrf.mxu3  ;;  %12602 = vst [vmem:[#allocation19_spill] sm:$0xff] %v10448_v51 }
 0x573   : > { %v2778_v37 = vadd.f32 %v2777_v17, %v2745_v53  ;;  %v2754_v30 = vpop.f32.mrf.mxu2 }
 0x574   : > { %v2755_v1 = vadd.f32 %v2754_v30, %v10423_v52 }
 0x575   : > { %v10441_v49 = vadd.f32 %v8960_v16, %v2778_v37  ;;  %v2716_v9 = vpop.f32.mrf.mxu1 }
 0x576   : > { %v2717_v19 = vadd.f32 %v2716_v9, %v2684_v10  ;;  %v8969_v9 = vld [vmem:[%s9287_s19 + $0x60] sm:$0xff] }
 0x577   : > { %12601 = vst [vmem:[#allocation18_spill] sm:$0xff] %v10441_v49  ;;  %v2822_v56 = vadd.f32 %v10441_v49, %v10438_v26 }
 0x578   : > { %v10458_v29 = vadd.f32 %v8963_v18, %v2717_v19 }
 0x579   : > { %2823 = vadd.xlane.f32.xlu1 %v2822_v56  ;;  %v8970_v56 = vld [vmem:[%s9287_s19 + $0x68] sm:$0xff] }
 0x57a   : > { %v2780_v24 = vpop.f32.mrf.mxu3  ;;  %12604 = vst [vmem:[#allocation21_spill] sm:$0xff] %v10458_v29 }
 0x57b   : > { %v2781_v6 = vadd.f32 %v2780_v24, %v2748_v38 }
 0x57d   : > { %v10451_v58 = vadd.f32 %v8962_v61, %v2781_v6  ;;  %v2719_v41 = vpop.f32.mrf.mxu1  ;;  %v2691_v12 = vpop.f32.mrf.mxu0 }
 0x57e   : > { %v2720_v23 = vadd.f32 %v2719_v41, %v2687_v43  ;;  %v2692_v53 = vadd.f32 %v2691_v12, %v10421_v11 }
 0x57f   : > { %12603 = vst [vmem:[#allocation20_spill] sm:$0xff] %v10451_v58  ;;  %v2825_v21 = vadd.f32 %v10451_v58, %v10448_v51 }
 0x580   : > { %v10468_v40 = vadd.f32 %v8965_v45, %v2720_v23  ;;  %v8974_v45 = vld [vmem:[%s9287_s19 + $0x88] sm:$0x1] }
 0x581   : > { %2826 = vadd.xlane.f32.xlu2 %v2825_v21  ;;  %v8971_v21 = vld [vmem:[%s9287_s19 + $0x70] sm:$0xff] }
 0x582   : > { %v2782_v48 = vpop.f32.mrf.mxu3  ;;  %12606 = vst [vmem:[#allocation23_spill] sm:$0xff] %v10468_v40 }
 0x583   : > { %v2783_v36 = vadd.f32 %v2782_v48, %v2750_v33  ;;  %v8972_v33 = vld [vmem:[%s9287_s19 + $0x78] sm:$0xff] }
 0x584   : > { %v2757_v47 = vpop.f32.mrf.mxu2 }
 0x585   : > { %v10461_v55 = vadd.f32 %v8964_v42, %v2783_v36  ;;  %v2721_v50 = vpop.f32.mrf.mxu1  ;;  %v2758_v17 = vadd.f32 %v2757_v47, %v10423_v52  ;;  %v2693_v16 = vpop.f32.mrf.mxu0 }
 0x586   : > { %v2722_v27 = vadd.f32 %v2721_v50, %v2689_v59  ;;  %v2694_v24 = vadd.f32 %v2693_v16, %v10421_v11  ;;  %v8973_v50 = vld [vmem:[%s9287_s19 + $0x80] sm:$0x1] }
 0x587   : > { %12605 = vst [vmem:[#allocation22_spill] sm:$0xff] %v10461_v55  ;;  %v2828_v62 = vadd.f32 %v10461_v55, %v10458_v29 }
 0x588   : > { %v10478_v22 = vadd.f32 %v8967_v44, %v2722_v27 }
 0x589   : > { %2829 = vadd.xlane.f32.xlu0 %v2828_v62 }
 0x58a   : > { %v2785_v3 = vpop.f32.mrf.mxu3  ;;  %12608 = vst [vmem:[#allocation25_spill] sm:$0xff] %v10478_v22 }
 0x58b   : > { %v2786_v34 = vadd.f32 %v2785_v3, %v2753_v5 }
 0x58c   : > { %v2759_v38 = vpop.f32.mrf.mxu2 }
 0x58d   : > { %v10471_v8 = vadd.f32 %v8966_v14, %v2786_v34  ;;  %v2724_v60 = vpop.f32.mrf.mxu1  ;;  %v2760_v63 = vadd.f32 %v2759_v38, %v10423_v52 }
 0x58e   : > { %v2725_v37 = vadd.f32 %v2724_v60, %v2692_v53 }
 0x58f   : > { %12607 = vst [vmem:[#allocation24_spill] sm:$0xff] %v10471_v8  ;;  %v2831_v31 = vadd.f32 %v10471_v8, %v10468_v40 }
 0x590   : > { %v10488_v15 = vadd.f32 %v8969_v9, %v2725_v37 }
 0x591   : > { %2832 = vadd.xlane.f32.xlu1 %v2831_v31  ;;  %v12616_v31 = vld [vmem:[#allocation14_spill] sm:$0xff] }
 0x592   : > { %v2787_v7 = vpop.f32.mrf.mxu3  ;;  %12610 = vst [vmem:[#allocation27_spill] sm:$0xff] %v10488_v15 }
 0x593   : > { %v2788_v35 = vadd.f32 %v2787_v7, %v2755_v1 }
 0x595   : > { %v10481_v32 = vadd.f32 %v8968_v4, %v2788_v35  ;;  %v2726_v46 = vpop.f32.mrf.mxu1 }
 0x596   : > { %v2727_v61 = vadd.f32 %v2726_v46, %v2694_v24 }
 0x597   : > { %12609 = vst [vmem:[#allocation26_spill] sm:$0xff] %v10481_v32  ;;  %v2834_v20 = vadd.f32 %v10481_v32, %v10478_v22 }
 0x598   : > { %v10498_v41 = vadd.f32 %v8971_v21, %v2727_v61 }
 0x599   : > { %2835 = vadd.xlane.f32.xlu2 %v2834_v20 }
 0x59a   : > { %v2790_v28 = vpop.f32.mrf.mxu3  ;;  %12612 = vst [vmem:[#allocation29_spill] sm:$0xff] %v10498_v41 }
 0x59b   : > { %v2791_v0 = vadd.f32 %v2790_v28, %v2758_v17 }
 0x59d   : > { %v10491_v39 = vadd.f32 %v8970_v56, %v2791_v0 }
 0x59f   : > { %12611 = vst [vmem:[#allocation28_spill] sm:$0xff] %v10491_v39  ;;  %v2837_v6 = vadd.f32 %v10491_v39, %v10488_v15 }
 0x5a1   : > { %2838 = vadd.xlane.f32.xlu0 %v2837_v6 }
 0x5a2   : > { %v2792_v10 = vpop.f32.mrf.mxu3 }
 0x5a3   : > { %v2793_v54 = vadd.f32 %v2792_v10, %v2760_v63 }
 0x5a5   : > { %v10501_v19 = vadd.f32 %v8972_v33, %v2793_v54 }
 0x5a7   : > { %12613 = vst [vmem:[#allocation30_spill] sm:$0xff] %v10501_v19  ;;  %v2840_v25 = vadd.f32 %v10501_v19, %v10498_v41 }
 0x5a9   : > { %2841 = vadd.xlane.f32.xlu1 %v2840_v25 }
 0x5cd   : > { %v2696_v48 = vpop.f32.mrf.mxu0 }
 0x5ce   : > { %v2697_v43 = vadd.f32 %v2696_v48, %v10421_v11 }
 0x5d3   : > { %v2762_v36 = vpop.f32.mrf.mxu2 }
 0x5d4   : > { %v2763_v2 = vadd.f32 %v2762_v36, %v10423_v52 }
 0x5d5   : > { %v2698_v18 = vpop.f32.mrf.mxu0 }
 0x5da   : > { %v2729_v42 = vpop.f32.mrf.mxu1 }
 0x5db   : > { %v2764_v62 = vpop.f32.mrf.mxu2  ;;  %v2730_v5 = vadd.f32 %v2729_v42, %v2697_v43 }
 0x5dd   : > { %v10508_v3 = vadd.f32 %v8973_v50, %v2730_v5 }
 0x5df   : > { %12614 = vst [vmem:[#allocation31_spill] sm:$0xff] %v10508_v3  ;;  %v2843_v27 = vsel %vm776_vm0, %v10508_v3, 0.0 }
 0x5e0   : > { %v2795_v23 = vpop.f32.mrf.mxu3 }
 0x5e1   : > { %v2796_v34 = vadd.f32 %v2795_v23, %v2763_v2 }
 0x5e2   : > { %v2731_v30 = vpop.f32.mrf.mxu1 }
 0x5e3   : > { %v10511_v14 = vadd.f32 %v8974_v45, %v2796_v34 }
 0x5e4   : > { %v2821_v59 = vpop.xlane.xlu0 %2820 }
 0x5e5   : > { %12615 = vst [vmem:[#allocation32_spill] sm:$0xff] %v10511_v14  ;;  %v2848_v1 = vmul.f32 %v2821_v59, %v12616_v31  ;;  %v2844_v11 = vsel %vm776_vm0, %v10511_v14, 0.0 }
 0x5e6   : > { %v2845_v12 = vadd.f32 %v2844_v11, %v2843_v27 }
 0x5e7   : > { %v10519_v52 = vsub.f32 %v10428_v13, %v2848_v1  ;;  %v10522_v7 = vsub.f32 %v10431_v57, %v2848_v1  ;;  %v7484_v57 = vld [vmem:[%s9268_s4 + $0x210] sm:$0xf] }
 0x5e8   : > { %v2797_v35 = vpop.f32.mrf.mxu3  ;;  %2846 = vadd.xlane.f32.xlu1 %v2845_v12 }
 0x5e9   : > { %v2875_v47 = vmul.f32 %v10519_v52, %v10519_v52  ;;  %v2876_v60 = vmul.f32 %v10522_v7, %v10522_v7 }
 0x5eb   : > { %v2893_v44 = vadd.f32 %v2876_v60, %v2875_v47 }
 0x5ec   : > { %v2824_v4 = vpop.xlane.xlu1 %2823 }
 0x5ed   : > { %v2849_v53 = vmul.f32 %v2824_v4, %v12616_v31  ;;  %2894 = vadd.xlane.f32.xlu2 %v2893_v44 }
 0x5ef   : > { %v10530_v20 = vsub.f32 %v10438_v26, %v2849_v53  ;;  %v10533_v17 = vsub.f32 %v10441_v49, %v2849_v53  ;;  %v8373_v49 = vld [vmem:[%s9268_s4 + $0x2c] sm:$0xf0]  ;;  %v7526_v26 = vld [vmem:[%s9268_s4 + $0x278] sm:$0xf0] }
 0x5f1   : > { %v2877_v37 = vmul.f32 %v10530_v20, %v10530_v20  ;;  %v2878_v28 = vmul.f32 %v10533_v17, %v10533_v17 }
 0x5f3   : > { %v2896_v0 = vadd.f32 %v2878_v28, %v2877_v37 }
 0x5f4   : > { %v2827_v16 = vpop.xlane.xlu2 %2826 }
 0x5f5   : > { %v2850_v9 = vmul.f32 %v2827_v16, %v12616_v31  ;;  %2897 = vadd.xlane.f32.xlu0 %v2896_v0 }
 0x5f7   : > { %v10541_v56 = vsub.f32 %v10448_v51, %v2850_v9  ;;  %v10544_v38 = vsub.f32 %v10451_v58, %v2850_v9  ;;  %v7436_v9 = vld [vmem:[%s9268_s4 + $0x1c0] sm:$0xf]  ;;  %v7228_v58 = vld [vmem:[%s9268_s4 + $0x10] sm:$0xf]  ;;  %v8442_v51 = vld [vmem:[%s9268_s4 + $0x25c] sm:$0xf] }
 0x5f9   : > { %v2879_v46 = vmul.f32 %v10541_v56, %v10541_v56  ;;  %v2880_v24 = vmul.f32 %v10544_v38, %v10544_v38 }
 0x5fb   : > { %v2899_v6 = vadd.f32 %v2880_v24, %v2879_v46  ;;  %v8427_v46 = vld [vmem:[%s9268_s4 + $0x1dc] sm:$0xf0] }
 0x5fc   : > { %v2830_v63 = vpop.xlane.xlu0 %2829  ;;  %v7692_v24 = vld [vmem:[%s9268_s4 + $0x3c0] sm:$0xf] }
 0x5fd   : > { %v2851_v61 = vmul.f32 %v2830_v63, %v12616_v31  ;;  %2900 = vadd.xlane.f32.xlu2 %v2899_v6  ;;  %v7437_v6 = vor.u32 %v8427_v46, %v7436_v9  ;;  %v8491_v63 = vld [vmem:[%s9268_s4 + $0x3dc] sm:$0xf0]  ;;  %v8407_v9 = vld [vmem:[%s9268_s4 + $0x144] sm:$0xf] }
 0x5fe   : > { %v7374_v46 = vld [vmem:[%s9268_s4 + $0x160] sm:$0xf0] }
 0x5ff   : > { %v10552_v10 = vsub.f32 %v10458_v29, %v2851_v61  ;;  %v10555_v54 = vsub.f32 %v10461_v55, %v2851_v61  ;;  %v8423_v61 = vld [vmem:[%s9268_s4 + $0x1c4] sm:$0xf]  ;;  %3890 = vmatpush.bf16.msrb.mxu0 %v7437_v6  ;;  %v7377_v6 = vor.u32 %v8407_v9, %v7374_v46  ;;  %v8446_v29 = vld [vmem:[%s9268_s4 + $0x274] sm:$0xf0] }
 0x600   : > { %v7310_v9 = vld [vmem:[%s9268_s4 + $0xe0] sm:$0xf0] }
 0x601   : > { %v2881_v21 = vmul.f32 %v10552_v10, %v10552_v10  ;;  %v2882_v33 = vmul.f32 %v10555_v54, %v10555_v54 }
 0x603   : > { %v2902_v25 = vadd.f32 %v2882_v33, %v2881_v21  ;;  %v7438_v21 = vld [vmem:[%s9268_s4 + $0x1e0] sm:$0xf0]  ;;  %v7693_v33 = vor.u32 %v8491_v63, %v7692_v24 }
 0x604   : > { %v2833_v48 = vpop.xlane.xlu1 %2832  ;;  %v8471_v63 = vld [vmem:[%s9268_s4 + $0x344] sm:$0xf] }
 0x605   : > { %v2852_v36 = vmul.f32 %v2833_v48, %v12616_v31  ;;  %2903 = vadd.xlane.f32.xlu0 %v2902_v25  ;;  %v7441_v25 = vor.u32 %v8423_v61, %v7438_v21  ;;  %v8487_v48 = vld [vmem:[%s9268_s4 + $0x3c4] sm:$0xf]  ;;  %3923 = vmatpush.bf16.msrb.mxu1 %v7693_v33  ;;  %v7340_v33 = vld [vmem:[%s9268_s4 + $0x100] sm:$0xf] }
 0x606   : > { %v7630_v61 = vld [vmem:[%s9268_s4 + $0x360] sm:$0xf0] }
 0x607   : > { %v10563_v18 = vsub.f32 %v10468_v40, %v2852_v36  ;;  %v10566_v42 = vsub.f32 %v10471_v8, %v2852_v36  ;;  %v7694_v36 = vld [vmem:[%s9268_s4 + $0x3e0] sm:$0xf0]  ;;  %3956 = vmatpush.bf16.msrb.mxu2 %v7441_v25  ;;  %v7633_v21 = vor.u32 %v8471_v63, %v7630_v61  ;;  %v8403_v25 = vld [vmem:[%s9268_s4 + $0x11c] sm:$0xf0]  ;;  %v7524_v40 = vld [vmem:[%s9268_s4 + $0x258] sm:$0xf] }
 0x608   : > { %v7566_v63 = vld [vmem:[%s9268_s4 + $0x2e0] sm:$0xf0] }
 0x609   : > { %v2883_v43 = vmul.f32 %v10563_v18, %v10563_v18  ;;  %v2884_v62 = vmul.f32 %v10566_v42, %v10566_v42 }
 0x60b   : > { %v2905_v5 = vadd.f32 %v2884_v62, %v2883_v43  ;;  %v7697_v43 = vor.u32 %v8487_v48, %v7694_v36  ;;  %v7404_v62 = vld [vmem:[%s9268_s4 + $0x180] sm:$0xf]  ;;  %v7341_v36 = vor.u32 %v8403_v25, %v7340_v33 }
 0x60c   : > { %v2836_v2 = vpop.xlane.xlu2 %2835  ;;  %v7596_v48 = vld [vmem:[%s9268_s4 + $0x300] sm:$0xf] }
 0x60d   : > { %v2853_v23 = vmul.f32 %v2836_v2, %v12616_v31  ;;  %2906 = vadd.xlane.f32.xlu1 %v2905_v5  ;;  %v8419_v5 = vld [vmem:[%s9268_s4 + $0x19c] sm:$0xf0]  ;;  %3989 = vmatpush.bf16.msrb.mxu3 %v7697_v43 }
 0x60e   : > { %v7660_v2 = vld [vmem:[%s9268_s4 + $0x380] sm:$0xf] }
 0x60f   : > { %v10574_v50 = vsub.f32 %v10478_v22, %v2853_v23  ;;  %v10577_v34 = vsub.f32 %v10481_v32, %v2853_v23  ;;  %v7405_v23 = vor.u32 %v8419_v5, %v7404_v62  ;;  %v8467_v43 = vld [vmem:[%s9268_s4 + $0x31c] sm:$0xf0]  ;;  %v8399_v62 = vld [vmem:[%s9268_s4 + $0x104] sm:$0xf]  ;;  %v7516_v32 = vld [vmem:[%s9268_s4 + $0x250] sm:$0xf] }
 0x610   : > { %v7342_v5 = vld [vmem:[%s9268_s4 + $0x120] sm:$0xf0]  ;;  %v8382_v22 = vld [vmem:[%s9268_s4 + $0x74] sm:$0xf0] }
 0x611   : > { %v2885_v30 = vmul.f32 %v10574_v50, %v10574_v50  ;;  %v2886_v45 = vmul.f32 %v10577_v34, %v10577_v34  ;;  %3891 = vmatpush.bf16.msrb.mxu0 %v7405_v23  ;;  %v7597_v23 = vor.u32 %v8467_v43, %v7596_v48  ;;  %v8387_v43 = vld [vmem:[%s9268_s4 + $0x9c] sm:$0xf0] }
 0x613   : > { %v2908_v59 = vadd.f32 %v2886_v45, %v2885_v30  ;;  %v8483_v30 = vld [vmem:[%s9268_s4 + $0x39c] sm:$0xf0]  ;;  %v8415_v45 = vld [vmem:[%s9268_s4 + $0x184] sm:$0xf] }
 0x614   : > { %v2839_v1 = vpop.xlane.xlu0 %2838 }
 0x615   : > { %v2854_v27 = vmul.f32 %v2839_v1, %v12616_v31  ;;  %2909 = vadd.xlane.f32.xlu2 %v2908_v59  ;;  %v7406_v59 = vld [vmem:[%s9268_s4 + $0x1a0] sm:$0xf0]  ;;  %v7661_v1 = vor.u32 %v8483_v30, %v7660_v2  ;;  %v7345_v30 = vor.u32 %v8399_v62, %v7342_v5  ;;  %v7532_v62 = vld [vmem:[%s9268_s4 + $0x280] sm:$0xf] }
 0x617   : > { %v10585_v11 = vsub.f32 %v10488_v15, %v2854_v27  ;;  %v10588_v12 = vsub.f32 %v10491_v39, %v2854_v27  ;;  %v7409_v27 = vor.u32 %v8415_v45, %v7406_v59  ;;  %3924 = vmatpush.bf16.msrb.mxu1 %v7661_v1  ;;  %v8463_v45 = vld [vmem:[%s9268_s4 + $0x304] sm:$0xf]  ;;  %v7292_v39 = vld [vmem:[%s9268_s4 + $0x90] sm:$0xf] }
 0x618   : > { %v7598_v59 = vld [vmem:[%s9268_s4 + $0x320] sm:$0xf0] }
 0x619   : > { %v2887_v35 = vmul.f32 %v10585_v11, %v10585_v11  ;;  %v2888_v47 = vmul.f32 %v10588_v12, %v10588_v12  ;;  %3957 = vmatpush.bf16.msrb.mxu2 %v7409_v27  ;;  %v7601_v27 = vor.u32 %v8463_v45, %v7598_v59  ;;  %v8383_v45 = vld [vmem:[%s9268_s4 + $0x84] sm:$0xf] }
 0x61b   : > { %v2911_v60 = vadd.f32 %v2888_v47, %v2887_v35  ;;  %v8479_v35 = vld [vmem:[%s9268_s4 + $0x384] sm:$0xf] }
 0x61c   : > { %v2842_v44 = vpop.xlane.xlu1 %2841  ;;  %v7662_v47 = vld [vmem:[%s9268_s4 + $0x3a0] sm:$0xf0] }
 0x61d   : > { %v2855_v4 = vmul.f32 %v2842_v44, %v12616_v31  ;;  %2912 = vadd.xlane.f32.xlu0 %v2911_v60  ;;  %v7665_v60 = vor.u32 %v8479_v35, %v7662_v47  ;;  %v7372_v44 = vld [vmem:[%s9268_s4 + $0x140] sm:$0xf]  ;;  %3958 = vmatpush.bf16.msrb.mxu2 %v7377_v6  ;;  %v8455_v6 = vld [vmem:[%s9268_s4 + $0x2c4] sm:$0xf] }
 0x61e   : > { %v7308_v35 = vld [vmem:[%s9268_s4 + $0xc0] sm:$0xf]  ;;  %v7569_v25 = vor.u32 %v8455_v6, %v7566_v63  ;;  %v8375_v63 = vld [vmem:[%s9268_s4 + $0x44] sm:$0xf] }
 0x61f   : > { %v10596_v53 = vsub.f32 %v10498_v41, %v2855_v4  ;;  %v10599_v37 = vsub.f32 %v10501_v19, %v2855_v4  ;;  %v8411_v4 = vld [vmem:[%s9268_s4 + $0x15c] sm:$0xf0]  ;;  %3990 = vmatpush.bf16.msrb.mxu3 %v7665_v60  ;;  %v8457_v19 = vld [vmem:[%s9268_s4 + $0x2d4] sm:$0xf]  ;;  %v7332_v41 = vld [vmem:[%s9268_s4 + $0xd8] sm:$0xf] }
 0x620   : > { %v8395_v47 = vld [vmem:[%s9268_s4 + $0xdc] sm:$0xf0] }
 0x621   : > { %v2889_v28 = vmul.f32 %v10596_v53, %v10596_v53  ;;  %v2890_v0 = vmul.f32 %v10599_v37, %v10599_v37  ;;  %3959 = vmatpush.bf16.msrb.mxu2 %v7345_v30  ;;  %v7564_v60 = vld [vmem:[%s9268_s4 + $0x2c0] sm:$0xf] }
 0x622   : > { %v8451_v30 = vld [vmem:[%s9268_s4 + $0x29c] sm:$0xf0] }
 0x623   : > { %v2914_v16 = vadd.f32 %v2890_v0, %v2889_v28  ;;  %v7628_v28 = vld [vmem:[%s9268_s4 + $0x340] sm:$0xf]  ;;  %v7373_v0 = vor.u32 %v8411_v4, %v7372_v44  ;;  %3991 = vmatpush.bf16.msrb.mxu3 %v7633_v21 }
 0x624   : > { %v8443_v6 = vld [vmem:[%s9268_s4 + $0x25c] sm:$0xf0] }
 0x625   : > { %2915 = vadd.xlane.f32.xlu1 %v2914_v16  ;;  %v8475_v16 = vld [vmem:[%s9268_s4 + $0x35c] sm:$0xf0]  ;;  %3892 = vmatpush.bf16.msrb.mxu0 %v7373_v0 }
 0x626   : > { %v7629_v24 = vor.u32 %v8475_v16, %v7628_v28  ;;  %v7309_v28 = vor.u32 %v8395_v47, %v7308_v35  ;;  %v8459_v0 = vld [vmem:[%s9268_s4 + $0x2dc] sm:$0xf0]  ;;  %v8391_v16 = vld [vmem:[%s9268_s4 + $0xc4] sm:$0xf] }
 0x627   : > { %3992 = vmatpush.bf16.msrb.mxu3 %v7601_v27  ;;  %v7565_v46 = vor.u32 %v8459_v0, %v7564_v60  ;;  %v7533_v27 = vor.u32 %v8451_v30, %v7532_v62  ;;  %v7278_v35 = vld [vmem:[%s9268_s4 + $0xa0] sm:$0xf0] }
 0x628   : > { %3925 = vmatpush.bf16.msrb.mxu1 %v7629_v24  ;;  %v7313_v24 = vor.u32 %v8391_v16, %v7310_v9  ;;  %v8447_v47 = vld [vmem:[%s9268_s4 + $0x284] sm:$0xf]  ;;  %v7281_v60 = vor.u32 %v8383_v45, %v7278_v35  ;;  %v7244_v16 = vld [vmem:[%s9268_s4 + $0x40] sm:$0xf] }
 0x629   : > { %3893 = vmatpush.bf16.msrb.mxu0 %v7341_v36  ;;  %v7276_v36 = vld [vmem:[%s9268_s4 + $0x80] sm:$0xf] }
 0x62a   : > { %3960 = vmatpush.bf16.msrb.mxu2 %v7313_v24  ;;  %v8379_v9 = vld [vmem:[%s9268_s4 + $0x5c] sm:$0xf0] }
 0x62b   : > { %3993 = vmatpush.bf16.msrb.mxu3 %v7569_v25  ;;  %v7245_v24 = vor.u32 %v8379_v9, %v7244_v16  ;;  %v8439_v25 = vld [vmem:[%s9268_s4 + $0x244] sm:$0xf]  ;;  %v8435_v45 = vld [vmem:[%s9268_s4 + $0x21c] sm:$0xf0] }
 0x62c   : > { %3926 = vmatpush.bf16.msrb.mxu1 %v7597_v23  ;;  %v7277_v23 = vor.u32 %v8387_v43, %v7276_v36  ;;  %v7470_v16 = vld [vmem:[%s9268_s4 + $0x220] sm:$0xf0] }
 0x62d   : > { %3894 = vmatpush.bf16.msrb.mxu0 %v7309_v28  ;;  %v7534_v28 = vld [vmem:[%s9268_s4 + $0x2a0] sm:$0xf0] }
 0x62e   : > { %v7537_v0 = vor.u32 %v8447_v47, %v7534_v28  ;;  %3961 = vmatpush.bf16.msrb.mxu2 %v7281_v60 }
 0x630   : > { %3927 = vmatpush.bf16.msrb.mxu1 %v7565_v46  ;;  %v7500_v46 = vld [vmem:[%s9268_s4 + $0x240] sm:$0xf]  ;;  %3994 = vmatpush.bf16.msrb.mxu3 %v7537_v0  ;;  %v8431_v0 = vld [vmem:[%s9268_s4 + $0x204] sm:$0xf] }
 0x631   : > { %3895 = vmatpush.bf16.msrb.mxu0 %v7277_v23  ;;  %v7468_v23 = vld [vmem:[%s9268_s4 + $0x200] sm:$0xf] }
 0x632   : > { %v7469_v60 = vor.u32 %v8435_v45, %v7468_v23 }
 0x634   : > { %3928 = vmatpush.bf16.msrb.mxu1 %v7533_v27  ;;  %v7214_v27 = vld [vmem:[%s9268_s4 + $0x20] sm:$0xf0] }
 0x635   : > { %3896 = vmatpush.bf16.msrb.mxu0 %v7245_v24 }
 0x65b   : > { %v2847_v2 = vpop.xlane.xlu1 %2846 }
 0x65c   : > { %v2856_v1 = vmul.f32 %v2847_v2, %v12616_v31 }
 0x65e   : > { %v10642_v44 = vsub.f32 %v10508_v3, %v2856_v1  ;;  %v10645_v4 = vsub.f32 %v10511_v14, %v2856_v1 }
 0x660   : > { %v2895_v61 = vpop.xlane.xlu2 %2894  ;;  %v2891_v21 = vmul.f32 %v10642_v44, %v10642_v44  ;;  %v2892_v33 = vmul.f32 %v10645_v4, %v10645_v4 }
 0x661   : > { %v2922_v48 = vmul.f32 %v2895_v61, %v12616_v31  ;;  %v7246_v61 = vld [vmem:[%s9268_s4 + $0x60] sm:$0xf0] }
 0x662   : > { %v2917_v5 = vsel %vm776_vm0, %v2891_v21, 0.0  ;;  %v2918_v2 = vsel %vm776_vm0, %v2892_v33, 0.0  ;;  %v7501_v21 = vor.u32 %v8443_v6, %v7500_v46  ;;  %v7249_v33 = vor.u32 %v8375_v63, %v7246_v61 }
 0x663   : > { %v10664_v59 = vadd.f32 1e-06, %v2922_v48  ;;  %v2919_v1 = vadd.f32 %v2918_v2, %v2917_v5  ;;  %v7502_v48 = vld [vmem:[%s9268_s4 + $0x260] sm:$0xf0]  ;;  %v7212_v5 = vld [vmem:[%s9268_s4] sm:$0xf]  ;;  %v7473_v46 = vor.u32 %v8431_v0, %v7470_v16 }
 0x664   : > { %v7505_v43 = vor.u32 %v8439_v25, %v7502_v48  ;;  %3929 = vmatpush.bf16.msrb.mxu1 %v7501_v21  ;;  %v8371_v2 = vld [vmem:[%s9268_s4 + $0x1c] sm:$0xf0]  ;;  %3962 = vmatpush.bf16.msrb.mxu2 %v7249_v33 }
 0x665   : > { %8795 = vrsqrt.f32 %v10664_v59  ;;  %2920 = vadd.xlane.f32.xlu2 %v2919_v1  ;;  %v7213_v30 = vor.u32 %v8371_v2, %v7212_v5  ;;  %v8367_v1 = vld [vmem:[%s9268_s4 + $0x4] sm:$0xf]  ;;  %vm2946_vm1 = vweird.f32 %v10664_v59 }
 0x666   : > { %3995 = vmatpush.bf16.msrb.mxu3 %v7505_v43  ;;  %v7217_v28 = vor.u32 %v8367_v1, %v7214_v27  ;;  %v2817_v43 = vld [vmem:[%s12617_s15] sm:$0x3] }
 0x667   : > { %3897 = vmatpush.bf16.msrb.mxu0 %v7213_v30  ;;  %v10695_v30 = vperm.slane %v2817_v43, 0  ;;  %v10697_v45 = vperm.slane %v2817_v43, 1 }
 0x668   : > { %v2898_v36 = vpop.xlane.xlu0 %2897  ;;  %3930 = vmatpush.bf16.msrb.mxu1 %v7469_v60  ;;  %3963 = vmatpush.bf16.msrb.mxu2 %v7217_v28 }
 0x669   : > { %v2923_v62 = vmul.f32 %v2898_v36, %v12616_v31 }
 0x66a   : > { %3996 = vmatpush.bf16.msrb.mxu3 %v7473_v46 }
 0x66b   : > { %v8796_v35 = vpop.eup %8795  ;;  %v2932_v47 = vadd.f32 1e-06, %v2923_v62 }
 0x66c   : > { %v2941_v9 = vmul.f32 %v8796_v35, %v10664_v59  ;;  %vm2947_vm0 = vweird.f32 %v8796_v35  ;;  %v2818_v59 = vld [vmem:[%s12619_s20] sm:$0x3] }
 0x66d   : > { %8797 = vrsqrt.f32 %v2932_v47  ;;  %vm2948_vm2 = vmor %vm2946_vm1, %vm2947_vm0  ;;  %vm2956_vm4 = vweird.f32 %v2932_v47  ;;  %v10707_v46 = vperm.slane %v2818_v59, 0 }
 0x66e   : > { %v2942_v24 = vmul.f32 %v8796_v35, %v2941_v9 }
 0x670   : > { %v2943_v6 = vmul.f32 0.5, %v2942_v24  ;;  %v2901_v63 = vpop.xlane.xlu2 %2900  ;;  %v10709_v24 = vperm.slane %v2818_v59, 1 }
 0x671   : > { %v2924_v61 = vmul.f32 %v2901_v63, %v12616_v31 }
 0x672   : > { %v2944_v21 = vsub.f32 1.5, %v2943_v6 }
 0x673   : > { %v8798_v33 = vpop.eup %8797  ;;  %v2933_v25 = vadd.f32 1e-06, %v2924_v61 }
 0x674   : > { %v2945_v48 = vmul.f32 %v8796_v35, %v2944_v21  ;;  %v2951_v36 = vmul.f32 %v8798_v33, %v2932_v47  ;;  %vm2957_vm3 = vweird.f32 %v8798_v33 }
 0x675   : > { %8799 = vrsqrt.f32 %v2933_v25  ;;  %vm2958_vm5 = vmor %vm2956_vm4, %vm2957_vm3  ;;  %vm2966_vm7 = vweird.f32 %v2933_v25 }
 0x676   : > { %v2952_v62 = vmul.f32 %v8798_v33, %v2951_v36  ;;  %v2949_v5 = vsel %vm2948_vm2, %v8796_v35, %v2945_v48 }
 0x677   : > { %v3030_v27 = vmul.f32 %v2949_v5, %v10519_v52  ;;  %v3031_v60 = vmul.f32 %v2949_v5, %v10522_v7 }
 0x678   : > { %v2953_v2 = vmul.f32 0.5, %v2952_v62  ;;  %v2904_v23 = vpop.xlane.xlu0 %2903 }
 0x679   : > { %v2925_v1 = vmul.f32 %v2904_v23, %v12616_v31  ;;  %v3053_v6 = vmul.f32 %v10695_v30, %v3030_v27  ;;  %v3054_v63 = vmul.f32 %v10697_v45, %v3031_v60 }
 0x67a   : > { %v2954_v28 = vsub.f32 1.5, %v2953_v2 }
 0x67b   : > { %v8800_v35 = vpop.eup %8799  ;;  %v2934_v0 = vadd.f32 1e-06, %v2925_v1  ;;  %v3076_v5 = vadd.f32 %v10707_v46, %v3053_v6  ;;  %v3077_v2 = vadd.f32 %v10709_v24, %v3054_v63 }
 0x67c   : > { %v2955_v16 = vmul.f32 %v8798_v33, %v2954_v28  ;;  %v2961_v9 = vmul.f32 %v8800_v35, %v2933_v25  ;;  %vm2967_vm6 = vweird.f32 %v8800_v35 }
 0x67d   : > { %8801 = vrsqrt.f32 %v2934_v0  ;;  %vm2968_vm8 = vmor %vm2966_vm7, %vm2967_vm6  ;;  %vm2976_vm10 = vweird.f32 %v2934_v0 }
 0x67e   : > { %v2959_v52 = vsel %vm2958_vm5, %v8798_v33, %v2955_v16  ;;  %v2962_v61 = vmul.f32 %v8800_v35, %v2961_v9 }
 0x67f   : > { %v3032_v7 = vmul.f32 %v2959_v52, %v10530_v20  ;;  %v3033_v21 = vmul.f32 %v2959_v52, %v10533_v17 }
 0x680   : > { %v2963_v48 = vmul.f32 0.5, %v2962_v61  ;;  %v2907_v36 = vpop.xlane.xlu1 %2906 }
 0x681   : > { %v3055_v47 = vmul.f32 %v10695_v30, %v3032_v7  ;;  %v3056_v43 = vmul.f32 %v10697_v45, %v3033_v21  ;;  %v2926_v62 = vmul.f32 %v2907_v36, %v12616_v31 }
 0x682   : > { %v2964_v23 = vsub.f32 1.5, %v2963_v48 }
 0x683   : > { %v8802_v1 = vpop.eup %8801  ;;  %v3078_v33 = vadd.f32 %v10707_v46, %v3055_v47  ;;  %v3079_v20 = vadd.f32 %v10709_v24, %v3056_v43  ;;  %v2935_v17 = vadd.f32 1e-06, %v2926_v62 }
 0x684   : > { %v2965_v59 = vmul.f32 %v8800_v35, %v2964_v23  ;;  %v2971_v27 = vmul.f32 %v8802_v1, %v2934_v0  ;;  %vm2977_vm9 = vweird.f32 %v8802_v1 }
 0x685   : > { %v10722_v60 = vpack.c.bf16 %v3078_v33, %v3076_v5  ;;  %v10724_v28 = vpack.c.bf16 %v3079_v20, %v3077_v2  ;;  %8803 = vrsqrt.f32 %v2935_v17  ;;  %vm2978_vm11 = vmor %vm2976_vm10, %vm2977_vm9  ;;  %vm2986_vm13 = vweird.f32 %v2935_v17 }
 0x686   : > { %v2972_v16 = vmul.f32 %v8802_v1, %v2971_v27  ;;  %v2969_v9 = vsel %vm2968_vm8, %v8800_v35, %v2965_v59 }
 0x687   : > { %3898 = vmatmul.bf16.vlgmr.msrb.gmra.mxu0 %v10722_v60  ;;  %3931 = vmatmul.bf16.vlgmr.msrb.gmra.mxu1 %v10724_v28  ;;  %v3034_v61 = vmul.f32 %v2969_v9, %v10541_v56  ;;  %v3035_v21 = vmul.f32 %v2969_v9, %v10544_v38 }
 0x688   : > { %v2973_v6 = vmul.f32 0.5, %v2972_v16  ;;  %3964 = vmatmul.bf16.vlgmr.msrb.gmra.mxu2 %v10722_v60  ;;  %3997 = vmatmul.bf16.vlgmr.msrb.gmra.mxu3 %v10724_v28  ;;  %v2910_v63 = vpop.xlane.xlu2 %2909 }
 0x689   : > { %v2927_v52 = vmul.f32 %v2910_v63, %v12616_v31  ;;  %v3057_v47 = vmul.f32 %v10695_v30, %v3034_v61  ;;  %v3058_v5 = vmul.f32 %v10697_v45, %v3035_v21 }
 0x68a   : > { %v2974_v7 = vsub.f32 1.5, %v2973_v6 }
 0x68b   : > { %v8804_v25 = vpop.eup %8803  ;;  %v2936_v35 = vadd.f32 1e-06, %v2927_v52  ;;  %v3080_v59 = vadd.f32 %v10707_v46, %v3057_v47 }
 0x68c   : > { %v2975_v48 = vmul.f32 %v8802_v1, %v2974_v7  ;;  %v2981_v36 = vmul.f32 %v8804_v25, %v2935_v17  ;;  %vm2987_vm12 = vweird.f32 %v8804_v25 }
 0x68d   : > { %8805 = vrsqrt.f32 %v2936_v35  ;;  %vm2988_vm14 = vmor %vm2986_vm13, %vm2987_vm12  ;;  %vm2996_vm0 = vweird.f32 %v2936_v35 }
 0x68e   : > { %v2979_v43 = vsel %vm2978_vm11, %v8802_v1, %v2975_v48  ;;  %v2982_v62 = vmul.f32 %v8804_v25, %v2981_v36  ;;  %v3081_v1 = vadd.f32 %v10709_v24, %v3058_v5 }
 0x68f   : > { %v3036_v2 = vmul.f32 %v2979_v43, %v10552_v10  ;;  %v3037_v56 = vmul.f32 %v2979_v43, %v10555_v54 }
 0x690   : > { %v2983_v23 = vmul.f32 0.5, %v2982_v62  ;;  %v2913_v33 = vpop.xlane.xlu0 %2912 }
 0x691   : > { %v3059_v38 = vmul.f32 %v10695_v30, %v3036_v2  ;;  %v3060_v20 = vmul.f32 %v10697_v45, %v3037_v56  ;;  %v2928_v0 = vmul.f32 %v2913_v33, %v12616_v31 }
 0x692   : > { %v2984_v27 = vsub.f32 1.5, %v2983_v23 }
 0x693   : > { %v8806_v16 = vpop.eup %8805  ;;  %v3082_v9 = vadd.f32 %v10707_v46, %v3059_v38  ;;  %v3083_v10 = vadd.f32 %v10709_v24, %v3060_v20  ;;  %v2937_v6 = vadd.f32 1e-06, %v2928_v0 }
 0x694   : > { %v2985_v54 = vmul.f32 %v8804_v25, %v2984_v27  ;;  %v2991_v63 = vmul.f32 %v8806_v16, %v2936_v35  ;;  %vm2997_vm15 = vweird.f32 %v8806_v16 }
 0x695   : > { %v10744_v52 = vpack.c.bf16 %v3082_v9, %v3080_v59  ;;  %v10746_v61 = vpack.c.bf16 %v3083_v10, %v3081_v1  ;;  %8807 = vrsqrt.f32 %v2937_v6  ;;  %vm2998_vm1 = vmor %vm2996_vm0, %vm2997_vm15  ;;  %vm3006_vm3 = vweird.f32 %v2937_v6 }
 0x696   : > { %v2992_v7 = vmul.f32 %v8806_v16, %v2991_v63  ;;  %v2989_v21 = vsel %vm2988_vm14, %v8804_v25, %v2985_v54 }
 0x697   : > { %3903 = vmatmul.bf16.gmra.mxu0 %v10744_v52  ;;  %3936 = vmatmul.bf16.gmra.mxu1 %v10746_v61  ;;  %v3038_v17 = vmul.f32 %v2989_v21, %v10563_v18  ;;  %v3039_v5 = vmul.f32 %v2989_v21, %v10566_v42 }
 0x698   : > { %v2993_v48 = vmul.f32 0.5, %v2992_v7  ;;  %3969 = vmatmul.bf16.gmra.mxu2 %v10744_v52  ;;  %4002 = vmatmul.bf16.gmra.mxu3 %v10746_v61  ;;  %v2916_v36 = vpop.xlane.xlu1 %2915 }
 0x699   : > { %v2929_v47 = vmul.f32 %v2916_v36, %v12616_v31  ;;  %v3061_v38 = vmul.f32 %v10695_v30, %v3038_v17  ;;  %v3062_v20 = vmul.f32 %v10697_v45, %v3039_v5 }
 0x69a   : > { %v2994_v43 = vsub.f32 1.5, %v2993_v48 }
 0x69b   : > { %v8808_v62 = vpop.eup %8807  ;;  %v2938_v2 = vadd.f32 1e-06, %v2929_v47  ;;  %v3084_v9 = vadd.f32 %v10707_v46, %v3061_v38 }
 0x69c   : > { %v2995_v56 = vmul.f32 %v8806_v16, %v2994_v43  ;;  %v3001_v23 = vmul.f32 %v8808_v62, %v2937_v6  ;;  %vm3007_vm2 = vweird.f32 %v8808_v62 }
 0x69d   : > { %8809 = vrsqrt.f32 %v2938_v2  ;;  %vm3008_vm4 = vmor %vm3006_vm3, %vm3007_vm2  ;;  %vm3016_vm6 = vweird.f32 %v2938_v2 }
 0x69e   : > { %v2999_v25 = vsel %vm2998_vm1, %v8806_v16, %v2995_v56  ;;  %v3002_v33 = vmul.f32 %v8808_v62, %v3001_v23  ;;  %v3085_v16 = vadd.f32 %v10709_v24, %v3062_v20 }
 0x69f   : > { %v3040_v0 = vmul.f32 %v2999_v25, %v10574_v50  ;;  %v3041_v59 = vmul.f32 %v2999_v25, %v10577_v34 }
 0x6a0   : > { %v3003_v27 = vmul.f32 0.5, %v3002_v33 }
 0x6a1   : > { %v3063_v18 = vmul.f32 %v10695_v30, %v3040_v0  ;;  %v3064_v42 = vmul.f32 %v10697_v45, %v3041_v59  ;;  %v8424_v0 = vld [vmem:[%s9268_s4 + $0x1cc] sm:$0xf] }
 0x6a2   : > { %v3004_v1 = vsub.f32 1.5, %v3003_v27  ;;  %v7446_v59 = vld [vmem:[%s9268_s4 + $0x1e8] sm:$0xf0] }
 0x6a3   : > { %v8810_v35 = vpop.eup %8809  ;;  %v3086_v10 = vadd.f32 %v10707_v46, %v3063_v18  ;;  %v3087_v54 = vadd.f32 %v10709_v24, %v3064_v42  ;;  %v8488_v27 = vld [vmem:[%s9268_s4 + $0x3cc] sm:$0xf]  ;;  %v7449_v18 = vor.u32 %v8424_v0, %v7446_v59 }
 0x6a4   : > { %v3005_v63 = vmul.f32 %v8808_v62, %v3004_v1  ;;  %v3011_v50 = vmul.f32 %v8810_v35, %v2938_v2  ;;  %vm3017_vm5 = vweird.f32 %v8810_v35  ;;  %v7702_v42 = vld [vmem:[%s9268_s4 + $0x3e8] sm:$0xf0]  ;;  %v7444_v1 = vld [vmem:[%s9268_s4 + $0x1c8] sm:$0xf] }
 0x6a5   : > { %v10765_v7 = vpack.c.bf16 %v3086_v10, %v3084_v9  ;;  %v10767_v34 = vpack.c.bf16 %v3087_v54, %v3085_v16  ;;  %vm3018_vm7 = vmor %vm3016_vm6, %vm3017_vm5  ;;  %v7705_v9 = vor.u32 %v8488_v27, %v7702_v42  ;;  %v7700_v10 = vld [vmem:[%s9268_s4 + $0x3c8] sm:$0xf]  ;;  %4088 = vmatpush.bf16.msra.mxu2 %v7449_v18  ;;  %v8472_v27 = vld [vmem:[%s9268_s4 + $0x34c] sm:$0xf] }
 0x6a6   : > { %v3012_v21 = vmul.f32 %v8810_v35, %v3011_v50  ;;  %v3009_v48 = vsel %vm3008_vm4, %v8808_v62, %v3005_v63  ;;  %v8492_v54 = vld [vmem:[%s9268_s4 + $0x3e4] sm:$0xf0]  ;;  %v8416_v50 = vld [vmem:[%s9268_s4 + $0x18c] sm:$0xf] }
 0x6a7   : > { %3908 = vmatmul.bf16.gmra.mxu0 %v10765_v7  ;;  %3941 = vmatmul.bf16.gmra.mxu1 %v10767_v34  ;;  %v3042_v43 = vmul.f32 %v3009_v48, %v10585_v11  ;;  %v3043_v17 = vmul.f32 %v3009_v48, %v10588_v12  ;;  %v7701_v63 = vor.u32 %v8492_v54, %v7700_v10  ;;  %v7412_v48 = vld [vmem:[%s9268_s4 + $0x188] sm:$0xf]  ;;  %v7638_v18 = vld [vmem:[%s9268_s4 + $0x368] sm:$0xf0] }
 0x6a8   : > { %v3013_v36 = vmul.f32 0.5, %v3012_v21  ;;  %3974 = vmatmul.bf16.gmra.mxu2 %v10765_v7  ;;  %4007 = vmatmul.bf16.gmra.mxu3 %v10767_v34  ;;  %v7414_v21 = vld [vmem:[%s9268_s4 + $0x1a8] sm:$0xf0]  ;;  %v7348_v42 = vld [vmem:[%s9268_s4 + $0x108] sm:$0xf] }
 0x6a9   : > { %v3065_v56 = vmul.f32 %v10695_v30, %v3042_v43  ;;  %v3066_v62 = vmul.f32 %v10697_v45, %v3043_v17  ;;  %4121 = vmatpush.bf16.msra.mxu3 %v7705_v9  ;;  %4055 = vmatpush.bf16.msra.mxu1 %v7701_v63  ;;  %v7668_v43 = vld [vmem:[%s9268_s4 + $0x388] sm:$0xf] }
 0x6aa   : > { %v3014_v47 = vsub.f32 1.5, %v3013_v36  ;;  %v7417_v36 = vor.u32 %v8416_v50, %v7414_v21  ;;  %v8484_v17 = vld [vmem:[%s9268_s4 + $0x3a4] sm:$0xf0]  ;;  %v8400_v50 = vld [vmem:[%s9268_s4 + $0x10c] sm:$0xf] }
 0x6ab   : > { %v3088_v12 = vadd.f32 %v10707_v46, %v3065_v56  ;;  %v3089_v2 = vadd.f32 %v10709_v24, %v3066_v62  ;;  %v8480_v56 = vld [vmem:[%s9268_s4 + $0x38c] sm:$0xf]  ;;  %v8404_v9 = vld [vmem:[%s9268_s4 + $0x124] sm:$0xf0] }
 0x6ac   : > { %v3015_v5 = vmul.f32 %v8810_v35, %v3014_v47  ;;  %v8420_v47 = vld [vmem:[%s9268_s4 + $0x1a4] sm:$0xf0]  ;;  %v7670_v62 = vld [vmem:[%s9268_s4 + $0x3a8] sm:$0xf0]  ;;  %4089 = vmatpush.bf16.msra.mxu2 %v7417_v36  ;;  %v7349_v63 = vor.u32 %v8404_v9, %v7348_v42 }
 0x6ad   : > { %v8468_v10 = vld [vmem:[%s9268_s4 + $0x324] sm:$0xf0]  ;;  %v7350_v21 = vld [vmem:[%s9268_s4 + $0x128] sm:$0xf0] }
 0x6ae   : > { %v3019_v6 = vsel %vm3018_vm7, %v8810_v35, %v3015_v5  ;;  %v8428_v35 = vld [vmem:[%s9268_s4 + $0x1e4] sm:$0xf0]  ;;  %v7413_v5 = vor.u32 %v8420_v47, %v7412_v48  ;;  %v8464_v48 = vld [vmem:[%s9268_s4 + $0x30c] sm:$0xf]  ;;  %v7353_v47 = vor.u32 %v8400_v50, %v7350_v21 }
 0x6af   : > { %v3044_v23 = vmul.f32 %v3019_v6, %v10596_v53  ;;  %v3045_v25 = vmul.f32 %v3019_v6, %v10599_v37  ;;  %v7445_v16 = vor.u32 %v8428_v35, %v7444_v1  ;;  %v7669_v6 = vor.u32 %v8484_v17, %v7668_v43  ;;  %v7606_v43 = vld [vmem:[%s9268_s4 + $0x328] sm:$0xf0]  ;;  %v7316_v17 = vld [vmem:[%s9268_s4 + $0xc8] sm:$0xf] }
 0x6b0   : > { %v7641_v35 = vor.u32 %v8472_v27, %v7638_v18  ;;  %v7540_v27 = vld [vmem:[%s9268_s4 + $0x288] sm:$0xf]  ;;  %v8384_v42 = vld [vmem:[%s9268_s4 + $0x8c] sm:$0xf] }
 0x6b1   : > { %v3067_v33 = vmul.f32 %v10695_v30, %v3044_v23  ;;  %v3068_v11 = vmul.f32 %v10697_v45, %v3045_v25  ;;  %4022 = vmatpush.bf16.msra.mxu0 %v7445_v16  ;;  %v7673_v23 = vor.u32 %v8480_v56, %v7670_v62  ;;  %v7380_v25 = vld [vmem:[%s9268_s4 + $0x148] sm:$0xf]  ;;  %4056 = vmatpush.bf16.msra.mxu1 %v7669_v6  ;;  %v7542_v9 = vld [vmem:[%s9268_s4 + $0x2a8] sm:$0xf0] }
 0x6b2   : > { %v7604_v16 = vld [vmem:[%s9268_s4 + $0x308] sm:$0xf]  ;;  %v7609_v6 = vor.u32 %v8464_v48, %v7606_v43 }
 0x6b3   : > { %v3090_v38 = vadd.f32 %v10707_v46, %v3067_v33  ;;  %v3091_v20 = vadd.f32 %v10709_v24, %v3068_v11  ;;  %v8412_v33 = vld [vmem:[%s9268_s4 + $0x164] sm:$0xf0]  ;;  %4122 = vmatpush.bf16.msra.mxu3 %v7673_v23  ;;  %v7605_v36 = vor.u32 %v8468_v10, %v7604_v16  ;;  %v8392_v23 = vld [vmem:[%s9268_s4 + $0xcc] sm:$0xf] }
 0x6b4   : > { %v7636_v11 = vld [vmem:[%s9268_s4 + $0x348] sm:$0xf] }
 0x6b5   : > { %v10785_v53 = vpack.c.bf16 %v3090_v38, %v3088_v12  ;;  %v10787_v37 = vpack.c.bf16 %v3091_v20, %v3089_v2  ;;  %4023 = vmatpush.bf16.msra.mxu0 %v7413_v5  ;;  %v7381_v12 = vor.u32 %v8412_v33, %v7380_v25  ;;  %v8476_v2 = vld [vmem:[%s9268_s4 + $0x364] sm:$0xf0]  ;;  %v8408_v38 = vld [vmem:[%s9268_s4 + $0x14c] sm:$0xf] }
 0x6b6   : > { %v7382_v20 = vld [vmem:[%s9268_s4 + $0x168] sm:$0xf0]  ;;  %v7637_v0 = vor.u32 %v8476_v2, %v7636_v11  ;;  %v7572_v56 = vld [vmem:[%s9268_s4 + $0x2c8] sm:$0xf] }
 0x6b7   : > { %3913 = vmatmul.bf16.gmra.mxu0 %v10785_v53  ;;  %3946 = vmatmul.bf16.gmra.mxu1 %v10787_v37  ;;  %v7385_v59 = vor.u32 %v8408_v38, %v7382_v20  ;;  %v8460_v62 = vld [vmem:[%s9268_s4 + $0x2e4] sm:$0xf0]  ;;  %v7318_v25 = vld [vmem:[%s9268_s4 + $0xe8] sm:$0xf0] }
 0x6b8   : > { %3979 = vmatmul.bf16.gmra.mxu2 %v10785_v53  ;;  %4012 = vmatmul.bf16.gmra.mxu3 %v10787_v37  ;;  %v8456_v33 = vld [vmem:[%s9268_s4 + $0x2cc] sm:$0xf]  ;;  %v7284_v38 = vld [vmem:[%s9268_s4 + $0x88] sm:$0xf] }
 0x6b9   : > { %4024 = vmatpush.bf16.msra.mxu0 %v7381_v12  ;;  %4090 = vmatpush.bf16.msra.mxu2 %v7385_v59  ;;  %v7321_v12 = vor.u32 %v8392_v23, %v7318_v25  ;;  %v7574_v2 = vld [vmem:[%s9268_s4 + $0x2e8] sm:$0xf0]  ;;  %v8388_v20 = vld [vmem:[%s9268_s4 + $0xa4] sm:$0xf0] }
 0x6ba   : > { %4057 = vmatpush.bf16.msra.mxu1 %v7637_v0  ;;  %4123 = vmatpush.bf16.msra.mxu3 %v7641_v35  ;;  %v7573_v0 = vor.u32 %v8460_v62, %v7572_v56  ;;  %v7577_v59 = vor.u32 %v8456_v33, %v7574_v2  ;;  %v8452_v18 = vld [vmem:[%s9268_s4 + $0x2a4] sm:$0xf0]  ;;  %v8448_v35 = vld [vmem:[%s9268_s4 + $0x28c] sm:$0xf]  ;;  %v7285_v16 = vor.u32 %v8388_v20, %v7284_v38 }
 0x6bb   : > { %v7541_v50 = vor.u32 %v8452_v18, %v7540_v27  ;;  %v7545_v21 = vor.u32 %v8448_v35, %v7542_v9  ;;  %v7508_v48 = vld [vmem:[%s9268_s4 + $0x248] sm:$0xf]  ;;  %v8368_v18 = vld [vmem:[%s9268_s4 + $0xc] sm:$0xf] }
 0x6bc   : > { %v7220_v2 = vld [vmem:[%s9268_s4 + $0x8] sm:$0xf]  ;;  %v8432_v35 = vld [vmem:[%s9268_s4 + $0x20c] sm:$0xf] }
 0x6bd   : > { %4025 = vmatpush.bf16.msra.mxu0 %v7349_v63  ;;  %4091 = vmatpush.bf16.msra.mxu2 %v7353_v47  ;;  %v8380_v63 = vld [vmem:[%s9268_s4 + $0x64] sm:$0xf0]  ;;  %v7254_v47 = vld [vmem:[%s9268_s4 + $0x68] sm:$0xf0] }
 0x6be   : > { %4058 = vmatpush.bf16.msra.mxu1 %v7605_v36  ;;  %4124 = vmatpush.bf16.msra.mxu3 %v7609_v6  ;;  %v8376_v36 = vld [vmem:[%s9268_s4 + $0x4c] sm:$0xf]  ;;  %v8372_v38 = vld [vmem:[%s9268_s4 + $0x24] sm:$0xf0] }
 0x6bf   : > { %v7510_v6 = vld [vmem:[%s9268_s4 + $0x268] sm:$0xf0]  ;;  %v7257_v23 = vor.u32 %v8376_v36, %v7254_v47  ;;  %v7476_v20 = vld [vmem:[%s9268_s4 + $0x208] sm:$0xf] }
 0x6c0   : > { %v8436_v27 = vld [vmem:[%s9268_s4 + $0x224] sm:$0xf0]  ;;  %v7478_v9 = vld [vmem:[%s9268_s4 + $0x228] sm:$0xf0] }
 0x6c1   : > { %4092 = vmatpush.bf16.msra.mxu2 %v7321_v12 }
 0x6c2   : > { %4059 = vmatpush.bf16.msra.mxu1 %v7573_v0  ;;  %4125 = vmatpush.bf16.msra.mxu3 %v7577_v59  ;;  %v7221_v59 = vor.u32 %v8372_v38, %v7220_v2  ;;  %v8425_v2 = vld [vmem:[%s9268_s4 + $0x1d4] sm:$0xf] }
 0x6c3   : > { %v7454_v38 = vld [vmem:[%s9268_s4 + $0x1f0] sm:$0xf0] }
 0x6c6   : > { %4060 = vmatpush.bf16.msra.mxu1 %v7541_v50  ;;  %4126 = vmatpush.bf16.msra.mxu3 %v7545_v21 }
 0x6d8   : > { %v2921_v1 = vpop.xlane.xlu2 %2920 }
 0x6d9   : > { %v2930_v54 = vmul.f32 %v2921_v1, %v12616_v31  ;;  %v8396_v31 = vld [vmem:[%s9268_s4 + $0xe4] sm:$0xf0]  ;;  %v7286_v1 = vld [vmem:[%s9268_s4 + $0xa8] sm:$0xf0] }
 0x6da   : > { %v7317_v11 = vor.u32 %v8396_v31, %v7316_v17  ;;  %v7289_v10 = vor.u32 %v8384_v42, %v7286_v1  ;;  %v8444_v17 = vld [vmem:[%s9268_s4 + $0x264] sm:$0xf0]  ;;  %v8440_v31 = vld [vmem:[%s9268_s4 + $0x24c] sm:$0xf]  ;;  %v7477_v42 = vor.u32 %v8436_v27, %v7476_v20 }
 0x6db   : > { %v10828_v5 = vadd.f32 1e-06, %v2930_v54  ;;  %v7252_v54 = vld [vmem:[%s9268_s4 + $0x48] sm:$0xf]  ;;  %v7509_v33 = vor.u32 %v8444_v17, %v7508_v48  ;;  %v7222_v1 = vld [vmem:[%s9268_s4 + $0x28] sm:$0xf0] }
 0x6dc   : > { %4026 = vmatpush.bf16.msra.mxu0 %v7317_v11  ;;  %4093 = vmatpush.bf16.msra.mxu2 %v7289_v10  ;;  %v7253_v62 = vor.u32 %v8380_v63, %v7252_v54  ;;  %v7513_v11 = vor.u32 %v8440_v31, %v7510_v6  ;;  %v7225_v10 = vor.u32 %v8368_v18, %v7222_v1  ;;  %v7710_v1 = vld [vmem:[%s9268_s4 + $0x3f0] sm:$0xf0] }
 0x6dd   : > { %8811 = vrsqrt.f32 %v10828_v5  ;;  %4061 = vmatpush.bf16.msra.mxu1 %v7509_v33  ;;  %vm3026_vm9 = vweird.f32 %v10828_v5  ;;  %v7481_v54 = vor.u32 %v8432_v35, %v7478_v9 }
 0x6de   : > { %4127 = vmatpush.bf16.msra.mxu3 %v7513_v11 }
 0x6e0   : > { %4027 = vmatpush.bf16.msra.mxu0 %v7285_v16  ;;  %4094 = vmatpush.bf16.msra.mxu2 %v7257_v23 }
 0x6e1   : > { %4062 = vmatpush.bf16.msra.mxu1 %v7477_v42  ;;  %v8489_v42 = vld [vmem:[%s9268_s4 + $0x3d4] sm:$0xf] }
 0x6e2   : > { %4128 = vmatpush.bf16.msra.mxu3 %v7481_v54  ;;  %v8429_v54 = vld [vmem:[%s9268_s4 + $0x1ec] sm:$0xf0] }
 0x6e3   : > { %v8812_v43 = vpop.eup %8811 }
 0x6e4   : > { %v3021_v56 = vmul.f32 %v8812_v43, %v10828_v5  ;;  %4028 = vmatpush.bf16.msra.mxu0 %v7253_v62  ;;  %vm3027_vm8 = vweird.f32 %v8812_v43  ;;  %4095 = vmatpush.bf16.msra.mxu2 %v7225_v10  ;;  %v7452_v10 = vld [vmem:[%s9268_s4 + $0x1d0] sm:$0xf] }
 0x6e5   : > { %vm3028_vm10 = vmor %vm3026_vm9, %vm3027_vm8 }
 0x6e6   : > { %v3022_v25 = vmul.f32 %v8812_v43, %v3021_v56 }
 0x6e8   : > { %v3023_v12 = vmul.f32 0.5, %v3022_v25  ;;  %4029 = vmatpush.bf16.msra.mxu0 %v7221_v59  ;;  %v7457_v59 = vor.u32 %v8425_v2, %v7454_v38 }
 0x6ea   : > { %v3024_v0 = vsub.f32 1.5, %v3023_v12  ;;  %4220 = vmatpush.bf16.msrb.mxu2 %v7457_v59  ;;  %v8485_v59 = vld [vmem:[%s9268_s4 + $0x3ac] sm:$0xf0] }
 0x6ec   : > { %v3025_v16 = vmul.f32 %v8812_v43, %v3024_v0 }
 0x6ee   : > { %v3029_v63 = vsel %vm3028_vm10, %v8812_v43, %v3025_v16  ;;  %v7713_v16 = vor.u32 %v8489_v42, %v7710_v1 }
 0x6ef   : > { %v3046_v50 = vmul.f32 %v3029_v63, %v10642_v44  ;;  %v3047_v21 = vmul.f32 %v3029_v63, %v10645_v4  ;;  %v10878_v44 = vld [vmem:[%s9273_s0] sm:$0xff]  ;;  %v7708_v63 = vld [vmem:[%s9268_s4 + $0x3d0] sm:$0xf] }
 0x6f0   : > { %v10881_v4 = vperm.slane %v10878_v44, 0  ;;  %v10891_v43 = vperm.slane %v10878_v44, 1  ;;  %4253 = vmatpush.bf16.msrb.mxu3 %v7713_v16  ;;  %v7388_v16 = vld [vmem:[%s9268_s4 + $0x150] sm:$0xf] }
 0x6f1   : > { %v3069_v48 = vmul.f32 %v10695_v30, %v3046_v50  ;;  %v3070_v36 = vmul.f32 %v10697_v45, %v3047_v21 }
 0x6f3   : > { %v3092_v47 = vadd.f32 %v10707_v46, %v3069_v48  ;;  %v3093_v5 = vadd.f32 %v10709_v24, %v3070_v36  ;;  %v7453_v36 = vor.u32 %v8429_v54, %v7452_v10  ;;  %v8413_v10 = vld [vmem:[%s9268_s4 + $0x16c] sm:$0xf0] }
 0x6f5   : > { %v10869_v17 = vpack.c.bf16 %v3092_v47, %v3092_v47  ;;  %v10871_v31 = vpack.c.bf16 %v3093_v5, %v3093_v5  ;;  %v8493_v47 = vld [vmem:[%s9268_s4 + $0x3ec] sm:$0xf0]  ;;  %4154 = vmatpush.bf16.msrb.mxu0 %v7453_v36 }
 0x6f6   : > { %v7709_v5 = vor.u32 %v8493_v47, %v7708_v63  ;;  %v7644_v36 = vld [vmem:[%s9268_s4 + $0x350] sm:$0xf] }
 0x6f7   : > { %12620 = vst [vmem:[#allocation14_spill] sm:$0xff] %v10869_v17  ;;  %3918 = vmatmul.bf16.gmra.mxu0 %v10869_v17  ;;  %3951 = vmatmul.bf16.gmra.mxu1 %v10871_v31  ;;  %v8477_v47 = vld [vmem:[%s9268_s4 + $0x36c] sm:$0xf0] }
 0x6f8   : > { %12621 = vst [vmem:[#allocation33_spill] sm:$0xff] %v10871_v31  ;;  %3984 = vmatmul.bf16.gmra.mxu2 %v10869_v17  ;;  %4017 = vmatmul.bf16.gmra.mxu3 %v10871_v31 }
 0x6f9   : > { %4187 = vmatpush.bf16.msrb.mxu1 %v7709_v5  ;;  %v8409_v5 = vld [vmem:[%s9268_s4 + $0x154] sm:$0xf] }
 0x704   : > { %v3899_v30 = vpop.f32.mrf.mxu0  ;;  %v3932_v45 = vpop.f32.mrf.mxu1 }
 0x705   : > { %v3900_v46 = vadd.f32 %v3899_v30, %v10881_v4 }
 0x707   : > { %v10884_v24 = vadd.f32 %v3932_v45, %v3900_v46  ;;  %4030 = vmatmul.bf16.vlgmr.msra.gmra.mxu0 %v10722_v60  ;;  %4063 = vmatmul.bf16.vlgmr.msra.gmra.mxu1 %v10724_v28  ;;  %v8417_v45 = vld [vmem:[%s9268_s4 + $0x194] sm:$0xf] }
 0x708   : > { %4096 = vmatmul.bf16.vlgmr.msra.gmra.mxu2 %v10722_v60  ;;  %4129 = vmatmul.bf16.vlgmr.msra.gmra.mxu3 %v10724_v28  ;;  %v7422_v46 = vld [vmem:[%s9268_s4 + $0x1b0] sm:$0xf0] }
 0x709   : > { %v7425_v38 = vor.u32 %v8417_v45, %v7422_v46  ;;  %v7645_v45 = vor.u32 %v8477_v47, %v7644_v36  ;;  %v7390_v46 = vld [vmem:[%s9268_s4 + $0x170] sm:$0xf0] }
 0x70a   : > { %v7614_v36 = vld [vmem:[%s9268_s4 + $0x330] sm:$0xf0] }
 0x70b   : > { %v3965_v6 = vpop.f32.mrf.mxu2  ;;  %v3998_v56 = vpop.f32.mrf.mxu3  ;;  %4221 = vmatpush.bf16.msrb.mxu2 %v7425_v38  ;;  %v7393_v38 = vor.u32 %v8409_v5, %v7390_v46 }
 0x70c   : > { %v3966_v62 = vadd.f32 %v3965_v6, %v10891_v43  ;;  %v10894_v23 = vpop.f32.mrf.mxu0  ;;  %v10896_v25 = vpop.f32.mrf.mxu1  ;;  %v7420_v6 = vld [vmem:[%s9268_s4 + $0x190] sm:$0xf] }
 0x70e   : > { %v10898_v33 = vadd.f32 %v3998_v56, %v3966_v62  ;;  %v8421_v56 = vld [vmem:[%s9268_s4 + $0x1ac] sm:$0xf0] }
 0x70f   : > { %4222 = vmatpush.bf16.msrb.mxu2 %v7393_v38  ;;  %v7580_v38 = vld [vmem:[%s9268_s4 + $0x2d0] sm:$0xf] }
 0x713   : > { %v10900_v11 = vpop.f32.mrf.mxu2  ;;  %v10902_v12 = vpop.f32.mrf.mxu3 }
 0x714   : > { %v3904_v20 = vpop.f32.mrf.mxu0  ;;  %v3937_v0 = vpop.f32.mrf.mxu1 }
 0x715   : > { %v3905_v27 = vadd.f32 %v3904_v20, %v10881_v4  ;;  %v7421_v20 = vor.u32 %v8421_v56, %v7420_v6  ;;  %v8473_v6 = vld [vmem:[%s9268_s4 + $0x354] sm:$0xf] }
 0x716   : > { %v7646_v56 = vld [vmem:[%s9268_s4 + $0x370] sm:$0xf0] }
 0x717   : > { %v10907_v18 = vadd.f32 %v3937_v0, %v3905_v27  ;;  %4035 = vmatmul.bf16.gmra.mxu0 %v10744_v52  ;;  %4068 = vmatmul.bf16.gmra.mxu1 %v10746_v61  ;;  %v7676_v0 = vld [vmem:[%s9268_s4 + $0x390] sm:$0xf]  ;;  %v8481_v27 = vld [vmem:[%s9268_s4 + $0x394] sm:$0xf] }
 0x718   : > { %4101 = vmatmul.bf16.gmra.mxu2 %v10744_v52  ;;  %4134 = vmatmul.bf16.gmra.mxu3 %v10746_v61 }
 0x719   : > { %4155 = vmatpush.bf16.msrb.mxu0 %v7421_v20  ;;  %v7649_v20 = vor.u32 %v8473_v6, %v7646_v56  ;;  %v7324_v6 = vld [vmem:[%s9268_s4 + $0xd0] sm:$0xf] }
 0x71a   : > { %v8397_v56 = vld [vmem:[%s9268_s4 + $0xec] sm:$0xf0] }
 0x71b   : > { %v3970_v35 = vpop.f32.mrf.mxu2  ;;  %v4003_v9 = vpop.f32.mrf.mxu3 }
 0x71c   : > { %v3971_v50 = vadd.f32 %v3970_v35, %v10891_v43  ;;  %v10919_v21 = vpop.f32.mrf.mxu0  ;;  %v10921_v48 = vpop.f32.mrf.mxu1  ;;  %v7677_v35 = vor.u32 %v8485_v59, %v7676_v0  ;;  %v7356_v59 = vld [vmem:[%s9268_s4 + $0x110] sm:$0xf] }
 0x71e   : > { %v10924_v30 = vadd.f32 %v4003_v9, %v3971_v50  ;;  %v7678_v9 = vld [vmem:[%s9268_s4 + $0x3b0] sm:$0xf0]  ;;  %v7389_v50 = vor.u32 %v8413_v10, %v7388_v16  ;;  %4188 = vmatpush.bf16.msrb.mxu1 %v7677_v35  ;;  %v8469_v35 = vld [vmem:[%s9268_s4 + $0x32c] sm:$0xf0] }
 0x71f   : > { %v7681_v63 = vor.u32 %v8481_v27, %v7678_v9  ;;  %v8405_v27 = vld [vmem:[%s9268_s4 + $0x12c] sm:$0xf0]  ;;  %v8401_v9 = vld [vmem:[%s9268_s4 + $0x114] sm:$0xf] }
 0x720   : > { %4156 = vmatpush.bf16.msrb.mxu0 %v7389_v50  ;;  %v8465_v50 = vld [vmem:[%s9268_s4 + $0x314] sm:$0xf] }
 0x721   : > { %4254 = vmatpush.bf16.msrb.mxu3 %v7681_v63  ;;  %v7358_v63 = vld [vmem:[%s9268_s4 + $0x130] sm:$0xf0] }
 0x722   : > { %4189 = vmatpush.bf16.msrb.mxu1 %v7645_v45  ;;  %v7361_v46 = vor.u32 %v8401_v9, %v7358_v63 }
 0x723   : > { %v10930_v62 = vpop.f32.mrf.mxu2  ;;  %v10932_v2 = vpop.f32.mrf.mxu3 }
 0x724   : > { %v3909_v42 = vpop.f32.mrf.mxu0  ;;  %v3942_v1 = vpop.f32.mrf.mxu1  ;;  %4223 = vmatpush.bf16.msrb.mxu2 %v7361_v46  ;;  %v7550_v46 = vld [vmem:[%s9268_s4 + $0x2b0] sm:$0xf0] }
 0x725   : > { %v3910_v54 = vadd.f32 %v3909_v42, %v10881_v4  ;;  %v7357_v42 = vor.u32 %v8405_v27, %v7356_v59  ;;  %4255 = vmatpush.bf16.msrb.mxu3 %v7649_v20  ;;  %v7617_v59 = vor.u32 %v8465_v50, %v7614_v36  ;;  %v7325_v27 = vor.u32 %v8397_v56, %v7324_v6  ;;  %v7582_v20 = vld [vmem:[%s9268_s4 + $0x2f0] sm:$0xf0]  ;;  %v7548_v50 = vld [vmem:[%s9268_s4 + $0x290] sm:$0xf] }
 0x726   : > { %v8453_v36 = vld [vmem:[%s9268_s4 + $0x2ac] sm:$0xf0]  ;;  %v8385_v6 = vld [vmem:[%s9268_s4 + $0x94] sm:$0xf] }
 0x727   : > { %v10947_v0 = vadd.f32 %v3942_v1, %v3910_v54  ;;  %4040 = vmatmul.bf16.gmra.mxu0 %v10765_v7  ;;  %4073 = vmatmul.bf16.gmra.mxu1 %v10767_v34  ;;  %v7612_v1 = vld [vmem:[%s9268_s4 + $0x310] sm:$0xf]  ;;  %v7294_v56 = vld [vmem:[%s9268_s4 + $0xb0] sm:$0xf0] }
 0x728   : > { %4106 = vmatmul.bf16.gmra.mxu2 %v10765_v7  ;;  %4139 = vmatmul.bf16.gmra.mxu3 %v10767_v34  ;;  %v7613_v54 = vor.u32 %v8469_v35, %v7612_v1  ;;  %v8461_v1 = vld [vmem:[%s9268_s4 + $0x2ec] sm:$0xf0]  ;;  %v8393_v35 = vld [vmem:[%s9268_s4 + $0xd4] sm:$0xf] }
 0x729   : > { %4157 = vmatpush.bf16.msrb.mxu0 %v7357_v42  ;;  %v7581_v9 = vor.u32 %v8461_v1, %v7580_v38  ;;  %v8389_v42 = vld [vmem:[%s9268_s4 + $0xac] sm:$0xf0]  ;;  %4256 = vmatpush.bf16.msrb.mxu3 %v7617_v59  ;;  %v7549_v38 = vor.u32 %v8453_v36, %v7548_v50  ;;  %v7297_v1 = vor.u32 %v8385_v6, %v7294_v56  ;;  %v7518_v50 = vld [vmem:[%s9268_s4 + $0x270] sm:$0xf0] }
 0x72a   : > { %4190 = vmatpush.bf16.msrb.mxu1 %v7613_v54  ;;  %v7293_v54 = vor.u32 %v8389_v42, %v7292_v39  ;;  %v8445_v59 = vld [vmem:[%s9268_s4 + $0x26c] sm:$0xf0]  ;;  %v7262_v39 = vld [vmem:[%s9268_s4 + $0x70] sm:$0xf0] }
 0x72b   : > { %v3975_v16 = vpop.f32.mrf.mxu2  ;;  %v4008_v10 = vpop.f32.mrf.mxu3  ;;  %v8441_v42 = vld [vmem:[%s9268_s4 + $0x254] sm:$0xf]  ;;  %v7517_v6 = vor.u32 %v8445_v59, %v7516_v32 }
 0x72c   : > { %v3976_v47 = vadd.f32 %v3975_v16, %v10891_v43  ;;  %v10962_v5 = vpop.f32.mrf.mxu0  ;;  %v10964_v45 = vpop.f32.mrf.mxu1  ;;  %v7326_v16 = vld [vmem:[%s9268_s4 + $0xf0] sm:$0xf0]  ;;  %v7521_v32 = vor.u32 %v8441_v42, %v7518_v50 }
 0x72d   : > { %v7329_v63 = vor.u32 %v8393_v35, %v7326_v16  ;;  %4158 = vmatpush.bf16.msrb.mxu0 %v7325_v27  ;;  %v7260_v35 = vld [vmem:[%s9268_s4 + $0x50] sm:$0xf]  ;;  %v8377_v27 = vld [vmem:[%s9268_s4 + $0x54] sm:$0xf] }
 0x72e   : > { %v10972_v14 = vadd.f32 %v4008_v10, %v3976_v47  ;;  %v7585_v10 = vor.u32 %v8457_v19, %v7582_v20  ;;  %v8449_v47 = vld [vmem:[%s9268_s4 + $0x294] sm:$0xf]  ;;  %4191 = vmatpush.bf16.msrb.mxu1 %v7581_v9  ;;  %v8381_v16 = vld [vmem:[%s9268_s4 + $0x6c] sm:$0xf0]  ;;  %v7265_v56 = vor.u32 %v8377_v27, %v7262_v39 }
 0x72f   : > { %4224 = vmatpush.bf16.msrb.mxu2 %v7329_v63  ;;  %v7553_v63 = vor.u32 %v8449_v47, %v7550_v46  ;;  %v7261_v20 = vor.u32 %v8381_v16, %v7260_v35  ;;  %v7230_v47 = vld [vmem:[%s9268_s4 + $0x30] sm:$0xf0]  ;;  %v7229_v46 = vor.u32 %v8373_v49, %v7228_v58  ;;  %v7462_v49 = vld [vmem:[%s9268_s4 + $0x1f8] sm:$0xf0] }
 0x730   : > { %4257 = vmatpush.bf16.msrb.mxu3 %v7585_v10  ;;  %v8437_v10 = vld [vmem:[%s9268_s4 + $0x22c] sm:$0xf0]  ;;  %v8433_v35 = vld [vmem:[%s9268_s4 + $0x214] sm:$0xf] }
 0x731   : > { %4159 = vmatpush.bf16.msrb.mxu0 %v7293_v54  ;;  %v8369_v54 = vld [vmem:[%s9268_s4 + $0x14] sm:$0xf] }
 0x732   : > { %4192 = vmatpush.bf16.msrb.mxu1 %v7549_v38  ;;  %v7485_v38 = vor.u32 %v8437_v10, %v7484_v57  ;;  %v7486_v16 = vld [vmem:[%s9268_s4 + $0x230] sm:$0xf0]  ;;  %v8426_v57 = vld [vmem:[%s9268_s4 + $0x1dc] sm:$0xf]  ;;  %v7716_v10 = vld [vmem:[%s9268_s4 + $0x3d8] sm:$0xf] }
 0x733   : > { %v10987_v8 = vpop.f32.mrf.mxu2  ;;  %v10989_v55 = vpop.f32.mrf.mxu3  ;;  %4225 = vmatpush.bf16.msrb.mxu2 %v7297_v1  ;;  %v7233_v1 = vor.u32 %v8369_v54, %v7230_v47  ;;  %v7465_v58 = vor.u32 %v8426_v57, %v7462_v49  ;;  %v8494_v47 = vld [vmem:[%s9268_s4 + $0x3f4] sm:$0xf0]  ;;  %v8482_v49 = vld [vmem:[%s9268_s4 + $0x39c] sm:$0xf] }
 0x734   : > { %v3914_v19 = vpop.f32.mrf.mxu0  ;;  %v3947_v36 = vpop.f32.mrf.mxu1  ;;  %4258 = vmatpush.bf16.msrb.mxu3 %v7553_v63  ;;  %v8490_v63 = vld [vmem:[%s9268_s4 + $0x3dc] sm:$0xf]  ;;  %v8486_v57 = vld [vmem:[%s9268_s4 + $0x3b4] sm:$0xf0] }
 0x735   : > { %v3915_v9 = vadd.f32 %v3914_v19, %v10881_v4  ;;  %4160 = vmatpush.bf16.msrb.mxu0 %v7261_v20  ;;  %v7489_v19 = vor.u32 %v8433_v35, %v7486_v16  ;;  %v7718_v20 = vld [vmem:[%s9268_s4 + $0x3f8] sm:$0xf0]  ;;  %v7428_v35 = vld [vmem:[%s9268_s4 + $0x198] sm:$0xf] }
 0x736   : > { %4193 = vmatpush.bf16.msrb.mxu1 %v7517_v6  ;;  %v7721_v42 = vor.u32 %v8490_v63, %v7718_v20  ;;  %v7460_v6 = vld [vmem:[%s9268_s4 + $0x1d8] sm:$0xf] }
 0x737   : > { %v11000_v3 = vadd.f32 %v3947_v36, %v3915_v9  ;;  %4045 = vmatmul.bf16.gmra.mxu0 %v10785_v53  ;;  %4078 = vmatmul.bf16.gmra.mxu1 %v10787_v37  ;;  %v8422_v16 = vld [vmem:[%s9268_s4 + $0x1b4] sm:$0xf0] }
 0x738   : > { %4111 = vmatmul.bf16.gmra.mxu2 %v10785_v53  ;;  %4144 = vmatmul.bf16.gmra.mxu3 %v10787_v37 }
 0x739   : > { %4226 = vmatpush.bf16.msrb.mxu2 %v7265_v56  ;;  %4259 = vmatpush.bf16.msrb.mxu3 %v7521_v32  ;;  %v8430_v56 = vld [vmem:[%s9268_s4 + $0x1f4] sm:$0xf0]  ;;  %v7717_v32 = vor.u32 %v8494_v47, %v7716_v10 }
 0x73a   : > { %4161 = vmatpush.bf16.msrb.mxu0 %v7229_v46  ;;  %4194 = vmatpush.bf16.msrb.mxu1 %v7485_v38  ;;  %v7461_v54 = vor.u32 %v8430_v56, %v7460_v6  ;;  %v8418_v46 = vld [vmem:[%s9268_s4 + $0x19c] sm:$0xf]  ;;  %v7396_v10 = vld [vmem:[%s9268_s4 + $0x158] sm:$0xf] }
 0x73b   : > { %v3980_v59 = vpop.f32.mrf.mxu2  ;;  %v4013_v39 = vpop.f32.mrf.mxu3  ;;  %v7430_v38 = vld [vmem:[%s9268_s4 + $0x1b8] sm:$0xf0]  ;;  %v7652_v47 = vld [vmem:[%s9268_s4 + $0x358] sm:$0xf] }
 0x73c   : > { %v3981_v27 = vadd.f32 %v3980_v59, %v10891_v43  ;;  %v11030_v50 = vpop.f32.mrf.mxu0  ;;  %v11032_v36 = vpop.f32.mrf.mxu1  ;;  %v7684_v59 = vld [vmem:[%s9268_s4 + $0x398] sm:$0xf] }
 0x73d   : > { %4227 = vmatpush.bf16.msrb.mxu2 %v7233_v1  ;;  %4260 = vmatpush.bf16.msrb.mxu3 %v7489_v19  ;;  %v7433_v1 = vor.u32 %v8418_v46, %v7430_v38  ;;  %v7429_v19 = vor.u32 %v8422_v16, %v7428_v35  ;;  %v8478_v38 = vld [vmem:[%s9268_s4 + $0x374] sm:$0xf0]  ;;  %v8410_v35 = vld [vmem:[%s9268_s4 + $0x15c] sm:$0xf] }
 0x73e   : > { %v11012_v9 = vadd.f32 %v4013_v39, %v3981_v27  ;;  %4286 = vmatpush.bf16.msra.mxu0 %v7461_v54  ;;  %4319 = vmatpush.bf16.msra.mxu1 %v7717_v32  ;;  %v8414_v54 = vld [vmem:[%s9268_s4 + $0x174] sm:$0xf0]  ;;  %v3902_v32 = vadd.f32 %v10894_v23, %v10881_v4  ;;  %v7654_v23 = vld [vmem:[%s9268_s4 + $0x378] sm:$0xf0] }
 0x73f   : > { %v7397_v46 = vor.u32 %v8414_v54, %v7396_v10  ;;  %v8470_v10 = vld [vmem:[%s9268_s4 + $0x334] sm:$0xf0]  ;;  %v8402_v54 = vld [vmem:[%s9268_s4 + $0x11c] sm:$0xf] }
 0x741   : > { %4352 = vmatpush.bf16.msra.mxu2 %v7465_v58  ;;  %4385 = vmatpush.bf16.msra.mxu3 %v7721_v42  ;;  %v7686_v58 = vld [vmem:[%s9268_s4 + $0x3b8] sm:$0xf0]  ;;  %v7685_v42 = vor.u32 %v8486_v57, %v7684_v59  ;;  %v7653_v59 = vor.u32 %v8478_v38, %v7652_v47  ;;  %v11075_v47 = vadd.f32 %v10896_v25, %v3902_v32 }
 0x742   : > { %v7689_v6 = vor.u32 %v8482_v49, %v7686_v58  ;;  %4287 = vmatpush.bf16.msra.mxu0 %v7429_v19  ;;  %v8474_v57 = vld [vmem:[%s9268_s4 + $0x35c] sm:$0xf]  ;;  %v4490_v49 = vmul.f32 0.044715, %v10884_v24 }
 0x743   : > { %v11043_v27 = vpop.f32.mrf.mxu2  ;;  %v11045_v39 = vpop.f32.mrf.mxu3  ;;  %4320 = vmatpush.bf16.msra.mxu1 %v7685_v42  ;;  %v7657_v58 = vor.u32 %v8474_v57, %v7654_v23  ;;  %v8406_v42 = vld [vmem:[%s9268_s4 + $0x134] sm:$0xf0]  ;;  %v8466_v57 = vld [vmem:[%s9268_s4 + $0x31c] sm:$0xf] }
 0x744   : > { %12622 = vst [vmem:[#allocation34_spill] sm:$0xff] %v11043_v27  ;;  %v4562_v23 = vmul.f32 %v4490_v49, %v10884_v24  ;;  %v3968_v49 = vadd.f32 %v10900_v11, %v10891_v43  ;;  %v7590_v11 = vld [vmem:[%s9268_s4 + $0x2f8] sm:$0xf0] }
 0x745   : > { %12623 = vst [vmem:[#allocation35_spill] sm:$0xff] %v11045_v39  ;;  %4353 = vmatpush.bf16.msra.mxu2 %v7433_v1  ;;  %4386 = vmatpush.bf16.msra.mxu3 %v7689_v6  ;;  %v7398_v1 = vld [vmem:[%s9268_s4 + $0x178] sm:$0xf0] }
 0x746   : > { %v7401_v19 = vor.u32 %v8410_v35, %v7398_v1  ;;  %4288 = vmatpush.bf16.msra.mxu0 %v7397_v46  ;;  %v7366_v46 = vld [vmem:[%s9268_s4 + $0x138] sm:$0xf0] }
 0x747   : > { %4050 = vmatmul.bf16.gmra.mxu0 %v10869_v17  ;;  %4083 = vmatmul.bf16.gmra.mxu1 %v10871_v31 }
 0x748   : > { %4116 = vmatmul.bf16.gmra.mxu2 %v10869_v17  ;;  %4149 = vmatmul.bf16.gmra.mxu3 %v10871_v31 }
 0x749   : > { %4354 = vmatpush.bf16.msra.mxu2 %v7401_v19  ;;  %4321 = vmatpush.bf16.msra.mxu1 %v7653_v59  ;;  %v7622_v19 = vld [vmem:[%s9268_s4 + $0x338] sm:$0xf0] }
 0x74a   : > { %4387 = vmatpush.bf16.msra.mxu3 %v7657_v58  ;;  %v7625_v25 = vor.u32 %v8466_v57, %v7622_v19 }
 0x74e   : > { %4388 = vmatpush.bf16.msra.mxu3 %v7625_v25  ;;  %v7556_v25 = vld [vmem:[%s9268_s4 + $0x298] sm:$0xf] }
 0x757   : > { %4162 = vmatmul.bf16.vlgmr.msrb.gmra.mxu0 %v10722_v60  ;;  %4195 = vmatmul.bf16.vlgmr.msrb.gmra.mxu1 %v10724_v28 }
 0x758   : > { %4228 = vmatmul.bf16.vlgmr.msrb.gmra.mxu2 %v10722_v60  ;;  %4261 = vmatmul.bf16.vlgmr.msrb.gmra.mxu3 %v10724_v28 }
 0x767   : > { %4167 = vmatmul.bf16.gmra.mxu0 %v10744_v52  ;;  %4200 = vmatmul.bf16.gmra.mxu1 %v10746_v61 }
 0x768   : > { %4233 = vmatmul.bf16.gmra.mxu2 %v10744_v52  ;;  %4266 = vmatmul.bf16.gmra.mxu3 %v10746_v61 }
 0x774   : > { %v3919_v63 = vpop.f32.mrf.mxu0  ;;  %v3952_v20 = vpop.f32.mrf.mxu1 }
 0x775   : > { %v3920_v56 = vadd.f32 %v3919_v63, %v10881_v4  ;;  %v4491_v63 = vmul.f32 0.044715, %v10898_v33 }
 0x777   : > { %v11059_v16 = vadd.f32 %v3952_v20, %v3920_v56  ;;  %4172 = vmatmul.bf16.gmra.mxu0 %v10765_v7  ;;  %4205 = vmatmul.bf16.gmra.mxu1 %v10767_v34  ;;  %v7364_v20 = vld [vmem:[%s9268_s4 + $0x118] sm:$0xf]  ;;  %v4563_v32 = vmul.f32 %v4491_v63, %v10898_v33  ;;  %v7334_v63 = vld [vmem:[%s9268_s4 + $0xf8] sm:$0xf0] }
 0x778   : > { %4238 = vmatmul.bf16.gmra.mxu2 %v10765_v7  ;;  %4271 = vmatmul.bf16.gmra.mxu3 %v10767_v34  ;;  %v7365_v6 = vor.u32 %v8406_v42, %v7364_v20  ;;  %v7620_v56 = vld [vmem:[%s9268_s4 + $0x318] sm:$0xf]  ;;  %v7369_v42 = vor.u32 %v8402_v54, %v7366_v46  ;;  %v8394_v46 = vld [vmem:[%s9268_s4 + $0xdc] sm:$0xf] }
 0x779   : > { %12624 = vst [vmem:[#allocation36_spill] sm:$0xff] %v11059_v16  ;;  %v7621_v1 = vor.u32 %v8470_v10, %v7620_v56  ;;  %v8398_v56 = vld [vmem:[%s9268_s4 + $0xf4] sm:$0xf0]  ;;  %v7337_v19 = vor.u32 %v8394_v46, %v7334_v63  ;;  %v7302_v46 = vld [vmem:[%s9268_s4 + $0xb8] sm:$0xf0] }
 0x77a   : > { %4289 = vmatpush.bf16.msra.mxu0 %v7365_v6  ;;  %v7588_v10 = vld [vmem:[%s9268_s4 + $0x2d8] sm:$0xf]  ;;  %4355 = vmatpush.bf16.msra.mxu2 %v7369_v42  ;;  %v4498_v6 = vmul.f32 0.044715, %v11075_v47 }
 0x77b   : > { %v3985_v38 = vpop.f32.mrf.mxu2  ;;  %v4018_v35 = vpop.f32.mrf.mxu3  ;;  %4322 = vmatpush.bf16.msra.mxu1 %v7621_v1  ;;  %v8462_v54 = vld [vmem:[%s9268_s4 + $0x2f4] sm:$0xf0]  ;;  %v11098_v1 = vperm.slane %v10878_v44, 2 }
 0x77c   : > { %v3986_v59 = vadd.f32 %v3985_v38, %v10891_v43  ;;  %v3921_v58 = vpop.f32.mrf.mxu0  ;;  %v3954_v20 = vpop.f32.mrf.mxu1  ;;  %v7333_v38 = vor.u32 %v8398_v56, %v7332_v41  ;;  %v7589_v57 = vor.u32 %v8462_v54, %v7588_v10  ;;  %v8390_v42 = vld [vmem:[%s9268_s4 + $0xb4] sm:$0xf0]  ;;  %v11105_v56 = vadd.f32 %v10902_v12, %v3968_v49  ;;  %v8386_v54 = vld [vmem:[%s9268_s4 + $0x9c] sm:$0xf] }
 0x77d   : > { %v8458_v58 = vld [vmem:[%s9268_s4 + $0x2dc] sm:$0xf]  ;;  %v7300_v20 = vld [vmem:[%s9268_s4 + $0x98] sm:$0xf] }
 0x77e   : > { %v11088_v15 = vadd.f32 %v4018_v35, %v3986_v59  ;;  %v4634_v35 = vmul.f32 %v4562_v23, %v10884_v24  ;;  %v7593_v41 = vor.u32 %v8458_v58, %v7590_v11  ;;  %v4635_v59 = vmul.f32 %v4563_v32, %v10898_v33  ;;  %4290 = vmatpush.bf16.msra.mxu0 %v7333_v38  ;;  %v8454_v23 = vld [vmem:[%s9268_s4 + $0x2b4] sm:$0xf0]  ;;  %v8450_v12 = vld [vmem:[%s9268_s4 + $0x29c] sm:$0xf] }
 0x77f   : > { %4323 = vmatpush.bf16.msra.mxu1 %v7589_v57  ;;  %4356 = vmatpush.bf16.msra.mxu2 %v7337_v19  ;;  %v7301_v10 = vor.u32 %v8390_v42, %v7300_v20  ;;  %v4570_v32 = vmul.f32 %v4498_v6, %v11075_v47  ;;  %v7557_v58 = vor.u32 %v8454_v23, %v7556_v25  ;;  %v7558_v49 = vld [vmem:[%s9268_s4 + $0x2b8] sm:$0xf0]  ;;  %v7268_v57 = vld [vmem:[%s9268_s4 + $0x58] sm:$0xf] }
 0x780   : > { %12625 = vst [vmem:[#allocation37_spill] sm:$0xff] %v11088_v15  ;;  %4389 = vmatpush.bf16.msra.mxu3 %v7593_v41  ;;  %v7305_v11 = vor.u32 %v8386_v54, %v7302_v46  ;;  %v4706_v19 = vadd.f32 %v4634_v35, %v10884_v24  ;;  %v4707_v6 = vadd.f32 %v4635_v59, %v10898_v33  ;;  %v8378_v54 = vld [vmem:[%s9268_s4 + $0x5c] sm:$0xf] }
 0x781   : > { %v7561_v25 = vor.u32 %v8450_v12, %v7558_v49  ;;  %v7269_v23 = vor.u32 %v8382_v22, %v7268_v57  ;;  %v7270_v46 = vld [vmem:[%s9268_s4 + $0x78] sm:$0xf0]  ;;  %v7525_v35 = vor.u32 %v8446_v29, %v7524_v40  ;;  %v4642_v13 = vmul.f32 %v4570_v32, %v11075_v47  ;;  %v7492_v12 = vld [vmem:[%s9268_s4 + $0x218] sm:$0xf] }
 0x782   : > { %4291 = vmatpush.bf16.msra.mxu0 %v7301_v10  ;;  %v4778_v22 = vmul.f32 0.7978846, %v4706_v19  ;;  %v3907_v59 = vadd.f32 %v10919_v21, %v10881_v4  ;;  %v11135_v29 = vperm.slane %v10878_v44, 3  ;;  %v4779_v40 = vmul.f32 0.7978846, %v4707_v6 }
 0x783   : > { %v3987_v38 = vpop.f32.mrf.mxu2  ;;  %v4020_v63 = vpop.f32.mrf.mxu3  ;;  %4324 = vmatpush.bf16.msra.mxu1 %v7557_v58  ;;  %4357 = vmatpush.bf16.msra.mxu2 %v7305_v11  ;;  %v7529_v32 = vor.u32 %v8442_v51, %v7526_v26  ;;  %v7236_v58 = vld [vmem:[%s9268_s4 + $0x18] sm:$0xf]  ;;  %v4714_v44 = vadd.f32 %v4642_v13, %v11075_v47  ;;  %v7238_v26 = vld [vmem:[%s9268_s4 + $0x38] sm:$0xf0] }
 0x784   : > { %v4031_v20 = vpop.f32.mrf.mxu0  ;;  %v4064_v42 = vpop.f32.mrf.mxu1  ;;  %v4499_v38 = vmul.f32 0.044715, %v11105_v56  ;;  %v7273_v63 = vor.u32 %v8378_v54, %v7270_v46  ;;  %4390 = vmatpush.bf16.msra.mxu3 %v7561_v25  ;;  %v8374_v21 = vld [vmem:[%s9268_s4 + $0x34] sm:$0xf0]  ;;  %v8434_v51 = vld [vmem:[%s9268_s4 + $0x21c] sm:$0xf]  ;;  %8813 = vtanh.f32 %v4778_v22 }
 0x785   : > { %v4032_v41 = vadd.f32 %v4031_v20, %v11098_v1  ;;  %v8438_v49 = vld [vmem:[%s9268_s4 + $0x234] sm:$0xf0]  ;;  %v4506_v25 = vmul.f32 0.044715, %v10907_v18  ;;  %v7494_v13 = vld [vmem:[%s9268_s4 + $0x238] sm:$0xf0]  ;;  %8815 = vtanh.f32 %v4779_v40 }
 0x786   : > { %4292 = vmatpush.bf16.msra.mxu0 %v7269_v23  ;;  %v4571_v11 = vmul.f32 %v4499_v38, %v11105_v56  ;;  %v7493_v6 = vor.u32 %v8438_v49, %v7492_v12  ;;  %v11150_v23 = vadd.f32 %v10921_v48, %v3907_v59  ;;  %v4786_v48 = vmul.f32 0.7978846, %v4714_v44 }
 0x787   : > { %v11126_v15 = vadd.f32 %v4064_v42, %v4032_v41  ;;  %4177 = vmatmul.bf16.gmra.mxu0 %v10785_v53  ;;  %4210 = vmatmul.bf16.gmra.mxu1 %v10787_v37  ;;  %v7237_v42 = vor.u32 %v8374_v21, %v7236_v58  ;;  %v8370_v41 = vld [vmem:[%s9268_s4 + $0x1c] sm:$0xf]  ;;  %v7497_v58 = vor.u32 %v8434_v51, %v7494_v13  ;;  %v4507_v59 = vmul.f32 0.044715, %v10924_v30 }
 0x788   : > { %4243 = vmatmul.bf16.gmra.mxu2 %v10785_v53  ;;  %4276 = vmatmul.bf16.gmra.mxu3 %v10787_v37  ;;  %v4643_v21 = vmul.f32 %v4571_v11, %v11105_v56  ;;  %v4578_v22 = vmul.f32 %v4506_v25, %v10907_v18  ;;  %v11169_v11 = vmul.f32 0.5, %v10898_v33  ;;  %v11177_v40 = vmul.f32 0.5, %v11105_v56 }
 0x789   : > { %v4492_v10 = vmul.f32 0.044715, %v11126_v15  ;;  %4325 = vmatpush.bf16.msra.mxu1 %v7525_v35  ;;  %4358 = vmatpush.bf16.msra.mxu2 %v7273_v63  ;;  %v7241_v35 = vor.u32 %v8370_v41, %v7238_v26  ;;  %8817 = vtanh.f32 %v4786_v48  ;;  %v4579_v33 = vmul.f32 %v4507_v59, %v10924_v30 }
 0x78a   : > { %4391 = vmatpush.bf16.msra.mxu3 %v7529_v32  ;;  %4293 = vmatpush.bf16.msra.mxu0 %v7237_v42  ;;  %v11174_v42 = vmul.f32 0.5, %v11075_v47  ;;  %v3973_v47 = vadd.f32 %v10930_v62, %v10891_v43  ;;  %v4650_v13 = vmul.f32 %v4578_v22, %v10907_v18 }
 0x78b   : > { %v4564_v57 = vmul.f32 %v4492_v10, %v11126_v15  ;;  %v4097_v19 = vpop.f32.mrf.mxu2  ;;  %v4130_v20 = vpop.f32.mrf.mxu3 }
 0x78c   : > { %v4098_v54 = vadd.f32 %v4097_v19, %v11135_v29  ;;  %v4033_v46 = vpop.f32.mrf.mxu0  ;;  %v4066_v38 = vpop.f32.mrf.mxu1 }
 0x78d   : > { %v4636_v63 = vmul.f32 %v4564_v57, %v11126_v15  ;;  %v4034_v10 = vadd.f32 %v4033_v46, %v11098_v1  ;;  %4326 = vmatpush.bf16.msra.mxu1 %v7493_v6  ;;  %4359 = vmatpush.bf16.msra.mxu2 %v7241_v35  ;;  %v11166_v57 = vmul.f32 0.5, %v10884_v24  ;;  %v4715_v6 = vadd.f32 %v4643_v21, %v11105_v56  ;;  %v8814_v24 = vpop.eup %8813 }
 0x78e   : > { %v11157_v12 = vadd.f32 %v4130_v20, %v4098_v54  ;;  %v4514_v20 = vmul.f32 0.044715, %v11150_v23  ;;  %4392 = vmatpush.bf16.msra.mxu3 %v7497_v58  ;;  %v11192_v21 = vmul.f32 0.5, %v10907_v18  ;;  %v8816_v48 = vpop.eup %8815  ;;  %v11194_v59 = vadd.f32 1.0, %v8814_v24 }
 0x78f   : > { %v4708_v49 = vadd.f32 %v4636_v63, %v11126_v15  ;;  %v11161_v19 = vadd.f32 %v4066_v38, %v4034_v10  ;;  %v4787_v62 = vmul.f32 0.7978846, %v4715_v6  ;;  %v4722_v24 = vadd.f32 %v4650_v13, %v10907_v18 }
 0x790   : > { %v4493_v32 = vmul.f32 0.044715, %v11157_v12  ;;  %v4586_v63 = vmul.f32 %v4514_v20, %v11150_v23  ;;  %v4651_v20 = vmul.f32 %v4579_v33, %v10924_v30  ;;  %v3912_v18 = vadd.f32 %v10962_v5, %v10881_v4 }
 0x791   : > { %v4500_v44 = vmul.f32 0.044715, %v11161_v19  ;;  %v4780_v26 = vmul.f32 0.7978846, %v4708_v49 }
 0x792   : > { %v4565_v41 = vmul.f32 %v4493_v32, %v11157_v12 }
 0x793   : > { %v4572_v51 = vmul.f32 %v4500_v44, %v11161_v19  ;;  %v4099_v25 = vpop.f32.mrf.mxu2  ;;  %v4132_v54 = vpop.f32.mrf.mxu3  ;;  %8819 = vtanh.f32 %v4780_v26  ;;  %v11213_v26 = vmul.f32 0.5, %v10924_v30 }
 0x794   : > { %v4637_v46 = vmul.f32 %v4565_v41, %v11157_v12  ;;  %v4100_v38 = vadd.f32 %v4099_v25, %v11135_v29  ;;  %v4036_v35 = vpop.f32.mrf.mxu0  ;;  %v4069_v56 = vpop.f32.mrf.mxu1  ;;  %v11206_v41 = vadd.f32 %v10932_v2, %v3973_v47  ;;  %v11215_v25 = vadd.f32 1.0, %v8816_v48 }
 0x795   : > { %v4644_v10 = vmul.f32 %v4572_v51, %v11161_v19  ;;  %v4037_v58 = vadd.f32 %v4036_v35, %v11098_v1  ;;  %12626 = vst [vmem:[#allocation38_spill] sm:$0xff] %v11213_v26  ;;  %v8818_v51 = vpop.eup %8817  ;;  %v4658_v2 = vmul.f32 %v4586_v63, %v11150_v23  ;;  %8821 = vtanh.f32 %v4787_v62 }
 0x796   : > { %v4709_v49 = vadd.f32 %v4637_v46, %v11157_v12  ;;  %v11197_v32 = vadd.f32 %v4132_v54, %v4100_v38  ;;  %v11221_v38 = vmul.f32 0.5, %v11150_v23  ;;  %v4515_v63 = vmul.f32 0.044715, %v11206_v41 }
 0x797   : > { %v4716_v22 = vadd.f32 %v4644_v10, %v11161_v19  ;;  %v11200_v44 = vadd.f32 %v4069_v56, %v4037_v58  ;;  %4182 = vmatmul.bf16.gmra.mxu0 %v10869_v17  ;;  %4215 = vmatmul.bf16.gmra.mxu1 %v10871_v31  ;;  %v11227_v10 = vadd.f32 %v4651_v20, %v10924_v30 }
 0x798   : > { %v4501_v6 = vmul.f32 0.044715, %v11197_v32  ;;  %4248 = vmatmul.bf16.gmra.mxu2 %v10869_v17  ;;  %4281 = vmatmul.bf16.gmra.mxu3 %v10871_v31  ;;  %v4781_v47 = vmul.f32 0.7978846, %v4709_v49  ;;  %12627 = vst [vmem:[#allocation39_spill] sm:$0xff] %v11221_v38  ;;  %v4428_v31 = vmul.f32 0.5, %v11161_v19 }
 0x799   : > { %v4788_v54 = vmul.f32 0.7978846, %v4716_v22  ;;  %v4508_v33 = vmul.f32 0.044715, %v11200_v44  ;;  %v11232_v22 = vadd.f32 1.0, %v8818_v51 }
 0x79a   : > { %v4573_v46 = vmul.f32 %v4501_v6, %v11197_v32  ;;  %v8820_v6 = vpop.eup %8819  ;;  %v4522_v51 = vmul.f32 0.044715, %v10947_v0 }
 0x79b   : > { %8823 = vtanh.f32 %v4788_v54  ;;  %v4580_v35 = vmul.f32 %v4508_v33, %v11200_v44  ;;  %v4102_v56 = vpop.f32.mrf.mxu2  ;;  %v4135_v13 = vpop.f32.mrf.mxu3  ;;  %v11236_v54 = vadd.f32 %v4658_v2, %v11150_v23  ;;  %v4794_v33 = vmul.f32 0.7978846, %v4722_v24 }
 0x79c   : > { %v4645_v58 = vmul.f32 %v4573_v46, %v11197_v32  ;;  %v4103_v48 = vadd.f32 %v4102_v56, %v11135_v29  ;;  %v4038_v62 = vpop.f32.mrf.mxu0  ;;  %v4071_v49 = vpop.f32.mrf.mxu1  ;;  %8825 = vtanh.f32 %v4781_v47  ;;  %v11243_v46 = vmul.f32 0.5, %v11206_v41 }
 0x79d   : > { %v4039_v5 = vadd.f32 %v4038_v62, %v11098_v1  ;;  %v4652_v30 = vmul.f32 %v4580_v35, %v11200_v44  ;;  %v11247_v56 = vadd.f32 %v10964_v45, %v3912_v18  ;;  %v11252_v24 = vpop.eup %8821  ;;  %v4587_v2 = vmul.f32 %v4515_v63, %v11206_v41 }
 0x79e   : > { %v4717_v20 = vadd.f32 %v4645_v58, %v11197_v32  ;;  %v11240_v16 = vadd.f32 %v4135_v13, %v4103_v48  ;;  %12628 = vst [vmem:[#allocation40_spill] sm:$0xff] %v11243_v46  ;;  %v4924_v47 = vadd.f32 1.0, %v8820_v6  ;;  %v4420_v48 = vmul.f32 0.5, %v11126_v15 }
 0x79f   : > { %v11249_v62 = vadd.f32 %v4071_v49, %v4039_v5  ;;  %v4724_v23 = vadd.f32 %v4652_v30, %v11200_v44  ;;  %8827 = vtanh.f32 %v4794_v33  ;;  %v4594_v30 = vmul.f32 %v4522_v51, %v10947_v0 }
 0x7a0   : > { %v4789_v35 = vmul.f32 0.7978846, %v4717_v20  ;;  %v4509_v13 = vmul.f32 0.044715, %v11240_v16  ;;  %v4523_v63 = vmul.f32 0.044715, %v10972_v14  ;;  %v3978_v51 = vadd.f32 %v10987_v8, %v10891_v43 }
 0x7a1   : > { %v8824_v58 = vpop.eup %8823  ;;  %v4516_v45 = vmul.f32 0.044715, %v11249_v62  ;;  %v4796_v5 = vmul.f32 0.7978846, %v4724_v23  ;;  %v4530_v6 = vmul.f32 0.044715, %v11247_v56 }
 0x7a2   : > { %8829 = vtanh.f32 %v4789_v35  ;;  %v4581_v18 = vmul.f32 %v4509_v13, %v11240_v16  ;;  %v4932_v49 = vadd.f32 1.0, %v8824_v58  ;;  %v8826_v39 = vpop.eup %8825  ;;  %v4996_v35 = vmul.f32 %v4924_v47, %v4420_v48 }
 0x7a3   : > { %v4588_v20 = vmul.f32 %v4516_v45, %v11249_v62  ;;  %v4104_v17 = vpop.f32.mrf.mxu2  ;;  %v4137_v15 = vpop.f32.mrf.mxu3  ;;  %v4659_v58 = vmul.f32 %v4587_v2, %v11206_v41  ;;  %8831 = vtanh.f32 %v4796_v5 }
 0x7a4   : > { %v4105_v19 = vadd.f32 %v4104_v17, %v11135_v29  ;;  %v4041_v46 = vpop.f32.mrf.mxu0  ;;  %v4074_v33 = vpop.f32.mrf.mxu1  ;;  %v5004_v26 = vmul.f32 %v4932_v49, %v4428_v31  ;;  %v4653_v13 = vmul.f32 %v4581_v18, %v11240_v16  ;;  %v4925_v31 = vadd.f32 1.0, %v8826_v39 }
 0x7a5   : > { %v4042_v23 = vadd.f32 %v4041_v46, %v11098_v1  ;;  %v4660_v45 = vmul.f32 %v4588_v20, %v11249_v62  ;;  %v8828_v47 = vpop.eup %8827  ;;  %v4666_v46 = vmul.f32 %v4594_v30, %v10947_v0  ;;  %v4595_v18 = vmul.f32 %v4523_v63, %v10972_v14 }
 0x7a6   : > { %v11271_v27 = vadd.f32 %v4137_v15, %v4105_v19  ;;  %v11273_v38 = vpack.c.bf16 %v5004_v26, %v4996_v35  ;;  %v4725_v17 = vadd.f32 %v4653_v13, %v11240_v16  ;;  %v4602_v26 = vmul.f32 %v4530_v6, %v11247_v56 }
 0x7a7   : > { %v11276_v48 = vadd.f32 %v4074_v33, %v4042_v23  ;;  %4294 = vmatmul.bf16.vlgmr.msra.gmra.mxu0 %v10722_v60  ;;  %4327 = vmatmul.bf16.vlgmr.msra.gmra.mxu1 %v10724_v28  ;;  %v4732_v8 = vadd.f32 %v4660_v45, %v11249_v62  ;;  %v4421_v49 = vmul.f32 0.5, %v11157_v12  ;;  %v4429_v39 = vmul.f32 0.5, %v11197_v32 }
 0x7a8   : > { %12629 = vst [vmem:[#allocation41_spill] sm:$0xff] %v11273_v38  ;;  %v8830_v2 = vpop.eup %8829  ;;  %v4517_v5 = vmul.f32 0.044715, %v11271_v27  ;;  %4360 = vmatmul.bf16.vlgmr.msra.gmra.mxu2 %v10722_v60  ;;  %4393 = vmatmul.bf16.vlgmr.msra.gmra.mxu3 %v10724_v28  ;;  %v11291_v30 = vadd.f32 %v10989_v55, %v3978_v51  ;;  %v4731_v6 = vadd.f32 %v4659_v58, %v11206_v41  ;;  %v4797_v12 = vmul.f32 0.7978846, %v4725_v17 }
 0x7a9   : > { %v4524_v20 = vmul.f32 0.044715, %v11276_v48  ;;  %v4933_v15 = vadd.f32 1.0, %v8830_v2  ;;  %v4804_v19 = vmul.f32 0.7978846, %v4732_v8  ;;  %v4997_v13 = vmul.f32 %v4925_v31, %v4421_v49  ;;  %v8832_v32 = vpop.eup %8831 }
 0x7aa   : > { %v4589_v63 = vmul.f32 %v4517_v5, %v11271_v27  ;;  %v4738_v51 = vadd.f32 %v4666_v46, %v10947_v0  ;;  %v4667_v2 = vmul.f32 %v4595_v18, %v10972_v14  ;;  %v4674_v17 = vmul.f32 %v4602_v26, %v11247_v56 }
 0x7ab   : > { %v4596_v33 = vmul.f32 %v4524_v20, %v11276_v48  ;;  %v4107_v35 = vpop.f32.mrf.mxu2  ;;  %v4140_v60 = vpop.f32.mrf.mxu3  ;;  %v5005_v28 = vmul.f32 %v4933_v15, %v4429_v39  ;;  %8833 = vtanh.f32 %v4804_v19  ;;  %v11308_v5 = vadd.f32 1.0, %v11252_v24 }
 0x7ac   : > { %v4108_v23 = vadd.f32 %v4107_v35, %v11135_v29  ;;  %v4043_v45 = vpop.f32.mrf.mxu0  ;;  %v4076_v8 = vpop.f32.mrf.mxu1  ;;  %v4661_v55 = vmul.f32 %v4589_v63, %v11271_v27  ;;  %8835 = vtanh.f32 %v4797_v12  ;;  %v11312_v46 = vmul.f32 0.044715, %v11291_v30 }
 0x7ad   : > { %v4044_v41 = vadd.f32 %v4043_v45, %v11098_v1  ;;  %v11301_v58 = vpack.c.bf16 %v5005_v28, %v4997_v13  ;;  %v4668_v31 = vmul.f32 %v4596_v33, %v11276_v48  ;;  %v11317_v20 = vmul.f32 0.7978846, %v11236_v54 }
 0x7ae   : > { %v11305_v49 = vadd.f32 %v4140_v60, %v4108_v23  ;;  %v4733_v39 = vadd.f32 %v4661_v55, %v11271_v27  ;;  %v4940_v15 = vadd.f32 1.0, %v8832_v32  ;;  %v11321_v19 = vmul.f32 0.7978846, %v11227_v10 }
 0x7af   : > { %12630 = vst [vmem:[#allocation42_spill] sm:$0xff] %v11301_v58  ;;  %v11314_v18 = vadd.f32 %v4076_v8, %v4044_v41  ;;  %v4740_v24 = vadd.f32 %v4668_v31, %v11276_v48  ;;  %v11325_v12 = vmul.f32 0.044715, %v11000_v3  ;;  %v11328_v60 = vadd.f32 1.0, %v8828_v47 }
 0x7b0   : > { %v4525_v26 = vmul.f32 0.044715, %v11305_v49  ;;  %v4805_v63 = vmul.f32 0.7978846, %v4733_v39  ;;  %v4436_v54 = vmul.f32 0.5, %v11200_v44  ;;  %v4444_v28 = vmul.f32 0.5, %v11249_v62 }
 0x7b1   : > { %v8834_v33 = vpop.eup %8833  ;;  %v4532_v35 = vmul.f32 0.044715, %v11314_v18  ;;  %v11334_v8 = vmul.f32 0.7978846, %v4731_v6  ;;  %v11337_v41 = vmul.f32 0.5, %v10947_v0  ;;  %v4746_v6 = vadd.f32 %v4674_v17, %v11247_v56 }
 0x7b2   : > { %v4597_v13 = vmul.f32 %v4525_v26, %v11305_v49  ;;  %v4948_v32 = vadd.f32 1.0, %v8834_v33  ;;  %8837 = vtanh.f32 %v4805_v63  ;;  %v5012_v55 = vmul.f32 %v4940_v15, %v4436_v54  ;;  %v8836_v47 = vpop.eup %8835 }
 0x7b3   : > { %v4604_v10 = vmul.f32 %v4532_v35, %v11314_v18  ;;  %v4109_v23 = vpop.f32.mrf.mxu2  ;;  %v4142_v45 = vpop.f32.mrf.mxu3  ;;  %v4812_v58 = vmul.f32 0.7978846, %v4740_v24  ;;  %v11343_v33 = vmul.f32 0.5, %v11247_v56  ;;  %v11351_v54 = vmul.f32 0.7978846, %v4738_v51 }
 0x7b4   : > { %v4110_v31 = vadd.f32 %v4109_v23, %v11135_v29  ;;  %v4046_v44 = vpop.f32.mrf.mxu0  ;;  %v4079_v39 = vpop.f32.mrf.mxu1  ;;  %v5020_v26 = vmul.f32 %v4948_v32, %v4444_v28  ;;  %v4669_v62 = vmul.f32 %v4597_v13, %v11305_v49  ;;  %v11354_v28 = vmul.f32 0.5, %v10972_v14 }
 0x7b5   : > { %v4047_v63 = vadd.f32 %v4046_v44, %v11098_v1  ;;  %12631 = vst [vmem:[#allocation43_spill] sm:$0xff] %v11343_v33  ;;  %v4676_v15 = vmul.f32 %v4604_v10, %v11314_v18  ;;  %v4941_v13 = vadd.f32 1.0, %v8836_v47  ;;  %v4739_v56 = vadd.f32 %v4667_v2, %v10972_v14  ;;  %v8538_v33 = vld [vmem:[%s9278_s22 + $0x154] sm:$0xf0] }
 0x7b6   : > { %v11347_v0 = vadd.f32 %v4142_v45, %v4110_v31  ;;  %v11349_v35 = vpack.c.bf16 %v5020_v26, %v5012_v55  ;;  %12633 = vst [vmem:[#allocation45_spill] sm:$0xff] %v11354_v28  ;;  %v4437_v51 = vmul.f32 0.5, %v11240_v16  ;;  %8839 = vtanh.f32 %v4812_v58 }
 0x7b7   : > { %v11356_v24 = vadd.f32 %v4079_v39, %v4047_v63  ;;  %4299 = vmatmul.bf16.gmra.mxu0 %v10744_v52  ;;  %4332 = vmatmul.bf16.gmra.mxu1 %v10746_v61  ;;  %v4748_v17 = vadd.f32 %v4676_v15, %v11314_v18  ;;  %v4741_v23 = vadd.f32 %v4669_v62, %v11305_v49  ;;  %v4445_v55 = vmul.f32 0.5, %v11271_v27 }
 0x7b8   : > { %12632 = vst [vmem:[#allocation44_spill] sm:$0xff] %v11349_v35  ;;  %v8838_v32 = vpop.eup %8837  ;;  %v4533_v10 = vmul.f32 0.044715, %v11347_v0  ;;  %4365 = vmatmul.bf16.gmra.mxu2 %v10744_v52  ;;  %4398 = vmatmul.bf16.gmra.mxu3 %v10746_v61  ;;  %v11370_v31 = vmul.f32 0.7978846, %v4746_v6  ;;  %v11373_v52 = vmul.f32 0.5, %v11291_v30  ;;  %v5013_v27 = vmul.f32 %v4941_v13, %v4437_v51 }
 0x7b9   : > { %v4540_v45 = vmul.f32 0.044715, %v11356_v24  ;;  %v4949_v47 = vadd.f32 1.0, %v8838_v32  ;;  %v4820_v14 = vmul.f32 0.7978846, %v4748_v17  ;;  %v11376_v61 = vmul.f32 0.5, %v11000_v3 }
 0x7ba   : > { %v4605_v2 = vmul.f32 %v4533_v10, %v11347_v0  ;;  %12634 = vst [vmem:[#allocation46_spill] sm:$0xff] %v11373_v52  ;;  %v11380_v6 = vmul.f32 0.7978846, %v4739_v56  ;;  %v4813_v17 = vmul.f32 0.7978846, %v4741_v23 }
 0x7bb   : > { %12635 = vst [vmem:[#allocation47_spill] sm:$0xff] %v11376_v61  ;;  %v4612_v16 = vmul.f32 %v4540_v45, %v11356_v24  ;;  %v4112_v58 = vpop.f32.mrf.mxu2  ;;  %v4145_v44 = vpop.f32.mrf.mxu3  ;;  %v5021_v39 = vmul.f32 %v4949_v47, %v4445_v55  ;;  %8841 = vtanh.f32 %v4820_v14  ;;  %v7908_v10 = vld [vmem:[%s9278_s22 + $0x170] sm:$0xf]  ;;  %v8542_v45 = vld [vmem:[%s9278_s22 + $0x174] sm:$0xf0] }
 0x7bc   : > { %v4113_v26 = vadd.f32 %v4112_v58, %v11135_v29  ;;  %v4048_v62 = vpop.f32.mrf.mxu0  ;;  %v4081_v63 = vpop.f32.mrf.mxu1  ;;  %v4677_v15 = vmul.f32 %v4605_v2, %v11347_v0  ;;  %v7972_v13 = vld [vmem:[%s9278_s22 + $0x1f0] sm:$0xf]  ;;  %8843 = vtanh.f32 %v11317_v20  ;;  %v7909_v14 = vor.u32 %v8542_v45, %v7908_v10  ;;  %v8558_v56 = vld [vmem:[%s9278_s22 + $0x1f4] sm:$0xf0] }
 0x7bd   : > { %v4049_v32 = vadd.f32 %v4048_v62, %v11098_v1  ;;  %v11388_v51 = vpack.c.bf16 %v5021_v39, %v5013_v27  ;;  %v8840_v55 = vpop.eup %8839  ;;  %v7780_v58 = vld [vmem:[%s9278_s22 + $0x70] sm:$0xf]  ;;  %v8510_v61 = vld [vmem:[%s9278_s22 + $0x74] sm:$0xf0]  ;;  %v4684_v2 = vmul.f32 %v4612_v16, %v11356_v24  ;;  %v11398_v62 = vmul.f32 0.044715, %v11012_v9 }
 0x7be   : > { %v11390_v47 = vadd.f32 %v4145_v44, %v4113_v26  ;;  %v4749_v23 = vadd.f32 %v4677_v15, %v11347_v0  ;;  %v7973_v20 = vor.u32 %v8558_v56, %v7972_v13  ;;  %v7781_v27 = vor.u32 %v8510_v61, %v7780_v58  ;;  %v7844_v39 = vld [vmem:[%s9278_s22 + $0xf0] sm:$0xf]  ;;  %5946 = vmatpush.bf16.msrb.mxu2 %v7909_v14  ;;  %v8508_v13 = vld [vmem:[%s9278_s22 + $0x64] sm:$0xf0] }
 0x7bf   : > { %12636 = vst [vmem:[#allocation48_spill] sm:$0xff] %v11388_v51  ;;  %v11400_v35 = vadd.f32 %v4081_v63, %v4049_v32  ;;  %v8526_v51 = vld [vmem:[%s9278_s22 + $0xf4] sm:$0xf0]  ;;  %v4452_v26 = vmul.f32 0.5, %v11276_v48  ;;  %8845 = vtanh.f32 %v4813_v17  ;;  %v7772_v63 = vld [vmem:[%s9278_s22 + $0x60] sm:$0xf]  ;;  %v11409_v61 = vmul.f32 %v11194_v59, %v11166_v57 }
 0x7c0   : > { %v7845_v44 = vor.u32 %v8526_v51, %v7844_v39  ;;  %v4821_v15 = vmul.f32 0.7978846, %v4749_v23  ;;  %5979 = vmatpush.bf16.msrb.mxu3 %v7973_v20  ;;  %5880 = vmatpush.bf16.msrb.mxu0 %v7781_v27  ;;  %v4460_v32 = vmul.f32 0.5, %v11314_v18  ;;  %v4956_v45 = vadd.f32 1.0, %v8840_v55  ;;  %v7836_v51 = vld [vmem:[%s9278_s22 + $0xe0] sm:$0xf] }
 0x7c1   : > { %v8842_v16 = vpop.eup %8841  ;;  %v4548_v10 = vmul.f32 0.044715, %v11400_v35  ;;  %v11414_v48 = vmul.f32 %v11312_v46, %v11291_v30  ;;  %v11418_v17 = vadd.f32 %v11030_v50, %v10881_v4  ;;  %v8524_v14 = vld [vmem:[%s9278_s22 + $0xe4] sm:$0xf0]  ;;  %v11425_v57 = vmul.f32 %v11232_v22, %v11174_v42  ;;  %v7900_v50 = vld [vmem:[%s9278_s22 + $0x160] sm:$0xf] }
 0x7c2   : > { %5913 = vmatpush.bf16.msrb.mxu1 %v7845_v44  ;;  %v4756_v59 = vadd.f32 %v4684_v2, %v11356_v24  ;;  %v8844_v18 = vpop.eup %8843  ;;  %v7773_v58 = vor.u32 %v8508_v13, %v7772_v63  ;;  %v7837_v4 = vor.u32 %v8524_v14, %v7836_v51  ;;  %v8540_v23 = vld [vmem:[%s9278_s22 + $0x164] sm:$0xf0]  ;;  %v7964_v20 = vld [vmem:[%s9278_s22 + $0x1e0] sm:$0xf]  ;;  %8847 = vtanh.f32 %v4821_v15  ;;  %v7764_v51 = vld [vmem:[%s9278_s22 + $0x50] sm:$0xf] }
 0x7c3   : > { %v4620_v46 = vmul.f32 %v4548_v10, %v11400_v35  ;;  %v4114_v55 = vpop.f32.mrf.mxu2  ;;  %v4147_v56 = vpop.f32.mrf.mxu3  ;;  %v4541_v42 = vmul.f32 0.044715, %v11390_v47  ;;  %v7901_v39 = vor.u32 %v8540_v23, %v7900_v50  ;;  %v8556_v44 = vld [vmem:[%s9278_s22 + $0x1e4] sm:$0xf0]  ;;  %v4964_v10 = vadd.f32 1.0, %v8842_v16 }
 0x7c4   : > { %v4115_v22 = vadd.f32 %v4114_v55, %v11135_v29  ;;  %v4051_v2 = vpop.f32.mrf.mxu0  ;;  %v4084_v27 = vpop.f32.mrf.mxu1  ;;  %5881 = vmatpush.bf16.msrb.mxu0 %v7773_v58  ;;  %v7965_v13 = vor.u32 %v8556_v44, %v7964_v20  ;;  %v8506_v14 = vld [vmem:[%s9278_s22 + $0x54] sm:$0xf0]  ;;  %v7828_v52 = vld [vmem:[%s9278_s22 + $0xd0] sm:$0xf]  ;;  %v5028_v15 = vmul.f32 %v4956_v45, %v4452_v26  ;;  %v11451_v20 = vadd.f32 1.0, %v8844_v18 }
 0x7c5   : > { %v4052_v63 = vadd.f32 %v4051_v2, %v11098_v1  ;;  %v4692_v28 = vmul.f32 %v4620_v46, %v11400_v35  ;;  %v8846_v55 = vpop.eup %8845  ;;  %5947 = vmatpush.bf16.msrb.mxu2 %v7901_v39  ;;  %v7765_v50 = vor.u32 %v8506_v14, %v7764_v51  ;;  %v8522_v16 = vld [vmem:[%s9278_s22 + $0xd4] sm:$0xf0]  ;;  %v7892_v23 = vld [vmem:[%s9278_s22 + $0x150] sm:$0xf]  ;;  %v5036_v1 = vmul.f32 %v4964_v10, %v4460_v32  ;;  %v8504_v39 = vld [vmem:[%s9278_s22 + $0x44] sm:$0xf0] }
 0x7c6   : > { %v11440_v38 = vadd.f32 %v4147_v56, %v4115_v22  ;;  %5914 = vmatpush.bf16.msrb.mxu1 %v7837_v4  ;;  %v7829_v26 = vor.u32 %v8522_v16, %v7828_v52  ;;  %v7893_v45 = vor.u32 %v8538_v33, %v7892_v23  ;;  %v7956_v46 = vld [vmem:[%s9278_s22 + $0x1d0] sm:$0xf]  ;;  %v8554_v56 = vld [vmem:[%s9278_s22 + $0x1d4] sm:$0xf0]  ;;  %v4453_v22 = vmul.f32 0.5, %v11305_v49  ;;  %5980 = vmatpush.bf16.msrb.mxu3 %v7965_v13 }
 0x7c7   : > { %v11445_v58 = vadd.f32 %v4084_v27, %v4052_v63  ;;  %4304 = vmatmul.bf16.gmra.mxu0 %v10765_v7  ;;  %4337 = vmatmul.bf16.gmra.mxu1 %v10767_v34  ;;  %v11456_v32 = vpack.c.bf16 %v5036_v1, %v5028_v15  ;;  %v4828_v52 = vmul.f32 0.7978846, %v4756_v59  ;;  %v4613_v2 = vmul.f32 %v4541_v42, %v11390_v47  ;;  %v7756_v27 = vld [vmem:[%s9278_s22 + $0x40] sm:$0xf]  ;;  %v8520_v10 = vld [vmem:[%s9278_s22 + $0xc4] sm:$0xf0] }
 0x7c8   : > { %v4549_v4 = vmul.f32 0.044715, %v11440_v38  ;;  %4370 = vmatmul.bf16.gmra.mxu2 %v10765_v7  ;;  %4403 = vmatmul.bf16.gmra.mxu3 %v10767_v34  ;;  %v8848_v33 = vpop.eup %8847  ;;  %v7957_v18 = vor.u32 %v8554_v56, %v7956_v46  ;;  %v4461_v7 = vmul.f32 0.5, %v11347_v0  ;;  %v4957_v34 = vadd.f32 1.0, %v8846_v55  ;;  %v7820_v49 = vld [vmem:[%s9278_s22 + $0xc0] sm:$0xf] }
 0x7c9   : > { %12637 = vst [vmem:[#allocation49_spill] sm:$0xff] %v11456_v32  ;;  %5882 = vmatpush.bf16.msrb.mxu0 %v7765_v50  ;;  %5948 = vmatpush.bf16.msrb.mxu2 %v7893_v45  ;;  %v7757_v44 = vor.u32 %v8504_v39, %v7756_v27  ;;  %v7884_v59 = vld [vmem:[%s9278_s22 + $0x140] sm:$0xf]  ;;  %v11468_v42 = vmul.f32 %v11308_v5, %v11177_v40  ;;  %v8536_v55 = vld [vmem:[%s9278_s22 + $0x144] sm:$0xf0]  ;;  %8849 = vtanh.f32 %v4828_v52 }
 0x7ca   : > { %5915 = vmatpush.bf16.msrb.mxu1 %v7829_v26  ;;  %v11472_v63 = vmul.f32 %v11414_v48, %v11291_v30  ;;  %v11476_v0 = vadd.f32 %v11032_v36, %v11418_v17  ;;  %v4621_v13 = vmul.f32 %v4549_v4, %v11440_v38  ;;  %v7821_v15 = vor.u32 %v8520_v10, %v7820_v49  ;;  %v7948_v50 = vld [vmem:[%s9278_s22 + $0x1c0] sm:$0xf]  ;;  %v8552_v40 = vld [vmem:[%s9278_s22 + $0x1c4] sm:$0xf0]  ;;  %v7748_v26 = vld [vmem:[%s9278_s22 + $0x30] sm:$0xf] }
 0x7cb   : > { %v4117_v51 = vpop.f32.mrf.mxu2  ;;  %v4150_v14 = vpop.f32.mrf.mxu3  ;;  %v4764_v5 = vadd.f32 %v4692_v28, %v11400_v35  ;;  %v7885_v36 = vor.u32 %v8536_v55, %v7884_v59  ;;  %v4965_v17 = vadd.f32 1.0, %v8848_v33  ;;  %5981 = vmatpush.bf16.msrb.mxu3 %v7957_v18  ;;  %v7949_v1 = vor.u32 %v8552_v40, %v7948_v50  ;;  %v8502_v45 = vld [vmem:[%s9278_s22 + $0x34] sm:$0xf0]  ;;  %v7812_v46 = vld [vmem:[%s9278_s22 + $0xb0] sm:$0xf]  ;;  %v11501_v59 = vld [vmem:[%s9273_s0] sm:$0xff] }
 0x7cc   : > { %v4118_v48 = vadd.f32 %v4117_v51, %v11135_v29  ;;  %v4053_v16 = vpop.f32.mrf.mxu0  ;;  %v4086_v23 = vpop.f32.mrf.mxu1  ;;  %v5029_v56 = vmul.f32 %v4957_v34, %v4453_v22  ;;  %v4685_v28 = vmul.f32 %v4613_v2, %v11390_v47  ;;  %v7749_v4 = vor.u32 %v8502_v45, %v7748_v26  ;;  %v8518_v33 = vld [vmem:[%s9278_s22 + $0xb4] sm:$0xf0]  ;;  %v7876_v27 = vld [vmem:[%s9278_s22 + $0x130] sm:$0xf]  ;;  %v7804_v55 = vld [vmem:[%s9278_s22 + $0xa0] sm:$0xf] }
 0x7cd   : > { %5883 = vmatpush.bf16.msrb.mxu0 %v7757_v44  ;;  %5949 = vmatpush.bf16.msrb.mxu2 %v7885_v36  ;;  %v8534_v52 = vld [vmem:[%s9278_s22 + $0x134] sm:$0xf0]  ;;  %8851 = vtanh.f32 %v11321_v19  ;;  %v5037_v18 = vmul.f32 %v4965_v17, %v4461_v7  ;;  %v7813_v39 = vor.u32 %v8518_v33, %v7812_v46  ;;  %v7940_v22 = vld [vmem:[%s9278_s22 + $0x1b0] sm:$0xf]  ;;  %v4836_v2 = vmul.f32 0.7978846, %v4764_v5 }
 0x7ce   : > { %v11488_v29 = vadd.f32 %v4150_v14, %v4118_v48  ;;  %5916 = vmatpush.bf16.msrb.mxu1 %v7821_v15  ;;  %v7877_v44 = vor.u32 %v8534_v52, %v7876_v27  ;;  %v8550_v34 = vld [vmem:[%s9278_s22 + $0x1b4] sm:$0xf0]  ;;  %v4693_v49 = vmul.f32 %v4621_v13, %v11440_v38  ;;  %v11498_v10 = vmul.f32 0.044715, %v11476_v0  ;;  %v7740_v13 = vld [vmem:[%s9278_s22 + $0x20] sm:$0xf] }
 0x7cf   : > { %v11504_v51 = vperm.slane %v11501_v59, 4  ;;  %v11506_v19 = vpack.c.bf16 %v5037_v18, %v5029_v56  ;;  %v11509_v7 = vmul.f32 0.5, %v11012_v9  ;;  %5982 = vmatpush.bf16.msrb.mxu3 %v7949_v1  ;;  %v7941_v14 = vor.u32 %v8550_v34, %v7940_v22  ;;  %v8500_v15 = vld [vmem:[%s9278_s22 + $0x24] sm:$0xf0]  ;;  %v8850_v40 = vpop.eup %8849  ;;  %v7868_v16 = vld [vmem:[%s9278_s22 + $0x120] sm:$0xf] }
 0x7d0   : > { %v4995_v50 = vmul.f32 %v11215_v25, %v11169_v11  ;;  %8853 = vtanh.f32 %v4836_v2  ;;  %v7741_v5 = vor.u32 %v8500_v15, %v7740_v13  ;;  %v8516_v48 = vld [vmem:[%s9278_s22 + $0xa4] sm:$0xf0]  ;;  %v11521_v36 = vpack.c.bf16 %v11425_v57, %v11409_v61  ;;  %v7932_v45 = vld [vmem:[%s9278_s22 + $0x1a0] sm:$0xf]  ;;  %v7732_v56 = vld [vmem:[%s9278_s22 + $0x10] sm:$0xf] }
 0x7d1   : > { %12638 = vst [vmem:[#allocation50_spill] sm:$0xff] %v11506_v19  ;;  %5884 = vmatpush.bf16.msrb.mxu0 %v7749_v4  ;;  %5950 = vmatpush.bf16.msrb.mxu2 %v7877_v44  ;;  %v8532_v23 = vld [vmem:[%s9278_s22 + $0x124] sm:$0xf0]  ;;  %v4757_v17 = vadd.f32 %v4685_v28, %v11390_v47  ;;  %v7805_v1 = vor.u32 %v8516_v48, %v7804_v55  ;;  %v8498_v52 = vld [vmem:[%s9278_s22 + $0x14] sm:$0xf0]  ;;  %8855 = vtanh.f32 %v11334_v8 }
 0x7d2   : > { %5917 = vmatpush.bf16.msrb.mxu1 %v7813_v39  ;;  %v7869_v26 = vor.u32 %v8532_v23, %v7868_v16  ;;  %v8548_v46 = vld [vmem:[%s9278_s22 + $0x1a4] sm:$0xf0]  ;;  %v11529_v4 = vmul.f32 %v11328_v60, %v11192_v21  ;;  %v4765_v33 = vadd.f32 %v4693_v49, %v11440_v38  ;;  %v4610_v57 = vmul.f32 %v11325_v12, %v11000_v3  ;;  %v7796_v18 = vld [vmem:[%s9278_s22 + $0x90] sm:$0xf]  ;;  %v8514_v39 = vld [vmem:[%s9278_s22 + $0x94] sm:$0xf0] }
 0x7d3   : > { %v4119_v11 = vpop.f32.mrf.mxu2  ;;  %v4152_v25 = vpop.f32.mrf.mxu3  ;;  %v11538_v44 = vpack.c.bf16 %v11468_v42, %v4995_v50  ;;  %v4747_v21 = vadd.f32 %v11472_v63, %v11291_v30  ;;  %5983 = vmatpush.bf16.msrb.mxu3 %v7941_v14  ;;  %v7933_v12 = vor.u32 %v8548_v46, %v7932_v45  ;;  %v7733_v22 = vor.u32 %v8498_v52, %v7732_v56  ;;  %v7860_v34 = vld [vmem:[%s9278_s22 + $0x110] sm:$0xf]  ;;  %v8530_v2 = vld [vmem:[%s9278_s22 + $0x114] sm:$0xf0]  ;;  %v7724_v23 = vld [vmem:[%s9278_s22] sm:$0xf] }
 0x7d4   : > { %v8852_v61 = vpop.eup %8851  ;;  %v4163_v28 = vpop.f32.mrf.mxu0  ;;  %v4972_v49 = vadd.f32 1.0, %v8850_v40  ;;  %v7797_v13 = vor.u32 %v8514_v39, %v7796_v18  ;;  %v7861_v42 = vor.u32 %v8530_v2, %v7860_v34  ;;  %v7924_v15 = vld [vmem:[%s9278_s22 + $0x190] sm:$0xf]  ;;  %v8546_v55 = vld [vmem:[%s9278_s22 + $0x194] sm:$0xf0]  ;;  %8857 = vtanh.f32 %v11351_v54 }
 0x7d5   : > { %v4196_v27 = vpop.f32.mrf.mxu1  ;;  %v4164_v60 = vadd.f32 %v4163_v28, %v11504_v51  ;;  %5885 = vmatpush.bf16.msrb.mxu0 %v7741_v5  ;;  %5951 = vmatpush.bf16.msrb.mxu2 %v7869_v26  ;;  %v4829_v8 = vmul.f32 0.7978846, %v4757_v17  ;;  %v11553_v63 = vadd.f32 1.0, %v8852_v61  ;;  %v4468_v14 = vmul.f32 0.5, %v11356_v24  ;;  %v7788_v11 = vld [vmem:[%s9278_s22 + $0x80] sm:$0xf] }
 0x7d6   : > { %5918 = vmatpush.bf16.msrb.mxu1 %v7805_v1  ;;  %v8854_v50 = vpop.eup %8853  ;;  %v4837_v40 = vmul.f32 0.7978846, %v4765_v33  ;;  %v11559_v54 = vperm.slane %v11501_v59, 5  ;;  %v4476_v5 = vmul.f32 0.5, %v11400_v35  ;;  %v7925_v24 = vor.u32 %v8546_v55, %v7924_v15  ;;  %v8512_v25 = vld [vmem:[%s9278_s22 + $0x84] sm:$0xf0] }
 0x7d7   : > { %v11549_v30 = vadd.f32 %v4196_v27, %v4164_v60  ;;  %4309 = vmatmul.bf16.gmra.mxu0 %v10785_v53  ;;  %4342 = vmatmul.bf16.gmra.mxu1 %v10787_v37  ;;  %v4980_v48 = vadd.f32 1.0, %v8854_v50  ;;  %8859 = vtanh.f32 %v4829_v8  ;;  %v4819_v17 = vmul.f32 0.7978846, %v4747_v21  ;;  %v7852_v27 = vld [vmem:[%s9278_s22 + $0x100] sm:$0xf] }
 0x7d8   : > { %4375 = vmatmul.bf16.gmra.mxu2 %v10785_v53  ;;  %4408 = vmatmul.bf16.gmra.mxu3 %v10787_v37  ;;  %8861 = vtanh.f32 %v4837_v40  ;;  %v8856_v53 = vpop.eup %8855  ;;  %v8496_v37 = vld [vmem:[%s9278_s22 + $0x4] sm:$0xf0]  ;;  %v4682_v35 = vmul.f32 %v4610_v57, %v11000_v3  ;;  %v5044_v1 = vmul.f32 %v4972_v49, %v4468_v14  ;;  %v4611_v45 = vmul.f32 %v11398_v62, %v11012_v9  ;;  %v7916_v18 = vld [vmem:[%s9278_s22 + $0x180] sm:$0xf] }
 0x7d9   : > { %v4494_v16 = vmul.f32 0.044715, %v11549_v30  ;;  %5984 = vmatpush.bf16.msrb.mxu3 %v7933_v12  ;;  %5886 = vmatpush.bf16.msrb.mxu0 %v7733_v22  ;;  %8863 = vtanh.f32 %v11370_v31  ;;  %v5052_v26 = vmul.f32 %v4980_v48, %v4476_v5  ;;  %v7725_v61 = vor.u32 %v8496_v37, %v7724_v23  ;;  %v8528_v52 = vld [vmem:[%s9278_s22 + $0x104] sm:$0xf0]  ;;  %v12641_v14 = vld [vmem:[#allocation34_spill] sm:$0xff] }
 0x7da   : > { %5919 = vmatpush.bf16.msrb.mxu1 %v7797_v13  ;;  %5952 = vmatpush.bf16.msrb.mxu2 %v7861_v42  ;;  %v7789_v28 = vor.u32 %v8512_v25, %v7788_v11  ;;  %v8858_v39 = vpop.eup %8857  ;;  %v7853_v60 = vor.u32 %v8528_v52, %v7852_v27  ;;  %v8544_v12 = vld [vmem:[%s9278_s22 + $0x184] sm:$0xf0]  ;;  %8865 = vtanh.f32 %v11380_v6  ;;  %v4618_v15 = vmul.f32 %v11498_v10, %v11476_v0  ;;  %v12642_v11 = vld [vmem:[#allocation38_spill] sm:$0xff]  ;;  %v12643_v27 = vld [vmem:[#allocation40_spill] sm:$0xff] }
 0x7db   : > { %v4566_v46 = vmul.f32 %v4494_v16, %v11549_v30  ;;  %v4229_v56 = vpop.f32.mrf.mxu2  ;;  %v4262_v33 = vpop.f32.mrf.mxu3  ;;  %v12639_v22 = vld [vmem:[#allocation39_spill] sm:$0xff]  ;;  %v11579_v62 = vpack.c.bf16 %v5052_v26, %v5044_v1  ;;  %v7917_v13 = vor.u32 %v8544_v12, %v7916_v18  ;;  %v11589_v8 = vmul.f32 0.5, %v11476_v0 }
 0x7dc   : > { %v4230_v31 = vadd.f32 %v4229_v56, %v11559_v54  ;;  %v4165_v21 = vpop.f32.mrf.mxu0  ;;  %v5018_v34 = vmul.f32 %v11451_v20, %v12639_v22  ;;  %v4947_v20 = vadd.f32 1.0, %v8856_v53  ;;  %v3983_v40 = vadd.f32 %v12641_v14, %v10891_v43  ;;  %v12646_v14 = vld [vmem:[#allocation14_spill] sm:$0xff] }
 0x7dd   : > { %v4198_v57 = vpop.f32.mrf.mxu1  ;;  %12640 = vst [vmem:[#allocation39_spill] sm:$0xff] %v11579_v62  ;;  %v4638_v2 = vmul.f32 %v4566_v46, %v11549_v30  ;;  %v4166_v49 = vadd.f32 %v4165_v21, %v11504_v51  ;;  %5985 = vmatpush.bf16.msrb.mxu3 %v7925_v24  ;;  %5887 = vmatpush.bf16.msrb.mxu0 %v7725_v61  ;;  %v8860_v42 = vpop.eup %8859  ;;  %v4469_v24 = vmul.f32 0.5, %v11390_v47  ;;  %v4477_v23 = vmul.f32 0.5, %v11440_v38 }
 0x7de   : > { %v11586_v55 = vadd.f32 %v4262_v33, %v4230_v31  ;;  %5920 = vmatpush.bf16.msrb.mxu1 %v7789_v28  ;;  %5953 = vmatpush.bf16.msrb.mxu2 %v7853_v60  ;;  %v8862_v50 = vpop.eup %8861  ;;  %v4973_v6 = vadd.f32 1.0, %v8860_v42  ;;  %v5011_v25 = vmul.f32 %v11553_v63, %v12642_v11  ;;  %8867 = vtanh.f32 %v4819_v17  ;;  %v12644_v63 = vld [vmem:[#allocation35_spill] sm:$0xff] }
 0x7df   : > { %v4710_v5 = vadd.f32 %v4638_v2, %v11549_v30  ;;  %v11594_v48 = vadd.f32 %v4198_v57, %v4166_v49  ;;  %v8864_v16 = vpop.eup %8863  ;;  %v4981_v53 = vadd.f32 1.0, %v8862_v50  ;;  %v4683_v43 = vmul.f32 %v4611_v45, %v11012_v9 }
 0x7e0   : > { %v4495_v10 = vmul.f32 0.044715, %v11586_v55  ;;  %v4754_v26 = vadd.f32 %v4682_v35, %v11000_v3  ;;  %v5045_v46 = vmul.f32 %v4973_v6, %v4469_v24  ;;  %v8866_v33 = vpop.eup %8865  ;;  %v5019_v52 = vmul.f32 %v4947_v20, %v12643_v27 }
 0x7e1   : > { %v4502_v37 = vmul.f32 0.044715, %v11594_v48  ;;  %5986 = vmatpush.bf16.msrb.mxu3 %v7917_v13  ;;  %v5053_v56 = vmul.f32 %v4981_v53, %v4477_v23  ;;  %v4782_v47 = vmul.f32 0.7978846, %v4710_v5  ;;  %v4690_v18 = vmul.f32 %v4618_v15, %v11476_v0 }
 0x7e2   : > { %v4567_v1 = vmul.f32 %v4495_v10, %v11586_v55  ;;  %v11609_v17 = vadd.f32 %v12644_v63, %v3983_v40  ;;  %v4954_v12 = vadd.f32 1.0, %v8858_v39  ;;  %v4755_v22 = vadd.f32 %v4683_v43, %v11012_v9  ;;  %v12647_v40 = vld [vmem:[#allocation33_spill] sm:$0xff] }
 0x7e3   : > { %v4574_v38 = vmul.f32 %v4502_v37, %v11594_v48  ;;  %v4231_v61 = vpop.f32.mrf.mxu2  ;;  %v4264_v28 = vpop.f32.mrf.mxu3  ;;  %v11613_v21 = vpack.c.bf16 %v5053_v56, %v5045_v46  ;;  %v11622_v13 = vpack.c.bf16 %v5018_v34, %v11529_v4  ;;  %v4826_v42 = vmul.f32 0.7978846, %v4754_v26 }
 0x7e4   : > { %v4639_v45 = vmul.f32 %v4567_v1, %v11586_v55  ;;  %v4232_v31 = vadd.f32 %v4231_v61, %v11559_v54  ;;  %v4168_v3 = vpop.f32.mrf.mxu0  ;;  %v8868_v15 = vpop.eup %8867  ;;  %8869 = vtanh.f32 %v4782_v47  ;;  %v4762_v9 = vadd.f32 %v4690_v18, %v11476_v0 }
 0x7e5   : > { %v4201_v35 = vpop.f32.mrf.mxu1  ;;  %12645 = vst [vmem:[#allocation34_spill] sm:$0xff] %v11613_v21  ;;  %v4646_v57 = vmul.f32 %v4574_v38, %v11594_v48  ;;  %v4169_v60 = vadd.f32 %v4168_v3, %v11504_v51  ;;  %v4547_v39 = vmul.f32 0.044715, %v11609_v17  ;;  %v11634_v4 = vpack.c.bf16 %v5019_v52, %v5011_v25  ;;  %v12650_v3 = vld [vmem:[#allocation37_spill] sm:$0xff] }
 0x7e6   : > { %v4711_v2 = vadd.f32 %v4639_v45, %v11586_v55  ;;  %v11619_v49 = vadd.f32 %v4264_v28, %v4232_v31  ;;  %v4962_v34 = vadd.f32 1.0, %v8864_v16  ;;  %v11638_v24 = vmul.f32 %v4954_v12, %v11337_v41  ;;  %v12649_v28 = vld [vmem:[#allocation36_spill] sm:$0xff] }
 0x7e7   : > { %v4718_v20 = vadd.f32 %v4646_v57, %v11594_v48  ;;  %v11625_v50 = vadd.f32 %v4201_v35, %v4169_v60  ;;  %4314 = vmatmul.bf16.gmra.mxu0 %v12646_v14  ;;  %4347 = vmatmul.bf16.gmra.mxu1 %v12647_v40  ;;  %v4827_v23 = vmul.f32 0.7978846, %v4755_v22  ;;  %v11641_v37 = vadd.f32 1.0, %v8866_v33  ;;  %v12648_v33 = vld [vmem:[#allocation43_spill] sm:$0xff] }
 0x7e8   : > { %v4503_v5 = vmul.f32 0.044715, %v11619_v49  ;;  %4380 = vmatmul.bf16.gmra.mxu2 %v12646_v14  ;;  %4413 = vmatmul.bf16.gmra.mxu3 %v12647_v40  ;;  %v4783_v53 = vmul.f32 0.7978846, %v4711_v2  ;;  %8871 = vtanh.f32 %v4826_v42  ;;  %v4834_v1 = vmul.f32 0.7978846, %v4762_v9 }
 0x7e9   : > { %v4790_v6 = vmul.f32 0.7978846, %v4718_v20  ;;  %v4510_v10 = vmul.f32 0.044715, %v11625_v50  ;;  %v11645_v16 = vmul.f32 0.5, %v11609_v17  ;;  %v4619_v26 = vmul.f32 %v4547_v39, %v11609_v17 }
 0x7ea   : > { %v4575_v0 = vmul.f32 %v4503_v5, %v11619_v49  ;;  %v11651_v38 = vmul.f32 %v4962_v34, %v12648_v33  ;;  %v8870_v61 = vpop.eup %8869  ;;  %v4554_v27 = vmul.f32 0.044715, %v12649_v28  ;;  %v11659_v31 = vadd.f32 1.0, %v8868_v15 }
 0x7eb   : > { %8873 = vtanh.f32 %v4790_v6  ;;  %v4582_v11 = vmul.f32 %v4510_v10, %v11625_v50  ;;  %v4234_v43 = vpop.f32.mrf.mxu2  ;;  %v4267_v25 = vpop.f32.mrf.mxu3  ;;  %v4555_v35 = vmul.f32 0.044715, %v12650_v3  ;;  %v4926_v22 = vadd.f32 1.0, %v8870_v61 }
 0x7ec   : > { %v4647_v41 = vmul.f32 %v4575_v0, %v11619_v49  ;;  %v4235_v46 = vadd.f32 %v4234_v43, %v11559_v54  ;;  %v4170_v56 = vpop.f32.mrf.mxu0  ;;  %8875 = vtanh.f32 %v4827_v23  ;;  %v4691_v20 = vmul.f32 %v4619_v26, %v11609_v17 }
 0x7ed   : > { %v4203_v47 = vpop.f32.mrf.mxu1  ;;  %v4171_v52 = vadd.f32 %v4170_v56, %v11504_v51  ;;  %v4654_v18 = vmul.f32 %v4582_v11, %v11625_v50  ;;  %8877 = vtanh.f32 %v4783_v53  ;;  %v4626_v40 = vmul.f32 %v4554_v27, %v12649_v28 }
 0x7ee   : > { %v4719_v63 = vadd.f32 %v4647_v41, %v11619_v49  ;;  %v11657_v45 = vadd.f32 %v4267_v25, %v4235_v46  ;;  %8879 = vtanh.f32 %v4834_v1  ;;  %v11665_v12 = vpop.eup %8871  ;;  %v4556_v15 = vmul.f32 0.044715, %v11445_v58 }
 0x7ef   : > { %v11662_v57 = vadd.f32 %v4203_v47, %v4171_v52  ;;  %v4726_v60 = vadd.f32 %v4654_v18, %v11625_v50  ;;  %v4422_v9 = vmul.f32 0.5, %v11549_v30  ;;  %v4430_v5 = vmul.f32 0.5, %v11594_v48 }
 0x7f0   : > { %v4791_v2 = vmul.f32 0.7978846, %v4719_v63  ;;  %v4511_v42 = vmul.f32 0.044715, %v11657_v45  ;;  %v4627_v23 = vmul.f32 %v4555_v35, %v12650_v3  ;;  %v4557_v53 = vmul.f32 0.044715, %v11488_v29 }
 0x7f1   : > { %v8874_v14 = vpop.eup %8873  ;;  %v4518_v39 = vmul.f32 0.044715, %v11662_v57  ;;  %v4798_v25 = vmul.f32 0.7978846, %v4726_v60  ;;  %v4998_v41 = vmul.f32 %v4926_v22, %v4422_v9  ;;  %v4763_v61 = vadd.f32 %v4691_v20, %v11609_v17  ;;  %v12652_v9 = vld [vmem:[#allocation42_spill] sm:$0xff] }
 0x7f2   : > { %8881 = vtanh.f32 %v4791_v2  ;;  %v4583_v34 = vmul.f32 %v4511_v42, %v11657_v45  ;;  %v4934_v6 = vadd.f32 1.0, %v8874_v14  ;;  %v11675_v10 = vpop.eup %8875  ;;  %v4698_v27 = vmul.f32 %v4626_v40, %v12649_v28 }
 0x7f3   : > { %v4590_v0 = vmul.f32 %v4518_v39, %v11662_v57  ;;  %v4236_v11 = vpop.f32.mrf.mxu2  ;;  %v4269_v43 = vpop.f32.mrf.mxu3  ;;  %v4628_v18 = vmul.f32 %v4556_v15, %v11445_v58  ;;  %8883 = vtanh.f32 %v4798_v25  ;;  %v4629_v20 = vmul.f32 %v4557_v53, %v11488_v29  ;;  %v12651_v15 = vld [vmem:[#allocation41_spill] sm:$0xff] }
 0x7f4   : > { %v8878_v30 = vpop.eup %8877  ;;  %v4237_v1 = vadd.f32 %v4236_v11, %v11559_v54  ;;  %v4173_v26 = vpop.f32.mrf.mxu0  ;;  %v5006_v46 = vmul.f32 %v4934_v6, %v4430_v5  ;;  %v4655_v56 = vmul.f32 %v4583_v34, %v11657_v45  ;;  %v4423_v14 = vmul.f32 0.5, %v11586_v55 }
 0x7f5   : > { %v4206_v48 = vpop.f32.mrf.mxu1  ;;  %v11682_v47 = vpop.eup %8879  ;;  %v4174_v33 = vadd.f32 %v4173_v26, %v11504_v51  ;;  %v4662_v52 = vmul.f32 %v4590_v0, %v11662_v57  ;;  %v4927_v22 = vadd.f32 1.0, %v8878_v30  ;;  %v4699_v39 = vmul.f32 %v4627_v23, %v12650_v3 }
 0x7f6   : > { %v11689_v63 = vadd.f32 %v4269_v43, %v4237_v1  ;;  %v11691_v35 = vpack.c.bf16 %v5006_v46, %v4998_v41  ;;  %v4727_v60 = vadd.f32 %v4655_v56, %v11657_v45  ;;  %v4431_v5 = vmul.f32 0.5, %v11619_v49 }
 0x7f7   : > { %v11694_v2 = vadd.f32 %v4206_v48, %v4174_v33  ;;  %5888 = vmatmul.bf16.vlgmr.msrb.gmra.mxu0 %v11521_v36  ;;  %5921 = vmatmul.bf16.vlgmr.msrb.gmra.mxu1 %v11538_v44  ;;  %v4734_v17 = vadd.f32 %v4662_v52, %v11662_v57  ;;  %v4770_v53 = vadd.f32 %v4698_v27, %v12649_v28  ;;  %v4835_v46 = vmul.f32 0.7978846, %v4763_v61 }
 0x7f8   : > { %v8882_v42 = vpop.eup %8881  ;;  %v4519_v40 = vmul.f32 0.044715, %v11689_v63  ;;  %5954 = vmatmul.bf16.vlgmr.msrb.gmra.mxu2 %v12651_v15  ;;  %5987 = vmatmul.bf16.vlgmr.msrb.gmra.mxu3 %v12652_v9  ;;  %v4700_v55 = vmul.f32 %v4628_v18, %v11445_v58  ;;  %v4799_v43 = vmul.f32 0.7978846, %v4727_v60  ;;  %v4999_v26 = vmul.f32 %v4927_v22, %v4423_v14 }
 0x7f9   : > { %v4526_v34 = vmul.f32 0.044715, %v11694_v2  ;;  %v4935_v6 = vadd.f32 1.0, %v8882_v42  ;;  %v4806_v0 = vmul.f32 0.7978846, %v4734_v17  ;;  %v4771_v56 = vadd.f32 %v4699_v39, %v12650_v3  ;;  %v8884_v27 = vpop.eup %8883  ;;  %v12653_v42 = vld [vmem:[#allocation45_spill] sm:$0xff] }
 0x7fa   : > { %v4591_v11 = vmul.f32 %v4519_v40, %v11689_v63  ;;  %v4701_v18 = vmul.f32 %v4629_v20, %v11488_v29  ;;  %v5027_v14 = vmul.f32 %v11641_v37, %v12653_v42  ;;  %v4842_v39 = vmul.f32 0.7978846, %v4770_v53 }
 0x7fb   : > { %v4598_v25 = vmul.f32 %v4526_v34, %v11694_v2  ;;  %v4239_v30 = vpop.f32.mrf.mxu2  ;;  %v4272_v1 = vpop.f32.mrf.mxu3  ;;  %v5007_v48 = vmul.f32 %v4935_v6, %v4431_v5  ;;  %8885 = vtanh.f32 %v4806_v0  ;;  %v4772_v5 = vadd.f32 %v4700_v55, %v11445_v58 }
 0x7fc   : > { %v4240_v49 = vadd.f32 %v4239_v30, %v11559_v54  ;;  %v4175_v23 = vpop.f32.mrf.mxu0  ;;  %v4663_v33 = vmul.f32 %v4591_v11, %v11689_v63  ;;  %8887 = vtanh.f32 %v4799_v43  ;;  %v4942_v6 = vadd.f32 1.0, %v8884_v27 }
 0x7fd   : > { %v4208_v41 = vpop.f32.mrf.mxu1  ;;  %v4176_v52 = vadd.f32 %v4175_v23, %v11504_v51  ;;  %v11716_v60 = vpack.c.bf16 %v5007_v48, %v4999_v26  ;;  %v4670_v22 = vmul.f32 %v4598_v25, %v11694_v2  ;;  %8889 = vtanh.f32 %v4835_v46 }
 0x7fe   : > { %v11719_v17 = vadd.f32 %v4272_v1, %v4240_v49  ;;  %v4735_v61 = vadd.f32 %v4663_v33, %v11689_v63  ;;  %v4843_v30 = vmul.f32 0.7978846, %v4771_v56  ;;  %v4773_v37 = vadd.f32 %v4701_v18, %v11488_v29 }
 0x7ff   : > { %v11724_v40 = vadd.f32 %v4208_v41, %v4176_v52  ;;  %v4742_v34 = vadd.f32 %v4670_v22, %v11694_v2  ;;  %v4438_v43 = vmul.f32 0.5, %v11625_v50  ;;  %v4446_v53 = vmul.f32 0.5, %v11662_v57  ;;  %v12654_v22 = vld [vmem:[#allocation46_spill] sm:$0xff] }
 0x800   : > { %v4527_v20 = vmul.f32 0.044715, %v11719_v17  ;;  %v4807_v0 = vmul.f32 0.7978846, %v4735_v61  ;;  %v4844_v23 = vmul.f32 0.7978846, %v4772_v5  ;;  %v5035_v42 = vmul.f32 %v11659_v31, %v12654_v22 }
 0x801   : > { %v8886_v11 = vpop.eup %8885  ;;  %v4534_v25 = vmul.f32 0.044715, %v11724_v40  ;;  %v4814_v41 = vmul.f32 0.7978846, %v4742_v34  ;;  %v5014_v52 = vmul.f32 %v4942_v6, %v4438_v43  ;;  %v4845_v34 = vmul.f32 0.7978846, %v4773_v37 }
 0x802   : > { %v4599_v1 = vmul.f32 %v4527_v20, %v11719_v17  ;;  %v4950_v55 = vadd.f32 1.0, %v8886_v11  ;;  %8891 = vtanh.f32 %v4807_v0  ;;  %v8888_v46 = vpop.eup %8887  ;;  %v12655_v43 = vld [vmem:[#allocation44_spill] sm:$0xff] }
 0x803   : > { %v4606_v26 = vmul.f32 %v4534_v25, %v11724_v40  ;;  %v4241_v48 = vpop.f32.mrf.mxu2  ;;  %v4274_v49 = vpop.f32.mrf.mxu3  ;;  %8893 = vtanh.f32 %v4842_v39  ;;  %v4943_v11 = vadd.f32 1.0, %v8888_v46  ;;  %v12656_v37 = vld [vmem:[#allocation48_spill] sm:$0xff] }
 0x804   : > { %v4242_v56 = vadd.f32 %v4241_v48, %v11559_v54  ;;  %v4178_v33 = vpop.f32.mrf.mxu0  ;;  %v5022_v50 = vmul.f32 %v4950_v55, %v4446_v53  ;;  %v4671_v18 = vmul.f32 %v4599_v1, %v11719_v17  ;;  %8895 = vtanh.f32 %v4843_v30  ;;  %v8890_v39 = vpop.eup %8889 }
 0x805   : > { %v4211_v27 = vpop.f32.mrf.mxu1  ;;  %v4179_v57 = vadd.f32 %v4178_v33, %v11504_v51  ;;  %v4678_v61 = vmul.f32 %v4606_v26, %v11724_v40  ;;  %8897 = vtanh.f32 %v4814_v41  ;;  %v4439_v1 = vmul.f32 0.5, %v11657_v45 }
 0x806   : > { %v11741_v5 = vadd.f32 %v4274_v49, %v4242_v56  ;;  %v11743_v20 = vpack.c.bf16 %v5022_v50, %v5014_v52  ;;  %v4743_v0 = vadd.f32 %v4671_v18, %v11719_v17  ;;  %8899 = vtanh.f32 %v4844_v23 }
 0x807   : > { %v11746_v6 = vadd.f32 %v4211_v27, %v4179_v57  ;;  %5893 = vmatmul.bf16.gmra.mxu0 %v11622_v13  ;;  %5926 = vmatmul.bf16.gmra.mxu1 %v11634_v4  ;;  %v4750_v31 = vadd.f32 %v4678_v61, %v11724_v40  ;;  %v4447_v48 = vmul.f32 0.5, %v11689_v63  ;;  %v11760_v56 = vpack.c.bf16 %v11651_v38, %v11638_v24 }
 0x808   : > { %v8892_v25 = vpop.eup %8891  ;;  %v4535_v30 = vmul.f32 0.044715, %v11741_v5  ;;  %5959 = vmatmul.bf16.gmra.mxu2 %v12655_v43  ;;  %5992 = vmatmul.bf16.gmra.mxu3 %v12656_v37  ;;  %v4815_v53 = vmul.f32 0.7978846, %v4743_v0  ;;  %v11762_v33 = vpack.c.bf16 %v5035_v42, %v5027_v14  ;;  %8901 = vtanh.f32 %v4845_v34 }
 0x809   : > { %v8894_v55 = vpop.eup %8893  ;;  %v4542_v26 = vmul.f32 0.044715, %v11746_v6  ;;  %v4951_v49 = vadd.f32 1.0, %v8892_v25  ;;  %v4822_v46 = vmul.f32 0.7978846, %v4750_v31  ;;  %v11765_v52 = vadd.f32 1.0, %v11665_v12 }
 0x80a   : > { %v4607_v41 = vmul.f32 %v4535_v30, %v11741_v5  ;;  %v8896_v23 = vpop.eup %8895  ;;  %v5015_v50 = vmul.f32 %v4943_v11, %v4439_v1  ;;  %v11769_v61 = vadd.f32 1.0, %v11675_v10  ;;  %v11775_v12 = vadd.f32 1.0, %v11682_v47 }
 0x80b   : > { %v4244_v27 = vpop.f32.mrf.mxu2  ;;  %v4277_v45 = vpop.f32.mrf.mxu3  ;;  %v5023_v18 = vmul.f32 %v4951_v49, %v4447_v48  ;;  %8903 = vtanh.f32 %v4822_v46  ;;  %v4614_v14 = vmul.f32 %v4542_v26, %v11746_v6  ;;  %v11781_v31 = vadd.f32 1.0, %v8890_v39 }
 0x80c   : > { %v4245_v63 = vadd.f32 %v4244_v27, %v11559_v54  ;;  %v4180_v57 = vpop.f32.mrf.mxu0  ;;  %v4679_v24 = vmul.f32 %v4607_v41, %v11741_v5  ;;  %8905 = vtanh.f32 %v4815_v53  ;;  %v8898_v38 = vpop.eup %8897  ;;  %v11784_v10 = vmul.f32 0.5, %v12649_v28 }
 0x80d   : > { %v4213_v22 = vpop.f32.mrf.mxu1  ;;  %v4181_v42 = vadd.f32 %v4180_v57, %v11504_v51  ;;  %v11777_v34 = vpack.c.bf16 %v5023_v18, %v5015_v50  ;;  %v8900_v0 = vpop.eup %8899  ;;  %v11789_v1 = vadd.f32 1.0, %v8894_v55  ;;  %v11792_v53 = vmul.f32 0.5, %v12650_v3 }
 0x80e   : > { %v11779_v11 = vadd.f32 %v4277_v45, %v4245_v63  ;;  %v4751_v25 = vadd.f32 %v4679_v24, %v11741_v5  ;;  %v11794_v47 = vadd.f32 1.0, %v8896_v23  ;;  %v8902_v26 = vpop.eup %8901  ;;  %v11798_v39 = vmul.f32 0.5, %v11445_v58 }
 0x80f   : > { %v11787_v30 = vadd.f32 %v4213_v22, %v4181_v42  ;;  %v4958_v49 = vadd.f32 1.0, %v8898_v38  ;;  %v11801_v27 = vadd.f32 1.0, %v8900_v0  ;;  %v11804_v55 = vmul.f32 0.5, %v11488_v29 }
 0x810   : > { %v4543_v48 = vmul.f32 0.044715, %v11779_v11  ;;  %v4823_v28 = vmul.f32 0.7978846, %v4751_v25  ;;  %v4686_v3 = vmul.f32 %v4614_v14, %v11746_v6  ;;  %v4454_v45 = vmul.f32 0.5, %v11694_v2 }
 0x811   : > { %v8904_v46 = vpop.eup %8903  ;;  %v4550_v41 = vmul.f32 0.044715, %v11787_v30  ;;  %v4462_v50 = vmul.f32 0.5, %v11724_v40  ;;  %v11811_v22 = vperm.slane %v11501_v59, 6  ;;  %v11813_v29 = vadd.f32 1.0, %v8902_v26 }
 0x812   : > { %v8906_v23 = vpop.eup %8905  ;;  %v4966_v18 = vadd.f32 1.0, %v8904_v46  ;;  %8907 = vtanh.f32 %v4823_v28  ;;  %v4455_v24 = vmul.f32 0.5, %v11719_v17  ;;  %v4615_v2 = vmul.f32 %v4543_v48, %v11779_v11  ;;  %v8036_v17 = vld [vmem:[%s9278_s22 + $0x270] sm:$0xf]  ;;  %v8574_v48 = vld [vmem:[%s9278_s22 + $0x274] sm:$0xf0] }
 0x813   : > { %v4622_v58 = vmul.f32 %v4550_v41, %v11787_v30  ;;  %v4246_v63 = vpop.f32.mrf.mxu2  ;;  %v4279_v57 = vpop.f32.mrf.mxu3  ;;  %v5030_v42 = vmul.f32 %v4958_v49, %v4454_v45  ;;  %v4959_v59 = vadd.f32 1.0, %v8906_v23  ;;  %v4758_v26 = vadd.f32 %v4686_v3, %v11746_v6  ;;  %v8100_v41 = vld [vmem:[%s9278_s22 + $0x2f0] sm:$0xf]  ;;  %v8590_v45 = vld [vmem:[%s9278_s22 + $0x2f4] sm:$0xf0] }
 0x814   : > { %v4247_v40 = vadd.f32 %v4246_v63, %v11559_v54  ;;  %v4183_v38 = vpop.f32.mrf.mxu0  ;;  %v5038_v0 = vmul.f32 %v4966_v18, %v4462_v50  ;;  %v8164_v49 = vld [vmem:[%s9278_s22 + $0x370] sm:$0xf]  ;;  %v8037_v23 = vor.u32 %v8574_v48, %v8036_v17  ;;  %v8622_v17 = vld [vmem:[%s9278_s22 + $0x3f4] sm:$0xf0] }
 0x815   : > { %v4216_v14 = vpop.f32.mrf.mxu1  ;;  %v4184_v25 = vadd.f32 %v4183_v38, %v11504_v51  ;;  %v4694_v28 = vmul.f32 %v4622_v58, %v11787_v30  ;;  %v8606_v51 = vld [vmem:[%s9278_s22 + $0x374] sm:$0xf0]  ;;  %v4463_v38 = vmul.f32 0.5, %v11741_v5  ;;  %v8572_v5 = vld [vmem:[%s9278_s22 + $0x264] sm:$0xf0] }
 0x816   : > { %v11821_v46 = vadd.f32 %v4279_v57, %v4247_v40  ;;  %v11826_v63 = vpack.c.bf16 %v5038_v0, %v5030_v42  ;;  %v8165_v58 = vor.u32 %v8606_v51, %v8164_v49  ;;  %v8101_v57 = vor.u32 %v8590_v45, %v8100_v41  ;;  %6012 = vmatpush.bf16.msra.mxu0 %v8037_v23  ;;  %v8028_v51 = vld [vmem:[%s9278_s22 + $0x260] sm:$0xf] }
 0x817   : > { %v11828_v37 = vadd.f32 %v4216_v14, %v4184_v25  ;;  %5898 = vmatmul.bf16.gmra.mxu0 %v11760_v56  ;;  %5931 = vmatmul.bf16.gmra.mxu1 %v11762_v33  ;;  %v4766_v3 = vadd.f32 %v4694_v28, %v11787_v30  ;;  %v4687_v40 = vmul.f32 %v4615_v2, %v11779_v11  ;;  %v11842_v42 = vmul.f32 0.5, %v11746_v6  ;;  %v8228_v28 = vld [vmem:[%s9278_s22 + $0x3f0] sm:$0xf]  ;;  %v8092_v23 = vld [vmem:[%s9278_s22 + $0x2e0] sm:$0xf] }
 0x818   : > { %v8908_v50 = vpop.eup %8907  ;;  %v4551_v18 = vmul.f32 0.044715, %v11821_v46  ;;  %5964 = vmatmul.bf16.gmra.mxu2 %v11456_v32  ;;  %5997 = vmatmul.bf16.gmra.mxu3 %v11506_v19  ;;  %v4830_v0 = vmul.f32 0.7978846, %v4758_v26  ;;  %v8229_v49 = vor.u32 %v8622_v17, %v8228_v28  ;;  %v5031_v45 = vmul.f32 %v4959_v59, %v4455_v24  ;;  %v8588_v19 = vld [vmem:[%s9278_s22 + $0x2e4] sm:$0xf0] }
 0x819   : > { %v4967_v14 = vadd.f32 1.0, %v8908_v50  ;;  %6078 = vmatpush.bf16.msra.mxu2 %v8165_v58  ;;  %6045 = vmatpush.bf16.msra.mxu1 %v8101_v57  ;;  %v4838_v2 = vmul.f32 0.7978846, %v4766_v3  ;;  %v8029_v58 = vor.u32 %v8572_v5, %v8028_v51  ;;  %v8156_v57 = vld [vmem:[%s9278_s22 + $0x360] sm:$0xf]  ;;  %v4759_v28 = vadd.f32 %v4687_v40, %v11779_v11 }
 0x81a   : > { %v4623_v25 = vmul.f32 %v4551_v18, %v11821_v46  ;;  %v8604_v32 = vld [vmem:[%s9278_s22 + $0x364] sm:$0xf0]  ;;  %6111 = vmatpush.bf16.msra.mxu3 %v8229_v49  ;;  %v8093_v24 = vor.u32 %v8588_v19, %v8092_v23  ;;  %v8020_v17 = vld [vmem:[%s9278_s22 + $0x250] sm:$0xf]  ;;  %v5050_v19 = vmul.f32 %v11775_v12, %v11589_v8  ;;  %v8586_v49 = vld [vmem:[%s9278_s22 + $0x2d4] sm:$0xf0]  ;;  %8909 = vtanh.f32 %v4830_v0 }
 0x81b   : > { %v4249_v48 = vpop.f32.mrf.mxu2  ;;  %v4282_v41 = vpop.f32.mrf.mxu3  ;;  %v5039_v6 = vmul.f32 %v4967_v14, %v4463_v38  ;;  %v8157_v59 = vor.u32 %v8604_v32, %v8156_v57  ;;  %v11859_v38 = vmul.f32 0.5, %v11779_v11  ;;  %6013 = vmatpush.bf16.msra.mxu0 %v8029_v58  ;;  %v8148_v11 = vld [vmem:[%s9278_s22 + $0x350] sm:$0xf]  ;;  %8911 = vtanh.f32 %v4838_v2  ;;  %v8620_v8 = vld [vmem:[%s9278_s22 + $0x3e4] sm:$0xf0] }
 0x81c   : > { %v4250_v26 = vadd.f32 %v4249_v48, %v11559_v54  ;;  %v4185_v50 = vpop.f32.mrf.mxu0  ;;  %v4695_v3 = vmul.f32 %v4623_v25, %v11821_v46  ;;  %v8570_v48 = vld [vmem:[%s9278_s22 + $0x254] sm:$0xf0]  ;;  %v8084_v25 = vld [vmem:[%s9278_s22 + $0x2d0] sm:$0xf]  ;;  %v4831_v23 = vmul.f32 0.7978846, %v4759_v28 }
 0x81d   : > { %v4218_v18 = vpop.f32.mrf.mxu1  ;;  %v11856_v54 = vpack.c.bf16 %v5039_v6, %v5031_v45  ;;  %6046 = vmatpush.bf16.msra.mxu1 %v8093_v24  ;;  %6079 = vmatpush.bf16.msra.mxu2 %v8157_v59  ;;  %v8021_v32 = vor.u32 %v8570_v48, %v8020_v17  ;;  %v8085_v51 = vor.u32 %v8586_v49, %v8084_v25  ;;  %v8220_v6 = vld [vmem:[%s9278_s22 + $0x3e0] sm:$0xf]  ;;  %v8568_v0 = vld [vmem:[%s9278_s22 + $0x244] sm:$0xf0]  ;;  %v8212_v25 = vld [vmem:[%s9278_s22 + $0x3d0] sm:$0xf] }
 0x81e   : > { %v11861_v14 = vadd.f32 %v4282_v41, %v4250_v26  ;;  %v4767_v40 = vadd.f32 %v4695_v3, %v11821_v46  ;;  %v8602_v41 = vld [vmem:[%s9278_s22 + $0x354] sm:$0xf0]  ;;  %v5051_v45 = vmul.f32 %v11781_v31, %v11645_v16  ;;  %v12657_v26 = vld [vmem:[#allocation47_spill] sm:$0xff]  ;;  %v8221_v18 = vor.u32 %v8620_v8, %v8220_v6  ;;  %v8012_v58 = vld [vmem:[%s9278_s22 + $0x240] sm:$0xf] }
 0x81f   : > { %v8149_v5 = vor.u32 %v8602_v41, %v8148_v11  ;;  %v5042_v50 = vmul.f32 %v11765_v52, %v12657_v26  ;;  %6014 = vmatpush.bf16.msra.mxu0 %v8021_v32  ;;  %v8076_v2 = vld [vmem:[%s9278_s22 + $0x2c0] sm:$0xf]  ;;  %v5043_v16 = vmul.f32 %v11769_v61, %v11509_v7  ;;  %v8013_v31 = vor.u32 %v8568_v0, %v8012_v58  ;;  %v8584_v28 = vld [vmem:[%s9278_s22 + $0x2c4] sm:$0xf0]  ;;  %v8004_v7 = vld [vmem:[%s9278_s22 + $0x230] sm:$0xf] }
 0x820   : > { %v4839_v12 = vmul.f32 0.7978846, %v4767_v40  ;;  %v8140_v52 = vld [vmem:[%s9278_s22 + $0x340] sm:$0xf]  ;;  %v8600_v24 = vld [vmem:[%s9278_s22 + $0x344] sm:$0xf0]  ;;  %6112 = vmatpush.bf16.msra.mxu3 %v8221_v18  ;;  %v8910_v61 = vpop.eup %8909  ;;  %v8077_v11 = vor.u32 %v8584_v28, %v8076_v2  ;;  %8913 = vtanh.f32 %v4831_v23 }
 0x821   : > { %6047 = vmatpush.bf16.msra.mxu1 %v8085_v51  ;;  %6080 = vmatpush.bf16.msra.mxu2 %v8149_v5  ;;  %v11886_v48 = vpack.c.bf16 %v5050_v19, %v5042_v50  ;;  %v8618_v40 = vld [vmem:[%s9278_s22 + $0x3d4] sm:$0xf0]  ;;  %v11892_v49 = vpack.c.bf16 %v5051_v45, %v5043_v16  ;;  %v8141_v41 = vor.u32 %v8600_v24, %v8140_v52  ;;  %v8068_v19 = vld [vmem:[%s9278_s22 + $0x2b0] sm:$0xf]  ;;  %v8912_v6 = vpop.eup %8911  ;;  %v8204_v58 = vld [vmem:[%s9278_s22 + $0x3c0] sm:$0xf] }
 0x822   : > { %v8566_v51 = vld [vmem:[%s9278_s22 + $0x234] sm:$0xf0]  ;;  %v8213_v8 = vor.u32 %v8618_v40, %v8212_v25  ;;  %v8132_v50 = vld [vmem:[%s9278_s22 + $0x330] sm:$0xf]  ;;  %v11906_v45 = vmul.f32 %v11789_v1, %v11784_v10  ;;  %v8616_v2 = vld [vmem:[%s9278_s22 + $0x3c4] sm:$0xf0]  ;;  %8915 = vtanh.f32 %v4839_v12  ;;  %v5059_v25 = vmul.f32 %v11794_v47, %v11792_v53 }
 0x823   : > { %v4251_v57 = vpop.f32.mrf.mxu2  ;;  %v4284_v3 = vpop.f32.mrf.mxu3  ;;  %12658 = vst [vmem:[#allocation38_spill] sm:$0xff] %v11886_v48  ;;  %v8582_v5 = vld [vmem:[%s9278_s22 + $0x2b4] sm:$0xf0]  ;;  %6015 = vmatpush.bf16.msra.mxu0 %v8013_v31  ;;  %v8005_v26 = vor.u32 %v8566_v51, %v8004_v7  ;;  %v8976_v16 = vld [vmem:[%s9273_s0] sm:$0xff]  ;;  %v4478_v52 = vmul.f32 0.5, %v11787_v30  ;;  %v4974_v10 = vadd.f32 1.0, %v8910_v61  ;;  %v8205_v30 = vor.u32 %v8616_v2, %v8204_v58 }
 0x824   : > { %v4295_v59 = vpop.f32.mrf.mxu0  ;;  %12659 = vst [vmem:[#allocation40_spill] sm:$0xff] %v11892_v49  ;;  %v8598_v18 = vld [vmem:[%s9278_s22 + $0x334] sm:$0xf0]  ;;  %v7996_v57 = vld [vmem:[%s9278_s22 + $0x220] sm:$0xf]  ;;  %v11914_v31 = vperm.slane %v8976_v16, 7  ;;  %v8069_v23 = vor.u32 %v8582_v5, %v8068_v19  ;;  %6113 = vmatpush.bf16.msra.mxu3 %v8213_v8  ;;  %v5060_v51 = vmul.f32 %v11801_v27, %v11798_v39  ;;  %v5061_v19 = vmul.f32 %v11813_v29, %v11804_v55 }
 0x825   : > { %v4328_v17 = vpop.f32.mrf.mxu1  ;;  %v4296_v32 = vadd.f32 %v4295_v59, %v11811_v22  ;;  %v8564_v3 = vld [vmem:[%s9278_s22 + $0x224] sm:$0xf0]  ;;  %v11917_v28 = vld [vmem:[%s9278_s22 + $0x2a0] sm:$0xf]  ;;  %6048 = vmatpush.bf16.msra.mxu1 %v8077_v11  ;;  %6081 = vmatpush.bf16.msra.mxu2 %v8141_v41  ;;  %v8133_v24 = vor.u32 %v8598_v18, %v8132_v50  ;;  %v8196_v61 = vld [vmem:[%s9278_s22 + $0x3b0] sm:$0xf]  ;;  %v5046_v2 = vmul.f32 %v4974_v10, %v11842_v42 }
 0x826   : > { %v8580_v59 = vld [vmem:[%s9278_s22 + $0x2a4] sm:$0xf0]  ;;  %v7997_v40 = vor.u32 %v8564_v3, %v7996_v57  ;;  %v8124_v7 = vld [vmem:[%s9278_s22 + $0x320] sm:$0xf]  ;;  %v8614_v5 = vld [vmem:[%s9278_s22 + $0x3b4] sm:$0xf0]  ;;  %v8914_v27 = vpop.eup %8913 }
 0x827   : > { %v11900_v0 = vadd.f32 %v4328_v17, %v4296_v32  ;;  %5903 = vmatmul.bf16.gmra.mxu0 %v11886_v48  ;;  %5936 = vmatmul.bf16.gmra.mxu1 %v11892_v49  ;;  %v4982_v17 = vadd.f32 1.0, %v8912_v6  ;;  %v8596_v12 = vld [vmem:[%s9278_s22 + $0x324] sm:$0xf0]  ;;  %v7988_v53 = vld [vmem:[%s9278_s22 + $0x210] sm:$0xf]  ;;  %v8061_v18 = vor.u32 %v8580_v59, %v11917_v28  ;;  %v4479_v39 = vmul.f32 0.5, %v11821_v46 }
 0x828   : > { %5969 = vmatmul.bf16.gmra.mxu2 %v11579_v62  ;;  %6002 = vmatmul.bf16.gmra.mxu3 %v11613_v21  ;;  %v8562_v47 = vld [vmem:[%s9278_s22 + $0x214] sm:$0xf0]  ;;  %v8052_v58 = vld [vmem:[%s9278_s22 + $0x290] sm:$0xf]  ;;  %v8125_v57 = vor.u32 %v8596_v12, %v8124_v7  ;;  %v8916_v42 = vpop.eup %8915  ;;  %v8197_v46 = vor.u32 %v8614_v5, %v8196_v61  ;;  %v8612_v59 = vld [vmem:[%s9278_s22 + $0x3a4] sm:$0xf0]  ;;  %v11955_v7 = vpack.c.bf16 %v11906_v45, %v11906_v45 }
 0x829   : > { %v4496_v1 = vmul.f32 0.044715, %v11900_v0  ;;  %6016 = vmatpush.bf16.msra.mxu0 %v8005_v26  ;;  %v5054_v6 = vmul.f32 %v4982_v17, %v4478_v52  ;;  %6049 = vmatpush.bf16.msra.mxu1 %v8069_v23  ;;  %v8578_v3 = vld [vmem:[%s9278_s22 + $0x294] sm:$0xf0]  ;;  %v8116_v16 = vld [vmem:[%s9278_s22 + $0x310] sm:$0xf]  ;;  %v7989_v10 = vor.u32 %v8562_v47, %v7988_v53  ;;  %v11963_v61 = vpack.c.bf16 %v5059_v25, %v5059_v25 }
 0x82a   : > { %6082 = vmatpush.bf16.msra.mxu2 %v8133_v24  ;;  %v8594_v28 = vld [vmem:[%s9278_s22 + $0x314] sm:$0xf0]  ;;  %6114 = vmatpush.bf16.msra.mxu3 %v8205_v30  ;;  %v7980_v23 = vld [vmem:[%s9278_s22 + $0x200] sm:$0xf]  ;;  %v8560_v12 = vld [vmem:[%s9278_s22 + $0x204] sm:$0xf0]  ;;  %v11967_v5 = vpack.c.bf16 %v5061_v19, %v5061_v19 }
 0x82b   : > { %v4568_v32 = vmul.f32 %v4496_v1, %v11900_v0  ;;  %v4361_v11 = vpop.f32.mrf.mxu2  ;;  %v4394_v41 = vpop.f32.mrf.mxu3  ;;  %v8188_v1 = vld [vmem:[%s9278_s22 + $0x3a0] sm:$0xf]  ;;  %v11960_v30 = vpack.c.bf16 %v5054_v6, %v5046_v2  ;;  %v8592_v47 = vld [vmem:[%s9278_s22 + $0x304] sm:$0xf0]  ;;  %v4975_v6 = vadd.f32 1.0, %v8914_v27  ;;  %v7981_v2 = vor.u32 %v8560_v12, %v7980_v23 }
 0x82c   : > { %v4362_v8 = vadd.f32 %v4361_v11, %v11914_v31  ;;  %v4297_v26 = vpop.f32.mrf.mxu0  ;;  %v8576_v11 = vld [vmem:[%s9278_s22 + $0x284] sm:$0xf0]  ;;  %v8108_v53 = vld [vmem:[%s9278_s22 + $0x300] sm:$0xf]  ;;  %v8189_v25 = vor.u32 %v8612_v59, %v8188_v1 }
 0x82d   : > { %v4330_v50 = vpop.f32.mrf.mxu1  ;;  %v4640_v55 = vmul.f32 %v4568_v32, %v11900_v0  ;;  %v4298_v29 = vadd.f32 %v4297_v26, %v11811_v22  ;;  %6017 = vmatpush.bf16.msra.mxu0 %v7997_v40  ;;  %v8044_v32 = vld [vmem:[%s9278_s22 + $0x280] sm:$0xf]  ;;  %6050 = vmatpush.bf16.msra.mxu1 %v8061_v18  ;;  %v8117_v26 = vor.u32 %v8594_v28, %v8116_v16  ;;  %v8608_v23 = vld [vmem:[%s9278_s22 + $0x384] sm:$0xf0] }
 0x82e   : > { %v11945_v52 = vadd.f32 %v4394_v41, %v4362_v8  ;;  %v11965_v41 = vpack.c.bf16 %v5060_v51, %v5060_v51  ;;  %6083 = vmatpush.bf16.msra.mxu2 %v8125_v57  ;;  %v8053_v8 = vor.u32 %v8578_v3, %v8052_v58  ;;  %6115 = vmatpush.bf16.msra.mxu3 %v8197_v46  ;;  %v8180_v51 = vld [vmem:[%s9278_s22 + $0x390] sm:$0xf] }
 0x82f   : > { %v4712_v24 = vadd.f32 %v4640_v55, %v11900_v0  ;;  %v11951_v17 = vadd.f32 %v4330_v50, %v4298_v29  ;;  %v8610_v55 = vld [vmem:[%s9278_s22 + $0x394] sm:$0xf0]  ;;  %v4983_v29 = vadd.f32 1.0, %v8916_v42  ;;  %v8045_v48 = vor.u32 %v8576_v11, %v8044_v32 }
 0x830   : > { %v4497_v40 = vmul.f32 0.044715, %v11945_v52  ;;  %v8109_v18 = vor.u32 %v8592_v47, %v8108_v53  ;;  %v5047_v16 = vmul.f32 %v4975_v6, %v11859_v38 }
 0x831   : > { %v4504_v45 = vmul.f32 0.044715, %v11951_v17  ;;  %6018 = vmatpush.bf16.msra.mxu0 %v7989_v10  ;;  %v4784_v19 = vmul.f32 0.7978846, %v4712_v24  ;;  %v5055_v28 = vmul.f32 %v4983_v29, %v4479_v39  ;;  %6051 = vmatpush.bf16.msra.mxu1 %v8053_v8  ;;  %v8181_v10 = vor.u32 %v8610_v55, %v8180_v51 }
 0x832   : > { %v4569_v50 = vmul.f32 %v4497_v40, %v11945_v52  ;;  %6084 = vmatpush.bf16.msra.mxu2 %v8117_v26  ;;  %6116 = vmatpush.bf16.msra.mxu3 %v8189_v25 }
 0x833   : > { %v4576_v21 = vmul.f32 %v4504_v45, %v11951_v17  ;;  %v4363_v62 = vpop.f32.mrf.mxu2  ;;  %v4396_v49 = vpop.f32.mrf.mxu3  ;;  %8917 = vtanh.f32 %v4784_v19 }
 0x834   : > { %v4641_v58 = vmul.f32 %v4569_v50, %v11945_v52  ;;  %v4364_v27 = vadd.f32 %v4363_v62, %v11914_v31  ;;  %v4300_v57 = vpop.f32.mrf.mxu0  ;;  %v11984_v62 = vpack.c.bf16 %v5055_v28, %v5047_v16  ;;  %v4432_v28 = vmul.f32 0.5, %v11951_v17 }
 0x835   : > { %v4333_v3 = vpop.f32.mrf.mxu1  ;;  %v4648_v46 = vmul.f32 %v4576_v21, %v11951_v17  ;;  %v4301_v42 = vadd.f32 %v4300_v57, %v11811_v22  ;;  %6019 = vmatpush.bf16.msra.mxu0 %v7981_v2  ;;  %v8172_v21 = vld [vmem:[%s9278_s22 + $0x380] sm:$0xf]  ;;  %6052 = vmatpush.bf16.msra.mxu1 %v8045_v48 }
 0x836   : > { %v4713_v1 = vadd.f32 %v4641_v58, %v11945_v52  ;;  %v11982_v59 = vadd.f32 %v4396_v49, %v4364_v27  ;;  %6085 = vmatpush.bf16.msra.mxu2 %v8109_v18  ;;  %6117 = vmatpush.bf16.msra.mxu3 %v8181_v10  ;;  %v8173_v40 = vor.u32 %v8608_v23, %v8172_v21 }
 0x837   : > { %v4720_v38 = vadd.f32 %v4648_v46, %v11951_v17  ;;  %v11987_v39 = vadd.f32 %v4333_v3, %v4301_v42  ;;  %5908 = vmatmul.bf16.gmra.mxu0 %v11955_v7  ;;  %5941 = vmatmul.bf16.gmra.mxu1 %v11963_v61  ;;  %v4424_v3 = vmul.f32 0.5, %v11900_v0 }
 0x838   : > { %v4505_v24 = vmul.f32 0.044715, %v11982_v59  ;;  %5974 = vmatmul.bf16.gmra.mxu2 %v11965_v41  ;;  %6007 = vmatmul.bf16.gmra.mxu3 %v11967_v5  ;;  %v4785_v32 = vmul.f32 0.7978846, %v4713_v1 }
 0x839   : > { %v4792_v49 = vmul.f32 0.7978846, %v4720_v38  ;;  %v4512_v12 = vmul.f32 0.044715, %v11987_v39  ;;  %v8918_v25 = vpop.eup %8917 }
 0x83a   : > { %v4577_v11 = vmul.f32 %v4505_v24, %v11982_v59  ;;  %6118 = vmatpush.bf16.msra.mxu3 %v8173_v40  ;;  %v4928_v18 = vadd.f32 1.0, %v8918_v25 }
 0x83b   : > { %8919 = vtanh.f32 %v4792_v49  ;;  %v4584_v53 = vmul.f32 %v4512_v12, %v11987_v39  ;;  %v4366_v47 = vpop.f32.mrf.mxu2  ;;  %v4399_v45 = vpop.f32.mrf.mxu3 }
 0x83c   : > { %v4649_v8 = vmul.f32 %v4577_v11, %v11982_v59  ;;  %v4367_v26 = vadd.f32 %v4366_v47, %v11914_v31  ;;  %v4302_v6 = vpop.f32.mrf.mxu0  ;;  %8921 = vtanh.f32 %v4785_v32  ;;  %v5000_v32 = vmul.f32 %v4928_v18, %v4424_v3 }
 0x83d   : > { %v4335_v50 = vpop.f32.mrf.mxu1  ;;  %v4303_v48 = vadd.f32 %v4302_v6, %v11811_v22  ;;  %v4656_v2 = vmul.f32 %v4584_v53, %v11987_v39  ;;  %v4558_v53 = vmul.f32 0.044715, %v11828_v37 }
 0x83e   : > { %v4721_v51 = vadd.f32 %v4649_v8, %v11982_v59  ;;  %v12004_v55 = vadd.f32 %v4399_v45, %v4367_v26 }
 0x83f   : > { %v12006_v29 = vadd.f32 %v4335_v50, %v4303_v48  ;;  %v4728_v19 = vadd.f32 %v4656_v2, %v11987_v39  ;;  %v4425_v48 = vmul.f32 0.5, %v11945_v52 }
 0x840   : > { %v4793_v58 = vmul.f32 0.7978846, %v4721_v51  ;;  %v4513_v27 = vmul.f32 0.044715, %v12004_v55 }
 0x841   : > { %v8920_v57 = vpop.eup %8919  ;;  %v4520_v16 = vmul.f32 0.044715, %v12006_v29  ;;  %v4800_v21 = vmul.f32 0.7978846, %v4728_v19  ;;  %v4433_v19 = vmul.f32 0.5, %v11982_v59 }
 0x842   : > { %8923 = vtanh.f32 %v4793_v58  ;;  %v4585_v46 = vmul.f32 %v4513_v27, %v12004_v55  ;;  %v4936_v42 = vadd.f32 1.0, %v8920_v57  ;;  %v8922_v23 = vpop.eup %8921  ;;  %v4559_v57 = vmul.f32 0.044715, %v11861_v14 }
 0x843   : > { %v4592_v10 = vmul.f32 %v4520_v16, %v12006_v29  ;;  %v4368_v1 = vpop.f32.mrf.mxu2  ;;  %v4401_v38 = vpop.f32.mrf.mxu3  ;;  %v4929_v26 = vadd.f32 1.0, %v8922_v23  ;;  %8925 = vtanh.f32 %v4800_v21 }
 0x844   : > { %v4369_v24 = vadd.f32 %v4368_v1, %v11914_v31  ;;  %v4305_v49 = vpop.f32.mrf.mxu0  ;;  %v5008_v0 = vmul.f32 %v4936_v42, %v4432_v28  ;;  %v4657_v11 = vmul.f32 %v4585_v46, %v12004_v55 }
 0x845   : > { %v4338_v12 = vpop.f32.mrf.mxu1  ;;  %v4306_v17 = vadd.f32 %v4305_v49, %v11811_v22  ;;  %v4664_v40 = vmul.f32 %v4592_v10, %v12006_v29  ;;  %v5001_v52 = vmul.f32 %v4929_v26, %v4425_v48  ;;  %v4630_v10 = vmul.f32 %v4558_v53, %v11828_v37 }
 0x846   : > { %v12020_v47 = vadd.f32 %v4401_v38, %v4369_v24  ;;  %v12022_v45 = vpack.c.bf16 %v5008_v0, %v5000_v32  ;;  %v4729_v8 = vadd.f32 %v4657_v11, %v12004_v55  ;;  %v4631_v11 = vmul.f32 %v4559_v57, %v11861_v14 }
 0x847   : > { %v12025_v6 = vadd.f32 %v4338_v12, %v4306_v17  ;;  %6020 = vmatmul.bf16.vlgmr.msra.gmra.mxu0 %v11691_v35  ;;  %6053 = vmatmul.bf16.vlgmr.msra.gmra.mxu1 %v11716_v60  ;;  %v4736_v50 = vadd.f32 %v4664_v40, %v12006_v29  ;;  %v4440_v48 = vmul.f32 0.5, %v11987_v39 }
 0x848   : > { %v8924_v25 = vpop.eup %8923  ;;  %v4521_v2 = vmul.f32 0.044715, %v12020_v47  ;;  %6086 = vmatmul.bf16.vlgmr.msra.gmra.mxu2 %v12022_v45  ;;  %v4801_v51 = vmul.f32 0.7978846, %v4729_v8 }
 0x849   : > { %v4528_v18 = vmul.f32 0.044715, %v12025_v6  ;;  %v4937_v58 = vadd.f32 1.0, %v8924_v25  ;;  %v4808_v27 = vmul.f32 0.7978846, %v4736_v50  ;;  %v8926_v23 = vpop.eup %8925 }
 0x84a   : > { %v4593_v3 = vmul.f32 %v4521_v2, %v12020_v47  ;;  %v4944_v8 = vadd.f32 1.0, %v8926_v23 }
 0x84b   : > { %v4600_v16 = vmul.f32 %v4528_v18, %v12025_v6  ;;  %v4371_v28 = vpop.f32.mrf.mxu2  ;;  %v4404_v46 = vpop.f32.mrf.mxu3  ;;  %v5009_v42 = vmul.f32 %v4937_v58, %v4433_v19  ;;  %8927 = vtanh.f32 %v4808_v27  ;;  %v4448_v18 = vmul.f32 0.5, %v12006_v29 }
 0x84c   : > { %v4372_v1 = vadd.f32 %v4371_v28, %v11914_v31  ;;  %v4307_v59 = vpop.f32.mrf.mxu0  ;;  %v4665_v21 = vmul.f32 %v4593_v3, %v12020_v47  ;;  %8929 = vtanh.f32 %v4801_v51  ;;  %v4702_v51 = vmul.f32 %v4630_v10, %v11828_v37 }
 0x84d   : > { %v4340_v38 = vpop.f32.mrf.mxu1  ;;  %v4308_v24 = vadd.f32 %v4307_v59, %v11811_v22  ;;  %v12042_v49 = vpack.c.bf16 %v5009_v42, %v5001_v52  ;;  %v4672_v12 = vmul.f32 %v4600_v16, %v12025_v6  ;;  %v4703_v28 = vmul.f32 %v4631_v11, %v11861_v14 }
 0x84e   : > { %v12045_v32 = vadd.f32 %v4404_v46, %v4372_v1  ;;  %v4737_v0 = vadd.f32 %v4665_v21, %v12020_v47  ;;  %v5016_v42 = vmul.f32 %v4944_v8, %v4440_v48  ;;  %v4441_v11 = vmul.f32 0.5, %v12004_v55  ;;  %v7910_v8 = vld [vmem:[%s9278_s22 + $0x178] sm:$0xf0] }
 0x84f   : > { %v12049_v17 = vadd.f32 %v4340_v38, %v4308_v24  ;;  %6119 = vmatmul.bf16.vlgmr.msra.gmra.mxu3 %v12042_v49  ;;  %v4744_v40 = vadd.f32 %v4672_v12, %v12025_v6  ;;  %v4774_v38 = vadd.f32 %v4702_v51, %v11828_v37  ;;  %v4775_v51 = vadd.f32 %v4703_v28, %v11861_v14 }
 0x850   : > { %v4529_v53 = vmul.f32 0.044715, %v12045_v32  ;;  %v4809_v26 = vmul.f32 0.7978846, %v4737_v0  ;;  %v4449_v55 = vmul.f32 0.5, %v12020_v47 }
 0x851   : > { %v8928_v50 = vpop.eup %8927  ;;  %v4536_v25 = vmul.f32 0.044715, %v12049_v17  ;;  %v4816_v2 = vmul.f32 0.7978846, %v4744_v40 }
 0x852   : > { %v4601_v19 = vmul.f32 %v4529_v53, %v12045_v32  ;;  %v4952_v58 = vadd.f32 1.0, %v8928_v50  ;;  %8931 = vtanh.f32 %v4809_v26  ;;  %v8930_v27 = vpop.eup %8929  ;;  %v8541_v53 = vld [vmem:[%s9278_s22 + $0x174] sm:$0xf] }
 0x853   : > { %v4608_v57 = vmul.f32 %v4536_v25, %v12049_v17  ;;  %v4373_v3 = vpop.f32.mrf.mxu2  ;;  %v4406_v16 = vpop.f32.mrf.mxu3  ;;  %8933 = vtanh.f32 %v4816_v2  ;;  %v4945_v24 = vadd.f32 1.0, %v8930_v27  ;;  %v7913_v48 = vor.u32 %v8541_v53, %v7910_v8  ;;  %v8557_v2 = vld [vmem:[%s9278_s22 + $0x1f4] sm:$0xf] }
 0x854   : > { %v4374_v46 = vadd.f32 %v4373_v3, %v11914_v31  ;;  %v4310_v52 = vpop.f32.mrf.mxu0  ;;  %v5024_v10 = vmul.f32 %v4952_v58, %v4448_v18  ;;  %v4673_v1 = vmul.f32 %v4601_v19, %v12045_v32  ;;  %v7974_v3 = vld [vmem:[%s9278_s22 + $0x1f8] sm:$0xf0] }
 0x855   : > { %v4343_v39 = vpop.f32.mrf.mxu1  ;;  %v4311_v29 = vadd.f32 %v4310_v52, %v11811_v22  ;;  %v4680_v59 = vmul.f32 %v4608_v57, %v12049_v17  ;;  %v5017_v57 = vmul.f32 %v4945_v24, %v4441_v11  ;;  %6210 = vmatpush.bf16.msrb.mxu2 %v7913_v48 }
 0x856   : > { %v12066_v21 = vadd.f32 %v4406_v16, %v4374_v46  ;;  %v12068_v23 = vpack.c.bf16 %v5024_v10, %v5016_v42  ;;  %v4745_v12 = vadd.f32 %v4673_v1, %v12045_v32  ;;  %v8509_v16 = vld [vmem:[%s9278_s22 + $0x74] sm:$0xf]  ;;  %v12088_v46 = vmul.f32 0.7978846, %v4774_v38  ;;  %v7782_v1 = vld [vmem:[%s9278_s22 + $0x78] sm:$0xf0] }
 0x857   : > { %v12071_v0 = vadd.f32 %v4343_v39, %v4311_v29  ;;  %6025 = vmatmul.bf16.gmra.mxu0 %v11743_v20  ;;  %6058 = vmatmul.bf16.gmra.mxu1 %v11777_v34  ;;  %v4752_v40 = vadd.f32 %v4680_v59, %v12049_v17  ;;  %v7977_v10 = vor.u32 %v8557_v2, %v7974_v3  ;;  %v8525_v29 = vld [vmem:[%s9278_s22 + $0xf4] sm:$0xf]  ;;  %v7846_v59 = vld [vmem:[%s9278_s22 + $0xf8] sm:$0xf0]  ;;  %v12096_v38 = vmul.f32 0.7978846, %v4775_v51 }
 0x858   : > { %v8932_v26 = vpop.eup %8931  ;;  %v4537_v50 = vmul.f32 0.044715, %v12066_v21  ;;  %6091 = vmatmul.bf16.gmra.mxu2 %v12068_v23  ;;  %v4817_v25 = vmul.f32 0.7978846, %v4745_v12  ;;  %v7785_v53 = vor.u32 %v8509_v16, %v7782_v1  ;;  %v4456_v2 = vmul.f32 0.5, %v12025_v6 }
 0x859   : > { %v4544_v19 = vmul.f32 0.044715, %v12071_v0  ;;  %v4953_v18 = vadd.f32 1.0, %v8932_v26  ;;  %v4824_v58 = vmul.f32 0.7978846, %v4752_v40  ;;  %v8934_v52 = vpop.eup %8933  ;;  %6243 = vmatpush.bf16.msrb.mxu3 %v7977_v10  ;;  %v4457_v10 = vmul.f32 0.5, %v12045_v32 }
 0x85a   : > { %v4609_v27 = vmul.f32 %v4537_v50, %v12066_v21  ;;  %8935 = vtanh.f32 %v4817_v25  ;;  %v7849_v25 = vor.u32 %v8525_v29, %v7846_v59  ;;  %6144 = vmatpush.bf16.msrb.mxu0 %v7785_v53 }
 0x85b   : > { %v4616_v28 = vmul.f32 %v4544_v19, %v12071_v0  ;;  %v4376_v39 = vpop.f32.mrf.mxu2  ;;  %v4409_v42 = vpop.f32.mrf.mxu3  ;;  %v5025_v47 = vmul.f32 %v4953_v18, %v4449_v55  ;;  %8937 = vtanh.f32 %v4824_v58  ;;  %v4960_v19 = vadd.f32 1.0, %v8934_v52  ;;  %v8507_v58 = vld [vmem:[%s9278_s22 + $0x64] sm:$0xf] }
 0x85c   : > { %v4377_v12 = vadd.f32 %v4376_v39, %v11914_v31  ;;  %v4312_v24 = vpop.f32.mrf.mxu0  ;;  %v4681_v40 = vmul.f32 %v4609_v27, %v12066_v21  ;;  %6177 = vmatpush.bf16.msrb.mxu1 %v7849_v25  ;;  %v7774_v27 = vld [vmem:[%s9278_s22 + $0x68] sm:$0xf0]  ;;  %v7766_v25 = vld [vmem:[%s9278_s22 + $0x58] sm:$0xf0] }
 0x85d   : > { %v4345_v11 = vpop.f32.mrf.mxu1  ;;  %v4313_v8 = vadd.f32 %v4312_v24, %v11811_v22  ;;  %v12099_v26 = vpack.c.bf16 %v5025_v47, %v5017_v57  ;;  %v4688_v50 = vmul.f32 %v4616_v28, %v12071_v0  ;;  %v8523_v57 = vld [vmem:[%s9278_s22 + $0xe4] sm:$0xf]  ;;  %v7777_v52 = vor.u32 %v8507_v58, %v7774_v27  ;;  %v7838_v28 = vld [vmem:[%s9278_s22 + $0xe8] sm:$0xf0] }
 0x85e   : > { %v12102_v48 = vadd.f32 %v4409_v42, %v4377_v12  ;;  %v4753_v55 = vadd.f32 %v4681_v40, %v12066_v21  ;;  %v4464_v47 = vmul.f32 0.5, %v12049_v17  ;;  %v7841_v12 = vor.u32 %v8523_v57, %v7838_v28  ;;  %v8539_v24 = vld [vmem:[%s9278_s22 + $0x164] sm:$0xf]  ;;  %v8537_v28 = vld [vmem:[%s9278_s22 + $0x154] sm:$0xf] }
 0x85f   : > { %v12106_v51 = vadd.f32 %v4345_v11, %v4313_v8  ;;  %6124 = vmatmul.bf16.gmra.mxu3 %v12099_v26  ;;  %v4760_v18 = vadd.f32 %v4688_v50, %v12071_v0  ;;  %6145 = vmatpush.bf16.msrb.mxu0 %v7777_v52  ;;  %v7902_v11 = vld [vmem:[%s9278_s22 + $0x168] sm:$0xf0]  ;;  %v5032_v8 = vmul.f32 %v4960_v19, %v4456_v2  ;;  %v8505_v50 = vld [vmem:[%s9278_s22 + $0x54] sm:$0xf]  ;;  %v7830_v52 = vld [vmem:[%s9278_s22 + $0xd8] sm:$0xf0] }
 0x860   : > { %v8936_v3 = vpop.eup %8935  ;;  %v4545_v16 = vmul.f32 0.044715, %v12102_v48  ;;  %v4825_v6 = vmul.f32 0.7978846, %v4753_v55  ;;  %v7905_v32 = vor.u32 %v8539_v24, %v7902_v11  ;;  %v8521_v55 = vld [vmem:[%s9278_s22 + $0xd4] sm:$0xf]  ;;  %6178 = vmatpush.bf16.msrb.mxu1 %v7841_v12 }
 0x861   : > { %v8938_v39 = vpop.eup %8937  ;;  %v4552_v42 = vmul.f32 0.044715, %v12106_v51  ;;  %v4832_v1 = vmul.f32 0.7978846, %v4760_v18  ;;  %v8555_v24 = vld [vmem:[%s9278_s22 + $0x1e4] sm:$0xf] }
 0x862   : > { %v4617_v29 = vmul.f32 %v4545_v16, %v12102_v48  ;;  %v4968_v59 = vadd.f32 1.0, %v8938_v39  ;;  %8939 = vtanh.f32 %v4825_v6  ;;  %v4961_v16 = vadd.f32 1.0, %v8936_v3  ;;  %6211 = vmatpush.bf16.msrb.mxu2 %v7905_v32  ;;  %v7966_v11 = vld [vmem:[%s9278_s22 + $0x1e8] sm:$0xf0] }
 0x863   : > { %v4624_v40 = vmul.f32 %v4552_v42, %v12106_v51  ;;  %v4378_v53 = vpop.f32.mrf.mxu2  ;;  %v4411_v17 = vpop.f32.mrf.mxu3  ;;  %8941 = vtanh.f32 %v4832_v1  ;;  %v7769_v39 = vor.u32 %v8505_v50, %v7766_v25  ;;  %v7833_v42 = vor.u32 %v8521_v55, %v7830_v52  ;;  %v7894_v1 = vld [vmem:[%s9278_s22 + $0x158] sm:$0xf0] }
 0x864   : > { %v4379_v18 = vadd.f32 %v4378_v53, %v11914_v31  ;;  %v4315_v58 = vpop.f32.mrf.mxu0  ;;  %v5040_v57 = vmul.f32 %v4968_v59, %v4464_v47  ;;  %v4689_v6 = vmul.f32 %v4617_v29, %v12102_v48  ;;  %v7897_v59 = vor.u32 %v8537_v28, %v7894_v1  ;;  %v7822_v1 = vld [vmem:[%s9278_s22 + $0xc8] sm:$0xf0] }
 0x865   : > { %v4348_v27 = vpop.f32.mrf.mxu1  ;;  %v4316_v2 = vadd.f32 %v4315_v58, %v11811_v22  ;;  %v4696_v19 = vmul.f32 %v4624_v40, %v12106_v51  ;;  %v12148_v22 = vld [vmem:[%s685_s25] sm:$0x3]  ;;  %v7969_v53 = vor.u32 %v8555_v24, %v7966_v11  ;;  %6146 = vmatpush.bf16.msrb.mxu0 %v7769_v39  ;;  %6179 = vmatpush.bf16.msrb.mxu1 %v7833_v42  ;;  %v8535_v24 = vld [vmem:[%s9278_s22 + $0x144] sm:$0xf] }
 0x866   : > { %v12134_v47 = vadd.f32 %v4411_v17, %v4379_v18  ;;  %v12136_v3 = vpack.c.bf16 %v5040_v57, %v5032_v8  ;;  %v4761_v29 = vadd.f32 %v4689_v6, %v12102_v48  ;;  %v8503_v17 = vld [vmem:[%s9278_s22 + $0x44] sm:$0xf]  ;;  %v7758_v8 = vld [vmem:[%s9278_s22 + $0x48] sm:$0xf0]  ;;  %v4465_v57 = vmul.f32 0.5, %v12066_v21  ;;  %6212 = vmatpush.bf16.msrb.mxu2 %v7897_v59 }
 0x867   : > { %v12139_v12 = vadd.f32 %v4348_v27, %v4316_v2  ;;  %6030 = vmatmul.bf16.gmra.mxu0 %v11826_v63  ;;  %6063 = vmatmul.bf16.gmra.mxu1 %v11856_v54  ;;  %v4768_v40 = vadd.f32 %v4696_v19, %v12106_v51  ;;  %v7761_v55 = vor.u32 %v8503_v17, %v7758_v8  ;;  %v8519_v18 = vld [vmem:[%s9278_s22 + $0xc4] sm:$0xf]  ;;  %v12160_v19 = vperm.slane %v12148_v22, 0 }
 0x868   : > { %v8940_v32 = vpop.eup %8939  ;;  %v4553_v50 = vmul.f32 0.044715, %v12134_v47  ;;  %6096 = vmatmul.bf16.gmra.mxu2 %v12136_v3  ;;  %v4833_v25 = vmul.f32 0.7978846, %v4761_v29  ;;  %v5033_v2 = vmul.f32 %v4961_v16, %v4457_v10  ;;  %6244 = vmatpush.bf16.msrb.mxu3 %v7969_v53  ;;  %v7825_v59 = vor.u32 %v8519_v18, %v7822_v1  ;;  %v8553_v10 = vld [vmem:[%s9278_s22 + $0x1d4] sm:$0xf] }
 0x869   : > { %v8942_v58 = vpop.eup %8941  ;;  %v4560_v27 = vmul.f32 0.044715, %v12139_v12  ;;  %v4969_v6 = vadd.f32 1.0, %v8940_v32  ;;  %v4840_v52 = vmul.f32 0.7978846, %v4768_v40  ;;  %6147 = vmatpush.bf16.msrb.mxu0 %v7761_v55 }
 0x86a   : > { %v4625_v28 = vmul.f32 %v4553_v50, %v12134_v47  ;;  %v12162_v39 = vadd.f32 1.0, %v8942_v58  ;;  %v7886_v40 = vld [vmem:[%s9278_s22 + $0x148] sm:$0xf0]  ;;  %v7958_v16 = vld [vmem:[%s9278_s22 + $0x1d8] sm:$0xf0]  ;;  %6180 = vmatpush.bf16.msrb.mxu1 %v7825_v59 }
 0x86b   : > { %v4632_v21 = vmul.f32 %v4560_v27, %v12139_v12  ;;  %v4381_v11 = vpop.f32.mrf.mxu2  ;;  %v4414_v42 = vpop.f32.mrf.mxu3  ;;  %v5041_v29 = vmul.f32 %v4969_v6, %v4465_v57  ;;  %8943 = vtanh.f32 %v4840_v52  ;;  %v7889_v50 = vor.u32 %v8535_v24, %v7886_v40  ;;  %v8501_v58 = vld [vmem:[%s9278_s22 + $0x34] sm:$0xf]  ;;  %v7750_v27 = vld [vmem:[%s9278_s22 + $0x38] sm:$0xf0]  ;;  %v7950_v59 = vld [vmem:[%s9278_s22 + $0x1c8] sm:$0xf0] }
 0x86c   : > { %v4382_v17 = vadd.f32 %v4381_v11, %v11914_v31  ;;  %v4317_v53 = vpop.f32.mrf.mxu0  ;;  %v4697_v32 = vmul.f32 %v4625_v28, %v12134_v47  ;;  %8945 = vtanh.f32 %v4833_v25  ;;  %v8517_v18 = vld [vmem:[%s9278_s22 + $0xb4] sm:$0xf]  ;;  %v7961_v6 = vor.u32 %v8553_v10, %v7958_v16  ;;  %v7814_v1 = vld [vmem:[%s9278_s22 + $0xb8] sm:$0xf0]  ;;  %v7742_v10 = vld [vmem:[%s9278_s22 + $0x28] sm:$0xf0] }
 0x86d   : > { %v4350_v8 = vpop.f32.mrf.mxu1  ;;  %v12175_v57 = vpack.c.bf16 %v5041_v29, %v5033_v2  ;;  %v4704_v31 = vmul.f32 %v4632_v21, %v12139_v12  ;;  %v7753_v52 = vor.u32 %v8501_v58, %v7750_v27  ;;  %v8533_v28 = vld [vmem:[%s9278_s22 + $0x134] sm:$0xf]  ;;  %v7878_v25 = vld [vmem:[%s9278_s22 + $0x138] sm:$0xf0]  ;;  %6213 = vmatpush.bf16.msrb.mxu2 %v7889_v50  ;;  %v7817_v11 = vor.u32 %v8517_v18, %v7814_v1  ;;  %v8551_v29 = vld [vmem:[%s9278_s22 + $0x1c4] sm:$0xf] }
 0x86e   : > { %v12181_v55 = vadd.f32 %v4414_v42, %v4382_v17  ;;  %v4769_v24 = vadd.f32 %v4697_v32, %v12134_v47  ;;  %v7881_v2 = vor.u32 %v8533_v28, %v7878_v25  ;;  %v8499_v21 = vld [vmem:[%s9278_s22 + $0x24] sm:$0xf]  ;;  %6245 = vmatpush.bf16.msrb.mxu3 %v7961_v6  ;;  %v7953_v17 = vor.u32 %v8551_v29, %v7950_v59  ;;  %v7806_v32 = vld [vmem:[%s9278_s22 + $0xa8] sm:$0xf0] }
 0x86f   : > { %6129 = vmatmul.bf16.gmra.mxu3 %v12175_v57  ;;  %v4776_v40 = vadd.f32 %v4704_v31, %v12139_v12  ;;  %v8515_v16 = vld [vmem:[%s9278_s22 + $0xa4] sm:$0xf]  ;;  %6148 = vmatpush.bf16.msrb.mxu0 %v7753_v52  ;;  %v7745_v8 = vor.u32 %v8499_v21, %v7742_v10  ;;  %v4472_v58 = vmul.f32 0.5, %v12071_v0  ;;  %v4480_v27 = vmul.f32 0.5, %v12106_v51  ;;  %v8549_v0 = vld [vmem:[%s9278_s22 + $0x1b4] sm:$0xf] }
 0x870   : > { %v4561_v53 = vmul.f32 0.044715, %v12181_v55  ;;  %v4841_v42 = vmul.f32 0.7978846, %v4769_v24  ;;  %6181 = vmatpush.bf16.msrb.mxu1 %v7817_v11  ;;  %v7809_v31 = vor.u32 %v8515_v16, %v7806_v32  ;;  %v8531_v1 = vld [vmem:[%s9278_s22 + $0x124] sm:$0xf] }
 0x871   : > { %v8944_v50 = vpop.eup %8943  ;;  %v4848_v18 = vmul.f32 0.7978846, %v4776_v40  ;;  %v12198_v25 = vmul.f32 0.5, %v12102_v48  ;;  %6214 = vmatpush.bf16.msrb.mxu2 %v7881_v2  ;;  %v7870_v24 = vld [vmem:[%s9278_s22 + $0x128] sm:$0xf0]  ;;  %v5048_v11 = vmul.f32 %v12162_v39, %v4472_v58 }
 0x872   : > { %v8946_v28 = vpop.eup %8945  ;;  %v4633_v6 = vmul.f32 %v4561_v53, %v12181_v55  ;;  %v4984_v52 = vadd.f32 1.0, %v8944_v50  ;;  %8947 = vtanh.f32 %v4841_v42  ;;  %v7873_v59 = vor.u32 %v8531_v1, %v7870_v24  ;;  %v7942_v40 = vld [vmem:[%s9278_s22 + $0x1b8] sm:$0xf0]  ;;  %v8497_v21 = vld [vmem:[%s9278_s22 + $0x14] sm:$0xf]  ;;  %6246 = vmatpush.bf16.msrb.mxu3 %v7953_v17 }
 0x873   : > { %v4383_v29 = vpop.f32.mrf.mxu2  ;;  %v4416_v51 = vpop.f32.mrf.mxu3  ;;  %8949 = vtanh.f32 %v12088_v46  ;;  %v7734_v10 = vld [vmem:[%s9278_s22 + $0x18] sm:$0xf0]  ;;  %6149 = vmatpush.bf16.msrb.mxu0 %v7745_v8  ;;  %v7945_v42 = vor.u32 %v8549_v0, %v7942_v40  ;;  %v8513_v39 = vld [vmem:[%s9278_s22 + $0x94] sm:$0xf]  ;;  %v4977_v8 = vadd.f32 1.0, %v8946_v28 }
 0x874   : > { %v5889_v16 = vpop.f32.mrf.mxu0  ;;  %v5056_v53 = vmul.f32 %v4984_v52, %v4480_v27  ;;  %8951 = vtanh.f32 %v12096_v38  ;;  %v4705_v2 = vmul.f32 %v4633_v6, %v12181_v55  ;;  %v7798_v32 = vld [vmem:[%s9278_s22 + $0x98] sm:$0xf0]  ;;  %v8529_v46 = vld [vmem:[%s9278_s22 + $0x114] sm:$0xf]  ;;  %6182 = vmatpush.bf16.msrb.mxu1 %v7809_v31  ;;  %v7737_v58 = vor.u32 %v8497_v21, %v7734_v10  ;;  %v8547_v52 = vld [vmem:[%s9278_s22 + $0x1a4] sm:$0xf] }
 0x875   : > { %v5922_v48 = vpop.f32.mrf.mxu1  ;;  %v5890_v50 = vadd.f32 %v5889_v16, %v12160_v19  ;;  %8953 = vtanh.f32 %v4848_v18  ;;  %v7801_v27 = vor.u32 %v8513_v39, %v7798_v32  ;;  %v7862_v38 = vld [vmem:[%s9278_s22 + $0x118] sm:$0xf0]  ;;  %6215 = vmatpush.bf16.msrb.mxu2 %v7873_v59  ;;  %v7934_v24 = vld [vmem:[%s9278_s22 + $0x1a8] sm:$0xf0]  ;;  %v8495_v18 = vld [vmem:[%s9278_s22 + $0x4] sm:$0xf] }
 0x876   : > { %v12214_v17 = vpack.c.bf16 %v5056_v53, %v5048_v11  ;;  %v4777_v1 = vadd.f32 %v4705_v2, %v12181_v55  ;;  %v7865_v6 = vor.u32 %v8529_v46, %v7862_v38  ;;  %v7726_v31 = vld [vmem:[%s9278_s22 + $0x8] sm:$0xf0]  ;;  %v8511_v29 = vld [vmem:[%s9278_s22 + $0x84] sm:$0xf]  ;;  %6247 = vmatpush.bf16.msrb.mxu3 %v7945_v42  ;;  %v7937_v11 = vor.u32 %v8547_v52, %v7934_v24  ;;  %v8545_v39 = vld [vmem:[%s9278_s22 + $0x194] sm:$0xf] }
 0x877   : > { %v5923_v0 = vadd.f32 %v5922_v48, %v5890_v50  ;;  %6035 = vmatmul.bf16.gmra.mxu0 %v11960_v30  ;;  %6068 = vmatmul.bf16.gmra.mxu1 %v11984_v62  ;;  %v7790_v59 = vld [vmem:[%s9278_s22 + $0x88] sm:$0xf0]  ;;  %v8527_v40 = vld [vmem:[%s9278_s22 + $0x104] sm:$0xf]  ;;  %v4481_v10 = vmul.f32 0.5, %v12134_v47  ;;  %v7729_v48 = vor.u32 %v8495_v18, %v7726_v31  ;;  %v5049_v52 = vmul.f32 %v4977_v8, %v12198_v25 }
 0x878   : > { %12661 = vst [vmem:[#allocation35_spill] sm:$0xff] %v12214_v17  ;;  %v8948_v51 = vpop.eup %8947  ;;  %6101 = vmatmul.bf16.gmra.mxu2 %v12214_v17  ;;  %v4849_v28 = vmul.f32 0.7978846, %v4777_v1  ;;  %6150 = vmatpush.bf16.msrb.mxu0 %v7737_v58  ;;  %v7793_v53 = vor.u32 %v8511_v29, %v7790_v59  ;;  %v7854_v2 = vld [vmem:[%s9278_s22 + $0x108] sm:$0xf0] }
 0x879   : > { %v8950_v21 = vpop.eup %8949  ;;  %v4985_v16 = vadd.f32 1.0, %v8948_v51  ;;  %6183 = vmatpush.bf16.msrb.mxu1 %v7801_v27  ;;  %6216 = vmatpush.bf16.msrb.mxu2 %v7865_v6  ;;  %v7857_v46 = vor.u32 %v8527_v40, %v7854_v2  ;;  %v7926_v50 = vld [vmem:[%s9278_s22 + $0x198] sm:$0xf0]  ;;  %v8543_v8 = vld [vmem:[%s9278_s22 + $0x184] sm:$0xf]  ;;  %v4488_v40 = vmul.f32 0.5, %v12139_v12 }
 0x87a   : > { %v8952_v32 = vpop.eup %8951  ;;  %8955 = vtanh.f32 %v4849_v28  ;;  %6248 = vmatpush.bf16.msrb.mxu3 %v7937_v11  ;;  %v7929_v27 = vor.u32 %v8545_v39, %v7926_v50  ;;  %v4990_v6 = vadd.f32 1.0, %v8950_v21  ;;  %v4486_v28 = vmul.f32 0.5, %v11828_v37 }
 0x87b   : > { %v8954_v38 = vpop.eup %8953  ;;  %v5955_v42 = vpop.f32.mrf.mxu2  ;;  %v5057_v24 = vmul.f32 %v4985_v16, %v4481_v10  ;;  %v4991_v29 = vadd.f32 1.0, %v8952_v32  ;;  %v4487_v11 = vmul.f32 0.5, %v11861_v14 }
 0x87c   : > { %v5988_v1 = vpop.f32.mrf.mxu3  ;;  %v5956_v17 = vadd.f32 %v5955_v42, %v5923_v0  ;;  %v5891_v47 = vpop.f32.mrf.mxu0  ;;  %6151 = vmatpush.bf16.msrb.mxu0 %v7729_v48  ;;  %v4992_v25 = vadd.f32 1.0, %v8954_v38  ;;  %v7918_v0 = vld [vmem:[%s9278_s22 + $0x188] sm:$0xf0]  ;;  %v5062_v10 = vmul.f32 %v4990_v6, %v4486_v28 }
 0x87d   : > { %v5924_v58 = vpop.f32.mrf.mxu1  ;;  %v5892_v18 = vadd.f32 %v5891_v47, %v12160_v19  ;;  %v12233_v31 = vpack.c.bf16 %v5057_v24, %v5049_v52  ;;  %6184 = vmatpush.bf16.msrb.mxu1 %v7793_v53  ;;  %6217 = vmatpush.bf16.msrb.mxu2 %v7857_v46  ;;  %v7921_v21 = vor.u32 %v8543_v8, %v7918_v0  ;;  %v4489_v52 = vmul.f32 0.5, %v12181_v55 }
 0x87e   : > { %v12235_v51 = vadd.f32 %v5988_v1, %v5956_v17  ;;  %6249 = vmatpush.bf16.msrb.mxu3 %v7929_v27  ;;  %v5063_v16 = vmul.f32 %v4991_v29, %v4487_v11  ;;  %v5064_v17 = vmul.f32 %v4992_v25, %v4488_v40  ;;  %v12244_v38 = vpack.c.bf16 %v5062_v10, %v5062_v10 }
 0x87f   : > { %v5925_v59 = vadd.f32 %v5924_v58, %v5892_v18  ;;  %6134 = vmatmul.bf16.gmra.mxu3 %v12233_v31 }
 0x880   : > { %v8956_v48 = vpop.eup %8955  ;;  %v12246_v37 = vpack.c.bf16 %v5063_v16, %v5063_v16  ;;  %v12250_v42 = vpack.c.bf16 %v5064_v17, %v5064_v17 }
 0x881   : > { %v4993_v14 = vadd.f32 1.0, %v8956_v48 }
 0x882   : > { %6250 = vmatpush.bf16.msrb.mxu3 %v7921_v21 }
 0x883   : > { %v5957_v53 = vpop.f32.mrf.mxu2  ;;  %v5065_v24 = vmul.f32 %v4993_v14, %v4489_v52 }
 0x884   : > { %v5990_v2 = vpop.f32.mrf.mxu3  ;;  %v5958_v39 = vadd.f32 %v5957_v53, %v5925_v59  ;;  %v5894_v32 = vpop.f32.mrf.mxu0 }
 0x885   : > { %v5927_v46 = vpop.f32.mrf.mxu1  ;;  %v5895_v50 = vadd.f32 %v5894_v32, %v12160_v19  ;;  %v12257_v25 = vpack.c.bf16 %v5065_v24, %v5065_v24 }
 0x886   : > { %v12248_v12 = vadd.f32 %v5990_v2, %v5958_v39 }
 0x887   : > { %v5928_v1 = vadd.f32 %v5927_v46, %v5895_v50  ;;  %6040 = vmatmul.bf16.gmra.mxu0 %v12244_v38  ;;  %6073 = vmatmul.bf16.gmra.mxu1 %v12246_v37 }
 0x888   : > { %6106 = vmatmul.bf16.gmra.mxu2 %v12250_v42 }
 0x88b   : > { %v5960_v47 = vpop.f32.mrf.mxu2 }
 0x88c   : > { %v5993_v58 = vpop.f32.mrf.mxu3  ;;  %v5961_v27 = vadd.f32 %v5960_v47, %v5928_v1  ;;  %v5896_v18 = vpop.f32.mrf.mxu0 }
 0x88d   : > { %v5929_v6 = vpop.f32.mrf.mxu1  ;;  %v5897_v29 = vadd.f32 %v5896_v18, %v12160_v19 }
 0x88e   : > { %v12259_v8 = vadd.f32 %v5993_v58, %v5961_v27  ;;  %v8166_v58 = vld [vmem:[%s9278_s22 + $0x378] sm:$0xf0]  ;;  %v8621_v27 = vld [vmem:[%s9278_s22 + $0x3f4] sm:$0xf] }
 0x88f   : > { %v5930_v0 = vadd.f32 %v5929_v6, %v5897_v29  ;;  %6139 = vmatmul.bf16.gmra.mxu3 %v12257_v25  ;;  %v8230_v6 = vld [vmem:[%s9278_s22 + $0x3f8] sm:$0xf0]  ;;  %v8573_v29 = vld [vmem:[%s9278_s22 + $0x274] sm:$0xf] }
 0x893   : > { %v5962_v59 = vpop.f32.mrf.mxu2 }
 0x894   : > { %v5995_v28 = vpop.f32.mrf.mxu3  ;;  %v5963_v55 = vadd.f32 %v5962_v59, %v5930_v0  ;;  %v5899_v11 = vpop.f32.mrf.mxu0  ;;  %v8038_v0 = vld [vmem:[%s9278_s22 + $0x278] sm:$0xf0]  ;;  %v8233_v59 = vor.u32 %v8621_v27, %v8230_v6 }
 0x895   : > { %v5932_v40 = vpop.f32.mrf.mxu1  ;;  %v5900_v21 = vadd.f32 %v5899_v11, %v12160_v19  ;;  %v8102_v11 = vld [vmem:[%s9278_s22 + $0x2f8] sm:$0xf0] }
 0x896   : > { %v12263_v10 = vadd.f32 %v5995_v28, %v5963_v55  ;;  %v8041_v28 = vor.u32 %v8573_v29, %v8038_v0  ;;  %v8589_v55 = vld [vmem:[%s9278_s22 + $0x2f4] sm:$0xf]  ;;  %6375 = vmatpush.bf16.msra.mxu3 %v8233_v59 }
 0x897   : > { %v5933_v16 = vadd.f32 %v5932_v40, %v5900_v21  ;;  %6152 = vmatmul.bf16.vlgmr.msrb.gmra.mxu0 %v11521_v36  ;;  %6185 = vmatmul.bf16.vlgmr.msrb.gmra.mxu1 %v11538_v44 }
 0x898   : > { %6218 = vmatmul.bf16.vlgmr.msrb.gmra.mxu2 %v12651_v15  ;;  %6276 = vmatpush.bf16.msra.mxu0 %v8041_v28 }
 0x89b   : > { %v5965_v48 = vpop.f32.mrf.mxu2 }
 0x89c   : > { %v5998_v17 = vpop.f32.mrf.mxu3  ;;  %v5966_v53 = vadd.f32 %v5965_v48, %v5933_v16  ;;  %v5901_v2 = vpop.f32.mrf.mxu0 }
 0x89d   : > { %v5934_v39 = vpop.f32.mrf.mxu1  ;;  %v5902_v32 = vadd.f32 %v5901_v2, %v12160_v19  ;;  %v12662_v2 = vld [vmem:[#allocation48_spill] sm:$0xff] }
 0x89e   : > { %v12269_v46 = vadd.f32 %v5998_v17, %v5966_v53 }
 0x89f   : > { %v5935_v50 = vadd.f32 %v5934_v39, %v5902_v32  ;;  %6251 = vmatmul.bf16.vlgmr.msrb.gmra.mxu3 %v12652_v9  ;;  %v8605_v9 = vld [vmem:[%s9278_s22 + $0x374] sm:$0xf]  ;;  %v8571_v39 = vld [vmem:[%s9278_s22 + $0x264] sm:$0xf]  ;;  %v8030_v32 = vld [vmem:[%s9278_s22 + $0x268] sm:$0xf0] }
 0x8a0   : > { %v8169_v18 = vor.u32 %v8605_v9, %v8166_v58  ;;  %v8022_v9 = vld [vmem:[%s9278_s22 + $0x258] sm:$0xf0]  ;;  %v8585_v58 = vld [vmem:[%s9278_s22 + $0x2d4] sm:$0xf] }
 0x8a2   : > { %6342 = vmatpush.bf16.msra.mxu2 %v8169_v18  ;;  %v8086_v18 = vld [vmem:[%s9278_s22 + $0x2d8] sm:$0xf0] }
 0x8a3   : > { %v5967_v36 = vpop.f32.mrf.mxu2 }
 0x8a4   : > { %v6000_v44 = vpop.f32.mrf.mxu3  ;;  %v5968_v15 = vadd.f32 %v5967_v36, %v5935_v50  ;;  %v5904_v14 = vpop.f32.mrf.mxu0  ;;  %v8587_v50 = vld [vmem:[%s9278_s22 + $0x2e4] sm:$0xf]  ;;  %v8033_v36 = vor.u32 %v8571_v39, %v8030_v32 }
 0x8a5   : > { %v5937_v1 = vpop.f32.mrf.mxu1  ;;  %v5905_v52 = vadd.f32 %v5904_v14, %v12160_v19  ;;  %v8158_v14 = vld [vmem:[%s9278_s22 + $0x368] sm:$0xf0] }
 0x8a6   : > { %v12273_v24 = vadd.f32 %v6000_v44, %v5968_v15  ;;  %v8094_v44 = vld [vmem:[%s9278_s22 + $0x2e8] sm:$0xf0]  ;;  %v8603_v15 = vld [vmem:[%s9278_s22 + $0x364] sm:$0xf]  ;;  %6277 = vmatpush.bf16.msra.mxu0 %v8033_v36 }
 0x8a7   : > { %v5938_v47 = vadd.f32 %v5937_v1, %v5905_v52  ;;  %6157 = vmatmul.bf16.gmra.mxu0 %v11622_v13  ;;  %6190 = vmatmul.bf16.gmra.mxu1 %v11634_v4  ;;  %v8105_v13 = vor.u32 %v8589_v55, %v8102_v11  ;;  %v8097_v1 = vor.u32 %v8587_v50, %v8094_v44  ;;  %v8599_v50 = vld [vmem:[%s9278_s22 + $0x344] sm:$0xf]  ;;  %v8142_v44 = vld [vmem:[%s9278_s22 + $0x348] sm:$0xf0] }
 0x8a8   : > { %6223 = vmatmul.bf16.gmra.mxu2 %v12655_v43  ;;  %v8161_v52 = vor.u32 %v8603_v15, %v8158_v14  ;;  %v8089_v55 = vor.u32 %v8585_v58, %v8086_v18  ;;  %v8617_v15 = vld [vmem:[%s9278_s22 + $0x3d4] sm:$0xf]  ;;  %v8214_v14 = vld [vmem:[%s9278_s22 + $0x3d8] sm:$0xf0] }
 0x8a9   : > { %6309 = vmatpush.bf16.msra.mxu1 %v8105_v13  ;;  %v8006_v58 = vld [vmem:[%s9278_s22 + $0x238] sm:$0xf0] }
 0x8aa   : > { %6343 = vmatpush.bf16.msra.mxu2 %v8161_v52 }
 0x8ab   : > { %v5970_v40 = vpop.f32.mrf.mxu2 }
 0x8ac   : > { %v6003_v4 = vpop.f32.mrf.mxu3  ;;  %v5971_v43 = vadd.f32 %v5970_v40, %v5938_v47  ;;  %v5906_v21 = vpop.f32.mrf.mxu0  ;;  %v8569_v47 = vld [vmem:[%s9278_s22 + $0x254] sm:$0xf] }
 0x8ad   : > { %v5939_v16 = vpop.f32.mrf.mxu1  ;;  %v5907_v48 = vadd.f32 %v5906_v21, %v12160_v19  ;;  %v8025_v27 = vor.u32 %v8569_v47, %v8022_v9  ;;  %6310 = vmatpush.bf16.msra.mxu1 %v8097_v1  ;;  %v8619_v21 = vld [vmem:[%s9278_s22 + $0x3e4] sm:$0xf]  ;;  %v8145_v47 = vor.u32 %v8599_v50, %v8142_v44  ;;  %v8565_v9 = vld [vmem:[%s9278_s22 + $0x234] sm:$0xf] }
 0x8ae   : > { %v12287_v17 = vadd.f32 %v6003_v4, %v5971_v43  ;;  %v8601_v4 = vld [vmem:[%s9278_s22 + $0x354] sm:$0xf]  ;;  %v8150_v43 = vld [vmem:[%s9278_s22 + $0x358] sm:$0xf0] }
 0x8af   : > { %v5940_v53 = vadd.f32 %v5939_v16, %v5907_v48  ;;  %6256 = vmatmul.bf16.gmra.mxu3 %v12662_v2  ;;  %6278 = vmatpush.bf16.msra.mxu0 %v8025_v27  ;;  %v12663_v16 = vld [vmem:[#allocation49_spill] sm:$0xff]  ;;  %v8222_v48 = vld [vmem:[%s9278_s22 + $0x3e8] sm:$0xf0]  ;;  %v8581_v27 = vld [vmem:[%s9278_s22 + $0x2b4] sm:$0xf] }
 0x8b0   : > { %v8014_v2 = vld [vmem:[%s9278_s22 + $0x248] sm:$0xf0]  ;;  %v8225_v39 = vor.u32 %v8619_v21, %v8222_v48  ;;  %v8615_v21 = vld [vmem:[%s9278_s22 + $0x3c4] sm:$0xf]  ;;  %v8613_v44 = vld [vmem:[%s9278_s22 + $0x3b4] sm:$0xf] }
 0x8b1   : > { %6311 = vmatpush.bf16.msra.mxu1 %v8089_v55  ;;  %v8563_v48 = vld [vmem:[%s9278_s22 + $0x224] sm:$0xf] }
 0x8b2   : > { %6376 = vmatpush.bf16.msra.mxu3 %v8225_v39 }
 0x8b3   : > { %v5972_v6 = vpop.f32.mrf.mxu2 }
 0x8b4   : > { %v6005_v29 = vpop.f32.mrf.mxu3  ;;  %v5973_v0 = vadd.f32 %v5972_v6, %v5940_v53  ;;  %v5909_v59 = vpop.f32.mrf.mxu0  ;;  %v8567_v53 = vld [vmem:[%s9278_s22 + $0x244] sm:$0xf] }
 0x8b5   : > { %v5942_v28 = vpop.f32.mrf.mxu1  ;;  %v5910_v11 = vadd.f32 %v5909_v59, %v12160_v19  ;;  %v8153_v19 = vor.u32 %v8601_v4, %v8150_v43  ;;  %v8017_v32 = vor.u32 %v8567_v53, %v8014_v2  ;;  %v8009_v59 = vor.u32 %v8565_v9, %v8006_v58  ;;  %v12664_v4 = vld [vmem:[#allocation50_spill] sm:$0xff]  ;;  %v8134_v43 = vld [vmem:[%s9278_s22 + $0x338] sm:$0xf0]  ;;  %v7998_v53 = vld [vmem:[%s9278_s22 + $0x228] sm:$0xf0] }
 0x8b6   : > { %v12301_v13 = vadd.f32 %v6005_v29, %v5973_v0  ;;  %v8217_v0 = vor.u32 %v8617_v15, %v8214_v14  ;;  %v8001_v39 = vor.u32 %v8563_v48, %v7998_v53  ;;  %v8198_v15 = vld [vmem:[%s9278_s22 + $0x3b8] sm:$0xf0]  ;;  %v8577_v58 = vld [vmem:[%s9278_s22 + $0x294] sm:$0xf]  ;;  %v8559_v48 = vld [vmem:[%s9278_s22 + $0x204] sm:$0xf] }
 0x8b7   : > { %v5943_v40 = vadd.f32 %v5942_v28, %v5910_v11  ;;  %6162 = vmatmul.bf16.gmra.mxu0 %v11760_v56  ;;  %6195 = vmatmul.bf16.gmra.mxu1 %v11762_v33  ;;  %v8583_v56 = vld [vmem:[%s9278_s22 + $0x2c4] sm:$0xf]  ;;  %v8078_v33 = vld [vmem:[%s9278_s22 + $0x2c8] sm:$0xf0]  ;;  %v8070_v28 = vld [vmem:[%s9278_s22 + $0x2b8] sm:$0xf0] }
 0x8b8   : > { %6228 = vmatmul.bf16.gmra.mxu2 %v12663_v16  ;;  %v8081_v36 = vor.u32 %v8583_v56, %v8078_v33  ;;  %6279 = vmatpush.bf16.msra.mxu0 %v8017_v32  ;;  %v8073_v55 = vor.u32 %v8581_v27, %v8070_v28  ;;  %v8579_v32 = vld [vmem:[%s9278_s22 + $0x2a4] sm:$0xf]  ;;  %v8062_v56 = vld [vmem:[%s9278_s22 + $0x2a8] sm:$0xf0]  ;;  %v7990_v9 = vld [vmem:[%s9278_s22 + $0x218] sm:$0xf0] }
 0x8b9   : > { %6344 = vmatpush.bf16.msra.mxu2 %v8153_v19  ;;  %6377 = vmatpush.bf16.msra.mxu3 %v8217_v0  ;;  %v8206_v19 = vld [vmem:[%s9278_s22 + $0x3c8] sm:$0xf0]  ;;  %v8595_v33 = vld [vmem:[%s9278_s22 + $0x324] sm:$0xf]  ;;  %v8065_v50 = vor.u32 %v8579_v32, %v8062_v56 }
 0x8ba   : > { %6312 = vmatpush.bf16.msra.mxu1 %v8081_v36  ;;  %v8209_v2 = vor.u32 %v8615_v21, %v8206_v19  ;;  %v8126_v36 = vld [vmem:[%s9278_s22 + $0x328] sm:$0xf0]  ;;  %v12665_v28 = vld [vmem:[#allocation38_spill] sm:$0xff] }
 0x8bb   : > { %v5975_v1 = vpop.f32.mrf.mxu2  ;;  %v12667_v21 = vld [vmem:[#allocation39_spill] sm:$0xff]  ;;  %v8575_v32 = vld [vmem:[%s9278_s22 + $0x284] sm:$0xf] }
 0x8bc   : > { %v6008_v52 = vpop.f32.mrf.mxu3  ;;  %v5976_v18 = vadd.f32 %v5975_v1, %v5943_v40  ;;  %v5911_v6 = vpop.f32.mrf.mxu0  ;;  %6280 = vmatpush.bf16.msra.mxu0 %v8009_v59  ;;  %v8597_v40 = vld [vmem:[%s9278_s22 + $0x334] sm:$0xf]  ;;  %v8190_v19 = vld [vmem:[%s9278_s22 + $0x3a8] sm:$0xf0] }
 0x8bd   : > { %v5944_v29 = vpop.f32.mrf.mxu1  ;;  %6345 = vmatpush.bf16.msra.mxu2 %v8145_v47  ;;  %v8137_v16 = vor.u32 %v8597_v40, %v8134_v43  ;;  %v8561_v47 = vld [vmem:[%s9278_s22 + $0x214] sm:$0xf]  ;;  %6378 = vmatpush.bf16.msra.mxu3 %v8209_v2  ;;  %v8201_v6 = vor.u32 %v8613_v44, %v8198_v15  ;;  %v8118_v40 = vld [vmem:[%s9278_s22 + $0x318] sm:$0xf0]  ;;  %v8611_v43 = vld [vmem:[%s9278_s22 + $0x3a4] sm:$0xf] }
 0x8be   : > { %v12322_v11 = vadd.f32 %v6008_v52, %v5976_v18  ;;  %6313 = vmatpush.bf16.msra.mxu1 %v8073_v55  ;;  %v8129_v52 = vor.u32 %v8595_v33, %v8126_v36  ;;  %v8054_v29 = vld [vmem:[%s9278_s22 + $0x298] sm:$0xf0]  ;;  %v7993_v0 = vor.u32 %v8561_v47, %v7990_v9  ;;  %v12666_v55 = vld [vmem:[#allocation40_spill] sm:$0xff]  ;;  %v7982_v53 = vld [vmem:[%s9278_s22 + $0x208] sm:$0xf0]  ;;  %v8193_v2 = vor.u32 %v8611_v43, %v8190_v19 }
 0x8bf   : > { %6261 = vmatmul.bf16.gmra.mxu3 %v12664_v4  ;;  %v8057_v59 = vor.u32 %v8577_v58, %v8054_v29  ;;  %v8593_v4 = vld [vmem:[%s9278_s22 + $0x314] sm:$0xf]  ;;  %v8046_v56 = vld [vmem:[%s9278_s22 + $0x288] sm:$0xf0]  ;;  %v8591_v33 = vld [vmem:[%s9278_s22 + $0x304] sm:$0xf] }
 0x8c0   : > { %6281 = vmatpush.bf16.msra.mxu0 %v8001_v39  ;;  %v7985_v39 = vor.u32 %v8559_v48, %v7982_v53  ;;  %v8110_v36 = vld [vmem:[%s9278_s22 + $0x308] sm:$0xf0]  ;;  %v8609_v44 = vld [vmem:[%s9278_s22 + $0x394] sm:$0xf]  ;;  %v8182_v15 = vld [vmem:[%s9278_s22 + $0x398] sm:$0xf0] }
 0x8c1   : > { %6346 = vmatpush.bf16.msra.mxu2 %v8137_v16  ;;  %6379 = vmatpush.bf16.msra.mxu3 %v8201_v6  ;;  %v8121_v16 = vor.u32 %v8593_v4, %v8118_v40  ;;  %v8185_v58 = vor.u32 %v8609_v44, %v8182_v15  ;;  %v12668_v29 = vld [vmem:[#allocation34_spill] sm:$0xff] }
 0x8c2   : > { %6314 = vmatpush.bf16.msra.mxu1 %v8065_v50  ;;  %v8049_v50 = vor.u32 %v8575_v32, %v8046_v56 }
 0x8c3   : > { %v5977_v14 = vpop.f32.mrf.mxu2 }
 0x8c4   : > { %v6010_v1 = vpop.f32.mrf.mxu3  ;;  %v6021_v27 = vpop.f32.mrf.mxu0  ;;  %6282 = vmatpush.bf16.msra.mxu0 %v7993_v0  ;;  %v8607_v0 = vld [vmem:[%s9278_s22 + $0x384] sm:$0xf] }
 0x8c5   : > { %v6054_v18 = vpop.f32.mrf.mxu1  ;;  %6347 = vmatpush.bf16.msra.mxu2 %v8129_v52  ;;  %v6022_v14 = vadd.f32 %v6021_v27, %v12235_v51  ;;  %v8113_v52 = vor.u32 %v8591_v33, %v8110_v36  ;;  %6380 = vmatpush.bf16.msra.mxu3 %v8193_v2  ;;  %v12670_v33 = vld [vmem:[#allocation16_spill] sm:$0xff] }
 0x8c6   : > { %6315 = vmatpush.bf16.msra.mxu1 %v8057_v59  ;;  %v8174_v59 = vld [vmem:[%s9278_s22 + $0x388] sm:$0xf0] }
 0x8c7   : > { %6167 = vmatmul.bf16.gmra.mxu0 %v12665_v28  ;;  %6200 = vmatmul.bf16.gmra.mxu1 %v12666_v55  ;;  %v6055_v6 = vadd.f32 %v6054_v18, %v6022_v14  ;;  %v8177_v28 = vor.u32 %v8607_v0, %v8174_v59  ;;  %v12672_v59 = vld [vmem:[#allocation21_spill] sm:$0xff] }
 0x8c8   : > { %6233 = vmatmul.bf16.gmra.mxu2 %v12667_v21  ;;  %6283 = vmatpush.bf16.msra.mxu0 %v7985_v39 }
 0x8c9   : > { %6348 = vmatpush.bf16.msra.mxu2 %v8121_v16  ;;  %6381 = vmatpush.bf16.msra.mxu3 %v8185_v58  ;;  %v12669_v16 = vld [vmem:[#allocation15_spill] sm:$0xff] }
 0x8ca   : > { %6316 = vmatpush.bf16.msra.mxu1 %v8049_v50 }
 0x8cb   : > { %v6087_v1 = vpop.f32.mrf.mxu2 }
 0x8cc   : > { %v6023_v47 = vpop.f32.mrf.mxu0  ;;  %v6088_v55 = vadd.f32 %v6087_v1, %v6055_v6 }
 0x8cd   : > { %v6056_v9 = vpop.f32.mrf.mxu1  ;;  %6349 = vmatpush.bf16.msra.mxu2 %v8113_v52  ;;  %v6024_v51 = vadd.f32 %v6023_v47, %v12248_v12  ;;  %6382 = vmatpush.bf16.msra.mxu3 %v8177_v28 }
 0x8cf   : > { %6266 = vmatmul.bf16.gmra.mxu3 %v12668_v29  ;;  %v6057_v18 = vadd.f32 %v6056_v9, %v6024_v51 }
 0x8d2   : > { %v6120_v4 = vpop.f32.mrf.mxu3 }
 0x8d3   : > { %v6121_v27 = vadd.f32 %v6120_v4, %v6088_v55  ;;  %v6089_v40 = vpop.f32.mrf.mxu2 }
 0x8d4   : > { %v6026_v43 = vpop.f32.mrf.mxu0  ;;  %v6090_v48 = vadd.f32 %v6089_v40, %v6057_v18 }
 0x8d5   : > { %v6059_v21 = vpop.f32.mrf.mxu1  ;;  %v6408_v19 = vadd.f32 %v6121_v27, %v12669_v16  ;;  %v6027_v12 = vadd.f32 %v6026_v43, %v12259_v8  ;;  %v12671_v8 = vld [vmem:[#allocation19_spill] sm:$0xff] }
 0x8d7   : > { %6426 = vst [vmem:[%s9287_s19] sm:$0xff] %v6408_v19  ;;  %6172 = vmatmul.bf16.gmra.mxu0 %v11955_v7  ;;  %6205 = vmatmul.bf16.gmra.mxu1 %v11963_v61  ;;  %v6060_v36 = vadd.f32 %v6059_v21, %v6027_v12  ;;  %v12674_v12 = vld [vmem:[#allocation25_spill] sm:$0xff] }
 0x8d8   : > { %6238 = vmatmul.bf16.gmra.mxu2 %v11965_v41 }
 0x8da   : > { %v6122_v53 = vpop.f32.mrf.mxu3 }
 0x8db   : > { %v6123_v2 = vadd.f32 %v6122_v53, %v6090_v48  ;;  %v6092_v39 = vpop.f32.mrf.mxu2 }
 0x8dc   : > { %v6028_v32 = vpop.f32.mrf.mxu0  ;;  %v6093_v7 = vadd.f32 %v6092_v39, %v6060_v36 }
 0x8dd   : > { %v6061_v56 = vpop.f32.mrf.mxu1  ;;  %v6410_v50 = vadd.f32 %v6123_v2, %v12670_v33  ;;  %v6029_v61 = vadd.f32 %v6028_v32, %v12263_v10 }
 0x8df   : > { %6428 = vst [vmem:[%s9287_s19 + $0x10] sm:$0xff] %v6410_v50  ;;  %6271 = vmatmul.bf16.gmra.mxu3 %v11967_v5  ;;  %v6062_v47 = vadd.f32 %v6061_v56, %v6029_v61 }
 0x8e2   : > { %v6125_v44 = vpop.f32.mrf.mxu3 }
 0x8e3   : > { %v6126_v41 = vadd.f32 %v6125_v44, %v6093_v7  ;;  %v6094_v15 = vpop.f32.mrf.mxu2 }
 0x8e4   : > { %v6031_v14 = vpop.f32.mrf.mxu0  ;;  %v6095_v5 = vadd.f32 %v6094_v15, %v6062_v47 }
 0x8e5   : > { %v6064_v1 = vpop.f32.mrf.mxu1  ;;  %v6412_v52 = vadd.f32 %v6126_v41, %v12671_v8  ;;  %v6032_v58 = vadd.f32 %v6031_v14, %v12269_v46  ;;  %v12673_v46 = vld [vmem:[#allocation23_spill] sm:$0xff] }
 0x8e7   : > { %6430 = vst [vmem:[%s9287_s19 + $0x20] sm:$0xff] %v6412_v52  ;;  %6284 = vmatmul.bf16.vlgmr.msra.gmra.mxu0 %v11691_v35  ;;  %6317 = vmatmul.bf16.vlgmr.msra.gmra.mxu1 %v11716_v60  ;;  %v6065_v55 = vadd.f32 %v6064_v1, %v6032_v58  ;;  %v12676_v1 = vld [vmem:[#allocation29_spill] sm:$0xff]  ;;  %v12677_v58 = vld [vmem:[#allocation31_spill] sm:$0xff] }
 0x8e8   : > { %6350 = vmatmul.bf16.vlgmr.msra.gmra.mxu2 %v12022_v45 }
 0x8ea   : > { %v6127_v9 = vpop.f32.mrf.mxu3 }
 0x8eb   : > { %v6128_v10 = vadd.f32 %v6127_v9, %v6095_v5  ;;  %v6097_v6 = vpop.f32.mrf.mxu2 }
 0x8ec   : > { %v6033_v29 = vpop.f32.mrf.mxu0  ;;  %v6098_v35 = vadd.f32 %v6097_v6, %v6065_v55 }
 0x8ed   : > { %v6066_v0 = vpop.f32.mrf.mxu1  ;;  %v6414_v28 = vadd.f32 %v6128_v10, %v12672_v59  ;;  %v6034_v60 = vadd.f32 %v6033_v29, %v12273_v24 }
 0x8ef   : > { %6432 = vst [vmem:[%s9287_s19 + $0x30] sm:$0xff] %v6414_v28  ;;  %6383 = vmatmul.bf16.vlgmr.msra.gmra.mxu3 %v12042_v49  ;;  %v6067_v21 = vadd.f32 %v6066_v0, %v6034_v60 }
 0x8f2   : > { %v6130_v4 = vpop.f32.mrf.mxu3 }
 0x8f3   : > { %v6131_v45 = vadd.f32 %v6130_v4, %v6098_v35  ;;  %v6099_v51 = vpop.f32.mrf.mxu2 }
 0x8f4   : > { %v6036_v27 = vpop.f32.mrf.mxu0  ;;  %v6100_v49 = vadd.f32 %v6099_v51, %v6067_v21 }
 0x8f5   : > { %v6069_v40 = vpop.f32.mrf.mxu1  ;;  %v6416_v43 = vadd.f32 %v6131_v45, %v12673_v46  ;;  %v6037_v19 = vadd.f32 %v6036_v27, %v12287_v17  ;;  %v12675_v17 = vld [vmem:[#allocation27_spill] sm:$0xff] }
 0x8f7   : > { %6434 = vst [vmem:[%s9287_s19 + $0x40] sm:$0xff] %v6416_v43  ;;  %6289 = vmatmul.bf16.gmra.mxu0 %v11743_v20  ;;  %6322 = vmatmul.bf16.gmra.mxu1 %v11777_v34  ;;  %v6070_v39 = vadd.f32 %v6069_v40, %v6037_v19 }
 0x8f8   : > { %6355 = vmatmul.bf16.gmra.mxu2 %v12068_v23 }
 0x8fa   : > { %v6132_v16 = vpop.f32.mrf.mxu3 }
 0x8fb   : > { %v6133_v24 = vadd.f32 %v6132_v16, %v6100_v49  ;;  %v6102_v18 = vpop.f32.mrf.mxu2 }
 0x8fc   : > { %v6038_v48 = vpop.f32.mrf.mxu0  ;;  %v6103_v20 = vadd.f32 %v6102_v18, %v6070_v39 }
 0x8fd   : > { %v6071_v53 = vpop.f32.mrf.mxu1  ;;  %v6418_v2 = vadd.f32 %v6133_v24, %v12674_v12  ;;  %v6039_v34 = vadd.f32 %v6038_v48, %v12301_v13 }
 0x8ff   : > { %6436 = vst [vmem:[%s9287_s19 + $0x50] sm:$0xff] %v6418_v2  ;;  %6388 = vmatmul.bf16.gmra.mxu3 %v12099_v26  ;;  %v6072_v7 = vadd.f32 %v6071_v53, %v6039_v34 }
 0x902   : > { %v6135_v32 = vpop.f32.mrf.mxu3 }
 0x903   : > { %v6136_v23 = vadd.f32 %v6135_v32, %v6103_v20  ;;  %v6104_v56 = vpop.f32.mrf.mxu2 }
 0x904   : > { %v6041_v33 = vpop.f32.mrf.mxu0  ;;  %v6105_v26 = vadd.f32 %v6104_v56, %v6072_v7 }
 0x905   : > { %v6074_v50 = vpop.f32.mrf.mxu1  ;;  %v6420_v36 = vadd.f32 %v6136_v23, %v12675_v17  ;;  %v6042_v61 = vadd.f32 %v6041_v33, %v12322_v11 }
 0x907   : > { %6438 = vst [vmem:[%s9287_s19 + $0x60] sm:$0xff] %v6420_v36  ;;  %6294 = vmatmul.bf16.gmra.mxu0 %v11826_v63  ;;  %6327 = vmatmul.bf16.gmra.mxu1 %v11856_v54  ;;  %v6075_v52 = vadd.f32 %v6074_v50, %v6042_v61  ;;  %v12401_v54 = vperm.slane %v12148_v22, 1 }
 0x908   : > { %6360 = vmatmul.bf16.gmra.mxu2 %v12136_v3 }
 0x90a   : > { %v6137_v44 = vpop.f32.mrf.mxu3 }
 0x90b   : > { %v6138_v13 = vadd.f32 %v6137_v44, %v6105_v26  ;;  %v6107_v41 = vpop.f32.mrf.mxu2 }
 0x90c   : > { %v6043_v15 = vpop.f32.mrf.mxu0  ;;  %v6108_v63 = vadd.f32 %v6107_v41, %v6075_v52 }
 0x90d   : > { %v6076_v14 = vpop.f32.mrf.mxu1  ;;  %v6422_v8 = vadd.f32 %v6138_v13, %v12676_v1 }
 0x90f   : > { %6440 = vst [vmem:[%s9287_s19 + $0x70] sm:$0xff] %v6422_v8  ;;  %6393 = vmatmul.bf16.gmra.mxu3 %v12175_v57  ;;  %v12678_v57 = vld [vmem:[#allocation35_spill] sm:$0xff] }
 0x912   : > { %v6140_v3 = vpop.f32.mrf.mxu3 }
 0x913   : > { %v6141_v47 = vadd.f32 %v6140_v3, %v6108_v63  ;;  %v6109_v5 = vpop.f32.mrf.mxu2 }
 0x914   : > { %v6153_v9 = vpop.f32.mrf.mxu0 }
 0x915   : > { %v6186_v11 = vpop.f32.mrf.mxu1  ;;  %v6424_v10 = vadd.f32 %v6141_v47, %v12677_v58  ;;  %v6154_v6 = vadd.f32 %v6153_v9, %v12401_v54 }
 0x917   : > { %6442 = vst [vmem:[%s9287_s19 + $0x80] sm:$0x1] %v6424_v10  ;;  %v6187_v29 = vadd.f32 %v6186_v11, %v6154_v6  ;;  %6299 = vmatmul.bf16.gmra.mxu0 %v11960_v30  ;;  %6332 = vmatmul.bf16.gmra.mxu1 %v11984_v62 }
 0x918   : > { %6365 = vmatmul.bf16.gmra.mxu2 %v12678_v57 }
 0x91a   : > { %v6142_v0 = vpop.f32.mrf.mxu3 }
 0x91b   : > { %v6219_v22 = vpop.f32.mrf.mxu2 }
 0x91c   : > { %v6220_v59 = vadd.f32 %v6219_v22, %v6187_v29  ;;  %v6155_v28 = vpop.f32.mrf.mxu0 }
 0x91d   : > { %v6188_v55 = vpop.f32.mrf.mxu1  ;;  %v6156_v35 = vadd.f32 %v6155_v28, %v12401_v54 }
 0x91f   : > { %v6189_v4 = vadd.f32 %v6188_v55, %v6156_v35  ;;  %6398 = vmatmul.bf16.gmra.mxu3 %v12233_v31 }
 0x922   : > { %v6252_v60 = vpop.f32.mrf.mxu3 }
 0x923   : > { %v12411_v45 = vadd.f32 %v6252_v60, %v6220_v59  ;;  %v6221_v51 = vpop.f32.mrf.mxu2 }
 0x924   : > { %v6222_v27 = vadd.f32 %v6221_v51, %v6189_v4  ;;  %v6158_v30 = vpop.f32.mrf.mxu0 }
 0x925   : > { %v6191_v40 = vpop.f32.mrf.mxu1  ;;  %v6159_v62 = vadd.f32 %v6158_v30, %v12401_v54 }
 0x927   : > { %v6192_v46 = vadd.f32 %v6191_v40, %v6159_v62  ;;  %6304 = vmatmul.bf16.gmra.mxu0 %v12244_v38  ;;  %6337 = vmatmul.bf16.gmra.mxu1 %v12246_v37 }
 0x928   : > { %6370 = vmatmul.bf16.gmra.mxu2 %v12250_v42 }
 0x92a   : > { %v6254_v43 = vpop.f32.mrf.mxu3 }
 0x92b   : > { %v12417_v21 = vadd.f32 %v6254_v43, %v6222_v27  ;;  %v6224_v31 = vpop.f32.mrf.mxu2 }
 0x92c   : > { %v6225_v49 = vadd.f32 %v6224_v31, %v6192_v46  ;;  %v6160_v16 = vpop.f32.mrf.mxu0 }
 0x92d   : > { %v6193_v19 = vpop.f32.mrf.mxu1  ;;  %v6161_v24 = vadd.f32 %v6160_v16, %v12401_v54 }
 0x92f   : > { %v6194_v18 = vadd.f32 %v6193_v19, %v6161_v24  ;;  %6403 = vmatmul.bf16.gmra.mxu3 %v12257_v25 }
 0x932   : > { %v6257_v48 = vpop.f32.mrf.mxu3 }
 0x933   : > { %v12421_v53 = vadd.f32 %v6257_v48, %v6225_v49  ;;  %v6226_v38 = vpop.f32.mrf.mxu2 }
 0x934   : > { %v6227_v12 = vadd.f32 %v6226_v38, %v6194_v18  ;;  %v6163_v37 = vpop.f32.mrf.mxu0 }
 0x935   : > { %v6196_v2 = vpop.f32.mrf.mxu1  ;;  %v6164_v42 = vadd.f32 %v6163_v37, %v12401_v54 }
 0x937   : > { %v6197_v39 = vadd.f32 %v6196_v2, %v6164_v42 }
 0x93a   : > { %v6259_v20 = vpop.f32.mrf.mxu3 }
 0x93b   : > { %v12424_v32 = vadd.f32 %v6259_v20, %v6227_v12  ;;  %v6229_v34 = vpop.f32.mrf.mxu2  ;;  %v12679_v12 = vld [vmem:[#allocation17_spill] sm:$0xff] }
 0x93c   : > { %v6230_v23 = vadd.f32 %v6229_v34, %v6197_v39  ;;  %v6165_v56 = vpop.f32.mrf.mxu0 }
 0x93d   : > { %v6198_v33 = vpop.f32.mrf.mxu1  ;;  %v6166_v50 = vadd.f32 %v6165_v56, %v12401_v54 }
 0x93f   : > { %v6199_v25 = vadd.f32 %v6198_v33, %v6166_v50  ;;  %v12680_v33 = vld [vmem:[#allocation18_spill] sm:$0xff] }
 0x942   : > { %v6262_v17 = vpop.f32.mrf.mxu3 }
 0x943   : > { %v12427_v36 = vadd.f32 %v6262_v17, %v6230_v23  ;;  %v6231_v7 = vpop.f32.mrf.mxu2 }
 0x944   : > { %v6232_v26 = vadd.f32 %v6231_v7, %v6199_v25  ;;  %v6168_v44 = vpop.f32.mrf.mxu0 }
 0x945   : > { %v6201_v61 = vpop.f32.mrf.mxu1  ;;  %v6169_v13 = vadd.f32 %v6168_v44, %v12401_v54 }
 0x947   : > { %v6202_v41 = vadd.f32 %v6201_v61, %v6169_v13 }
 0x94a   : > { %v6264_v15 = vpop.f32.mrf.mxu3 }
 0x94b   : > { %v12430_v14 = vadd.f32 %v6264_v15, %v6232_v26  ;;  %v6234_v1 = vpop.f32.mrf.mxu2 }
 0x94c   : > { %v6235_v8 = vadd.f32 %v6234_v1, %v6202_v41  ;;  %v6170_v52 = vpop.f32.mrf.mxu0  ;;  %v12681_v41 = vld [vmem:[#allocation20_spill] sm:$0xff] }
 0x94d   : > { %v6203_v63 = vpop.f32.mrf.mxu1  ;;  %v6171_v3 = vadd.f32 %v6170_v52, %v12401_v54 }
 0x94f   : > { %v6204_v47 = vadd.f32 %v6203_v63, %v6171_v3 }
 0x952   : > { %v6267_v5 = vpop.f32.mrf.mxu3 }
 0x953   : > { %v12433_v9 = vadd.f32 %v6267_v5, %v6235_v8  ;;  %v6236_v11 = vpop.f32.mrf.mxu2 }
 0x954   : > { %v6237_v58 = vadd.f32 %v6236_v11, %v6204_v47  ;;  %v6173_v10 = vpop.f32.mrf.mxu0  ;;  %v12682_v11 = vld [vmem:[#allocation22_spill] sm:$0xff] }
 0x955   : > { %v6206_v6 = vpop.f32.mrf.mxu1  ;;  %v6174_v29 = vadd.f32 %v6173_v10, %v12401_v54 }
 0x957   : > { %v6207_v57 = vadd.f32 %v6206_v6, %v6174_v29 }
 0x95a   : > { %v6269_v0 = vpop.f32.mrf.mxu3 }
 0x95b   : > { %v12436_v22 = vadd.f32 %v6269_v0, %v6237_v58  ;;  %v6239_v59 = vpop.f32.mrf.mxu2 }
 0x95c   : > { %v6240_v28 = vadd.f32 %v6239_v59, %v6207_v57  ;;  %v6175_v55 = vpop.f32.mrf.mxu0 }
 0x95d   : > { %v6208_v35 = vpop.f32.mrf.mxu1  ;;  %v12683_v55 = vld [vmem:[#allocation24_spill] sm:$0xff] }
 0x962   : > { %v6272_v4 = vpop.f32.mrf.mxu3 }
 0x963   : > { %v12438_v60 = vadd.f32 %v6272_v4, %v6240_v28  ;;  %v6241_v51 = vpop.f32.mrf.mxu2 }
 0x964   : > { %v6285_v27 = vpop.f32.mrf.mxu0 }
 0x965   : > { %v6318_v30 = vpop.f32.mrf.mxu1  ;;  %v6286_v62 = vadd.f32 %v6285_v27, %v12411_v45 }
 0x967   : > { %v6319_v31 = vadd.f32 %v6318_v30, %v6286_v62 }
 0x96a   : > { %v6274_v40 = vpop.f32.mrf.mxu3 }
 0x96b   : > { %v6351_v46 = vpop.f32.mrf.mxu2 }
 0x96c   : > { %v6287_v54 = vpop.f32.mrf.mxu0  ;;  %v6352_v49 = vadd.f32 %v6351_v46, %v6319_v31 }
 0x96d   : > { %v6320_v43 = vpop.f32.mrf.mxu1  ;;  %v6288_v19 = vadd.f32 %v6287_v54, %v12417_v21  ;;  %v12684_v54 = vld [vmem:[#allocation26_spill] sm:$0xff] }
 0x96f   : > { %v6321_v2 = vadd.f32 %v6320_v43, %v6288_v19 }
 0x972   : > { %v6384_v16 = vpop.f32.mrf.mxu3 }
 0x973   : > { %v6385_v24 = vadd.f32 %v6384_v16, %v6352_v49  ;;  %v6353_v18 = vpop.f32.mrf.mxu2 }
 0x974   : > { %v6290_v48 = vpop.f32.mrf.mxu0  ;;  %v6354_v42 = vadd.f32 %v6353_v18, %v6321_v2 }
 0x975   : > { %v6323_v38 = vpop.f32.mrf.mxu1  ;;  %v6409_v37 = vadd.f32 %v6385_v24, %v12679_v12  ;;  %v6291_v45 = vadd.f32 %v6290_v48, %v12421_v53 }
 0x977   : > { %6427 = vst [vmem:[%s9287_s19 + $0x8] sm:$0xff] %v6409_v37  ;;  %v6324_v50 = vadd.f32 %v6323_v38, %v6291_v45  ;;  %v12685_v38 = vld [vmem:[#allocation28_spill] sm:$0xff] }
 0x97a   : > { %v6386_v39 = vpop.f32.mrf.mxu3 }
 0x97b   : > { %v6387_v20 = vadd.f32 %v6386_v39, %v6354_v42  ;;  %v6356_v34 = vpop.f32.mrf.mxu2 }
 0x97c   : > { %v6292_v23 = vpop.f32.mrf.mxu0  ;;  %v6357_v25 = vadd.f32 %v6356_v34, %v6324_v50 }
 0x97d   : > { %v6325_v56 = vpop.f32.mrf.mxu1  ;;  %v6411_v21 = vadd.f32 %v6387_v20, %v12680_v33  ;;  %v6293_v7 = vadd.f32 %v6292_v23, %v12424_v32  ;;  %v12686_v23 = vld [vmem:[#allocation30_spill] sm:$0xff] }
 0x97f   : > { %6429 = vst [vmem:[%s9287_s19 + $0x18] sm:$0xff] %v6411_v21  ;;  %v6326_v15 = vadd.f32 %v6325_v56, %v6293_v7 }
 0x982   : > { %v6389_v17 = vpop.f32.mrf.mxu3 }
 0x983   : > { %v6390_v26 = vadd.f32 %v6389_v17, %v6357_v25  ;;  %v6358_v44 = vpop.f32.mrf.mxu2  ;;  %v12687_v17 = vld [vmem:[#allocation32_spill] sm:$0xff] }
 0x984   : > { %v6295_v61 = vpop.f32.mrf.mxu0  ;;  %v6359_v1 = vadd.f32 %v6358_v44, %v6326_v15 }
 0x985   : > { %v6328_v13 = vpop.f32.mrf.mxu1  ;;  %v6413_v53 = vadd.f32 %v6390_v26, %v12681_v41  ;;  %v6296_v52 = vadd.f32 %v6295_v61, %v12427_v36 }
 0x987   : > { %6431 = vst [vmem:[%s9287_s19 + $0x28] sm:$0xff] %v6413_v53  ;;  %v6329_v58 = vadd.f32 %v6328_v13, %v6296_v52 }
 0x98a   : > { %v6391_v8 = vpop.f32.mrf.mxu3 }
 0x98b   : > { %v6392_v63 = vadd.f32 %v6391_v8, %v6359_v1  ;;  %v6361_v3 = vpop.f32.mrf.mxu2 }
 0x98c   : > { %v6297_v47 = vpop.f32.mrf.mxu0  ;;  %v6362_v10 = vadd.f32 %v6361_v3, %v6329_v58 }
 0x98d   : > { %v6330_v5 = vpop.f32.mrf.mxu1  ;;  %v6415_v32 = vadd.f32 %v6392_v63, %v12682_v11  ;;  %v6298_v29 = vadd.f32 %v6297_v47, %v12430_v14 }
 0x98f   : > { %6433 = vst [vmem:[%s9287_s19 + $0x38] sm:$0xff] %v6415_v32  ;;  %v6331_v35 = vadd.f32 %v6330_v5, %v6298_v29 }
 0x992   : > { %v6394_v6 = vpop.f32.mrf.mxu3 }
 0x993   : > { %v6395_v57 = vadd.f32 %v6394_v6, %v6362_v10  ;;  %v6363_v0 = vpop.f32.mrf.mxu2 }
 0x994   : > { %v6300_v59 = vpop.f32.mrf.mxu0  ;;  %v6364_v4 = vadd.f32 %v6363_v0, %v6331_v35 }
 0x995   : > { %v6333_v28 = vpop.f32.mrf.mxu1  ;;  %v6417_v36 = vadd.f32 %v6395_v57, %v12683_v55  ;;  %v6301_v27 = vadd.f32 %v6300_v59, %v12433_v9 }
 0x997   : > { %6435 = vst [vmem:[%s9287_s19 + $0x48] sm:$0xff] %v6417_v36  ;;  %v6334_v43 = vadd.f32 %v6333_v28, %v6301_v27 }
 0x99a   : > { %v6396_v51 = vpop.f32.mrf.mxu3 }
 0x99b   : > { %v6397_v30 = vadd.f32 %v6396_v51, %v6364_v4  ;;  %v6366_v40 = vpop.f32.mrf.mxu2 }
 0x99c   : > { %v6302_v62 = vpop.f32.mrf.mxu0  ;;  %v6367_v31 = vadd.f32 %v6366_v40, %v6334_v43 }
 0x99d   : > { %v6335_v46 = vpop.f32.mrf.mxu1  ;;  %v6419_v14 = vadd.f32 %v6397_v30, %v12684_v54  ;;  %v6303_v16 = vadd.f32 %v6302_v62, %v12436_v22 }
 0x99f   : > { %6437 = vst [vmem:[%s9287_s19 + $0x58] sm:$0xff] %v6419_v14  ;;  %v6336_v12 = vadd.f32 %v6335_v46, %v6303_v16 }
 0x9a2   : > { %v6399_v49 = vpop.f32.mrf.mxu3 }
 0x9a3   : > { %v6400_v19 = vadd.f32 %v6399_v49, %v6367_v31  ;;  %v6368_v24 = vpop.f32.mrf.mxu2 }
 0x9a4   : > { %v6305_v18 = vpop.f32.mrf.mxu0  ;;  %v6369_v37 = vadd.f32 %v6368_v24, %v6336_v12 }
 0x9a5   : > { %v6338_v48 = vpop.f32.mrf.mxu1  ;;  %v6421_v9 = vadd.f32 %v6400_v19, %v12685_v38  ;;  %v6306_v42 = vadd.f32 %v6305_v18, %v12438_v60 }
 0x9a7   : > { %6439 = vst [vmem:[%s9287_s19 + $0x68] sm:$0xff] %v6421_v9  ;;  %v6339_v56 = vadd.f32 %v6338_v48, %v6306_v42 }
 0x9aa   : > { %v6401_v2 = vpop.f32.mrf.mxu3 }
 0x9ab   : > { %v6402_v39 = vadd.f32 %v6401_v2, %v6369_v37  ;;  %v6371_v45 = vpop.f32.mrf.mxu2 }
 0x9ac   : > { %v6307_v20 = vpop.f32.mrf.mxu0  ;;  %v6372_v33 = vadd.f32 %v6371_v45, %v6339_v56 }
 0x9ad   : > { %v6340_v34 = vpop.f32.mrf.mxu1  ;;  %v6423_v22 = vadd.f32 %v6402_v39, %v12686_v23 }
 0x9af   : > { %6441 = vst [vmem:[%s9287_s19 + $0x78] sm:$0xff] %v6423_v22 }
 0x9b2   : > { %v6404_v21 = vpop.f32.mrf.mxu3 }
 0x9b3   : > { %v6405_v50 = vadd.f32 %v6404_v21, %v6372_v33  ;;  %v6373_v25 = vpop.f32.mrf.mxu2 }
 0x9b5   : > { %v6425_v7 = vadd.f32 %v6405_v50, %v12687_v17 }
 0x9b7   : > { %6443 = vst [vmem:[%s9287_s19 + $0x88] sm:$0x1] %v6425_v7 }
 0x9ba   : > { %v6406_v26 = vpop.f32.mrf.mxu3 }
 0x9bb PF: > { %s12688_s17 = sld [smem:[#allocation9_spill]] }
 0x9bc   : > { %s12689_s25 = sld [smem:[#allocation5_spill]] }
 0x9bd   : > { %s12690_s26 = sld [smem:[#allocation6_spill]] }
 0x9be   : > { %s12691_s27 = sld [smem:[#allocation12_spill]] }
 0x9bf   : > { %s12692_s28 = sld [smem:[#allocation7_spill]] }
 0x9c0   : > { %s12693_s29 = sld [smem:[#allocation8_spill]] }
 0x9c1   : > { %s26_s15 = sadd.s32 1, %s12688_s17   ;;  %s12694_s30 = sld [smem:[#allocation10_spill]] }
 0x9c2   : > { %p23_p3 = scmp.ge.s32.totalorder %s26_s15, 6   ;;  %s12695_s14 = sld [smem:[#allocation11_spill]] }
 0x9c4   :  { %25 = sbr.rel (!%p23_p3) target bundleno = 14 (0xe), region = 152 }
 0x9c9   :  { %6465 = vsyncpa [#allocation3], 1 }
 0x9ca   :  { %6467 = vsyncpa [#allocation3 + $0x1], 1 }

</bundles_post_ra>
